<compile_context>
chip_gen: v6e
topology: v6e:2x2x1
jax: 0.10.0
libtpu: 0.0.40
codegen_flags: <defaults>
</compile_context>

<pallas_src>
import functools

import jax
import jax.numpy as jnp
from jax.experimental import pallas as pl
from jax.experimental.pallas import tpu as pltpu

# --------------------------- synthetic config --------------------------------
BS = 2           # batch size
NW = 8           # number of windows (LSTM sequence length)
FS = 4           # data_params.main.input_size   (conv in-channels)
WS = 16          # data_params.main.window_size
LSTM_IN = 32     # lstm.input_feature_size (encoder output features)
HID = 32         # lstm.hidden_size (bidirectional: HID//2 per direction)
OUT = 4          # data_params.main.output_size
CNN_OUT = WS - 3 - 3 - 2          # 8   (after kernels 4, 4, 3, stride 1)
FINAL_CONV = 200 * CNN_OUT        # 1600


def _sigmoid(v):
    return 1.0 / (1.0 + jnp.exp(-v))         # exp/div -> EUP, overlaps matmul


# ------------------------------- fused kernel --------------------------------
def milc_kernel(x_ref, w1_ref, b1_ref, w2_ref, b2_ref, w3_ref, b3_ref,
                wf_ref, bf_ref,
                wih_ref, bih_ref, whhf_ref, whhb_ref,
                wa1_ref, ba1_ref, wa2_ref, ba2_ref,
                wd1_ref, bd1_ref, wd2_ref, bd2_ref,
                o_ref, *, bs, nw):
    # ---------------- encoder: 3x (im2col Conv1d + ReLU) + Linear ------------
    x = x_ref[...]                                         # (N=bs*nw, WS, FS) f32

    def conv_relu(h, w_ref, b_ref, k):
        lout = h.shape[1] - k + 1
        # im2col: lane-concat the k shifted slices -> one matmul, K = k*Cin.
        patches = jnp.concatenate(
            [h[:, dt:dt + lout, :] for dt in range(k)], axis=-1)   # (N,Lout,k*C)
        out = jnp.einsum('nlc,cd->nld',
                         patches.astype(jnp.bfloat16), w_ref[...],
                         preferred_element_type=jnp.float32)
        return jnp.maximum(out + b_ref[...], 0.0)

    h = conv_relu(x, w1_ref, b1_ref, 4)                    # (N, 13, 64)
    h = conv_relu(h, w2_ref, b2_ref, 4)                    # (N, 10, 128)
    h = conv_relu(h, w3_ref, b3_ref, 3)                    # (N,  8, 200)

    # Final Linear as a single K=1600 dot.  wf is pre-flattened on host with
    # row index t*200 + c, matching this lane-concat over conv positions
    # (which itself reproduces PyTorch's (C, L)-ordered Flatten).
    hflat = jnp.concatenate([h[:, t, :] for t in range(h.shape[1])],
                            axis=-1)                       # (N, 1600)
    enc = (jnp.dot(hflat.astype(jnp.bfloat16), wf_ref[...],
                   preferred_element_type=jnp.float32)
           + bf_ref[...])                                  # (N, LSTM_IN) f32

    # ---------------- bidirectional LSTM (batch_first, gates i,f,g,o) --------
    hh = whhf_ref.shape[0]                                 # hidden per direction
    hid = 2 * hh
    # Hoisted input projection for BOTH directions + combined biases:
    # one (16, 32) x (32, 128) matmul instead of 32 tiny ones in the loop.
    gx = (jnp.dot(enc, wih_ref[...], preferred_element_type=jnp.float32)
          + bih_ref[...])                                  # (N, 8*hh)
    gxf = gx[:, :4 * hh].reshape(bs, nw, 4 * hh)           # forward gate inputs
    gxb = gx[:, 4 * hh:].reshape(bs, nw, 4 * hh)           # backward gate inputs

    def lstm_step(gates_x, h_prev, c_prev, whh):
        g = gates_x + jnp.dot(h_prev, whh, preferred_element_type=jnp.float32)
        i = _sigmoid(g[:, 0 * hh:1 * hh])
        f = _sigmoid(g[:, 1 * hh:2 * hh])
        gg = jnp.tanh(g[:, 2 * hh:3 * hh])
        o = _sigmoid(g[:, 3 * hh:4 * hh])
        c = f * c_prev + i * gg
        return o * jnp.tanh(c), c

    whhf = whhf_ref[...]
    whhb = whhb_ref[...]
    hf = jnp.zeros((bs, hh), jnp.float32)
    cf = jnp.zeros((bs, hh), jnp.float32)
    hb = jnp.zeros((bs, hh), jnp.float32)
    cb = jnp.zeros((bs, hh), jnp.float32)
    outs_f = [None] * nw
    outs_b = [None] * nw
    # Interleave the two independent recurrences so their h@Whh matmuls and
    # sigmoid/tanh (EUP) work overlap instead of serializing.
    for t in range(nw):
        tb = nw - 1 - t
        hf, cf = lstm_step(gxf[:, t, :], hf, cf, whhf)
        hb, cb = lstm_step(gxb[:, tb, :], hb, cb, whhb)
        outs_f[t] = hf
        outs_b[tb] = hb
    # One dense assembly at the end instead of 16 strided half-lane stores.
    L = jnp.concatenate([jnp.stack(outs_f, axis=1),
                         jnp.stack(outs_b, axis=1)], axis=-1)   # (bs, nw, HID)

    # ---------------- attention (concat-with-last MLP + softmax) + decoder ---
    Lf = L.reshape(bs * nw, hid)                           # (16, HID) 2-D rows
    last = L[:, nw - 1, :]                                 # (bs, HID)
    wa1 = wa1_ref[...]                                     # (2*HID, 128)
    # attn Linear(2H,128): cat(X[i], X[-1]) @ W == X[i]@W[:H] + X[-1]@W[H:]
    part1 = jnp.dot(Lf, wa1[:hid, :], preferred_element_type=jnp.float32)
    part2 = jnp.dot(last, wa1[hid:, :], preferred_element_type=jnp.float32)
    hdd = jnp.maximum(part1.reshape(bs, nw, -1) + part2[:, None, :]
                      + ba1_ref[...], 0.0)                 # (bs, nw, 128)
    # attn Linear(128,1); softmax over the window axis (dim=1 after squeeze).
    s = (jnp.dot(hdd.reshape(bs * nw, -1), wa2_ref[...],
                 preferred_element_type=jnp.float32)
         + ba2_ref[...]).reshape(bs, nw, 1)
    m = jnp.max(s, axis=1, keepdims=True)
    e = jnp.exp(s - m)
    wn = e / jnp.sum(e, axis=1, keepdims=True)             # (bs, nw, 1)
    # bmm(weights[:,None,:], L) -> VPU broadcast-multiply + sublane reduce.
    attn = jnp.sum(wn * L, axis=1, keepdims=True)[:, 0, :]  # (bs, HID)

    # decoder: Linear(H,H) + ReLU + Linear(H,OUT)
    d = jnp.maximum(jnp.dot(attn, wd1_ref[...],
                            preferred_element_type=jnp.float32) + bd1_ref[...],
                    0.0)
    o_ref[...] = jnp.dot(d, wd2_ref[...],
                         preferred_element_type=jnp.float32) + bd2_ref[...]


# ------------------------------- wrapper --------------------------------------
def milc_forward(x, p):
    bs, nw, fs, ws = x.shape
    # Only non-kernel work left: a free reshape + 4 KB transpose to
    # channels-last (N, WS, FS).  Kept host-side (proven layout path); its cost
    # is negligible next to the fused kernel.
    xe = jnp.transpose(x.reshape(bs * nw, fs, ws), (0, 2, 1))

    n_in = 21
    vmem_specs = [pl.BlockSpec(memory_space=pltpu.MemorySpace.VMEM)
                  for _ in range(n_in)]
    kernel = functools.partial(milc_kernel, bs=bs, nw=nw)
    return pl.pallas_call(
        kernel,
        out_shape=jax.ShapeDtypeStruct((bs, OUT), jnp.float32),
        in_specs=vmem_specs,
        out_specs=pl.BlockSpec(memory_space=pltpu.MemorySpace.VMEM),
    )(xe,
      p['w1'], p['b1'], p['w2'], p['b2'], p['w3'], p['b3'], p['wf'], p['bf'],
      p['wih'], p['bih'], p['whh_f'], p['whh_b'],
      p['wa1'], p['ba1'], p['wa2'], p['ba2'],
      p['wd1'], p['bd1'], p['wd2'], p['bd2'])


# ------------------------- deterministic parameters ----------------------------
def init_params(key):
    keys = jax.random.split(key, 14)

    def nrm(k, shape, scale):
        return (scale * jax.random.normal(k, shape)).astype(jnp.float32)

    hh = HID // 2
    p = {}
    # Conv1d weights: PyTorch layout (Cout, Cin, K); generated here as
    # (K, Cin, Cout) and flattened to the im2col layout (K*Cin, Cout) with row
    # index dt*Cin + c.  Encoder matmul weights are stored bf16 (f32 accum).
    p['w1'] = nrm(keys[0], (4, FS, 64), 0.20).reshape(4 * FS, 64).astype(jnp.bfloat16)
    p['b1'] = jnp.zeros((1, 64), jnp.float32)
    p['w2'] = nrm(keys[1], (4, 64, 128), 0.10).reshape(4 * 64, 128).astype(jnp.bfloat16)
    p['b2'] = jnp.zeros((1, 128), jnp.float32)
    p['w3'] = nrm(keys[2], (3, 128, 200), 0.08).reshape(3 * 128, 200).astype(jnp.bfloat16)
    p['b3'] = jnp.zeros((1, 200), jnp.float32)
    # Encoder Linear: PyTorch weight is (LSTM_IN, FINAL_CONV) with flatten index
    # c*CNN_OUT + t (Flatten over (C, L)); take W.T, regroup to row index
    # t*200 + c so the kernel's lane-concat over conv positions matches.
    wf_t = nrm(keys[3], (FINAL_CONV, LSTM_IN), 0.05)
    p['wf'] = (jnp.transpose(wf_t.reshape(200, CNN_OUT, LSTM_IN), (1, 0, 2))
               .reshape(CNN_OUT * 200, LSTM_IN).astype(jnp.bfloat16))
    p['bf'] = jnp.zeros((1, LSTM_IN), jnp.float32)
    # Bidirectional LSTM (1 layer).  Weights stored transposed vs PyTorch,
    # gate order i,f,g,o, bias = bias_ih + bias_hh.  Input-projection weights /
    # biases of both directions are concatenated along the output (lane) axis
    # so the hoisted projection is a single matmul.  Kept f32 (v5e VPU/EUP).
    wih_f = nrm(keys[4], (LSTM_IN, 4 * hh), 0.12)
    whh_f = nrm(keys[5], (hh, 4 * hh), 0.12)
    b_f = nrm(keys[6], (1, 4 * hh), 0.05)
    wih_b = nrm(keys[7], (LSTM_IN, 4 * hh), 0.12)
    whh_b = nrm(keys[8], (hh, 4 * hh), 0.12)
    b_b = nrm(keys[9], (1, 4 * hh), 0.05)
    p['wih'] = jnp.concatenate([wih_f, wih_b], axis=1)    # (LSTM_IN, 8*hh)
    p['bih'] = jnp.concatenate([b_f, b_b], axis=1)        # (1, 8*hh)
    p['whh_f'] = whh_f
    p['whh_b'] = whh_b
    # Attention MLP: Linear(2*HID, 128) -> ReLU -> Linear(128, 1)
    p['wa1'] = nrm(keys[10], (2 * HID, 128), 0.10)
    p['ba1'] = jnp.zeros((1, 128), jnp.float32)
    p['wa2'] = nrm(keys[11], (128, 1), 0.10)
    p['ba2'] = jnp.zeros((1, 1), jnp.float32)
    # Decoder: Linear(HID, HID) -> ReLU -> Linear(HID, OUT)
    p['wd1'] = nrm(keys[12], (HID, HID), 0.12)
    p['bd1'] = jnp.zeros((1, HID), jnp.float32)
    p['wd2'] = nrm(keys[13], (HID, OUT), 0.12)
    p['bd2'] = jnp.zeros((1, OUT), jnp.float32)
    return p


if __name__ == "__main__":
    key = jax.random.PRNGKey(0)
    kx, kp = jax.random.split(key)
    x = jax.random.normal(kx, (BS, NW, FS, WS), dtype=jnp.float32)
    params = init_params(kp)

    logits = jax.jit(milc_forward)(x, params)
    jax.block_until_ready(logits)
    assert logits.shape == (BS, OUT)
    assert bool(jnp.all(jnp.isfinite(logits)))
    print("KERNEL_OK")
</pallas_src>

<mosaic_0001>
module attributes {stable_mosaic.version = 11 : i64} {
  func.func @milc_kernel(%arg0: memref<16x16x4xf32, #tpu.memory_space<vmem>>, %arg1: memref<16x64xbf16, #tpu.memory_space<vmem>>, %arg2: memref<1x64xf32, #tpu.memory_space<vmem>>, %arg3: memref<256x128xbf16, #tpu.memory_space<vmem>>, %arg4: memref<1x128xf32, #tpu.memory_space<vmem>>, %arg5: memref<384x200xbf16, #tpu.memory_space<vmem>>, %arg6: memref<1x200xf32, #tpu.memory_space<vmem>>, %arg7: memref<1600x32xbf16, #tpu.memory_space<vmem>>, %arg8: memref<1x32xf32, #tpu.memory_space<vmem>>, %arg9: memref<32x128xf32, #tpu.memory_space<vmem>>, %arg10: memref<1x128xf32, #tpu.memory_space<vmem>>, %arg11: memref<16x64xf32, #tpu.memory_space<vmem>>, %arg12: memref<16x64xf32, #tpu.memory_space<vmem>>, %arg13: memref<64x128xf32, #tpu.memory_space<vmem>>, %arg14: memref<1x128xf32, #tpu.memory_space<vmem>>, %arg15: memref<128x1xf32, #tpu.memory_space<vmem>>, %arg16: memref<1x1xf32, #tpu.memory_space<vmem>>, %arg17: memref<32x32xf32, #tpu.memory_space<vmem>>, %arg18: memref<1x32xf32, #tpu.memory_space<vmem>>, %arg19: memref<32x4xf32, #tpu.memory_space<vmem>>, %arg20: memref<1x4xf32, #tpu.memory_space<vmem>>, %arg21: memref<2x4xf32, #tpu.memory_space<vmem>>) attributes {dimension_semantics = [], scalar_prefetch = 0 : i64, scratch_operands = 0 : i64, tpu.core_type = #tpu.core_type<tc>} {
    %c0 = arith.constant 0 : index
    %c0_0 = arith.constant 0 : index
    %c0_1 = arith.constant 0 : index
    %0 = vector.load %arg0[%c0, %c0_0, %c0_1] : memref<16x16x4xf32, #tpu.memory_space<vmem>>, vector<16x16x4xf32>
    %1 = vector.extract_strided_slice %0 {offsets = [0, 0, 0], sizes = [16, 13, 4], strides = [1, 1, 1]} : vector<16x16x4xf32> to vector<16x13x4xf32>
    %2 = vector.extract_strided_slice %0 {offsets = [0, 1, 0], sizes = [16, 13, 4], strides = [1, 1, 1]} : vector<16x16x4xf32> to vector<16x13x4xf32>
    %3 = vector.extract_strided_slice %0 {offsets = [0, 2, 0], sizes = [16, 13, 4], strides = [1, 1, 1]} : vector<16x16x4xf32> to vector<16x13x4xf32>
    %4 = vector.extract_strided_slice %0 {offsets = [0, 3, 0], sizes = [16, 13, 4], strides = [1, 1, 1]} : vector<16x16x4xf32> to vector<16x13x4xf32>
    %5 = tpu.concatenate %1, %2, %3, %4 in 2 : vector<16x13x4xf32>, vector<16x13x4xf32>, vector<16x13x4xf32>, vector<16x13x4xf32> -> vector<16x13x16xf32>
    %6 = arith.truncf %5 : vector<16x13x16xf32> to vector<16x13x16xbf16>
    %c0_2 = arith.constant 0 : index
    %c0_3 = arith.constant 0 : index
    %7 = vector.load %arg1[%c0_2, %c0_3] : memref<16x64xbf16, #tpu.memory_space<vmem>>, vector<16x64xbf16>
    "tpu.trace_start"() <{level = 10 : i32, message = "nlc,cd->nld"}> : () -> ()
    %cst = arith.constant dense<0.000000e+00> : vector<16x13x64xf32>
    %8 = tpu.matmul %6, %7, %cst {dimension_numbers = #tpu.dot_dimension_numbers<[2], [0], [0, 1], [1], [0, 0, 0, 1, 1, 1], [], []>} : vector<16x13x16xbf16>, vector<16x64xbf16>, vector<16x13x64xf32> -> vector<16x13x64xf32>
    "tpu.trace_stop"() : () -> ()
    %c0_4 = arith.constant 0 : index
    %c0_5 = arith.constant 0 : index
    %9 = vector.load %arg2[%c0_4, %c0_5] : memref<1x64xf32, #tpu.memory_space<vmem>>, vector<1x64xf32>
    %10 = vector.shape_cast %9 : vector<1x64xf32> to vector<1x1x64xf32>
    %11 = vector.broadcast %10 : vector<1x1x64xf32> to vector<16x13x64xf32>
    %12 = arith.addf %8, %11 : vector<16x13x64xf32>
    %cst_6 = arith.constant 0.000000e+00 : f32
    %13 = vector.broadcast %cst_6 : f32 to vector<16x13x64xf32>
    %14 = arith.maximumf %12, %13 : vector<16x13x64xf32>
    %15 = vector.extract_strided_slice %14 {offsets = [0, 0, 0], sizes = [16, 10, 64], strides = [1, 1, 1]} : vector<16x13x64xf32> to vector<16x10x64xf32>
    %16 = vector.extract_strided_slice %14 {offsets = [0, 1, 0], sizes = [16, 10, 64], strides = [1, 1, 1]} : vector<16x13x64xf32> to vector<16x10x64xf32>
    %17 = vector.extract_strided_slice %14 {offsets = [0, 2, 0], sizes = [16, 10, 64], strides = [1, 1, 1]} : vector<16x13x64xf32> to vector<16x10x64xf32>
    %18 = vector.extract_strided_slice %14 {offsets = [0, 3, 0], sizes = [16, 10, 64], strides = [1, 1, 1]} : vector<16x13x64xf32> to vector<16x10x64xf32>
    %19 = tpu.concatenate %15, %16, %17, %18 in 2 : vector<16x10x64xf32>, vector<16x10x64xf32>, vector<16x10x64xf32>, vector<16x10x64xf32> -> vector<16x10x256xf32>
    %20 = arith.truncf %19 : vector<16x10x256xf32> to vector<16x10x256xbf16>
    %c0_7 = arith.constant 0 : index
    %c0_8 = arith.constant 0 : index
    %21 = vector.load %arg3[%c0_7, %c0_8] : memref<256x128xbf16, #tpu.memory_space<vmem>>, vector<256x128xbf16>
    "tpu.trace_start"() <{level = 10 : i32, message = "nlc,cd->nld"}> : () -> ()
    %cst_9 = arith.constant dense<0.000000e+00> : vector<16x10x128xf32>
    %22 = tpu.matmul %20, %21, %cst_9 {dimension_numbers = #tpu.dot_dimension_numbers<[2], [0], [0, 1], [1], [0, 0, 0, 1, 1, 1], [], []>} : vector<16x10x256xbf16>, vector<256x128xbf16>, vector<16x10x128xf32> -> vector<16x10x128xf32>
    "tpu.trace_stop"() : () -> ()
    %c0_10 = arith.constant 0 : index
    %c0_11 = arith.constant 0 : index
    %23 = vector.load %arg4[%c0_10, %c0_11] : memref<1x128xf32, #tpu.memory_space<vmem>>, vector<1x128xf32>
    %24 = vector.shape_cast %23 : vector<1x128xf32> to vector<1x1x128xf32>
    %25 = vector.broadcast %24 : vector<1x1x128xf32> to vector<16x10x128xf32>
    %26 = arith.addf %22, %25 : vector<16x10x128xf32>
    %cst_12 = arith.constant 0.000000e+00 : f32
    %27 = vector.broadcast %cst_12 : f32 to vector<16x10x128xf32>
    %28 = arith.maximumf %26, %27 : vector<16x10x128xf32>
    %29 = vector.extract_strided_slice %28 {offsets = [0, 0, 0], sizes = [16, 8, 128], strides = [1, 1, 1]} : vector<16x10x128xf32> to vector<16x8x128xf32>
    %30 = vector.extract_strided_slice %28 {offsets = [0, 1, 0], sizes = [16, 8, 128], strides = [1, 1, 1]} : vector<16x10x128xf32> to vector<16x8x128xf32>
    %31 = vector.extract_strided_slice %28 {offsets = [0, 2, 0], sizes = [16, 8, 128], strides = [1, 1, 1]} : vector<16x10x128xf32> to vector<16x8x128xf32>
    %32 = tpu.concatenate %29, %30, %31 in 2 : vector<16x8x128xf32>, vector<16x8x128xf32>, vector<16x8x128xf32> -> vector<16x8x384xf32>
    %33 = arith.truncf %32 : vector<16x8x384xf32> to vector<16x8x384xbf16>
    %c0_13 = arith.constant 0 : index
    %c0_14 = arith.constant 0 : index
    %34 = vector.load %arg5[%c0_13, %c0_14] : memref<384x200xbf16, #tpu.memory_space<vmem>>, vector<384x200xbf16>
    "tpu.trace_start"() <{level = 10 : i32, message = "nlc,cd->nld"}> : () -> ()
    %cst_15 = arith.constant dense<0.000000e+00> : vector<16x8x200xf32>
    %35 = tpu.matmul %33, %34, %cst_15 {dimension_numbers = #tpu.dot_dimension_numbers<[2], [0], [0, 1], [1], [0, 0, 0, 1, 1, 1], [], []>} : vector<16x8x384xbf16>, vector<384x200xbf16>, vector<16x8x200xf32> -> vector<16x8x200xf32>
    "tpu.trace_stop"() : () -> ()
    %c0_16 = arith.constant 0 : index
    %c0_17 = arith.constant 0 : index
    %36 = vector.load %arg6[%c0_16, %c0_17] : memref<1x200xf32, #tpu.memory_space<vmem>>, vector<1x200xf32>
    %37 = vector.shape_cast %36 : vector<1x200xf32> to vector<1x1x200xf32>
    %38 = vector.broadcast %37 : vector<1x1x200xf32> to vector<16x8x200xf32>
    %39 = arith.addf %35, %38 : vector<16x8x200xf32>
    %cst_18 = arith.constant 0.000000e+00 : f32
    %40 = vector.broadcast %cst_18 : f32 to vector<16x8x200xf32>
    %41 = arith.maximumf %39, %40 : vector<16x8x200xf32>
    %42 = vector.extract_strided_slice %41 {offsets = [0, 0, 0], sizes = [16, 1, 200], strides = [1, 1, 1]} : vector<16x8x200xf32> to vector<16x1x200xf32>
    %43 = vector.shape_cast %42 : vector<16x1x200xf32> to vector<16x200xf32>
    %44 = vector.extract_strided_slice %41 {offsets = [0, 1, 0], sizes = [16, 1, 200], strides = [1, 1, 1]} : vector<16x8x200xf32> to vector<16x1x200xf32>
    %45 = vector.shape_cast %44 : vector<16x1x200xf32> to vector<16x200xf32>
    %46 = vector.extract_strided_slice %41 {offsets = [0, 2, 0], sizes = [16, 1, 200], strides = [1, 1, 1]} : vector<16x8x200xf32> to vector<16x1x200xf32>
    %47 = vector.shape_cast %46 : vector<16x1x200xf32> to vector<16x200xf32>
    %48 = vector.extract_strided_slice %41 {offsets = [0, 3, 0], sizes = [16, 1, 200], strides = [1, 1, 1]} : vector<16x8x200xf32> to vector<16x1x200xf32>
    %49 = vector.shape_cast %48 : vector<16x1x200xf32> to vector<16x200xf32>
    %50 = vector.extract_strided_slice %41 {offsets = [0, 4, 0], sizes = [16, 1, 200], strides = [1, 1, 1]} : vector<16x8x200xf32> to vector<16x1x200xf32>
    %51 = vector.shape_cast %50 : vector<16x1x200xf32> to vector<16x200xf32>
    %52 = vector.extract_strided_slice %41 {offsets = [0, 5, 0], sizes = [16, 1, 200], strides = [1, 1, 1]} : vector<16x8x200xf32> to vector<16x1x200xf32>
    %53 = vector.shape_cast %52 : vector<16x1x200xf32> to vector<16x200xf32>
    %54 = vector.extract_strided_slice %41 {offsets = [0, 6, 0], sizes = [16, 1, 200], strides = [1, 1, 1]} : vector<16x8x200xf32> to vector<16x1x200xf32>
    %55 = vector.shape_cast %54 : vector<16x1x200xf32> to vector<16x200xf32>
    %56 = vector.extract_strided_slice %41 {offsets = [0, 7, 0], sizes = [16, 1, 200], strides = [1, 1, 1]} : vector<16x8x200xf32> to vector<16x1x200xf32>
    %57 = vector.shape_cast %56 : vector<16x1x200xf32> to vector<16x200xf32>
    %58 = tpu.concatenate %43, %45, %47, %49, %51, %53, %55, %57 in 1 : vector<16x200xf32>, vector<16x200xf32>, vector<16x200xf32>, vector<16x200xf32>, vector<16x200xf32>, vector<16x200xf32>, vector<16x200xf32>, vector<16x200xf32> -> vector<16x1600xf32>
    %59 = arith.truncf %58 : vector<16x1600xf32> to vector<16x1600xbf16>
    %c0_19 = arith.constant 0 : index
    %c0_20 = arith.constant 0 : index
    %60 = vector.load %arg7[%c0_19, %c0_20] : memref<1600x32xbf16, #tpu.memory_space<vmem>>, vector<1600x32xbf16>
    %cst_21 = arith.constant dense<0.000000e+00> : vector<16x32xf32>
    %61 = tpu.matmul %59, %60, %cst_21 {dimension_numbers = #tpu.dot_dimension_numbers<[1], [0], [0], [1], [0, 0, 1, 1], [], []>} : vector<16x1600xbf16>, vector<1600x32xbf16>, vector<16x32xf32> -> vector<16x32xf32>
    %c0_22 = arith.constant 0 : index
    %c0_23 = arith.constant 0 : index
    %62 = vector.load %arg8[%c0_22, %c0_23] : memref<1x32xf32, #tpu.memory_space<vmem>>, vector<1x32xf32>
    %63 = vector.broadcast %62 : vector<1x32xf32> to vector<16x32xf32>
    %64 = arith.addf %61, %63 : vector<16x32xf32>
    %c0_24 = arith.constant 0 : index
    %c0_25 = arith.constant 0 : index
    %65 = vector.load %arg9[%c0_24, %c0_25] : memref<32x128xf32, #tpu.memory_space<vmem>>, vector<32x128xf32>
    %cst_26 = arith.constant dense<0.000000e+00> : vector<16x128xf32>
    %66 = tpu.matmul %64, %65, %cst_26 {dimension_numbers = #tpu.dot_dimension_numbers<[1], [0], [0], [1], [0, 0, 1, 1], [], []>} : vector<16x32xf32>, vector<32x128xf32>, vector<16x128xf32> -> vector<16x128xf32>
    %c0_27 = arith.constant 0 : index
    %c0_28 = arith.constant 0 : index
    %67 = vector.load %arg10[%c0_27, %c0_28] : memref<1x128xf32, #tpu.memory_space<vmem>>, vector<1x128xf32>
    %68 = vector.broadcast %67 : vector<1x128xf32> to vector<16x128xf32>
    %69 = arith.addf %66, %68 : vector<16x128xf32>
    %70 = vector.extract_strided_slice %69 {offsets = [0, 0], sizes = [16, 64], strides = [1, 1]} : vector<16x128xf32> to vector<16x64xf32>
    %71 = vector.shape_cast %70 : vector<16x64xf32> to vector<2x8x64xf32>
    %72 = vector.extract_strided_slice %69 {offsets = [0, 64], sizes = [16, 64], strides = [1, 1]} : vector<16x128xf32> to vector<16x64xf32>
    %73 = vector.shape_cast %72 : vector<16x64xf32> to vector<2x8x64xf32>
    %c0_29 = arith.constant 0 : index
    %c0_30 = arith.constant 0 : index
    %74 = vector.load %arg11[%c0_29, %c0_30] : memref<16x64xf32, #tpu.memory_space<vmem>>, vector<16x64xf32>
    %c0_31 = arith.constant 0 : index
    %c0_32 = arith.constant 0 : index
    %75 = vector.load %arg12[%c0_31, %c0_32] : memref<16x64xf32, #tpu.memory_space<vmem>>, vector<16x64xf32>
    %cst_33 = arith.constant 0.000000e+00 : f32
    %76 = vector.broadcast %cst_33 : f32 to vector<2x16xf32>
    %cst_34 = arith.constant 0.000000e+00 : f32
    %77 = vector.broadcast %cst_34 : f32 to vector<2x16xf32>
    %cst_35 = arith.constant 0.000000e+00 : f32
    %78 = vector.broadcast %cst_35 : f32 to vector<2x16xf32>
    %cst_36 = arith.constant 0.000000e+00 : f32
    %79 = vector.broadcast %cst_36 : f32 to vector<2x16xf32>
    %80 = vector.extract_strided_slice %71 {offsets = [0, 0, 0], sizes = [2, 1, 64], strides = [1, 1, 1]} : vector<2x8x64xf32> to vector<2x1x64xf32>
    %81 = vector.shape_cast %80 : vector<2x1x64xf32> to vector<2x64xf32>
    %cst_37 = arith.constant dense<0.000000e+00> : vector<2x64xf32>
    %82 = tpu.matmul %76, %74, %cst_37 {dimension_numbers = #tpu.dot_dimension_numbers<[1], [0], [0], [1], [0, 0, 1, 1], [], []>} : vector<2x16xf32>, vector<16x64xf32>, vector<2x64xf32> -> vector<2x64xf32>
    %83 = arith.addf %81, %82 : vector<2x64xf32>
    %84 = vector.extract_strided_slice %83 {offsets = [0, 0], sizes = [2, 16], strides = [1, 1]} : vector<2x64xf32> to vector<2x16xf32>
    %cst_38 = arith.constant 0.000000e+00 : f32
    %85 = vector.broadcast %cst_38 : f32 to vector<2x16xf32>
    %86 = arith.subf %85, %84 : vector<2x16xf32>
    %87 = math.exp %86 : vector<2x16xf32>
    %cst_39 = arith.constant 1.000000e+00 : f32
    %88 = vector.broadcast %cst_39 : f32 to vector<2x16xf32>
    %89 = arith.addf %88, %87 : vector<2x16xf32>
    %cst_40 = arith.constant 1.000000e+00 : f32
    %90 = vector.broadcast %cst_40 : f32 to vector<2x16xf32>
    %91 = arith.divf %90, %89 : vector<2x16xf32>
    %92 = vector.extract_strided_slice %83 {offsets = [0, 16], sizes = [2, 16], strides = [1, 1]} : vector<2x64xf32> to vector<2x16xf32>
    %cst_41 = arith.constant 0.000000e+00 : f32
    %93 = vector.broadcast %cst_41 : f32 to vector<2x16xf32>
    %94 = arith.subf %93, %92 : vector<2x16xf32>
    %95 = math.exp %94 : vector<2x16xf32>
    %cst_42 = arith.constant 1.000000e+00 : f32
    %96 = vector.broadcast %cst_42 : f32 to vector<2x16xf32>
    %97 = arith.addf %96, %95 : vector<2x16xf32>
    %cst_43 = arith.constant 1.000000e+00 : f32
    %98 = vector.broadcast %cst_43 : f32 to vector<2x16xf32>
    %99 = arith.divf %98, %97 : vector<2x16xf32>
    %100 = vector.extract_strided_slice %83 {offsets = [0, 32], sizes = [2, 16], strides = [1, 1]} : vector<2x64xf32> to vector<2x16xf32>
    %101 = math.tanh %100 : vector<2x16xf32>
    %102 = vector.extract_strided_slice %83 {offsets = [0, 48], sizes = [2, 16], strides = [1, 1]} : vector<2x64xf32> to vector<2x16xf32>
    %cst_44 = arith.constant 0.000000e+00 : f32
    %103 = vector.broadcast %cst_44 : f32 to vector<2x16xf32>
    %104 = arith.subf %103, %102 : vector<2x16xf32>
    %105 = math.exp %104 : vector<2x16xf32>
    %cst_45 = arith.constant 1.000000e+00 : f32
    %106 = vector.broadcast %cst_45 : f32 to vector<2x16xf32>
    %107 = arith.addf %106, %105 : vector<2x16xf32>
    %cst_46 = arith.constant 1.000000e+00 : f32
    %108 = vector.broadcast %cst_46 : f32 to vector<2x16xf32>
    %109 = arith.divf %108, %107 : vector<2x16xf32>
    %110 = arith.mulf %99, %77 : vector<2x16xf32>
    %111 = arith.mulf %91, %101 : vector<2x16xf32>
    %112 = arith.addf %110, %111 : vector<2x16xf32>
    %113 = math.tanh %112 : vector<2x16xf32>
    %114 = arith.mulf %109, %113 : vector<2x16xf32>
    %115 = vector.extract_strided_slice %73 {offsets = [0, 7, 0], sizes = [2, 1, 64], strides = [1, 1, 1]} : vector<2x8x64xf32> to vector<2x1x64xf32>
    %116 = vector.shape_cast %115 : vector<2x1x64xf32> to vector<2x64xf32>
    %cst_47 = arith.constant dense<0.000000e+00> : vector<2x64xf32>
    %117 = tpu.matmul %78, %75, %cst_47 {dimension_numbers = #tpu.dot_dimension_numbers<[1], [0], [0], [1], [0, 0, 1, 1], [], []>} : vector<2x16xf32>, vector<16x64xf32>, vector<2x64xf32> -> vector<2x64xf32>
    %118 = arith.addf %116, %117 : vector<2x64xf32>
    %119 = vector.extract_strided_slice %118 {offsets = [0, 0], sizes = [2, 16], strides = [1, 1]} : vector<2x64xf32> to vector<2x16xf32>
    %cst_48 = arith.constant 0.000000e+00 : f32
    %120 = vector.broadcast %cst_48 : f32 to vector<2x16xf32>
    %121 = arith.subf %120, %119 : vector<2x16xf32>
    %122 = math.exp %121 : vector<2x16xf32>
    %cst_49 = arith.constant 1.000000e+00 : f32
    %123 = vector.broadcast %cst_49 : f32 to vector<2x16xf32>
    %124 = arith.addf %123, %122 : vector<2x16xf32>
    %cst_50 = arith.constant 1.000000e+00 : f32
    %125 = vector.broadcast %cst_50 : f32 to vector<2x16xf32>
    %126 = arith.divf %125, %124 : vector<2x16xf32>
    %127 = vector.extract_strided_slice %118 {offsets = [0, 16], sizes = [2, 16], strides = [1, 1]} : vector<2x64xf32> to vector<2x16xf32>
    %cst_51 = arith.constant 0.000000e+00 : f32
    %128 = vector.broadcast %cst_51 : f32 to vector<2x16xf32>
    %129 = arith.subf %128, %127 : vector<2x16xf32>
    %130 = math.exp %129 : vector<2x16xf32>
    %cst_52 = arith.constant 1.000000e+00 : f32
    %131 = vector.broadcast %cst_52 : f32 to vector<2x16xf32>
    %132 = arith.addf %131, %130 : vector<2x16xf32>
    %cst_53 = arith.constant 1.000000e+00 : f32
    %133 = vector.broadcast %cst_53 : f32 to vector<2x16xf32>
    %134 = arith.divf %133, %132 : vector<2x16xf32>
    %135 = vector.extract_strided_slice %118 {offsets = [0, 32], sizes = [2, 16], strides = [1, 1]} : vector<2x64xf32> to vector<2x16xf32>
    %136 = math.tanh %135 : vector<2x16xf32>
    %137 = vector.extract_strided_slice %118 {offsets = [0, 48], sizes = [2, 16], strides = [1, 1]} : vector<2x64xf32> to vector<2x16xf32>
    %cst_54 = arith.constant 0.000000e+00 : f32
    %138 = vector.broadcast %cst_54 : f32 to vector<2x16xf32>
    %139 = arith.subf %138, %137 : vector<2x16xf32>
    %140 = math.exp %139 : vector<2x16xf32>
    %cst_55 = arith.constant 1.000000e+00 : f32
    %141 = vector.broadcast %cst_55 : f32 to vector<2x16xf32>
    %142 = arith.addf %141, %140 : vector<2x16xf32>
    %cst_56 = arith.constant 1.000000e+00 : f32
    %143 = vector.broadcast %cst_56 : f32 to vector<2x16xf32>
    %144 = arith.divf %143, %142 : vector<2x16xf32>
    %145 = arith.mulf %134, %79 : vector<2x16xf32>
    %146 = arith.mulf %126, %136 : vector<2x16xf32>
    %147 = arith.addf %145, %146 : vector<2x16xf32>
    %148 = math.tanh %147 : vector<2x16xf32>
    %149 = arith.mulf %144, %148 : vector<2x16xf32>
    %150 = vector.extract_strided_slice %71 {offsets = [0, 1, 0], sizes = [2, 1, 64], strides = [1, 1, 1]} : vector<2x8x64xf32> to vector<2x1x64xf32>
    %151 = vector.shape_cast %150 : vector<2x1x64xf32> to vector<2x64xf32>
    %cst_57 = arith.constant dense<0.000000e+00> : vector<2x64xf32>
    %152 = tpu.matmul %114, %74, %cst_57 {dimension_numbers = #tpu.dot_dimension_numbers<[1], [0], [0], [1], [0, 0, 1, 1], [], []>} : vector<2x16xf32>, vector<16x64xf32>, vector<2x64xf32> -> vector<2x64xf32>
    %153 = arith.addf %151, %152 : vector<2x64xf32>
    %154 = vector.extract_strided_slice %153 {offsets = [0, 0], sizes = [2, 16], strides = [1, 1]} : vector<2x64xf32> to vector<2x16xf32>
    %cst_58 = arith.constant 0.000000e+00 : f32
    %155 = vector.broadcast %cst_58 : f32 to vector<2x16xf32>
    %156 = arith.subf %155, %154 : vector<2x16xf32>
    %157 = math.exp %156 : vector<2x16xf32>
    %cst_59 = arith.constant 1.000000e+00 : f32
    %158 = vector.broadcast %cst_59 : f32 to vector<2x16xf32>
    %159 = arith.addf %158, %157 : vector<2x16xf32>
    %cst_60 = arith.constant 1.000000e+00 : f32
    %160 = vector.broadcast %cst_60 : f32 to vector<2x16xf32>
    %161 = arith.divf %160, %159 : vector<2x16xf32>
    %162 = vector.extract_strided_slice %153 {offsets = [0, 16], sizes = [2, 16], strides = [1, 1]} : vector<2x64xf32> to vector<2x16xf32>
    %cst_61 = arith.constant 0.000000e+00 : f32
    %163 = vector.broadcast %cst_61 : f32 to vector<2x16xf32>
    %164 = arith.subf %163, %162 : vector<2x16xf32>
    %165 = math.exp %164 : vector<2x16xf32>
    %cst_62 = arith.constant 1.000000e+00 : f32
    %166 = vector.broadcast %cst_62 : f32 to vector<2x16xf32>
    %167 = arith.addf %166, %165 : vector<2x16xf32>
    %cst_63 = arith.constant 1.000000e+00 : f32
    %168 = vector.broadcast %cst_63 : f32 to vector<2x16xf32>
    %169 = arith.divf %168, %167 : vector<2x16xf32>
    %170 = vector.extract_strided_slice %153 {offsets = [0, 32], sizes = [2, 16], strides = [1, 1]} : vector<2x64xf32> to vector<2x16xf32>
    %171 = math.tanh %170 : vector<2x16xf32>
    %172 = vector.extract_strided_slice %153 {offsets = [0, 48], sizes = [2, 16], strides = [1, 1]} : vector<2x64xf32> to vector<2x16xf32>
    %cst_64 = arith.constant 0.000000e+00 : f32
    %173 = vector.broadcast %cst_64 : f32 to vector<2x16xf32>
    %174 = arith.subf %173, %172 : vector<2x16xf32>
    %175 = math.exp %174 : vector<2x16xf32>
    %cst_65 = arith.constant 1.000000e+00 : f32
    %176 = vector.broadcast %cst_65 : f32 to vector<2x16xf32>
    %177 = arith.addf %176, %175 : vector<2x16xf32>
    %cst_66 = arith.constant 1.000000e+00 : f32
    %178 = vector.broadcast %cst_66 : f32 to vector<2x16xf32>
    %179 = arith.divf %178, %177 : vector<2x16xf32>
    %180 = arith.mulf %169, %112 : vector<2x16xf32>
    %181 = arith.mulf %161, %171 : vector<2x16xf32>
    %182 = arith.addf %180, %181 : vector<2x16xf32>
    %183 = math.tanh %182 : vector<2x16xf32>
    %184 = arith.mulf %179, %183 : vector<2x16xf32>
    %185 = vector.extract_strided_slice %73 {offsets = [0, 6, 0], sizes = [2, 1, 64], strides = [1, 1, 1]} : vector<2x8x64xf32> to vector<2x1x64xf32>
    %186 = vector.shape_cast %185 : vector<2x1x64xf32> to vector<2x64xf32>
    %cst_67 = arith.constant dense<0.000000e+00> : vector<2x64xf32>
    %187 = tpu.matmul %149, %75, %cst_67 {dimension_numbers = #tpu.dot_dimension_numbers<[1], [0], [0], [1], [0, 0, 1, 1], [], []>} : vector<2x16xf32>, vector<16x64xf32>, vector<2x64xf32> -> vector<2x64xf32>
    %188 = arith.addf %186, %187 : vector<2x64xf32>
    %189 = vector.extract_strided_slice %188 {offsets = [0, 0], sizes = [2, 16], strides = [1, 1]} : vector<2x64xf32> to vector<2x16xf32>
    %cst_68 = arith.constant 0.000000e+00 : f32
    %190 = vector.broadcast %cst_68 : f32 to vector<2x16xf32>
    %191 = arith.subf %190, %189 : vector<2x16xf32>
    %192 = math.exp %191 : vector<2x16xf32>
    %cst_69 = arith.constant 1.000000e+00 : f32
    %193 = vector.broadcast %cst_69 : f32 to vector<2x16xf32>
    %194 = arith.addf %193, %192 : vector<2x16xf32>
    %cst_70 = arith.constant 1.000000e+00 : f32
    %195 = vector.broadcast %cst_70 : f32 to vector<2x16xf32>
    %196 = arith.divf %195, %194 : vector<2x16xf32>
    %197 = vector.extract_strided_slice %188 {offsets = [0, 16], sizes = [2, 16], strides = [1, 1]} : vector<2x64xf32> to vector<2x16xf32>
    %cst_71 = arith.constant 0.000000e+00 : f32
    %198 = vector.broadcast %cst_71 : f32 to vector<2x16xf32>
    %199 = arith.subf %198, %197 : vector<2x16xf32>
    %200 = math.exp %199 : vector<2x16xf32>
    %cst_72 = arith.constant 1.000000e+00 : f32
    %201 = vector.broadcast %cst_72 : f32 to vector<2x16xf32>
    %202 = arith.addf %201, %200 : vector<2x16xf32>
    %cst_73 = arith.constant 1.000000e+00 : f32
    %203 = vector.broadcast %cst_73 : f32 to vector<2x16xf32>
    %204 = arith.divf %203, %202 : vector<2x16xf32>
    %205 = vector.extract_strided_slice %188 {offsets = [0, 32], sizes = [2, 16], strides = [1, 1]} : vector<2x64xf32> to vector<2x16xf32>
    %206 = math.tanh %205 : vector<2x16xf32>
    %207 = vector.extract_strided_slice %188 {offsets = [0, 48], sizes = [2, 16], strides = [1, 1]} : vector<2x64xf32> to vector<2x16xf32>
    %cst_74 = arith.constant 0.000000e+00 : f32
    %208 = vector.broadcast %cst_74 : f32 to vector<2x16xf32>
    %209 = arith.subf %208, %207 : vector<2x16xf32>
    %210 = math.exp %209 : vector<2x16xf32>
    %cst_75 = arith.constant 1.000000e+00 : f32
    %211 = vector.broadcast %cst_75 : f32 to vector<2x16xf32>
    %212 = arith.addf %211, %210 : vector<2x16xf32>
    %cst_76 = arith.constant 1.000000e+00 : f32
    %213 = vector.broadcast %cst_76 : f32 to vector<2x16xf32>
    %214 = arith.divf %213, %212 : vector<2x16xf32>
    %215 = arith.mulf %204, %147 : vector<2x16xf32>
    %216 = arith.mulf %196, %206 : vector<2x16xf32>
    %217 = arith.addf %215, %216 : vector<2x16xf32>
    %218 = math.tanh %217 : vector<2x16xf32>
    %219 = arith.mulf %214, %218 : vector<2x16xf32>
    %220 = vector.extract_strided_slice %71 {offsets = [0, 2, 0], sizes = [2, 1, 64], strides = [1, 1, 1]} : vector<2x8x64xf32> to vector<2x1x64xf32>
    %221 = vector.shape_cast %220 : vector<2x1x64xf32> to vector<2x64xf32>
    %cst_77 = arith.constant dense<0.000000e+00> : vector<2x64xf32>
    %222 = tpu.matmul %184, %74, %cst_77 {dimension_numbers = #tpu.dot_dimension_numbers<[1], [0], [0], [1], [0, 0, 1, 1], [], []>} : vector<2x16xf32>, vector<16x64xf32>, vector<2x64xf32> -> vector<2x64xf32>
    %223 = arith.addf %221, %222 : vector<2x64xf32>
    %224 = vector.extract_strided_slice %223 {offsets = [0, 0], sizes = [2, 16], strides = [1, 1]} : vector<2x64xf32> to vector<2x16xf32>
    %cst_78 = arith.constant 0.000000e+00 : f32
    %225 = vector.broadcast %cst_78 : f32 to vector<2x16xf32>
    %226 = arith.subf %225, %224 : vector<2x16xf32>
    %227 = math.exp %226 : vector<2x16xf32>
    %cst_79 = arith.constant 1.000000e+00 : f32
    %228 = vector.broadcast %cst_79 : f32 to vector<2x16xf32>
    %229 = arith.addf %228, %227 : vector<2x16xf32>
    %cst_80 = arith.constant 1.000000e+00 : f32
    %230 = vector.broadcast %cst_80 : f32 to vector<2x16xf32>
    %231 = arith.divf %230, %229 : vector<2x16xf32>
    %232 = vector.extract_strided_slice %223 {offsets = [0, 16], sizes = [2, 16], strides = [1, 1]} : vector<2x64xf32> to vector<2x16xf32>
    %cst_81 = arith.constant 0.000000e+00 : f32
    %233 = vector.broadcast %cst_81 : f32 to vector<2x16xf32>
    %234 = arith.subf %233, %232 : vector<2x16xf32>
    %235 = math.exp %234 : vector<2x16xf32>
    %cst_82 = arith.constant 1.000000e+00 : f32
    %236 = vector.broadcast %cst_82 : f32 to vector<2x16xf32>
    %237 = arith.addf %236, %235 : vector<2x16xf32>
    %cst_83 = arith.constant 1.000000e+00 : f32
    %238 = vector.broadcast %cst_83 : f32 to vector<2x16xf32>
    %239 = arith.divf %238, %237 : vector<2x16xf32>
    %240 = vector.extract_strided_slice %223 {offsets = [0, 32], sizes = [2, 16], strides = [1, 1]} : vector<2x64xf32> to vector<2x16xf32>
    %241 = math.tanh %240 : vector<2x16xf32>
    %242 = vector.extract_strided_slice %223 {offsets = [0, 48], sizes = [2, 16], strides = [1, 1]} : vector<2x64xf32> to vector<2x16xf32>
    %cst_84 = arith.constant 0.000000e+00 : f32
    %243 = vector.broadcast %cst_84 : f32 to vector<2x16xf32>
    %244 = arith.subf %243, %242 : vector<2x16xf32>
    %245 = math.exp %244 : vector<2x16xf32>
    %cst_85 = arith.constant 1.000000e+00 : f32
    %246 = vector.broadcast %cst_85 : f32 to vector<2x16xf32>
    %247 = arith.addf %246, %245 : vector<2x16xf32>
    %cst_86 = arith.constant 1.000000e+00 : f32
    %248 = vector.broadcast %cst_86 : f32 to vector<2x16xf32>
    %249 = arith.divf %248, %247 : vector<2x16xf32>
    %250 = arith.mulf %239, %182 : vector<2x16xf32>
    %251 = arith.mulf %231, %241 : vector<2x16xf32>
    %252 = arith.addf %250, %251 : vector<2x16xf32>
    %253 = math.tanh %252 : vector<2x16xf32>
    %254 = arith.mulf %249, %253 : vector<2x16xf32>
    %255 = vector.extract_strided_slice %73 {offsets = [0, 5, 0], sizes = [2, 1, 64], strides = [1, 1, 1]} : vector<2x8x64xf32> to vector<2x1x64xf32>
    %256 = vector.shape_cast %255 : vector<2x1x64xf32> to vector<2x64xf32>
    %cst_87 = arith.constant dense<0.000000e+00> : vector<2x64xf32>
    %257 = tpu.matmul %219, %75, %cst_87 {dimension_numbers = #tpu.dot_dimension_numbers<[1], [0], [0], [1], [0, 0, 1, 1], [], []>} : vector<2x16xf32>, vector<16x64xf32>, vector<2x64xf32> -> vector<2x64xf32>
    %258 = arith.addf %256, %257 : vector<2x64xf32>
    %259 = vector.extract_strided_slice %258 {offsets = [0, 0], sizes = [2, 16], strides = [1, 1]} : vector<2x64xf32> to vector<2x16xf32>
    %cst_88 = arith.constant 0.000000e+00 : f32
    %260 = vector.broadcast %cst_88 : f32 to vector<2x16xf32>
    %261 = arith.subf %260, %259 : vector<2x16xf32>
    %262 = math.exp %261 : vector<2x16xf32>
    %cst_89 = arith.constant 1.000000e+00 : f32
    %263 = vector.broadcast %cst_89 : f32 to vector<2x16xf32>
    %264 = arith.addf %263, %262 : vector<2x16xf32>
    %cst_90 = arith.constant 1.000000e+00 : f32
    %265 = vector.broadcast %cst_90 : f32 to vector<2x16xf32>
    %266 = arith.divf %265, %264 : vector<2x16xf32>
    %267 = vector.extract_strided_slice %258 {offsets = [0, 16], sizes = [2, 16], strides = [1, 1]} : vector<2x64xf32> to vector<2x16xf32>
    %cst_91 = arith.constant 0.000000e+00 : f32
    %268 = vector.broadcast %cst_91 : f32 to vector<2x16xf32>
    %269 = arith.subf %268, %267 : vector<2x16xf32>
    %270 = math.exp %269 : vector<2x16xf32>
    %cst_92 = arith.constant 1.000000e+00 : f32
    %271 = vector.broadcast %cst_92 : f32 to vector<2x16xf32>
    %272 = arith.addf %271, %270 : vector<2x16xf32>
    %cst_93 = arith.constant 1.000000e+00 : f32
    %273 = vector.broadcast %cst_93 : f32 to vector<2x16xf32>
    %274 = arith.divf %273, %272 : vector<2x16xf32>
    %275 = vector.extract_strided_slice %258 {offsets = [0, 32], sizes = [2, 16], strides = [1, 1]} : vector<2x64xf32> to vector<2x16xf32>
    %276 = math.tanh %275 : vector<2x16xf32>
    %277 = vector.extract_strided_slice %258 {offsets = [0, 48], sizes = [2, 16], strides = [1, 1]} : vector<2x64xf32> to vector<2x16xf32>
    %cst_94 = arith.constant 0.000000e+00 : f32
    %278 = vector.broadcast %cst_94 : f32 to vector<2x16xf32>
    %279 = arith.subf %278, %277 : vector<2x16xf32>
    %280 = math.exp %279 : vector<2x16xf32>
    %cst_95 = arith.constant 1.000000e+00 : f32
    %281 = vector.broadcast %cst_95 : f32 to vector<2x16xf32>
    %282 = arith.addf %281, %280 : vector<2x16xf32>
    %cst_96 = arith.constant 1.000000e+00 : f32
    %283 = vector.broadcast %cst_96 : f32 to vector<2x16xf32>
    %284 = arith.divf %283, %282 : vector<2x16xf32>
    %285 = arith.mulf %274, %217 : vector<2x16xf32>
    %286 = arith.mulf %266, %276 : vector<2x16xf32>
    %287 = arith.addf %285, %286 : vector<2x16xf32>
    %288 = math.tanh %287 : vector<2x16xf32>
    %289 = arith.mulf %284, %288 : vector<2x16xf32>
    %290 = vector.extract_strided_slice %71 {offsets = [0, 3, 0], sizes = [2, 1, 64], strides = [1, 1, 1]} : vector<2x8x64xf32> to vector<2x1x64xf32>
    %291 = vector.shape_cast %290 : vector<2x1x64xf32> to vector<2x64xf32>
    %cst_97 = arith.constant dense<0.000000e+00> : vector<2x64xf32>
    %292 = tpu.matmul %254, %74, %cst_97 {dimension_numbers = #tpu.dot_dimension_numbers<[1], [0], [0], [1], [0, 0, 1, 1], [], []>} : vector<2x16xf32>, vector<16x64xf32>, vector<2x64xf32> -> vector<2x64xf32>
    %293 = arith.addf %291, %292 : vector<2x64xf32>
    %294 = vector.extract_strided_slice %293 {offsets = [0, 0], sizes = [2, 16], strides = [1, 1]} : vector<2x64xf32> to vector<2x16xf32>
    %cst_98 = arith.constant 0.000000e+00 : f32
    %295 = vector.broadcast %cst_98 : f32 to vector<2x16xf32>
    %296 = arith.subf %295, %294 : vector<2x16xf32>
    %297 = math.exp %296 : vector<2x16xf32>
    %cst_99 = arith.constant 1.000000e+00 : f32
    %298 = vector.broadcast %cst_99 : f32 to vector<2x16xf32>
    %299 = arith.addf %298, %297 : vector<2x16xf32>
    %cst_100 = arith.constant 1.000000e+00 : f32
    %300 = vector.broadcast %cst_100 : f32 to vector<2x16xf32>
    %301 = arith.divf %300, %299 : vector<2x16xf32>
    %302 = vector.extract_strided_slice %293 {offsets = [0, 16], sizes = [2, 16], strides = [1, 1]} : vector<2x64xf32> to vector<2x16xf32>
    %cst_101 = arith.constant 0.000000e+00 : f32
    %303 = vector.broadcast %cst_101 : f32 to vector<2x16xf32>
    %304 = arith.subf %303, %302 : vector<2x16xf32>
    %305 = math.exp %304 : vector<2x16xf32>
    %cst_102 = arith.constant 1.000000e+00 : f32
    %306 = vector.broadcast %cst_102 : f32 to vector<2x16xf32>
    %307 = arith.addf %306, %305 : vector<2x16xf32>
    %cst_103 = arith.constant 1.000000e+00 : f32
    %308 = vector.broadcast %cst_103 : f32 to vector<2x16xf32>
    %309 = arith.divf %308, %307 : vector<2x16xf32>
    %310 = vector.extract_strided_slice %293 {offsets = [0, 32], sizes = [2, 16], strides = [1, 1]} : vector<2x64xf32> to vector<2x16xf32>
    %311 = math.tanh %310 : vector<2x16xf32>
    %312 = vector.extract_strided_slice %293 {offsets = [0, 48], sizes = [2, 16], strides = [1, 1]} : vector<2x64xf32> to vector<2x16xf32>
    %cst_104 = arith.constant 0.000000e+00 : f32
    %313 = vector.broadcast %cst_104 : f32 to vector<2x16xf32>
    %314 = arith.subf %313, %312 : vector<2x16xf32>
    %315 = math.exp %314 : vector<2x16xf32>
    %cst_105 = arith.constant 1.000000e+00 : f32
    %316 = vector.broadcast %cst_105 : f32 to vector<2x16xf32>
    %317 = arith.addf %316, %315 : vector<2x16xf32>
    %cst_106 = arith.constant 1.000000e+00 : f32
    %318 = vector.broadcast %cst_106 : f32 to vector<2x16xf32>
    %319 = arith.divf %318, %317 : vector<2x16xf32>
    %320 = arith.mulf %309, %252 : vector<2x16xf32>
    %321 = arith.mulf %301, %311 : vector<2x16xf32>
    %322 = arith.addf %320, %321 : vector<2x16xf32>
    %323 = math.tanh %322 : vector<2x16xf32>
    %324 = arith.mulf %319, %323 : vector<2x16xf32>
    %325 = vector.extract_strided_slice %73 {offsets = [0, 4, 0], sizes = [2, 1, 64], strides = [1, 1, 1]} : vector<2x8x64xf32> to vector<2x1x64xf32>
    %326 = vector.shape_cast %325 : vector<2x1x64xf32> to vector<2x64xf32>
    %cst_107 = arith.constant dense<0.000000e+00> : vector<2x64xf32>
    %327 = tpu.matmul %289, %75, %cst_107 {dimension_numbers = #tpu.dot_dimension_numbers<[1], [0], [0], [1], [0, 0, 1, 1], [], []>} : vector<2x16xf32>, vector<16x64xf32>, vector<2x64xf32> -> vector<2x64xf32>
    %328 = arith.addf %326, %327 : vector<2x64xf32>
    %329 = vector.extract_strided_slice %328 {offsets = [0, 0], sizes = [2, 16], strides = [1, 1]} : vector<2x64xf32> to vector<2x16xf32>
    %cst_108 = arith.constant 0.000000e+00 : f32
    %330 = vector.broadcast %cst_108 : f32 to vector<2x16xf32>
    %331 = arith.subf %330, %329 : vector<2x16xf32>
    %332 = math.exp %331 : vector<2x16xf32>
    %cst_109 = arith.constant 1.000000e+00 : f32
    %333 = vector.broadcast %cst_109 : f32 to vector<2x16xf32>
    %334 = arith.addf %333, %332 : vector<2x16xf32>
    %cst_110 = arith.constant 1.000000e+00 : f32
    %335 = vector.broadcast %cst_110 : f32 to vector<2x16xf32>
    %336 = arith.divf %335, %334 : vector<2x16xf32>
    %337 = vector.extract_strided_slice %328 {offsets = [0, 16], sizes = [2, 16], strides = [1, 1]} : vector<2x64xf32> to vector<2x16xf32>
    %cst_111 = arith.constant 0.000000e+00 : f32
    %338 = vector.broadcast %cst_111 : f32 to vector<2x16xf32>
    %339 = arith.subf %338, %337 : vector<2x16xf32>
    %340 = math.exp %339 : vector<2x16xf32>
    %cst_112 = arith.constant 1.000000e+00 : f32
    %341 = vector.broadcast %cst_112 : f32 to vector<2x16xf32>
    %342 = arith.addf %341, %340 : vector<2x16xf32>
    %cst_113 = arith.constant 1.000000e+00 : f32
    %343 = vector.broadcast %cst_113 : f32 to vector<2x16xf32>
    %344 = arith.divf %343, %342 : vector<2x16xf32>
    %345 = vector.extract_strided_slice %328 {offsets = [0, 32], sizes = [2, 16], strides = [1, 1]} : vector<2x64xf32> to vector<2x16xf32>
    %346 = math.tanh %345 : vector<2x16xf32>
    %347 = vector.extract_strided_slice %328 {offsets = [0, 48], sizes = [2, 16], strides = [1, 1]} : vector<2x64xf32> to vector<2x16xf32>
    %cst_114 = arith.constant 0.000000e+00 : f32
    %348 = vector.broadcast %cst_114 : f32 to vector<2x16xf32>
    %349 = arith.subf %348, %347 : vector<2x16xf32>
    %350 = math.exp %349 : vector<2x16xf32>
    %cst_115 = arith.constant 1.000000e+00 : f32
    %351 = vector.broadcast %cst_115 : f32 to vector<2x16xf32>
    %352 = arith.addf %351, %350 : vector<2x16xf32>
    %cst_116 = arith.constant 1.000000e+00 : f32
    %353 = vector.broadcast %cst_116 : f32 to vector<2x16xf32>
    %354 = arith.divf %353, %352 : vector<2x16xf32>
    %355 = arith.mulf %344, %287 : vector<2x16xf32>
    %356 = arith.mulf %336, %346 : vector<2x16xf32>
    %357 = arith.addf %355, %356 : vector<2x16xf32>
    %358 = math.tanh %357 : vector<2x16xf32>
    %359 = arith.mulf %354, %358 : vector<2x16xf32>
    %360 = vector.extract_strided_slice %71 {offsets = [0, 4, 0], sizes = [2, 1, 64], strides = [1, 1, 1]} : vector<2x8x64xf32> to vector<2x1x64xf32>
    %361 = vector.shape_cast %360 : vector<2x1x64xf32> to vector<2x64xf32>
    %cst_117 = arith.constant dense<0.000000e+00> : vector<2x64xf32>
    %362 = tpu.matmul %324, %74, %cst_117 {dimension_numbers = #tpu.dot_dimension_numbers<[1], [0], [0], [1], [0, 0, 1, 1], [], []>} : vector<2x16xf32>, vector<16x64xf32>, vector<2x64xf32> -> vector<2x64xf32>
    %363 = arith.addf %361, %362 : vector<2x64xf32>
    %364 = vector.extract_strided_slice %363 {offsets = [0, 0], sizes = [2, 16], strides = [1, 1]} : vector<2x64xf32> to vector<2x16xf32>
    %cst_118 = arith.constant 0.000000e+00 : f32
    %365 = vector.broadcast %cst_118 : f32 to vector<2x16xf32>
    %366 = arith.subf %365, %364 : vector<2x16xf32>
    %367 = math.exp %366 : vector<2x16xf32>
    %cst_119 = arith.constant 1.000000e+00 : f32
    %368 = vector.broadcast %cst_119 : f32 to vector<2x16xf32>
    %369 = arith.addf %368, %367 : vector<2x16xf32>
    %cst_120 = arith.constant 1.000000e+00 : f32
    %370 = vector.broadcast %cst_120 : f32 to vector<2x16xf32>
    %371 = arith.divf %370, %369 : vector<2x16xf32>
    %372 = vector.extract_strided_slice %363 {offsets = [0, 16], sizes = [2, 16], strides = [1, 1]} : vector<2x64xf32> to vector<2x16xf32>
    %cst_121 = arith.constant 0.000000e+00 : f32
    %373 = vector.broadcast %cst_121 : f32 to vector<2x16xf32>
    %374 = arith.subf %373, %372 : vector<2x16xf32>
    %375 = math.exp %374 : vector<2x16xf32>
    %cst_122 = arith.constant 1.000000e+00 : f32
    %376 = vector.broadcast %cst_122 : f32 to vector<2x16xf32>
    %377 = arith.addf %376, %375 : vector<2x16xf32>
    %cst_123 = arith.constant 1.000000e+00 : f32
    %378 = vector.broadcast %cst_123 : f32 to vector<2x16xf32>
    %379 = arith.divf %378, %377 : vector<2x16xf32>
    %380 = vector.extract_strided_slice %363 {offsets = [0, 32], sizes = [2, 16], strides = [1, 1]} : vector<2x64xf32> to vector<2x16xf32>
    %381 = math.tanh %380 : vector<2x16xf32>
    %382 = vector.extract_strided_slice %363 {offsets = [0, 48], sizes = [2, 16], strides = [1, 1]} : vector<2x64xf32> to vector<2x16xf32>
    %cst_124 = arith.constant 0.000000e+00 : f32
    %383 = vector.broadcast %cst_124 : f32 to vector<2x16xf32>
    %384 = arith.subf %383, %382 : vector<2x16xf32>
    %385 = math.exp %384 : vector<2x16xf32>
    %cst_125 = arith.constant 1.000000e+00 : f32
    %386 = vector.broadcast %cst_125 : f32 to vector<2x16xf32>
    %387 = arith.addf %386, %385 : vector<2x16xf32>
    %cst_126 = arith.constant 1.000000e+00 : f32
    %388 = vector.broadcast %cst_126 : f32 to vector<2x16xf32>
    %389 = arith.divf %388, %387 : vector<2x16xf32>
    %390 = arith.mulf %379, %322 : vector<2x16xf32>
    %391 = arith.mulf %371, %381 : vector<2x16xf32>
    %392 = arith.addf %390, %391 : vector<2x16xf32>
    %393 = math.tanh %392 : vector<2x16xf32>
    %394 = arith.mulf %389, %393 : vector<2x16xf32>
    %395 = vector.extract_strided_slice %73 {offsets = [0, 3, 0], sizes = [2, 1, 64], strides = [1, 1, 1]} : vector<2x8x64xf32> to vector<2x1x64xf32>
    %396 = vector.shape_cast %395 : vector<2x1x64xf32> to vector<2x64xf32>
    %cst_127 = arith.constant dense<0.000000e+00> : vector<2x64xf32>
    %397 = tpu.matmul %359, %75, %cst_127 {dimension_numbers = #tpu.dot_dimension_numbers<[1], [0], [0], [1], [0, 0, 1, 1], [], []>} : vector<2x16xf32>, vector<16x64xf32>, vector<2x64xf32> -> vector<2x64xf32>
    %398 = arith.addf %396, %397 : vector<2x64xf32>
    %399 = vector.extract_strided_slice %398 {offsets = [0, 0], sizes = [2, 16], strides = [1, 1]} : vector<2x64xf32> to vector<2x16xf32>
    %cst_128 = arith.constant 0.000000e+00 : f32
    %400 = vector.broadcast %cst_128 : f32 to vector<2x16xf32>
    %401 = arith.subf %400, %399 : vector<2x16xf32>
    %402 = math.exp %401 : vector<2x16xf32>
    %cst_129 = arith.constant 1.000000e+00 : f32
    %403 = vector.broadcast %cst_129 : f32 to vector<2x16xf32>
    %404 = arith.addf %403, %402 : vector<2x16xf32>
    %cst_130 = arith.constant 1.000000e+00 : f32
    %405 = vector.broadcast %cst_130 : f32 to vector<2x16xf32>
    %406 = arith.divf %405, %404 : vector<2x16xf32>
    %407 = vector.extract_strided_slice %398 {offsets = [0, 16], sizes = [2, 16], strides = [1, 1]} : vector<2x64xf32> to vector<2x16xf32>
    %cst_131 = arith.constant 0.000000e+00 : f32
    %408 = vector.broadcast %cst_131 : f32 to vector<2x16xf32>
    %409 = arith.subf %408, %407 : vector<2x16xf32>
    %410 = math.exp %409 : vector<2x16xf32>
    %cst_132 = arith.constant 1.000000e+00 : f32
    %411 = vector.broadcast %cst_132 : f32 to vector<2x16xf32>
    %412 = arith.addf %411, %410 : vector<2x16xf32>
    %cst_133 = arith.constant 1.000000e+00 : f32
    %413 = vector.broadcast %cst_133 : f32 to vector<2x16xf32>
    %414 = arith.divf %413, %412 : vector<2x16xf32>
    %415 = vector.extract_strided_slice %398 {offsets = [0, 32], sizes = [2, 16], strides = [1, 1]} : vector<2x64xf32> to vector<2x16xf32>
    %416 = math.tanh %415 : vector<2x16xf32>
    %417 = vector.extract_strided_slice %398 {offsets = [0, 48], sizes = [2, 16], strides = [1, 1]} : vector<2x64xf32> to vector<2x16xf32>
    %cst_134 = arith.constant 0.000000e+00 : f32
    %418 = vector.broadcast %cst_134 : f32 to vector<2x16xf32>
    %419 = arith.subf %418, %417 : vector<2x16xf32>
    %420 = math.exp %419 : vector<2x16xf32>
    %cst_135 = arith.constant 1.000000e+00 : f32
    %421 = vector.broadcast %cst_135 : f32 to vector<2x16xf32>
    %422 = arith.addf %421, %420 : vector<2x16xf32>
    %cst_136 = arith.constant 1.000000e+00 : f32
    %423 = vector.broadcast %cst_136 : f32 to vector<2x16xf32>
    %424 = arith.divf %423, %422 : vector<2x16xf32>
    %425 = arith.mulf %414, %357 : vector<2x16xf32>
    %426 = arith.mulf %406, %416 : vector<2x16xf32>
    %427 = arith.addf %425, %426 : vector<2x16xf32>
    %428 = math.tanh %427 : vector<2x16xf32>
    %429 = arith.mulf %424, %428 : vector<2x16xf32>
    %430 = vector.extract_strided_slice %71 {offsets = [0, 5, 0], sizes = [2, 1, 64], strides = [1, 1, 1]} : vector<2x8x64xf32> to vector<2x1x64xf32>
    %431 = vector.shape_cast %430 : vector<2x1x64xf32> to vector<2x64xf32>
    %cst_137 = arith.constant dense<0.000000e+00> : vector<2x64xf32>
    %432 = tpu.matmul %394, %74, %cst_137 {dimension_numbers = #tpu.dot_dimension_numbers<[1], [0], [0], [1], [0, 0, 1, 1], [], []>} : vector<2x16xf32>, vector<16x64xf32>, vector<2x64xf32> -> vector<2x64xf32>
    %433 = arith.addf %431, %432 : vector<2x64xf32>
    %434 = vector.extract_strided_slice %433 {offsets = [0, 0], sizes = [2, 16], strides = [1, 1]} : vector<2x64xf32> to vector<2x16xf32>
    %cst_138 = arith.constant 0.000000e+00 : f32
    %435 = vector.broadcast %cst_138 : f32 to vector<2x16xf32>
    %436 = arith.subf %435, %434 : vector<2x16xf32>
    %437 = math.exp %436 : vector<2x16xf32>
    %cst_139 = arith.constant 1.000000e+00 : f32
    %438 = vector.broadcast %cst_139 : f32 to vector<2x16xf32>
    %439 = arith.addf %438, %437 : vector<2x16xf32>
    %cst_140 = arith.constant 1.000000e+00 : f32
    %440 = vector.broadcast %cst_140 : f32 to vector<2x16xf32>
    %441 = arith.divf %440, %439 : vector<2x16xf32>
    %442 = vector.extract_strided_slice %433 {offsets = [0, 16], sizes = [2, 16], strides = [1, 1]} : vector<2x64xf32> to vector<2x16xf32>
    %cst_141 = arith.constant 0.000000e+00 : f32
    %443 = vector.broadcast %cst_141 : f32 to vector<2x16xf32>
    %444 = arith.subf %443, %442 : vector<2x16xf32>
    %445 = math.exp %444 : vector<2x16xf32>
    %cst_142 = arith.constant 1.000000e+00 : f32
    %446 = vector.broadcast %cst_142 : f32 to vector<2x16xf32>
    %447 = arith.addf %446, %445 : vector<2x16xf32>
    %cst_143 = arith.constant 1.000000e+00 : f32
    %448 = vector.broadcast %cst_143 : f32 to vector<2x16xf32>
    %449 = arith.divf %448, %447 : vector<2x16xf32>
    %450 = vector.extract_strided_slice %433 {offsets = [0, 32], sizes = [2, 16], strides = [1, 1]} : vector<2x64xf32> to vector<2x16xf32>
    %451 = math.tanh %450 : vector<2x16xf32>
    %452 = vector.extract_strided_slice %433 {offsets = [0, 48], sizes = [2, 16], strides = [1, 1]} : vector<2x64xf32> to vector<2x16xf32>
    %cst_144 = arith.constant 0.000000e+00 : f32
    %453 = vector.broadcast %cst_144 : f32 to vector<2x16xf32>
    %454 = arith.subf %453, %452 : vector<2x16xf32>
    %455 = math.exp %454 : vector<2x16xf32>
    %cst_145 = arith.constant 1.000000e+00 : f32
    %456 = vector.broadcast %cst_145 : f32 to vector<2x16xf32>
    %457 = arith.addf %456, %455 : vector<2x16xf32>
    %cst_146 = arith.constant 1.000000e+00 : f32
    %458 = vector.broadcast %cst_146 : f32 to vector<2x16xf32>
    %459 = arith.divf %458, %457 : vector<2x16xf32>
    %460 = arith.mulf %449, %392 : vector<2x16xf32>
    %461 = arith.mulf %441, %451 : vector<2x16xf32>
    %462 = arith.addf %460, %461 : vector<2x16xf32>
    %463 = math.tanh %462 : vector<2x16xf32>
    %464 = arith.mulf %459, %463 : vector<2x16xf32>
    %465 = vector.extract_strided_slice %73 {offsets = [0, 2, 0], sizes = [2, 1, 64], strides = [1, 1, 1]} : vector<2x8x64xf32> to vector<2x1x64xf32>
    %466 = vector.shape_cast %465 : vector<2x1x64xf32> to vector<2x64xf32>
    %cst_147 = arith.constant dense<0.000000e+00> : vector<2x64xf32>
    %467 = tpu.matmul %429, %75, %cst_147 {dimension_numbers = #tpu.dot_dimension_numbers<[1], [0], [0], [1], [0, 0, 1, 1], [], []>} : vector<2x16xf32>, vector<16x64xf32>, vector<2x64xf32> -> vector<2x64xf32>
    %468 = arith.addf %466, %467 : vector<2x64xf32>
    %469 = vector.extract_strided_slice %468 {offsets = [0, 0], sizes = [2, 16], strides = [1, 1]} : vector<2x64xf32> to vector<2x16xf32>
    %cst_148 = arith.constant 0.000000e+00 : f32
    %470 = vector.broadcast %cst_148 : f32 to vector<2x16xf32>
    %471 = arith.subf %470, %469 : vector<2x16xf32>
    %472 = math.exp %471 : vector<2x16xf32>
    %cst_149 = arith.constant 1.000000e+00 : f32
    %473 = vector.broadcast %cst_149 : f32 to vector<2x16xf32>
    %474 = arith.addf %473, %472 : vector<2x16xf32>
    %cst_150 = arith.constant 1.000000e+00 : f32
    %475 = vector.broadcast %cst_150 : f32 to vector<2x16xf32>
    %476 = arith.divf %475, %474 : vector<2x16xf32>
    %477 = vector.extract_strided_slice %468 {offsets = [0, 16], sizes = [2, 16], strides = [1, 1]} : vector<2x64xf32> to vector<2x16xf32>
    %cst_151 = arith.constant 0.000000e+00 : f32
    %478 = vector.broadcast %cst_151 : f32 to vector<2x16xf32>
    %479 = arith.subf %478, %477 : vector<2x16xf32>
    %480 = math.exp %479 : vector<2x16xf32>
    %cst_152 = arith.constant 1.000000e+00 : f32
    %481 = vector.broadcast %cst_152 : f32 to vector<2x16xf32>
    %482 = arith.addf %481, %480 : vector<2x16xf32>
    %cst_153 = arith.constant 1.000000e+00 : f32
    %483 = vector.broadcast %cst_153 : f32 to vector<2x16xf32>
    %484 = arith.divf %483, %482 : vector<2x16xf32>
    %485 = vector.extract_strided_slice %468 {offsets = [0, 32], sizes = [2, 16], strides = [1, 1]} : vector<2x64xf32> to vector<2x16xf32>
    %486 = math.tanh %485 : vector<2x16xf32>
    %487 = vector.extract_strided_slice %468 {offsets = [0, 48], sizes = [2, 16], strides = [1, 1]} : vector<2x64xf32> to vector<2x16xf32>
    %cst_154 = arith.constant 0.000000e+00 : f32
    %488 = vector.broadcast %cst_154 : f32 to vector<2x16xf32>
    %489 = arith.subf %488, %487 : vector<2x16xf32>
    %490 = math.exp %489 : vector<2x16xf32>
    %cst_155 = arith.constant 1.000000e+00 : f32
    %491 = vector.broadcast %cst_155 : f32 to vector<2x16xf32>
    %492 = arith.addf %491, %490 : vector<2x16xf32>
    %cst_156 = arith.constant 1.000000e+00 : f32
    %493 = vector.broadcast %cst_156 : f32 to vector<2x16xf32>
    %494 = arith.divf %493, %492 : vector<2x16xf32>
    %495 = arith.mulf %484, %427 : vector<2x16xf32>
    %496 = arith.mulf %476, %486 : vector<2x16xf32>
    %497 = arith.addf %495, %496 : vector<2x16xf32>
    %498 = math.tanh %497 : vector<2x16xf32>
    %499 = arith.mulf %494, %498 : vector<2x16xf32>
    %500 = vector.extract_strided_slice %71 {offsets = [0, 6, 0], sizes = [2, 1, 64], strides = [1, 1, 1]} : vector<2x8x64xf32> to vector<2x1x64xf32>
    %501 = vector.shape_cast %500 : vector<2x1x64xf32> to vector<2x64xf32>
    %cst_157 = arith.constant dense<0.000000e+00> : vector<2x64xf32>
    %502 = tpu.matmul %464, %74, %cst_157 {dimension_numbers = #tpu.dot_dimension_numbers<[1], [0], [0], [1], [0, 0, 1, 1], [], []>} : vector<2x16xf32>, vector<16x64xf32>, vector<2x64xf32> -> vector<2x64xf32>
    %503 = arith.addf %501, %502 : vector<2x64xf32>
    %504 = vector.extract_strided_slice %503 {offsets = [0, 0], sizes = [2, 16], strides = [1, 1]} : vector<2x64xf32> to vector<2x16xf32>
    %cst_158 = arith.constant 0.000000e+00 : f32
    %505 = vector.broadcast %cst_158 : f32 to vector<2x16xf32>
    %506 = arith.subf %505, %504 : vector<2x16xf32>
    %507 = math.exp %506 : vector<2x16xf32>
    %cst_159 = arith.constant 1.000000e+00 : f32
    %508 = vector.broadcast %cst_159 : f32 to vector<2x16xf32>
    %509 = arith.addf %508, %507 : vector<2x16xf32>
    %cst_160 = arith.constant 1.000000e+00 : f32
    %510 = vector.broadcast %cst_160 : f32 to vector<2x16xf32>
    %511 = arith.divf %510, %509 : vector<2x16xf32>
    %512 = vector.extract_strided_slice %503 {offsets = [0, 16], sizes = [2, 16], strides = [1, 1]} : vector<2x64xf32> to vector<2x16xf32>
    %cst_161 = arith.constant 0.000000e+00 : f32
    %513 = vector.broadcast %cst_161 : f32 to vector<2x16xf32>
    %514 = arith.subf %513, %512 : vector<2x16xf32>
    %515 = math.exp %514 : vector<2x16xf32>
    %cst_162 = arith.constant 1.000000e+00 : f32
    %516 = vector.broadcast %cst_162 : f32 to vector<2x16xf32>
    %517 = arith.addf %516, %515 : vector<2x16xf32>
    %cst_163 = arith.constant 1.000000e+00 : f32
    %518 = vector.broadcast %cst_163 : f32 to vector<2x16xf32>
    %519 = arith.divf %518, %517 : vector<2x16xf32>
    %520 = vector.extract_strided_slice %503 {offsets = [0, 32], sizes = [2, 16], strides = [1, 1]} : vector<2x64xf32> to vector<2x16xf32>
    %521 = math.tanh %520 : vector<2x16xf32>
    %522 = vector.extract_strided_slice %503 {offsets = [0, 48], sizes = [2, 16], strides = [1, 1]} : vector<2x64xf32> to vector<2x16xf32>
    %cst_164 = arith.constant 0.000000e+00 : f32
    %523 = vector.broadcast %cst_164 : f32 to vector<2x16xf32>
    %524 = arith.subf %523, %522 : vector<2x16xf32>
    %525 = math.exp %524 : vector<2x16xf32>
    %cst_165 = arith.constant 1.000000e+00 : f32
    %526 = vector.broadcast %cst_165 : f32 to vector<2x16xf32>
    %527 = arith.addf %526, %525 : vector<2x16xf32>
    %cst_166 = arith.constant 1.000000e+00 : f32
    %528 = vector.broadcast %cst_166 : f32 to vector<2x16xf32>
    %529 = arith.divf %528, %527 : vector<2x16xf32>
    %530 = arith.mulf %519, %462 : vector<2x16xf32>
    %531 = arith.mulf %511, %521 : vector<2x16xf32>
    %532 = arith.addf %530, %531 : vector<2x16xf32>
    %533 = math.tanh %532 : vector<2x16xf32>
    %534 = arith.mulf %529, %533 : vector<2x16xf32>
    %535 = vector.extract_strided_slice %73 {offsets = [0, 1, 0], sizes = [2, 1, 64], strides = [1, 1, 1]} : vector<2x8x64xf32> to vector<2x1x64xf32>
    %536 = vector.shape_cast %535 : vector<2x1x64xf32> to vector<2x64xf32>
    %cst_167 = arith.constant dense<0.000000e+00> : vector<2x64xf32>
    %537 = tpu.matmul %499, %75, %cst_167 {dimension_numbers = #tpu.dot_dimension_numbers<[1], [0], [0], [1], [0, 0, 1, 1], [], []>} : vector<2x16xf32>, vector<16x64xf32>, vector<2x64xf32> -> vector<2x64xf32>
    %538 = arith.addf %536, %537 : vector<2x64xf32>
    %539 = vector.extract_strided_slice %538 {offsets = [0, 0], sizes = [2, 16], strides = [1, 1]} : vector<2x64xf32> to vector<2x16xf32>
    %cst_168 = arith.constant 0.000000e+00 : f32
    %540 = vector.broadcast %cst_168 : f32 to vector<2x16xf32>
    %541 = arith.subf %540, %539 : vector<2x16xf32>
    %542 = math.exp %541 : vector<2x16xf32>
    %cst_169 = arith.constant 1.000000e+00 : f32
    %543 = vector.broadcast %cst_169 : f32 to vector<2x16xf32>
    %544 = arith.addf %543, %542 : vector<2x16xf32>
    %cst_170 = arith.constant 1.000000e+00 : f32
    %545 = vector.broadcast %cst_170 : f32 to vector<2x16xf32>
    %546 = arith.divf %545, %544 : vector<2x16xf32>
    %547 = vector.extract_strided_slice %538 {offsets = [0, 16], sizes = [2, 16], strides = [1, 1]} : vector<2x64xf32> to vector<2x16xf32>
    %cst_171 = arith.constant 0.000000e+00 : f32
    %548 = vector.broadcast %cst_171 : f32 to vector<2x16xf32>
    %549 = arith.subf %548, %547 : vector<2x16xf32>
    %550 = math.exp %549 : vector<2x16xf32>
    %cst_172 = arith.constant 1.000000e+00 : f32
    %551 = vector.broadcast %cst_172 : f32 to vector<2x16xf32>
    %552 = arith.addf %551, %550 : vector<2x16xf32>
    %cst_173 = arith.constant 1.000000e+00 : f32
    %553 = vector.broadcast %cst_173 : f32 to vector<2x16xf32>
    %554 = arith.divf %553, %552 : vector<2x16xf32>
    %555 = vector.extract_strided_slice %538 {offsets = [0, 32], sizes = [2, 16], strides = [1, 1]} : vector<2x64xf32> to vector<2x16xf32>
    %556 = math.tanh %555 : vector<2x16xf32>
    %557 = vector.extract_strided_slice %538 {offsets = [0, 48], sizes = [2, 16], strides = [1, 1]} : vector<2x64xf32> to vector<2x16xf32>
    %cst_174 = arith.constant 0.000000e+00 : f32
    %558 = vector.broadcast %cst_174 : f32 to vector<2x16xf32>
    %559 = arith.subf %558, %557 : vector<2x16xf32>
    %560 = math.exp %559 : vector<2x16xf32>
    %cst_175 = arith.constant 1.000000e+00 : f32
    %561 = vector.broadcast %cst_175 : f32 to vector<2x16xf32>
    %562 = arith.addf %561, %560 : vector<2x16xf32>
    %cst_176 = arith.constant 1.000000e+00 : f32
    %563 = vector.broadcast %cst_176 : f32 to vector<2x16xf32>
    %564 = arith.divf %563, %562 : vector<2x16xf32>
    %565 = arith.mulf %554, %497 : vector<2x16xf32>
    %566 = arith.mulf %546, %556 : vector<2x16xf32>
    %567 = arith.addf %565, %566 : vector<2x16xf32>
    %568 = math.tanh %567 : vector<2x16xf32>
    %569 = arith.mulf %564, %568 : vector<2x16xf32>
    %570 = vector.extract_strided_slice %71 {offsets = [0, 7, 0], sizes = [2, 1, 64], strides = [1, 1, 1]} : vector<2x8x64xf32> to vector<2x1x64xf32>
    %571 = vector.shape_cast %570 : vector<2x1x64xf32> to vector<2x64xf32>
    %cst_177 = arith.constant dense<0.000000e+00> : vector<2x64xf32>
    %572 = tpu.matmul %534, %74, %cst_177 {dimension_numbers = #tpu.dot_dimension_numbers<[1], [0], [0], [1], [0, 0, 1, 1], [], []>} : vector<2x16xf32>, vector<16x64xf32>, vector<2x64xf32> -> vector<2x64xf32>
    %573 = arith.addf %571, %572 : vector<2x64xf32>
    %574 = vector.extract_strided_slice %573 {offsets = [0, 0], sizes = [2, 16], strides = [1, 1]} : vector<2x64xf32> to vector<2x16xf32>
    %cst_178 = arith.constant 0.000000e+00 : f32
    %575 = vector.broadcast %cst_178 : f32 to vector<2x16xf32>
    %576 = arith.subf %575, %574 : vector<2x16xf32>
    %577 = math.exp %576 : vector<2x16xf32>
    %cst_179 = arith.constant 1.000000e+00 : f32
    %578 = vector.broadcast %cst_179 : f32 to vector<2x16xf32>
    %579 = arith.addf %578, %577 : vector<2x16xf32>
    %cst_180 = arith.constant 1.000000e+00 : f32
    %580 = vector.broadcast %cst_180 : f32 to vector<2x16xf32>
    %581 = arith.divf %580, %579 : vector<2x16xf32>
    %582 = vector.extract_strided_slice %573 {offsets = [0, 16], sizes = [2, 16], strides = [1, 1]} : vector<2x64xf32> to vector<2x16xf32>
    %cst_181 = arith.constant 0.000000e+00 : f32
    %583 = vector.broadcast %cst_181 : f32 to vector<2x16xf32>
    %584 = arith.subf %583, %582 : vector<2x16xf32>
    %585 = math.exp %584 : vector<2x16xf32>
    %cst_182 = arith.constant 1.000000e+00 : f32
    %586 = vector.broadcast %cst_182 : f32 to vector<2x16xf32>
    %587 = arith.addf %586, %585 : vector<2x16xf32>
    %cst_183 = arith.constant 1.000000e+00 : f32
    %588 = vector.broadcast %cst_183 : f32 to vector<2x16xf32>
    %589 = arith.divf %588, %587 : vector<2x16xf32>
    %590 = vector.extract_strided_slice %573 {offsets = [0, 32], sizes = [2, 16], strides = [1, 1]} : vector<2x64xf32> to vector<2x16xf32>
    %591 = math.tanh %590 : vector<2x16xf32>
    %592 = vector.extract_strided_slice %573 {offsets = [0, 48], sizes = [2, 16], strides = [1, 1]} : vector<2x64xf32> to vector<2x16xf32>
    %cst_184 = arith.constant 0.000000e+00 : f32
    %593 = vector.broadcast %cst_184 : f32 to vector<2x16xf32>
    %594 = arith.subf %593, %592 : vector<2x16xf32>
    %595 = math.exp %594 : vector<2x16xf32>
    %cst_185 = arith.constant 1.000000e+00 : f32
    %596 = vector.broadcast %cst_185 : f32 to vector<2x16xf32>
    %597 = arith.addf %596, %595 : vector<2x16xf32>
    %cst_186 = arith.constant 1.000000e+00 : f32
    %598 = vector.broadcast %cst_186 : f32 to vector<2x16xf32>
    %599 = arith.divf %598, %597 : vector<2x16xf32>
    %600 = arith.mulf %589, %532 : vector<2x16xf32>
    %601 = arith.mulf %581, %591 : vector<2x16xf32>
    %602 = arith.addf %600, %601 : vector<2x16xf32>
    %603 = math.tanh %602 : vector<2x16xf32>
    %604 = arith.mulf %599, %603 : vector<2x16xf32>
    %605 = vector.extract_strided_slice %73 {offsets = [0, 0, 0], sizes = [2, 1, 64], strides = [1, 1, 1]} : vector<2x8x64xf32> to vector<2x1x64xf32>
    %606 = vector.shape_cast %605 : vector<2x1x64xf32> to vector<2x64xf32>
    %cst_187 = arith.constant dense<0.000000e+00> : vector<2x64xf32>
    %607 = tpu.matmul %569, %75, %cst_187 {dimension_numbers = #tpu.dot_dimension_numbers<[1], [0], [0], [1], [0, 0, 1, 1], [], []>} : vector<2x16xf32>, vector<16x64xf32>, vector<2x64xf32> -> vector<2x64xf32>
    %608 = arith.addf %606, %607 : vector<2x64xf32>
    %609 = vector.extract_strided_slice %608 {offsets = [0, 0], sizes = [2, 16], strides = [1, 1]} : vector<2x64xf32> to vector<2x16xf32>
    %cst_188 = arith.constant 0.000000e+00 : f32
    %610 = vector.broadcast %cst_188 : f32 to vector<2x16xf32>
    %611 = arith.subf %610, %609 : vector<2x16xf32>
    %612 = math.exp %611 : vector<2x16xf32>
    %cst_189 = arith.constant 1.000000e+00 : f32
    %613 = vector.broadcast %cst_189 : f32 to vector<2x16xf32>
    %614 = arith.addf %613, %612 : vector<2x16xf32>
    %cst_190 = arith.constant 1.000000e+00 : f32
    %615 = vector.broadcast %cst_190 : f32 to vector<2x16xf32>
    %616 = arith.divf %615, %614 : vector<2x16xf32>
    %617 = vector.extract_strided_slice %608 {offsets = [0, 16], sizes = [2, 16], strides = [1, 1]} : vector<2x64xf32> to vector<2x16xf32>
    %cst_191 = arith.constant 0.000000e+00 : f32
    %618 = vector.broadcast %cst_191 : f32 to vector<2x16xf32>
    %619 = arith.subf %618, %617 : vector<2x16xf32>
    %620 = math.exp %619 : vector<2x16xf32>
    %cst_192 = arith.constant 1.000000e+00 : f32
    %621 = vector.broadcast %cst_192 : f32 to vector<2x16xf32>
    %622 = arith.addf %621, %620 : vector<2x16xf32>
    %cst_193 = arith.constant 1.000000e+00 : f32
    %623 = vector.broadcast %cst_193 : f32 to vector<2x16xf32>
    %624 = arith.divf %623, %622 : vector<2x16xf32>
    %625 = vector.extract_strided_slice %608 {offsets = [0, 32], sizes = [2, 16], strides = [1, 1]} : vector<2x64xf32> to vector<2x16xf32>
    %626 = math.tanh %625 : vector<2x16xf32>
    %627 = vector.extract_strided_slice %608 {offsets = [0, 48], sizes = [2, 16], strides = [1, 1]} : vector<2x64xf32> to vector<2x16xf32>
    %cst_194 = arith.constant 0.000000e+00 : f32
    %628 = vector.broadcast %cst_194 : f32 to vector<2x16xf32>
    %629 = arith.subf %628, %627 : vector<2x16xf32>
    %630 = math.exp %629 : vector<2x16xf32>
    %cst_195 = arith.constant 1.000000e+00 : f32
    %631 = vector.broadcast %cst_195 : f32 to vector<2x16xf32>
    %632 = arith.addf %631, %630 : vector<2x16xf32>
    %cst_196 = arith.constant 1.000000e+00 : f32
    %633 = vector.broadcast %cst_196 : f32 to vector<2x16xf32>
    %634 = arith.divf %633, %632 : vector<2x16xf32>
    %635 = arith.mulf %624, %567 : vector<2x16xf32>
    %636 = arith.mulf %616, %626 : vector<2x16xf32>
    %637 = arith.addf %635, %636 : vector<2x16xf32>
    %638 = math.tanh %637 : vector<2x16xf32>
    %639 = arith.mulf %634, %638 : vector<2x16xf32>
    %640 = vector.shape_cast %114 : vector<2x16xf32> to vector<2x1x16xf32>
    %641 = vector.shape_cast %184 : vector<2x16xf32> to vector<2x1x16xf32>
    %642 = vector.shape_cast %254 : vector<2x16xf32> to vector<2x1x16xf32>
    %643 = vector.shape_cast %324 : vector<2x16xf32> to vector<2x1x16xf32>
    %644 = vector.shape_cast %394 : vector<2x16xf32> to vector<2x1x16xf32>
    %645 = vector.shape_cast %464 : vector<2x16xf32> to vector<2x1x16xf32>
    %646 = vector.shape_cast %534 : vector<2x16xf32> to vector<2x1x16xf32>
    %647 = vector.shape_cast %604 : vector<2x16xf32> to vector<2x1x16xf32>
    %648 = tpu.concatenate %640, %641, %642, %643, %644, %645, %646, %647 in 1 : vector<2x1x16xf32>, vector<2x1x16xf32>, vector<2x1x16xf32>, vector<2x1x16xf32>, vector<2x1x16xf32>, vector<2x1x16xf32>, vector<2x1x16xf32>, vector<2x1x16xf32> -> vector<2x8x16xf32>
    %649 = vector.shape_cast %639 : vector<2x16xf32> to vector<2x1x16xf32>
    %650 = vector.shape_cast %569 : vector<2x16xf32> to vector<2x1x16xf32>
    %651 = vector.shape_cast %499 : vector<2x16xf32> to vector<2x1x16xf32>
    %652 = vector.shape_cast %429 : vector<2x16xf32> to vector<2x1x16xf32>
    %653 = vector.shape_cast %359 : vector<2x16xf32> to vector<2x1x16xf32>
    %654 = vector.shape_cast %289 : vector<2x16xf32> to vector<2x1x16xf32>
    %655 = vector.shape_cast %219 : vector<2x16xf32> to vector<2x1x16xf32>
    %656 = vector.shape_cast %149 : vector<2x16xf32> to vector<2x1x16xf32>
    %657 = tpu.concatenate %649, %650, %651, %652, %653, %654, %655, %656 in 1 : vector<2x1x16xf32>, vector<2x1x16xf32>, vector<2x1x16xf32>, vector<2x1x16xf32>, vector<2x1x16xf32>, vector<2x1x16xf32>, vector<2x1x16xf32>, vector<2x1x16xf32> -> vector<2x8x16xf32>
    %658 = tpu.concatenate %648, %657 in 2 : vector<2x8x16xf32>, vector<2x8x16xf32> -> vector<2x8x32xf32>
    %659 = vector.shape_cast %658 : vector<2x8x32xf32> to vector<16x32xf32>
    %660 = vector.extract_strided_slice %658 {offsets = [0, 7, 0], sizes = [2, 1, 32], strides = [1, 1, 1]} : vector<2x8x32xf32> to vector<2x1x32xf32>
    %661 = vector.shape_cast %660 : vector<2x1x32xf32> to vector<2x32xf32>
    %c0_197 = arith.constant 0 : index
    %c0_198 = arith.constant 0 : index
    %662 = vector.load %arg13[%c0_197, %c0_198] : memref<64x128xf32, #tpu.memory_space<vmem>>, vector<64x128xf32>
    %663 = vector.extract_strided_slice %662 {offsets = [0, 0], sizes = [32, 128], strides = [1, 1]} : vector<64x128xf32> to vector<32x128xf32>
    %cst_199 = arith.constant dense<0.000000e+00> : vector<16x128xf32>
    %664 = tpu.matmul %659, %663, %cst_199 {dimension_numbers = #tpu.dot_dimension_numbers<[1], [0], [0], [1], [0, 0, 1, 1], [], []>} : vector<16x32xf32>, vector<32x128xf32>, vector<16x128xf32> -> vector<16x128xf32>
    %665 = vector.extract_strided_slice %662 {offsets = [32, 0], sizes = [32, 128], strides = [1, 1]} : vector<64x128xf32> to vector<32x128xf32>
    %cst_200 = arith.constant dense<0.000000e+00> : vector<2x128xf32>
    %666 = tpu.matmul %661, %665, %cst_200 {dimension_numbers = #tpu.dot_dimension_numbers<[1], [0], [0], [1], [0, 0, 1, 1], [], []>} : vector<2x32xf32>, vector<32x128xf32>, vector<2x128xf32> -> vector<2x128xf32>
    %667 = vector.shape_cast %664 : vector<16x128xf32> to vector<2x8x128xf32>
    %668 = vector.shape_cast %666 : vector<2x128xf32> to vector<2x1x128xf32>
    %669 = vector.broadcast %668 : vector<2x1x128xf32> to vector<2x8x128xf32>
    %670 = arith.addf %667, %669 : vector<2x8x128xf32>
    %c0_201 = arith.constant 0 : index
    %c0_202 = arith.constant 0 : index
    %671 = vector.load %arg14[%c0_201, %c0_202] : memref<1x128xf32, #tpu.memory_space<vmem>>, vector<1x128xf32>
    %672 = vector.shape_cast %671 : vector<1x128xf32> to vector<1x1x128xf32>
    %673 = vector.broadcast %672 : vector<1x1x128xf32> to vector<2x8x128xf32>
    %674 = arith.addf %670, %673 : vector<2x8x128xf32>
    %cst_203 = arith.constant 0.000000e+00 : f32
    %675 = vector.broadcast %cst_203 : f32 to vector<2x8x128xf32>
    %676 = arith.maximumf %674, %675 : vector<2x8x128xf32>
    %677 = vector.shape_cast %676 : vector<2x8x128xf32> to vector<16x128xf32>
    %c0_204 = arith.constant 0 : index
    %c0_205 = arith.constant 0 : index
    %678 = vector.load %arg15[%c0_204, %c0_205] : memref<128x1xf32, #tpu.memory_space<vmem>>, vector<128x1xf32>
    %cst_206 = arith.constant dense<0.000000e+00> : vector<16x1xf32>
    %679 = tpu.matmul %677, %678, %cst_206 {dimension_numbers = #tpu.dot_dimension_numbers<[1], [0], [0], [1], [0, 0, 1, 1], [], []>} : vector<16x128xf32>, vector<128x1xf32>, vector<16x1xf32> -> vector<16x1xf32>
    %c0_207 = arith.constant 0 : index
    %c0_208 = arith.constant 0 : index
    %680 = vector.load %arg16[%c0_207, %c0_208] : memref<1x1xf32, #tpu.memory_space<vmem>>, vector<1x1xf32>
    %681 = vector.broadcast %680 : vector<1x1xf32> to vector<16x1xf32>
    %682 = arith.addf %679, %681 : vector<16x1xf32>
    %683 = vector.shape_cast %682 : vector<16x1xf32> to vector<2x8x1xf32>
    %cst_209 = arith.constant dense<0xFF800000> : vector<2x1xf32>
    %684 = vector.multi_reduction <maximumf>, %683, %cst_209 [1] : vector<2x8x1xf32> to vector<2x1xf32>
    %685 = vector.shape_cast %684 : vector<2x1xf32> to vector<2x1x1xf32>
    %686 = vector.broadcast %685 : vector<2x1x1xf32> to vector<2x8x1xf32>
    %687 = arith.subf %683, %686 : vector<2x8x1xf32>
    %688 = math.exp %687 : vector<2x8x1xf32>
    %cst_210 = arith.constant dense<0.000000e+00> : vector<2x1xf32>
    %689 = vector.multi_reduction <add>, %688, %cst_210 [1] : vector<2x8x1xf32> to vector<2x1xf32>
    %690 = vector.shape_cast %689 : vector<2x1xf32> to vector<2x1x1xf32>
    %691 = vector.broadcast %690 : vector<2x1x1xf32> to vector<2x8x1xf32>
    %692 = arith.divf %688, %691 : vector<2x8x1xf32>
    %693 = vector.broadcast %692 : vector<2x8x1xf32> to vector<2x8x32xf32>
    %694 = arith.mulf %693, %658 : vector<2x8x32xf32>
    %cst_211 = arith.constant dense<0.000000e+00> : vector<2x32xf32>
    %695 = vector.multi_reduction <add>, %694, %cst_211 [1] : vector<2x8x32xf32> to vector<2x32xf32>
    %696 = vector.shape_cast %695 : vector<2x32xf32> to vector<2x1x32xf32>
    %697 = vector.shape_cast %696 : vector<2x1x32xf32> to vector<2x32xf32>
    %c0_212 = arith.constant 0 : index
    %c0_213 = arith.constant 0 : index
    %698 = vector.load %arg17[%c0_212, %c0_213] : memref<32x32xf32, #tpu.memory_space<vmem>>, vector<32x32xf32>
    %cst_214 = arith.constant dense<0.000000e+00> : vector<2x32xf32>
    %699 = tpu.matmul %697, %698, %cst_214 {dimension_numbers = #tpu.dot_dimension_numbers<[1], [0], [0], [1], [0, 0, 1, 1], [], []>} : vector<2x32xf32>, vector<32x32xf32>, vector<2x32xf32> -> vector<2x32xf32>
    %c0_215 = arith.constant 0 : index
    %c0_216 = arith.constant 0 : index
    %700 = vector.load %arg18[%c0_215, %c0_216] : memref<1x32xf32, #tpu.memory_space<vmem>>, vector<1x32xf32>
    %701 = vector.broadcast %700 : vector<1x32xf32> to vector<2x32xf32>
    %702 = arith.addf %699, %701 : vector<2x32xf32>
    %cst_217 = arith.constant 0.000000e+00 : f32
    %703 = vector.broadcast %cst_217 : f32 to vector<2x32xf32>
    %704 = arith.maximumf %702, %703 : vector<2x32xf32>
    %c0_218 = arith.constant 0 : index
    %c0_219 = arith.constant 0 : index
    %705 = vector.load %arg19[%c0_218, %c0_219] : memref<32x4xf32, #tpu.memory_space<vmem>>, vector<32x4xf32>
    %cst_220 = arith.constant dense<0.000000e+00> : vector<2x4xf32>
    %706 = tpu.matmul %704, %705, %cst_220 {dimension_numbers = #tpu.dot_dimension_numbers<[1], [0], [0], [1], [0, 0, 1, 1], [], []>} : vector<2x32xf32>, vector<32x4xf32>, vector<2x4xf32> -> vector<2x4xf32>
    %c0_221 = arith.constant 0 : index
    %c0_222 = arith.constant 0 : index
    %707 = vector.load %arg20[%c0_221, %c0_222] : memref<1x4xf32, #tpu.memory_space<vmem>>, vector<1x4xf32>
    %708 = vector.broadcast %707 : vector<1x4xf32> to vector<2x4xf32>
    %709 = arith.addf %706, %708 : vector<2x4xf32>
    %c0_223 = arith.constant 0 : index
    %c0_224 = arith.constant 0 : index
    %710 = vector.load %arg21[%c0_223, %c0_224] : memref<2x4xf32, #tpu.memory_space<vmem>>, vector<2x4xf32>
    tpu.vector_store %arg21[%c0_223, %c0_224], %709 {strides = array<i32>} : memref<2x4xf32, #tpu.memory_space<vmem>>, vector<2x4xf32>,
    return
  }
}

</mosaic_0001>

<bundles_post_ra>
// kernel: milc_forward.1
= control target key start
LH: loop header
LB: loop body
LE: loop exit
PB: predicated region body
PF: predicated region fallthrough
CT: control target
= control target key end

     0   :  { %s24673_s0 = inlined_call_operand.vmem [shape: f32[16,16,4], index: 0, kind: input, shape index: {}]   ;;  %s24674_s1 = inlined_call_operand.vmem [shape: bf16[16,64], index: 1, kind: input, shape index: {}]   ;;  %s24675_s2 = inlined_call_operand.vmem [shape: f32[1,64], index: 2, kind: input, shape index: {}]   ;;  %s24676_s3 = inlined_call_operand.vmem [shape: bf16[256,128], index: 3, kind: input, shape index: {}]   ;;  %s24677_s4 = inlined_call_operand.vmem [shape: f32[1,128], index: 4, kind: input, shape index: {}]   ;;  %s24678_s5 = inlined_call_operand.vmem [shape: bf16[384,200], index: 5, kind: input, shape index: {}]   ;;  %s24679_s6 = inlined_call_operand.vmem [shape: f32[1,200], index: 6, kind: input, shape index: {}]   ;;  %s24680_s7 = inlined_call_operand.vmem [shape: bf16[1600,32], index: 7, kind: input, shape index: {}]   ;;  %s24681_s8 = inlined_call_operand.vmem [shape: f32[1,32], index: 8, kind: input, shape index: {}]   ;;  %s24682_s9 = inlined_call_operand.vmem [shape: f32[32,128], index: 9, kind: input, shape index: {}]   ;;  %s24683_s10 = inlined_call_operand.vmem [shape: f32[1,128], index: 10, kind: input, shape index: {}]   ;;  %s24684_s11 = inlined_call_operand.vmem [shape: f32[16,64], index: 11, kind: input, shape index: {}]   ;;  %s24685_s12 = inlined_call_operand.vmem [shape: f32[16,64], index: 12, kind: input, shape index: {}]   ;;  %s24686_s13 = inlined_call_operand.vmem [shape: f32[64,128], index: 13, kind: input, shape index: {}]   ;;  %s24687_s14 = inlined_call_operand.vmem [shape: f32[1,128], index: 14, kind: input, shape index: {}]   ;;  %s24688_s15 = inlined_call_operand.vmem [shape: f32[128,1], index: 15, kind: input, shape index: {}]   ;;  %s24689_s16 = inlined_call_operand.<no memory space> [shape: f32[1,1], index: 16, kind: input, shape index: {}]   ;;  %s24690_s17 = inlined_call_operand.vmem [shape: f32[32,32], index: 17, kind: input, shape index: {}]   ;;  %s24691_s18 = inlined_call_operand.vmem [shape: f32[1,32], index: 18, kind: input, shape index: {}]   ;;  %s24692_s19 = inlined_call_operand.vmem [shape: f32[32,4], index: 19, kind: input, shape index: {}]   ;;  %s24693_s20 = inlined_call_operand.vmem [shape: f32[1,4], index: 20, kind: input, shape index: {}]   ;;  %s24694_s21 = inlined_call_operand.hbm [shape: f32[2,4], index: 21, kind: output, shape index: {}]  }
   0x1   :  { %24830 = sst [smem:[#allocation93_spill]] %s24673_s0  ;;  %v26_v0 = vstv %s24689_s16 }
   0x2   :  { %24831 = sst [smem:[#allocation94_spill]] %s24674_s1  ;;  %27 = vst [vmem:[#allocation2] sm:$0x1] %v26_v0 }
   0x3   :  { %24832 = sst [smem:[#allocation95_spill]] %s24675_s2 }
   0x4   :  { %24833 = sst [smem:[#allocation96_spill]] %s24676_s3 }
   0x5   :  { %24834 = sst [smem:[#allocation97_spill]] %s24677_s4 }
   0x6   :  { %24835 = sst [smem:[#allocation98_spill]] %s24678_s5 }
   0x7   :  { %s24836_s3 = sld [smem:[#allocation93_spill]]  ;;  %vm281_vm0 = vcmask 1045504   ;;  %vm136_vm1 = vcmask 1046528   ;;  %vm426_vm2 = vcmask 1044480   ;;  %s18597_s24 = smov 8   ;;  %vm18601_vm3 = vmmov 0  }
   0x8   :  { %s18598_s2 = smov 4   ;;  %s18599_s30 = smov 12  }
   0x9   :  { %s24837_s4 = sld [smem:[#allocation94_spill]] }
   0xd   :  { %v73_v1 = vld [vmem:[%s24836_s3 + $0x8] sm:$0xff]  ;;  %v74_v2 = vld [vmem:[%s24836_s3 + $0x10] sm:$0xff]  ;;  %v75_v3 = vld [vmem:[%s24836_s3 + $0x18] sm:$0xff] }
   0xe   :  { %v283_v4 = vrot.slane %v73_v1, 2  ;;  %v285_v5 = vrot.slane %v74_v2, 2  ;;  %v286_v6 = vrot.slane %v75_v3, 2  ;;  %v138_v7 = vrot.slane %v73_v1, 1  ;;  %v72_v8 = vld [vmem:[%s24836_s3] sm:$0xff]  ;;  %v77_v21 = vld [vmem:[%s24836_s3 + $0x28] sm:$0xff] }
   0xf   :  { %v140_v9 = vrot.slane %v74_v2, 1  ;;  %v141_v10 = vrot.slane %v75_v3, 1  ;;  %v282_v11 = vrot.slane %v72_v8, 2  ;;  %v137_v12 = vrot.slane %v72_v8, 1  ;;  %v76_v20 = vld [vmem:[%s24836_s3 + $0x20] sm:$0xff]  ;;  %v78_v33 = vld [vmem:[%s24836_s3 + $0x30] sm:$0xff] }
  0x10   :  { %v287_v13 = vsel %vm281_vm0, %v285_v5, %v286_v6  ;;  %v427_v14 = vrot.slane %v72_v8, 3  ;;  %v428_v15 = vrot.slane %v73_v1, 3  ;;  %v431_v24 = vrot.slane %v75_v3, 3  ;;  %v79_v34 = vld [vmem:[%s24836_s3 + $0x38] sm:$0xff]  ;;  %v80_v43 = vld [vmem:[%s24836_s3 + $0x40] sm:$0xff]  ;;  %v81_v44 = vld [vmem:[%s24836_s3 + $0x48] sm:$0xff] }
  0x11   :  { %v17624_v16 = vpack.i.bf16 %v287_v13, %v283_v4  ;;  %v142_v17 = vsel %vm136_vm1, %v140_v9, %v141_v10  ;;  %v284_v18 = vsel %vm281_vm0, %v282_v11, %v283_v4  ;;  %v139_v19 = vsel %vm136_vm1, %v137_v12, %v138_v7  ;;  %v82_v56 = vld [vmem:[%s24836_s3 + $0x50] sm:$0xff]  ;;  %v83_v62 = vld [vmem:[%s24836_s3 + $0x58] sm:$0xff]  ;;  %v84_v3 = vld [vmem:[%s24836_s3 + $0x60] sm:$0xff] }
  0x12   :  { %v17614_v22 = vpack.i.bf16 %v142_v17, %v138_v7  ;;  %v17629_v23 = vpack.i.bf16 %v284_v18, %v286_v6  ;;  %v430_v25 = vrot.slane %v74_v2, 3  ;;  %v17619_v26 = vpack.i.bf16 %v139_v19, %v141_v10  ;;  %v18792_v4 = vld [vmem:[%s24836_s3 + $0x68] sm:$0xff] }
  0x13   :  { %17625 = vrot.lane.b32.xlu1 %v17624_v16, %s18597_s24  ;;  %v429_v27 = vsel %vm426_vm2, %v427_v14, %v428_v15  ;;  %v288_v28 = vrot.slane %v76_v20, 2  ;;  %v289_v29 = vrot.slane %v77_v21, 2  ;;  %v143_v31 = vrot.slane %v76_v20, 1 }
  0x14   :  { %17615 = vrot.lane.b32.xlu0 %v17614_v22, %s18598_s2  ;;  %v432_v30 = vsel %vm426_vm2, %v430_v25, %v431_v24  ;;  %v144_v32 = vrot.slane %v77_v21, 1  ;;  %v17639_v35 = vpack.i.bf16 %v429_v27, %v431_v24  ;;  %v433_v38 = vrot.slane %v76_v20, 3  ;;  %v18812_v25 = vld [vmem:[%s24836_s3 + $0x78] sm:$0xff] }
  0x15   :  { %v17634_v36 = vpack.i.bf16 %v432_v30, %v428_v15  ;;  %v290_v37 = vsel %vm281_vm0, %v288_v28, %v289_v29  ;;  %v434_v39 = vrot.slane %v77_v21, 3  ;;  %v146_v41 = vrot.slane %v78_v33, 1  ;;  %v86_v21 = vld [vmem:[%s24836_s3 + $0x70] sm:$0xff]  ;;  %v18820_v30 = vld [vmem:[%s24836_s3 + $0x80] sm:$0xff] }
  0x16   :  { %v145_v40 = vsel %vm136_vm1, %v143_v31, %v144_v32  ;;  %v147_v42 = vrot.slane %v79_v34, 1  ;;  %v17649_v45 = vpack.i.bf16 %v289_v29, %v290_v37  ;;  %v436_v48 = vrot.slane %v78_v33, 3  ;;  %v18825_v31 = vld [vmem:[%s24836_s3 + $0x88] sm:$0xff] }
  0x17   :  { %17630 = vrot.lane.b32.xlu1 %v17629_v23, %s18597_s24  ;;  %v17644_v46 = vpack.i.bf16 %v144_v32, %v145_v40  ;;  %v435_v47 = vsel %vm426_vm2, %v433_v38, %v434_v39  ;;  %v437_v49 = vrot.slane %v79_v34, 3  ;;  %v291_v51 = vrot.slane %v78_v33, 2 }
  0x18   :  { %17620 = vrot.lane.b32.xlu0 %v17619_v26, %s18598_s2  ;;  %v148_v50 = vsel %vm136_vm1, %v146_v41, %v147_v42  ;;  %v292_v52 = vrot.slane %v79_v34, 2  ;;  %v294_v53 = vrot.slane %v80_v43, 2  ;;  %v295_v54 = vrot.slane %v81_v44, 2  ;;  %v18831_v34 = vld [vmem:[%s24836_s3 + $0x90] sm:$0xff] }
  0x19   :  { %v149_v55 = vrot.slane %v80_v43, 1  ;;  %v17659_v57 = vpack.i.bf16 %v434_v39, %v435_v47  ;;  %v150_v58 = vrot.slane %v81_v44, 1  ;;  %v17654_v59 = vpack.i.bf16 %v147_v42, %v148_v50 }
  0x1a   :  { %v438_v60 = vsel %vm426_vm2, %v436_v48, %v437_v49  ;;  %v293_v61 = vsel %vm281_vm0, %v291_v51, %v292_v52  ;;  %v439_v0 = vrot.slane %v80_v43, 3  ;;  %v440_v1 = vrot.slane %v81_v44, 3  ;;  %v18845_v44 = vld [vmem:[%s24836_s3 + $0xa0] sm:$0xff] }
  0x1b   :  { %17640 = vrot.lane.b32.xlu1 %v17639_v35, %s18599_s30  ;;  %v17669_v63 = vpack.i.bf16 %v437_v49, %v438_v60  ;;  %v152_v2 = vrot.slane %v82_v56, 1  ;;  %v17664_v5 = vpack.i.bf16 %v292_v52, %v293_v61  ;;  %v296_v6 = vsel %vm281_vm0, %v294_v53, %v295_v54  ;;  %v18836_v35 = vld [vmem:[%s24836_s3 + $0x98] sm:$0xff]  ;;  %v18877_v60 = vld [vmem:[%s24836_s3 + $0xc0] sm:$0xff] }
  0x1c   :  { %17635 = vrot.lane.b32.xlu0 %v17634_v36, %s18599_s30  ;;  %v151_v7 = vsel %vm136_vm1, %v149_v55, %v150_v58  ;;  %v153_v8 = vrot.slane %v83_v62, 1  ;;  %v442_v9 = vrot.slane %v82_v56, 3  ;;  %v443_v10 = vrot.slane %v83_v62, 3  ;;  %v18868_v55 = vld [vmem:[%s24836_s3 + $0xb8] sm:$0xff] }
  0x1d   :  { %v17679_v11 = vpack.i.bf16 %v295_v54, %v296_v6  ;;  %v17674_v12 = vpack.i.bf16 %v150_v58, %v151_v7  ;;  %v297_v13 = vrot.slane %v82_v56, 2  ;;  %v298_v14 = vrot.slane %v83_v62, 2  ;;  %v18863_v54 = vld [vmem:[%s24836_s3 + $0xb0] sm:$0xff] }
  0x1e   :  { %v441_v15 = vsel %vm426_vm2, %v439_v0, %v440_v1  ;;  %v300_v16 = vrot.slane %v84_v3, 2  ;;  %v301_v17 = vrot.slane %v18792_v4, 2  ;;  %v155_v18 = vrot.slane %v84_v3, 1  ;;  %v18896_v6 = vld [vmem:[%s24836_s3 + $0xd0] sm:$0xff] }
  0x1f   :  { %17650 = vrot.lane.b32.xlu1 %v17649_v45, %s18597_s24  ;;  %v154_v19 = vsel %vm136_vm1, %v152_v2, %v153_v8  ;;  %v156_v20 = vrot.slane %v18792_v4, 1  ;;  %v444_v22 = vsel %vm426_vm2, %v442_v9, %v443_v10  ;;  %v17689_v23 = vpack.i.bf16 %v440_v1, %v441_v15  ;;  %v18850_v45 = vld [vmem:[%s24836_s3 + $0xa8] sm:$0xff] }
  0x20   :  { %17645 = vrot.lane.b32.xlu0 %v17644_v46, %s18598_s2  ;;  %v299_v24 = vsel %vm281_vm0, %v297_v13, %v298_v14  ;;  %v17684_v26 = vpack.i.bf16 %v153_v8, %v154_v19  ;;  %v302_v27 = vsel %vm281_vm0, %v300_v16, %v301_v17  ;;  %v445_v28 = vrot.slane %v84_v3, 3  ;;  %v18886_v1 = vld [vmem:[%s24836_s3 + $0xc8] sm:$0xff]  ;;  %v18914_v16 = vld [vmem:[%s24836_s3 + $0xe0] sm:$0xff] }
  0x21   :  { %v446_v29 = vrot.slane %v18792_v4, 3  ;;  %v17699_v32 = vpack.i.bf16 %v443_v10, %v444_v22  ;;  %v157_v33 = vsel %vm136_vm1, %v155_v18, %v156_v20  ;;  %v17694_v36 = vpack.i.bf16 %v298_v14, %v299_v24 }
  0x22   :  { %v158_v37 = vrot.slane %v86_v21, 1  ;;  %v159_v38 = vrot.slane %v18812_v25, 1  ;;  %v448_v39 = vrot.slane %v86_v21, 3  ;;  %v17709_v40 = vpack.i.bf16 %v301_v17, %v302_v27  ;;  %v18919_v17 = vld [vmem:[%s24836_s3 + $0xe8] sm:$0xff]  ;;  %v18937_v27 = vld [vmem:[%s24836_s3 + $0xf8] sm:$0xff] }
  0x23   :  { %17660 = vrot.lane.b32.xlu1 %v17659_v57, %s18599_s30  ;;  %v449_v41 = vrot.slane %v18812_v25, 3  ;;  %v303_v42 = vrot.slane %v86_v21, 2  ;;  %v304_v43 = vrot.slane %v18812_v25, 2  ;;  %v17704_v46 = vpack.i.bf16 %v156_v20, %v157_v33 }
  0x24   :  { %17655 = vrot.lane.b32.xlu0 %v17654_v59, %s18598_s2  ;;  %v447_v47 = vsel %vm426_vm2, %v445_v28, %v446_v29  ;;  %v306_v48 = vrot.slane %v18820_v30, 2  ;;  %v307_v49 = vrot.slane %v18825_v31, 2  ;;  %v161_v50 = vrot.slane %v18820_v30, 1 }
  0x25   :  { %v162_v51 = vrot.slane %v18825_v31, 1  ;;  %v451_v52 = vrot.slane %v18820_v30, 3  ;;  %v452_v53 = vrot.slane %v18825_v31, 3  ;;  %v160_v56 = vsel %vm136_vm1, %v158_v37, %v159_v38 }
  0x26   :  { %v164_v57 = vrot.slane %v18831_v34, 1  ;;  %v165_v58 = vrot.slane %v18836_v35, 1  ;;  %v454_v59 = vrot.slane %v18831_v34, 3  ;;  %v17719_v61 = vpack.i.bf16 %v446_v29, %v447_v47 }
  0x27   :  { %17670 = vrot.lane.b32.xlu1 %v17669_v63, %s18599_s30  ;;  %v455_v62 = vrot.slane %v18836_v35, 3  ;;  %v309_v63 = vrot.slane %v18831_v34, 2  ;;  %v310_v0 = vrot.slane %v18836_v35, 2  ;;  %v450_v2 = vsel %vm426_vm2, %v448_v39, %v449_v41 }
  0x28   :  { %17665 = vrot.lane.b32.xlu0 %v17664_v5, %s18597_s24  ;;  %v312_v3 = vrot.slane %v18845_v44, 2  ;;  %v313_v4 = vrot.slane %v18850_v45, 2  ;;  %v167_v5 = vrot.slane %v18845_v44, 1  ;;  %v305_v7 = vsel %vm281_vm0, %v303_v42, %v304_v43 }
  0x29   :  { %v168_v8 = vrot.slane %v18850_v45, 1  ;;  %v457_v9 = vrot.slane %v18845_v44, 3  ;;  %v458_v10 = vrot.slane %v18850_v45, 3  ;;  %v171_v13 = vrot.slane %v18868_v55, 1 }
  0x2a   :  { %v315_v14 = vrot.slane %v18863_v54, 2  ;;  %v316_v15 = vrot.slane %v18868_v55, 2  ;;  %v17714_v18 = vpack.i.bf16 %v159_v38, %v160_v56  ;;  %v460_v19 = vrot.slane %v18863_v54, 3 }
  0x2b   :  { %17680 = vrot.lane.b32.xlu1 %v17679_v11, %s18597_s24  ;;  %v18905_v11 = vld [vmem:[%s24836_s3 + $0xd8] sm:$0xff]  ;;  %v461_v20 = vrot.slane %v18868_v55, 3  ;;  %v173_v21 = vrot.slane %v18877_v60, 1  ;;  %v17729_v22 = vpack.i.bf16 %v449_v41, %v450_v2  ;;  %v318_v24 = vrot.slane %v18877_v60, 2 }
  0x2c   :  { %17675 = vrot.lane.b32.xlu0 %v17674_v12, %s18598_s2  ;;  %v170_v12 = vrot.slane %v18863_v54, 1  ;;  %v319_v25 = vrot.slane %v18886_v1, 2  ;;  %v17724_v28 = vpack.i.bf16 %v304_v43, %v305_v7  ;;  %v463_v29 = vrot.slane %v18877_v60, 3 }
  0x2d   :  { %v176_v33 = vrot.slane %v18896_v6, 1  ;;  %v177_v37 = vrot.slane %v18905_v11, 1  ;;  %v321_v38 = vrot.slane %v18896_v6, 2  ;;  %v322_v39 = vrot.slane %v18905_v11, 2 }
  0x2e   :  { %v467_v41 = vrot.slane %v18905_v11, 3  ;;  %v324_v47 = vrot.slane %v18914_v16, 2  ;;  %v163_v2 = vsel %vm136_vm1, %v161_v50, %v162_v51  ;;  %v183_v42 = vrot.slane %v18937_v27, 1 }
  0x2f   :  { %17690 = vrot.lane.b32.xlu1 %v17689_v23, %s18599_s30  ;;  %v174_v23 = vrot.slane %v18886_v1, 1  ;;  %v17734_v50 = vpack.i.bf16 %v162_v51, %v163_v2  ;;  %v473_v43 = vrot.slane %v18937_v27, 3  ;;  %v24698_v7 = vmov 0.0  }
  0x30   :  { %17685 = vrot.lane.b32.xlu0 %v17684_v26, %s18598_s2  ;;  %v18932_v26 = vld [vmem:[%s24836_s3 + $0xf0] sm:$0xff]  ;;  %17327 = vmatprep.subr.bf16.mxu0 %v24698_v7  ;;  %v169_v34 = vsel %vm136_vm1, %v167_v5, %v168_v8  ;;  %v462_v44 = vsel %vm426_vm2, %v460_v19, %v461_v20  ;;  %v323_v60 = vsel %vm281_vm0, %v321_v38, %v322_v39 }
  0x31   :  { %17329 = vmatprep.mubr.msk.bf16.mxu0 %vm18601_vm3, %v24698_v7  ;;  %v17764_v35 = vpack.i.bf16 %v168_v8, %v169_v34  ;;  %v17789_v45 = vpack.i.bf16 %v461_v20, %v462_v44  ;;  %v320_v8 = vsel %vm281_vm0, %v318_v24, %v319_v25  ;;  %v175_v54 = vsel %vm136_vm1, %v173_v21, %v174_v23 }
  0x32   :  { %v17794_v55 = vpack.i.bf16 %v174_v23, %v175_v54  ;;  %v24839_v21 = vrot.slane %v18914_v16, 1 }
  0x33   :  { %17700 = vrot.lane.b32.xlu1 %v17699_v32, %s18599_s30  ;;  %v464_v32 = vrot.slane %v18886_v1, 3  ;;  %v17814_v1 = vpack.i.bf16 %v322_v39, %v323_v60 }
  0x34   :  { %17695 = vrot.lane.b32.xlu0 %v17694_v36, %s18597_s24  ;;  %v308_v36 = vsel %vm281_vm0, %v306_v48, %v307_v49  ;;  %v325_v48 = vrot.slane %v18919_v17, 2 }
  0x35   :  { %v17739_v56 = vpack.i.bf16 %v307_v49, %v308_v36  ;;  %v166_v49 = vsel %vm136_vm1, %v164_v57, %v165_v58  ;;  %v311_v57 = vsel %vm281_vm0, %v309_v63, %v310_v0  ;;  %v172_v63 = vsel %vm136_vm1, %v170_v12, %v171_v13 }
  0x36   :  { %v17744_v51 = vpack.i.bf16 %v165_v58, %v166_v49  ;;  %v314_v58 = vsel %vm281_vm0, %v312_v3, %v313_v4  ;;  %v17774_v3 = vpack.i.bf16 %v171_v13, %v172_v63  ;;  %v465_v12 = vsel %vm426_vm2, %v463_v29, %v464_v32 }
  0x37   :  { %17710 = vrot.lane.b32.xlu1 %v17709_v40, %s18597_s24  ;;  %v466_v40 = vrot.slane %v18896_v6, 3  ;;  %v326_v20 = vsel %vm281_vm0, %v324_v47, %v325_v48  ;;  %v24838_v6 = vrot.slane %v18919_v17, 1  ;;  %v24842_v29 = vrot.slane %v18919_v17, 3 }
  0x38   :  { %17705 = vrot.lane.b32.xlu0 %v17704_v46, %s18598_s2  ;;  %v18086_v46 = vld [vmem:[%s24837_s4] sm:$0xff]   ;;  %v17829_v23 = vpack.i.bf16 %v325_v48, %v326_v20 }
  0x39   :  { %17328 = vmatpush3.bf16.msra.mxu0 %v18086_v46  ;;  %v24840_v11 = vmov %v24838_v6 }
  0x3b   :  { %17720 = vrot.lane.b32.xlu1 %v17719_v61, %s18599_s30  ;;  %v472_v61 = vrot.slane %v18932_v26, 3 }
  0x3c   :  { %17715 = vrot.lane.b32.xlu0 %v17714_v18, %s18598_s2  ;;  %v453_v18 = vsel %vm426_vm2, %v451_v52, %v452_v53  ;;  %v456_v52 = vsel %vm426_vm2, %v454_v59, %v455_v62  ;;  %v17769_v59 = vpack.i.bf16 %v313_v4, %v314_v58  ;;  %v317_v4 = vsel %vm281_vm0, %v315_v14, %v316_v15 }
  0x3d   :  { %v17749_v30 = vpack.i.bf16 %v452_v53, %v453_v18  ;;  %v17759_v31 = vpack.i.bf16 %v455_v62, %v456_v52  ;;  %v17754_v53 = vpack.i.bf16 %v310_v0, %v311_v57  ;;  %v459_v62 = vsel %vm426_vm2, %v457_v9, %v458_v10 }
  0x3e   :  { %v17779_v0 = vpack.i.bf16 %v458_v10, %v459_v62  ;;  %v17784_v5 = vpack.i.bf16 %v316_v15, %v317_v4  ;;  %v17799_v9 = vpack.i.bf16 %v319_v25, %v320_v8  ;;  %v178_v10 = vsel %vm136_vm1, %v176_v33, %v177_v37 }
  0x3f   :  { %17730 = vrot.lane.b32.xlu1 %v17729_v22, %s18599_s30  ;;  %v17809_v13 = vpack.i.bf16 %v177_v37, %v178_v10  ;;  %v17804_v14 = vpack.i.bf16 %v464_v32, %v465_v12  ;;  %v468_v15 = vsel %vm426_vm2, %v466_v40, %v467_v41  ;;  %v181_v22 = vsel %vm136_vm1, %v24839_v21, %v24838_v6 }
  0x40   :  { %17725 = vrot.lane.b32.xlu0 %v17724_v28, %s18597_s24  ;;  %v17819_v19 = vpack.i.bf16 %v467_v41, %v468_v15  ;;  %v17824_v24 = vpack.i.bf16 %v24840_v11, %v181_v22  ;;  %v24841_v25 = vrot.slane %v18932_v26, 1  ;;  %v24843_v32 = vrot.slane %v18914_v16, 3 }
  0x41   :  { %v24844_v37 = vmov %v24842_v29  ;;  %v474_v39 = vsel %vm426_vm2, %v472_v61, %v473_v43  ;;  %v24845_v16 = vrot.slane %v18937_v27, 2  ;;  %v24846_v40 = vrot.slane %v18932_v26, 2 }
  0x42   :  { %v184_v28 = vsel %vm136_vm1, %v24841_v25, %v183_v42  ;;  %v471_v33 = vsel %vm426_vm2, %v24843_v32, %v24842_v29 }
  0x43   :  { %17740 = vrot.lane.b32.xlu1 %v17739_v56, %s18597_s24  ;;  %v17839_v36 = vpack.i.bf16 %v183_v42, %v184_v28  ;;  %v17834_v38 = vpack.i.bf16 %v24844_v37, %v471_v33  ;;  %v329_v41 = vsel %vm281_vm0, %v24846_v40, %v24845_v16  ;;  %v17849_v42 = vpack.i.bf16 %v473_v43, %v474_v39 }
  0x44   :  { %17735 = vrot.lane.b32.xlu0 %v17734_v50, %s18598_s2  ;;  %v24847_v17 = vmov %v24845_v16 }
  0x45   :  { %v17844_v46 = vpack.i.bf16 %v24847_v17, %v329_v41 }
  0x47   :  { %17750 = vrot.lane.b32.xlu1 %v17749_v30, %s18599_s30 }
  0x48   :  { %17745 = vrot.lane.b32.xlu0 %v17744_v51, %s18598_s2 }
  0x4b   :  { %17760 = vrot.lane.b32.xlu1 %v17759_v31, %s18599_s30 }
  0x4c   :  { %17755 = vrot.lane.b32.xlu0 %v17754_v53, %s18597_s24 }
  0x4f   :  { %17770 = vrot.lane.b32.xlu1 %v17769_v59, %s18597_s24 }
  0x50   :  { %17765 = vrot.lane.b32.xlu0 %v17764_v35, %s18598_s2 }
  0x53   :  { %17780 = vrot.lane.b32.xlu1 %v17779_v0, %s18599_s30 }
  0x54   :  { %17775 = vrot.lane.b32.xlu0 %v17774_v3, %s18598_s2 }
  0x57   :  { %17790 = vrot.lane.b32.xlu1 %v17789_v45, %s18599_s30 }
  0x58   :  { %17785 = vrot.lane.b32.xlu0 %v17784_v5, %s18597_s24 }
  0x5b   :  { %17800 = vrot.lane.b32.xlu1 %v17799_v9, %s18597_s24 }
  0x5c   :  { %17795 = vrot.lane.b32.xlu0 %v17794_v55, %s18598_s2 }
  0x5f   :  { %17810 = vrot.lane.b32.xlu1 %v17809_v13, %s18598_s2 }
  0x60   :  { %17805 = vrot.lane.b32.xlu0 %v17804_v14, %s18599_s30 }
  0x63   :  { %17820 = vrot.lane.b32.xlu1 %v17819_v19, %s18599_s30 }
  0x64   :  { %17815 = vrot.lane.b32.xlu0 %v17814_v1, %s18597_s24 }
  0x67   :  { %17830 = vrot.lane.b32.xlu1 %v17829_v23, %s18597_s24 }
  0x68   :  { %17825 = vrot.lane.b32.xlu0 %v17824_v24, %s18598_s2 }
  0x6b   :  { %17840 = vrot.lane.b32.xlu1 %v17839_v36, %s18598_s2 }
  0x6c   :  { %17835 = vrot.lane.b32.xlu0 %v17834_v38, %s18599_s30 }
  0x6f   :  { %17850 = vrot.lane.b32.xlu1 %v17849_v42, %s18599_s30 }
  0x70   :  { %17845 = vrot.lane.b32.xlu0 %v17844_v46, %s18597_s24 }
  0x71   :  { %28 = vsyncpa [#allocation4], 0  ;;  %v18602_v26 = vmov 1966171168   ;;  %v714_v61 = vlaneseq  ;;  %vm571_vm4 = vcmask 31744   ;;  %vm604_vm5 = vcmask 64512  }
  0x72   :  { %v712_v56 = vunpack.c.l.s4 %v18602_v26  ;;  %vm637_vm6 = vcmask 97280   ;;  %v18539_v58 = vld [vmem:[%s24836_s3 + $0x10] sm:$0xff]  ;;  %v18540_v59 = vld [vmem:[%s24836_s3 + $0x8] sm:$0xff]  ;;  %v18541_v62 = vld [vmem:[%s24836_s3] sm:$0xff]  ;;  %vm2668_vm7 = vcmask 130048   ;;  %s24850_s22 = sld [smem:[#allocation95_spill]] }
  0x73   :  { %v19159_v30 = vshrl.u32 %v714_v61, 7  ;;  %v18542_v0 = vld [vmem:[%s24836_s3 + $0x18] sm:$0xff]  ;;  %v18543_v40 = vld [vmem:[%s24836_s3 + $0x28] sm:$0xff]  ;;  %v18544_v46 = vld [vmem:[%s24836_s3 + $0x20] sm:$0xff]  ;;  %s18603_s23 = smov 64   ;;  %s24951_s26 = sld [smem:[#allocation96_spill]] }
  0x74   :  { %v713_v49 = vunpack.c.0.s8 %v712_v56  ;;  %vm8097_vm8 = vcmask 523264   ;;  %s25048_s0 = sld [smem:[#allocation98_spill]]  ;;  %vm11995_vm9 = vcmask 1041409   ;;  %vm11998_vm10 = vcmask 1042434   ;;  %s18606_s30 = smov 72  }
  0x75   :  { %24848 = vst [vmem:[#allocation6_spill] sm:$0xff] %v19159_v30  ;;  %vm12001_vm11 = vcmask 1043459   ;;  %vm12004_vm12 = vcmask 1044484   ;;  %vm12007_vm13 = vcmask 1045509   ;;  %vm12010_vm14 = vcmask 1046534   ;;  %s18607_s16 = smov 16  }
  0x76   :  { %v19178_v4 = vsub.s32 %v713_v49, %v19159_v30  ;;  %vm12013_vm15 = vcmask 1047559   ;;  %s18609_s5 = smov 32   ;;  %s18611_s1 = smov 48  }
  0x77   :  { %s18612_s25 = smov 120   ;;  %s18613_s2 = smov 96  }
  0x85   :  { %v17626_v47 = vpop.permute.xlu1 %17625 }
  0x86   :  { %v17616_v48 = vpop.permute.xlu0 %17615  ;;  %v17628_v31 = vunpack.i.h.bf16 %v17626_v47  ;;  %v17627_v53 = vunpack.i.l.bf16 %v17626_v47 }
  0x87   :  { %v17618_v2 = vunpack.i.h.bf16 %v17616_v48  ;;  %v17617_v18 = vunpack.i.l.bf16 %v17616_v48 }
  0x89   :  { %v17631_v50 = vpop.permute.xlu1 %17630  ;;  %v574_v34 = vsel %vm571_vm4, %v18539_v58, %v17618_v2  ;;  %v573_v35 = vsel %vm571_vm4, %v18540_v59, %v17617_v18 }
  0x8a   :  { %v17621_v43 = vpop.permute.xlu0 %17620  ;;  %v17633_v27 = vunpack.i.h.bf16 %v17631_v50  ;;  %v17632_v51 = vunpack.i.l.bf16 %v17631_v50  ;;  %v606_v14 = vsel %vm604_vm5, %v573_v35, %v17627_v53  ;;  %v607_v15 = vsel %vm604_vm5, %v574_v34, %v17628_v31 }
  0x8b   :  { %v17623_v52 = vunpack.i.h.bf16 %v17621_v43  ;;  %v17622_v57 = vunpack.i.l.bf16 %v17621_v43 }
  0x8d   :  { %v572_v63 = vsel %vm571_vm4, %v18541_v62, %v17623_v52  ;;  %v575_v3 = vsel %vm571_vm4, %v18542_v0, %v17622_v57  ;;  %v17641_v44 = vpop.permute.xlu1 %17640 }
  0x8e   :  { %v17643_v45 = vunpack.i.h.bf16 %v17641_v44  ;;  %v17642_v5 = vunpack.i.l.bf16 %v17641_v44  ;;  %v17636_v8 = vpop.permute.xlu0 %17635  ;;  %v605_v54 = vsel %vm604_vm5, %v572_v63, %v17633_v27  ;;  %v608_v9 = vsel %vm604_vm5, %v575_v3, %v17632_v51 }
  0x8f   :  { %v17638_v55 = vunpack.i.h.bf16 %v17636_v8  ;;  %v17637_v10 = vunpack.i.l.bf16 %v17636_v8 }
  0x90   :  { %v638_v12 = vsel %vm637_vm6, %v605_v54, %v17643_v45  ;;  %v641_v13 = vsel %vm637_vm6, %v608_v9, %v17642_v5 }
  0x91   :  { %v16635_v60 = vpack.c.bf16 %v641_v13, %v641_v13  ;;  %v640_v19 = vsel %vm637_vm6, %v607_v15, %v17638_v55  ;;  %v639_v1 = vsel %vm637_vm6, %v606_v14, %v17637_v10  ;;  %v17651_v20 = vpop.permute.xlu1 %17650  ;;  %v18545_v55 = vld [vmem:[%s24836_s3 + $0x38] sm:$0xff] }
  0x92   :  { %v670_v6 = vpack.c.bf16 %v639_v1, %v638_v12  ;;  %v16634_v21 = vpack.c.bf16 %v639_v1, %v639_v1  ;;  %v17646_v22 = vpop.permute.xlu0 %17645  ;;  %v671_v11 = vpack.c.bf16 %v641_v13, %v640_v19  ;;  %v17653_v39 = vunpack.i.h.bf16 %v17651_v20  ;;  %v18546_v12 = vld [vmem:[%s24836_s3 + $0x30] sm:$0xff] }
  0x93   :  { %v772_v23 = vrot.slane %v16635_v60, %v19178_v4  ;;  %v17648_v24 = vunpack.i.h.bf16 %v17646_v22  ;;  %v17647_v29 = vunpack.i.l.bf16 %v17646_v22  ;;  %v17652_v16 = vunpack.i.l.bf16 %v17651_v20 }
  0x94   :  { %v717_v25 = vrot.slane %v670_v6, %v19178_v4  ;;  %v724_v28 = vrot.slane %v16634_v21, %v19178_v4  ;;  %v765_v38 = vrot.slane %v671_v11, %v19178_v4 }
  0x95   :  { %v17661_v32 = vpop.permute.xlu1 %17660  ;;  %v774_v33 = vcombine.high %v772_v23, %v772_v23  ;;  %v19192_v37 = vrot.slane %v772_v23, %v19178_v4  ;;  %v577_v41 = vsel %vm571_vm4, %v18543_v40, %v17648_v24  ;;  %v576_v47 = vsel %vm571_vm4, %v18544_v46, %v17647_v29 }
  0x96   :  { %v17656_v36 = vpop.permute.xlu0 %17655  ;;  %v725_v42 = vcombine.high %v717_v25, %v717_v25  ;;  %v726_v17 = vcombine.high %v724_v28, %v724_v28  ;;  %v17663_v48 = vunpack.i.h.bf16 %v17661_v32  ;;  %v19207_v61 = vrot.slane %v717_v25, %v19178_v4 }
  0x97   :  { %v19204_v56 = vrot.slane %v774_v33, %v19178_v4  ;;  %v19210_v2 = vrot.slane %v724_v28, %v19178_v4  ;;  %v804_v50 = vcombine.high %v19192_v37, %v19192_v37  ;;  %v1500_v43 = vunpack.i.h.s16 %v19192_v37  ;;  %v18547_v28 = vld [vmem:[%s24836_s3 + $0x48] sm:$0xff] }
  0x98   :  { %v773_v49 = vcombine.high %v765_v38, %v765_v38  ;;  %v17662_v27 = vunpack.i.l.bf16 %v17661_v32  ;;  %v609_v51 = vsel %vm604_vm5, %v576_v47, %v17652_v16  ;;  %v610_v52 = vsel %vm604_vm5, %v577_v41, %v17653_v39  ;;  %v18548_v41 = vld [vmem:[%s24836_s3 + $0x40] sm:$0xff] }
  0x99   :  { %v17671_v26 = vpop.permute.xlu1 %17670  ;;  %v17658_v57 = vunpack.i.h.bf16 %v17656_v36  ;;  %v17657_v31 = vunpack.i.l.bf16 %v17656_v36  ;;  %v19218_v53 = vrot.slane %v725_v42, %v19178_v4  ;;  %v19221_v58 = vrot.slane %v726_v17, %v19178_v4 }
  0x9a   :  { %v17666_v18 = vpop.permute.xlu0 %17665  ;;  %v642_v34 = vsel %vm637_vm6, %v609_v51, %v17662_v27  ;;  %v643_v59 = vsel %vm637_vm6, %v610_v52, %v17663_v48  ;;  %v756_v62 = vcombine.high %v19210_v2, %v19210_v2  ;;  %v781_v63 = vrot.slane %v765_v38, %v19178_v4 }
  0x9b   :  { %v672_v0 = vpack.c.bf16 %v643_v59, %v642_v34  ;;  %v16636_v3 = vpack.c.bf16 %v643_v59, %v643_v59  ;;  %v17673_v45 = vunpack.i.h.bf16 %v17671_v26  ;;  %v17672_v5 = vunpack.i.l.bf16 %v17671_v26 }
  0x9c   :  { %v17668_v8 = vunpack.i.h.bf16 %v17666_v18  ;;  %v17667_v54 = vunpack.i.l.bf16 %v17666_v18  ;;  %v579_v10 = vsel %vm571_vm4, %v18545_v55, %v17658_v57  ;;  %v578_v13 = vsel %vm571_vm4, %v18546_v12, %v17657_v31 }
  0x9d   :  { %v17681_v35 = vpop.permute.xlu1 %17680  ;;  %v813_v9 = vrot.slane %v672_v0, %v19178_v4  ;;  %v1502_v15 = vunpack.i.h.s16 %v19204_v56  ;;  %v19241_v6 = vpack.i.b16 %v19204_v56, %v1500_v43  ;;  %v820_v21 = vrot.slane %v16636_v3, %v19178_v4 }
  0x9e   :  { %v17676_v44 = vpop.permute.xlu0 %17675  ;;  %v611_v60 = vsel %vm604_vm5, %v578_v13, %v17667_v54  ;;  %v612_v19 = vsel %vm604_vm5, %v579_v10, %v17668_v8  ;;  %v17683_v23 = vunpack.i.h.bf16 %v17681_v35  ;;  %v19245_v11 = vrot.slane %v773_v49, %v19178_v4  ;;  %v18550_v8 = vld [vmem:[%s24836_s3 + $0x50] sm:$0xff] }
  0x9f   :  { %v17678_v14 = vunpack.i.h.bf16 %v17676_v44  ;;  %v17677_v1 = vunpack.i.l.bf16 %v17676_v44  ;;  %v821_v22 = vcombine.high %v813_v9, %v813_v9  ;;  %v19247_v24 = vcombine.high %v781_v63, %v781_v63  ;;  %v18549_v44 = vld [vmem:[%s24836_s3 + $0x58] sm:$0xff] }
  0xa0   :  { %v645_v25 = vsel %vm637_vm6, %v612_v19, %v17673_v45  ;;  %v1492_v33 = vunpack.i.h.s16 %v781_v63  ;;  %v16650_v36 = vpack.i.b16 %v781_v63, %v756_v62  ;;  %v644_v38 = vsel %vm637_vm6, %v611_v60, %v17672_v5 }
  0xa1   :  { %v17691_v20 = vpop.permute.xlu1 %17690  ;;  %v581_v29 = vsel %vm571_vm4, %v18547_v28, %v17678_v14  ;;  %v17682_v39 = vunpack.i.l.bf16 %v17681_v35  ;;  %v1839_v16 = vcombine.low %v19207_v61, %v19218_v53  ;;  %v16637_v40 = vpack.c.bf16 %v645_v25, %v645_v25 }
  0xa2   :  { %v17686_v32 = vpop.permute.xlu0 %17685  ;;  %v580_v42 = vsel %vm571_vm4, %v18548_v41, %v17677_v1  ;;  %v17693_v17 = vunpack.i.h.bf16 %v17691_v20  ;;  %v822_v47 = vcombine.high %v820_v21, %v820_v21  ;;  %v19262_v48 = vrot.slane %v813_v9, %v19178_v4 }
  0xa3   :  { %v19265_v26 = vrot.slane %v821_v22, %v19178_v4  ;;  %v614_v56 = vsel %vm604_vm5, %v581_v29, %v17683_v23  ;;  %v673_v18 = vpack.c.bf16 %v645_v25, %v644_v38  ;;  %v17692_v43 = vunpack.i.l.bf16 %v17691_v20 }
  0xa4   :  { %v647_v49 = vsel %vm637_vm6, %v614_v56, %v17693_v17  ;;  %v17688_v27 = vunpack.i.h.bf16 %v17686_v32  ;;  %v16706_v51 = vcombine.high %v19207_v61, %v19218_v53  ;;  %v1841_v52 = vcombine.low %v19210_v2, %v19221_v58 }
  0xa5   :  { %v17701_v46 = vpop.permute.xlu1 %17700  ;;  %v613_v57 = vsel %vm604_vm5, %v580_v42, %v17682_v39  ;;  %v17687_v31 = vunpack.i.l.bf16 %v17686_v32  ;;  %v19277_v34 = vpack.i.b16 %v804_v50, %v1502_v15  ;;  %v868_v59 = vrot.slane %v16637_v40, %v19178_v4 }
  0xa6   :  { %v17696_v35 = vpop.permute.xlu0 %17695  ;;  %v16651_v62 = vpack.i.b16 %v19245_v11, %v1492_v33  ;;  %v1849_v63 = vrot.slane %v1839_v16, %v19178_v4  ;;  %v19283_v61 = vrot.slane %v820_v21, %v19178_v4  ;;  %v19286_v2 = vrot.slane %v822_v47, %v19178_v4 }
  0xa7   :  { %v851_v53 = vcombine.high %v19262_v48, %v19262_v48  ;;  %v16638_v58 = vpack.c.bf16 %v647_v49, %v647_v49  ;;  %v853_v50 = vcombine.high %v19265_v26, %v19265_v26  ;;  %v861_v0 = vrot.slane %v673_v18, %v19178_v4 }
  0xa8   :  { %v646_v3 = vsel %vm637_vm6, %v613_v57, %v17692_v43  ;;  %v583_v45 = vsel %vm571_vm4, %v18549_v44, %v17688_v27  ;;  %v582_v54 = vsel %vm571_vm4, %v18550_v8, %v17687_v31  ;;  %v17703_v9 = vunpack.i.h.bf16 %v17701_v46 }
  0xa9   :  { %v17711_v5 = vpop.permute.xlu1 %17710  ;;  %v17702_v55 = vunpack.i.l.bf16 %v17701_v46  ;;  %v17698_v10 = vunpack.i.h.bf16 %v17696_v35  ;;  %v870_v12 = vcombine.high %v868_v59, %v868_v59  ;;  %v17697_v13 = vunpack.i.l.bf16 %v17696_v35 }
  0xaa   :  { %v1842_v14 = vcombine.low %v16650_v36, %v16651_v62  ;;  %v1856_v15 = vrot.slane %v16706_v51, %v19178_v4  ;;  %v852_v60 = vcombine.high %v19283_v61, %v19283_v61  ;;  %v1890_v19 = vcombine.low %v19277_v34, %v19262_v48  ;;  %v17706_v36 = vpop.permute.xlu0 %17705 }
  0xab   :  { %v674_v1 = vpack.c.bf16 %v647_v49, %v646_v3  ;;  %v916_v20 = vrot.slane %v16638_v58, %v19178_v4  ;;  %v615_v21 = vsel %vm604_vm5, %v582_v54, %v17697_v13  ;;  %v616_v22 = vsel %vm604_vm5, %v583_v45, %v17698_v10  ;;  %v18551_v3 = vld [vmem:[%s24836_s3 + $0x68] sm:$0xff] }
  0xac   :  { %v1863_v23 = vrot.slane %v1841_v52, %v19178_v4  ;;  %v1870_v25 = vrot.slane %v1842_v14, %v19178_v4  ;;  %v19313_v28 = vcombine.low %v853_v50, %v19283_v61  ;;  %v869_v29 = vcombine.high %v861_v0, %v861_v0 }
  0xad   :  { %v648_v32 = vsel %vm637_vm6, %v615_v21, %v17702_v55  ;;  %v649_v33 = vsel %vm637_vm6, %v616_v22, %v17703_v9  ;;  %v19318_v38 = vrot.slane %v870_v12, %v19178_v4  ;;  %v1871_v16 = vcombine.low %v1849_v63, %v1856_v15  ;;  %v17721_v41 = vpop.permute.xlu1 %17720 }
  0xae   :  { %v16639_v39 = vpack.c.bf16 %v649_v33, %v649_v33  ;;  %v1872_v40 = vcombine.low %v1863_v23, %v1870_v25  ;;  %v909_v42 = vrot.slane %v674_v1, %v19178_v4  ;;  %v918_v17 = vcombine.high %v916_v20, %v916_v20 }
  0xaf   :  { %v675_v46 = vpack.c.bf16 %v649_v33, %v648_v32  ;;  %v17713_v47 = vunpack.i.h.bf16 %v17711_v5  ;;  %v1879_v18 = vrot.slane %v1871_v16, %v19178_v4  ;;  %v17712_v49 = vunpack.i.l.bf16 %v17711_v5 }
  0xb0   :  { %v964_v56 = vrot.slane %v16639_v39, %v19178_v4  ;;  %v1886_v43 = vrot.slane %v1872_v40, %v19178_v4  ;;  %v17708_v27 = vunpack.i.h.bf16 %v17706_v36  ;;  %v17707_v51 = vunpack.i.l.bf16 %v17706_v36 }
  0xb1   :  { %v17723_v52 = vunpack.i.h.bf16 %v17721_v41  ;;  %v17722_v57 = vunpack.i.l.bf16 %v17721_v41  ;;  %v19325_v31 = vrot.slane %v861_v0, %v19178_v4  ;;  %v19328_v35 = vrot.slane %v868_v59, %v19178_v4  ;;  %v18552_v0 = vld [vmem:[%s24836_s3 + $0x60] sm:$0xff]  ;;  %v17716_v59 = vpop.permute.xlu0 %17715  ;;  %v17731_v39 = vpop.permute.xlu1 %17730 }
  0xb2   :  { %v19331_v62 = vrot.slane %v916_v20, %v19178_v4  ;;  %v966_v63 = vcombine.high %v964_v56, %v964_v56  ;;  %v917_v58 = vcombine.high %v909_v42, %v909_v42  ;;  %v1887_v50 = vcombine.low %v1879_v18, %v1886_v43 }
  0xb3   :  { %v585_v44 = vsel %vm571_vm4, %v18551_v3, %v17708_v27  ;;  %v584_v45 = vsel %vm571_vm4, %v18552_v0, %v17707_v51  ;;  %v19342_v5 = vrot.slane %v918_v17, %v19178_v4  ;;  %v957_v8 = vrot.slane %v675_v46, %v19178_v4 }
  0xb4   :  { %v617_v54 = vsel %vm604_vm5, %v584_v45, %v17712_v49  ;;  %v618_v9 = vsel %vm604_vm5, %v585_v44, %v17713_v47  ;;  %v19348_v55 = vrot.slane %v869_v29, %v19178_v4  ;;  %v1528_v10 = vunpack.i.h.s16 %v19318_v38  ;;  %17330 = vmatmul.mubr.msk.bf16.vlgmr.msra.gmra.mxu0 %vm2668_vm7, %v1887_v50 }
  0xb5   :  { %v650_v12 = vsel %vm637_vm6, %v617_v54, %v17722_v57  ;;  %v651_v13 = vsel %vm637_vm6, %v618_v9, %v17723_v52  ;;  %v19355_v14 = vrot.slane %v909_v42, %v19178_v4  ;;  %v948_v15 = vcombine.high %v19331_v62, %v19331_v62  ;;  %17333 = vmatprep.mubr.msk.bf16.mxu0 %vm18601_vm3, %v24698_v7  ;;  %v17726_v42 = vpop.permute.xlu0 %17725  ;;  %v18553_v52 = vld [vmem:[%s24836_s3 + $0x78] sm:$0xff]  ;;  %v17741_v44 = vpop.permute.xlu1 %17740 }
  0xb6   :  { %v19360_v1 = vrot.slane %v966_v63, %v19178_v4  ;;  %v676_v20 = vpack.c.bf16 %v651_v13, %v650_v12  ;;  %v805_v21 = vcombine.high %v19245_v11, %v19245_v11  ;;  %v1494_v22 = vunpack.i.h.s16 %v19245_v11  ;;  %v18554_v63 = vld [vmem:[%s24836_s3 + $0x70] sm:$0xff] }
  0xb7   :  { %v1496_v23 = vunpack.i.h.s16 %v19247_v24  ;;  %v1891_v25 = vcombine.low %v19265_v26, %v851_v53  ;;  %v19373_v29 = vrot.slane %v917_v58, %v19178_v4  ;;  %v1989_v32 = vcombine.low %v19331_v62, %v19342_v5  ;;  %v18562_v62 = vld [vmem:[%s24836_s3 + $0xb0] sm:$0xff] }
  0xb8   :  { %v965_v33 = vcombine.high %v957_v8, %v957_v8  ;;  %v16640_v36 = vpack.c.bf16 %v651_v13, %v651_v13  ;;  %v19378_v16 = vrot.slane %v964_v56, %v19178_v4  ;;  %v1498_v11 = vunpack.i.h.s16 %v805_v21 }
  0xb9   :  { %v16652_v40 = vpack.i.b16 %v19247_v24, %v1494_v22  ;;  %v16653_v41 = vpack.i.b16 %v805_v21, %v1496_v23  ;;  %v1005_v17 = vrot.slane %v676_v20, %v19178_v4  ;;  %v1554_v26 = vunpack.i.h.s16 %v19360_v1 }
  0xba   :  { %v17718_v53 = vunpack.i.h.bf16 %v17716_v59  ;;  %v17717_v46 = vunpack.i.l.bf16 %v17716_v59  ;;  %v16654_v47 = vpack.i.b16 %v19192_v37, %v1498_v11  ;;  %v1912_v56 = vrot.slane %v1890_v19, %v19178_v4 }
  0xbb   :  { %v1888_v18 = vcombine.low %v16652_v40, %v16653_v41  ;;  %v1919_v43 = vrot.slane %v1891_v25, %v19178_v4  ;;  %v1987_v24 = vcombine.low %v19355_v14, %v19373_v29  ;;  %v16707_v49 = vcombine.high %v19355_v14, %v19373_v29  ;;  %v18559_v29 = vld [vmem:[%s24836_s3 + $0xa8] sm:$0xff] }
  0xbc   :  { %v19394_v27 = vrot.slane %v957_v8, %v19178_v4  ;;  %v19397_v51 = vrot.slane %v16640_v36, %v19178_v4  ;;  %v19400_v37 = vrot.slane %v965_v33, %v19178_v4  ;;  %v996_v48 = vcombine.high %v19378_v16, %v19378_v16  ;;  %v17736_v8 = vpop.permute.xlu0 %17735 }
  0xbd   :  { %v1889_v34 = vcombine.low %v16654_v47, %v19241_v6  ;;  %v1921_v19 = vcombine.low %v1912_v56, %v1919_v43  ;;  %v587_v57 = vsel %vm571_vm4, %v18553_v52, %v17718_v53  ;;  %v586_v58 = vsel %vm571_vm4, %v18554_v63, %v17717_v46  ;;  %v17751_v47 = vpop.permute.xlu1 %17750 }
  0xbe   :  { %v17728_v50 = vunpack.i.h.bf16 %v17726_v42  ;;  %v17727_v3 = vunpack.i.l.bf16 %v17726_v42  ;;  %v1013_v0 = vcombine.high %v1005_v17, %v1005_v17  ;;  %v19413_v45 = vpack.i.b16 %v996_v48, %v1554_v26 }
  0xbf   :  { %v1898_v6 = vrot.slane %v1888_v18, %v19178_v4  ;;  %v1905_v59 = vrot.slane %v1889_v34, %v19178_v4  ;;  %v1014_v54 = vcombine.high %v19397_v51, %v19397_v51  ;;  %v19420_v9 = vrot.slane %v1005_v17, %v19178_v4 }
  0xc0   :  { %v19424_v12 = vrot.slane %v19397_v51, %v19178_v4  ;;  %v17732_v13 = vunpack.i.l.bf16 %v17731_v39  ;;  %v1935_v21 = vrot.slane %v1921_v19, %v19178_v4  ;;  %v17733_v22 = vunpack.i.h.bf16 %v17731_v39  ;;  %v17746_v48 = vpop.permute.xlu0 %17745  ;;  %v18555_v19 = vld [vmem:[%s24836_s3 + $0x88] sm:$0xff] }
  0xc1   :  { %v1920_v20 = vcombine.low %v1898_v6, %v1905_v59  ;;  %v619_v23 = vsel %vm604_vm5, %v586_v58, %v17727_v3  ;;  %v620_v25 = vsel %vm604_vm5, %v587_v57, %v17728_v50  ;;  %v17738_v33 = vunpack.i.h.bf16 %v17736_v8  ;;  %v18556_v57 = vld [vmem:[%s24836_s3 + $0x80] sm:$0xff] }
  0xc2   :  { %v17737_v36 = vunpack.i.l.bf16 %v17736_v8  ;;  %v899_v11 = vcombine.high %v19325_v31, %v19325_v31  ;;  %v19432_v40 = vrot.slane %v1013_v0, %v19178_v4  ;;  %v901_v42 = vcombine.high %v19348_v55, %v19348_v55 }
  0xc3   :  { %v1928_v41 = vrot.slane %v1920_v20, %v19178_v4  ;;  %v1518_v17 = vunpack.i.h.s16 %v19325_v31  ;;  %v652_v39 = vsel %vm637_vm6, %v619_v23, %v17732_v13  ;;  %v17743_v26 = vunpack.i.h.bf16 %v17741_v44  ;;  %v17761_v23 = vpop.permute.xlu1 %17760 }
  0xc4   :  { %v1520_v53 = vunpack.i.h.s16 %v19348_v55  ;;  %v1522_v46 = vunpack.i.h.s16 %v899_v11  ;;  %v653_v56 = vsel %vm637_vm6, %v620_v25, %v17733_v22  ;;  %v1524_v43 = vunpack.i.h.s16 %v901_v42 }
  0xc5   :  { %v1936_v18 = vcombine.low %v1928_v41, %v1935_v21  ;;  %v16657_v51 = vpack.i.b16 %v19325_v31, %v852_v60  ;;  %v17742_v34 = vunpack.i.l.bf16 %v17741_v44  ;;  %v589_v52 = vsel %vm571_vm4, %v18555_v19, %v17738_v33 }
  0xc6   :  { %v588_v63 = vsel %vm571_vm4, %v18556_v57, %v17737_v36  ;;  %v16658_v58 = vpack.i.b16 %v19348_v55, %v1518_v17  ;;  %v16659_v61 = vpack.i.b16 %v899_v11, %v1520_v53  ;;  %v16660_v60 = vpack.i.b16 %v901_v42, %v1522_v46  ;;  %v17756_v11 = vpop.permute.xlu0 %17755  ;;  %v18557_v46 = vld [vmem:[%s24836_s3 + $0x98] sm:$0xff] }
  0xc7   :  { %17334 = vmatmul.mubr.msk.bf16.gmra.mxu0 %vm2668_vm7, %v1936_v18  ;;  %v16661_v31 = vpack.i.b16 %v19328_v35, %v1524_v43  ;;  %v1938_v50 = vcombine.low %v19286_v2, %v16657_v51  ;;  %v677_v3 = vpack.c.bf16 %v653_v56, %v652_v39  ;;  %v16641_v44 = vpack.c.bf16 %v653_v56, %v653_v56 }
  0xc8   :  { %17337 = vmatprep.mubr.msk.bf16.mxu0 %vm18601_vm3, %v24698_v7  ;;  %v1947_v0 = vrot.slane %v19313_v28, %v19178_v4  ;;  %v17753_v6 = vunpack.i.h.bf16 %v17751_v47  ;;  %v1939_v59 = vcombine.low %v16658_v58, %v16659_v61  ;;  %v17752_v13 = vunpack.i.l.bf16 %v17751_v47 }
  0xc9   :  { %v1940_v8 = vcombine.low %v16660_v60, %v16661_v31  ;;  %v1954_v55 = vrot.slane %v1938_v50, %v19178_v4  ;;  %v19463_v20 = vrot.slane %v1014_v54, %v19178_v4  ;;  %v621_v21 = vsel %vm604_vm5, %v588_v63, %v17742_v34  ;;  %v17771_v31 = vpop.permute.xlu1 %17770 }
  0xca   :  { %v622_v2 = vsel %vm604_vm5, %v589_v52, %v17743_v26  ;;  %v17748_v22 = vunpack.i.h.bf16 %v17746_v48  ;;  %v1961_v25 = vrot.slane %v1939_v59, %v19178_v4  ;;  %v654_v36 = vsel %vm637_vm6, %v621_v21, %v17752_v13  ;;  %v18558_v52 = vld [vmem:[%s24836_s3 + $0x90] sm:$0xff] }
  0xcb   :  { %v1968_v33 = vrot.slane %v1940_v8, %v19178_v4  ;;  %v1969_v28 = vcombine.low %v1947_v0, %v1954_v55  ;;  %v1045_v41 = vcombine.high %v19432_v40, %v19432_v40  ;;  %v19473_v54 = vrot.slane %v677_v3, %v19178_v4 }
  0xcc   :  { %v655_v42 = vsel %vm637_vm6, %v622_v2, %v17753_v6  ;;  %v17747_v17 = vunpack.i.l.bf16 %v17746_v48  ;;  %v1060_v39 = vrot.slane %v16641_v44, %v19178_v4  ;;  %v591_v47 = vsel %vm571_vm4, %v18557_v46, %v17748_v22 }
  0xcd   :  { %v1970_v26 = vcombine.low %v1961_v25, %v1968_v33  ;;  %v678_v53 = vpack.c.bf16 %v655_v42, %v654_v36  ;;  %v1977_v18 = vrot.slane %v1969_v28, %v19178_v4  ;;  %v17763_v56 = vunpack.i.h.bf16 %v17761_v23 }
  0xce   :  { %v17758_v43 = vunpack.i.h.bf16 %v17756_v11  ;;  %v17757_v51 = vunpack.i.l.bf16 %v17756_v11  ;;  %v16642_v19 = vpack.c.bf16 %v655_v42, %v655_v42  ;;  %v590_v57 = vsel %vm571_vm4, %v18558_v52, %v17747_v17  ;;  %v17781_v17 = vpop.permute.xlu1 %17780 }
  0xcf   :  { %v1984_v34 = vrot.slane %v1970_v26, %v19178_v4  ;;  %v1101_v48 = vrot.slane %v678_v53, %v19178_v4  ;;  %v1043_v63 = vcombine.high %v19420_v9, %v19420_v9  ;;  %v1044_v58 = vcombine.high %v19424_v12, %v19424_v12 }
  0xd0   :  { %v624_v61 = vsel %vm604_vm5, %v591_v47, %v17758_v43  ;;  %v1526_v60 = vunpack.i.h.s16 %v19328_v35  ;;  %v2038_v50 = vcombine.low %v19413_v45, %v19420_v9  ;;  %v1062_v3 = vcombine.high %v1060_v39, %v1060_v39 }
  0xd1   :  { %v1985_v44 = vcombine.low %v1977_v18, %v1984_v34  ;;  %v17762_v0 = vunpack.i.l.bf16 %v17761_v23  ;;  %v19497_v6 = vcombine.low %v1045_v41, %v19424_v12  ;;  %v623_v59 = vsel %vm604_vm5, %v590_v57, %v17757_v51  ;;  %v17766_v23 = vpop.permute.xlu0 %17765 }
  0xd2   :  { %v657_v8 = vsel %vm637_vm6, %v624_v61, %v17763_v56  ;;  %v900_v55 = vcombine.high %v19328_v35, %v19328_v35  ;;  %v1061_v13 = vcombine.high %v19473_v54, %v19473_v54  ;;  %v19507_v21 = vrot.slane %v19473_v54, %v19178_v4 }
  0xd3   :  { %17338 = vmatmul.mubr.msk.bf16.gmra.mxu0 %vm2668_vm7, %v1985_v44  ;;  %v1108_v2 = vrot.slane %v16642_v19, %v19178_v4  ;;  %v1109_v22 = vcombine.high %v1101_v48, %v1101_v48  ;;  %v16662_v25 = vpack.i.b16 %v19318_v38, %v1526_v60  ;;  %v2010_v33 = vrot.slane %v16707_v49, %v19178_v4 }
  0xd4   :  { %17341 = vmatprep.mubr.msk.bf16.mxu0 %vm18601_vm3, %v24698_v7  ;;  %v16663_v35 = vpack.i.b16 %v900_v55, %v1528_v10  ;;  %v2017_v28 = vrot.slane %v1989_v32, %v19178_v4  ;;  %v19525_v36 = vrot.slane %v1060_v39, %v19178_v4  ;;  %v19528_v11 = vrot.slane %v1062_v3, %v19178_v4 }
  0xd5   :  { %v656_v41 = vsel %vm637_vm6, %v623_v59, %v17762_v0  ;;  %v16643_v38 = vpack.c.bf16 %v657_v8, %v657_v8  ;;  %v2003_v49 = vrot.slane %v1987_v24, %v19178_v4  ;;  %v17773_v42 = vunpack.i.h.bf16 %v17771_v31  ;;  %v17776_v51 = vpop.permute.xlu0 %17775 }
  0xd6   :  { %v1986_v10 = vcombine.low %v16662_v25, %v16663_v35  ;;  %v2019_v54 = vcombine.low %v2010_v33, %v2017_v28  ;;  %v1110_v5 = vcombine.high %v1108_v2, %v1108_v2  ;;  %v19536_v32 = vrot.slane %v1101_v48, %v19178_v4 }
  0xd7   :  { %v19539_v39 = vrot.slane %v1108_v2, %v19178_v4  ;;  %v17768_v26 = vunpack.i.h.bf16 %v17766_v23  ;;  %v19542_v53 = vrot.slane %v1109_v22, %v19178_v4  ;;  %v679_v46 = vpack.c.bf16 %v657_v8, %v656_v41 }
  0xd8   :  { %v1996_v47 = vrot.slane %v1986_v10, %v19178_v4  ;;  %v17772_v18 = vunpack.i.l.bf16 %v17771_v31  ;;  %v1156_v14 = vrot.slane %v16643_v38, %v19178_v4  ;;  %v17767_v56 = vunpack.i.l.bf16 %v17766_v23  ;;  %v18560_v31 = vld [vmem:[%s24836_s3 + $0xa0] sm:$0xff] }
  0xd9   :  { %v593_v24 = vsel %vm571_vm4, %v18559_v29, %v17768_v26  ;;  %v17783_v43 = vunpack.i.h.bf16 %v17781_v17  ;;  %v2033_v19 = vrot.slane %v2019_v54, %v19178_v4  ;;  %v17782_v48 = vunpack.i.l.bf16 %v17781_v17 }
  0xda   :  { %v2018_v34 = vcombine.low %v1996_v47, %v2003_v49  ;;  %v626_v52 = vsel %vm604_vm5, %v593_v24, %v17773_v42  ;;  %v19553_v57 = vrot.slane %v1061_v13, %v19178_v4  ;;  %v1580_v61 = vunpack.i.h.s16 %v19528_v11  ;;  %v17786_v49 = vpop.permute.xlu0 %17785 }
  0xdb   :  { %v19557_v60 = vrot.slane %v1110_v5, %v19178_v4  ;;  %v592_v3 = vsel %vm571_vm4, %v18560_v31, %v17767_v56  ;;  %v1140_v44 = vcombine.high %v19539_v39, %v19539_v39  ;;  %v2135_v0 = vcombine.low %v19536_v32, %v19542_v53 }
  0xdc   :  { %v2026_v59 = vrot.slane %v2018_v34, %v19178_v4  ;;  %v625_v8 = vsel %vm604_vm5, %v592_v3, %v17772_v18  ;;  %v1149_v55 = vrot.slane %v679_v46, %v19178_v4  ;;  %v659_v2 = vsel %vm637_vm6, %v626_v52, %v17783_v43  ;;  %v17791_v43 = vpop.permute.xlu1 %17790  ;;  %v18561_v52 = vld [vmem:[%s24836_s3 + $0xb8] sm:$0xff] }
  0xdd   :  { %v658_v13 = vsel %vm637_vm6, %v625_v8, %v17782_v48  ;;  %v995_v22 = vcombine.high %v19394_v27, %v19394_v27  ;;  %v16708_v23 = vcombine.high %v19536_v32, %v19542_v53  ;;  %v1158_v25 = vcombine.high %v1156_v14, %v1156_v14 }
  0xde   :  { %v19577_v35 = vrot.slane %v1156_v14, %v19178_v4  ;;  %v2034_v33 = vcombine.low %v2026_v59, %v2033_v19  ;;  %v2182_v28 = vcombine.low %v19539_v39, %v19557_v60  ;;  %v997_v41 = vcombine.high %v19400_v37, %v19400_v37  ;;  %v17796_v8 = vpop.permute.xlu0 %17795 }
  0xdf   :  { %v1544_v38 = vunpack.i.h.s16 %v19394_v27  ;;  %v1546_v10 = vunpack.i.h.s16 %v19400_v37  ;;  %v680_v54 = vpack.c.bf16 %v659_v2, %v658_v13  ;;  %v17778_v42 = vunpack.i.h.bf16 %v17776_v51 }
  0xe0   :  { %17342 = vmatmul.mubr.msk.bf16.gmra.mxu0 %vm2668_vm7, %v2034_v33  ;;  %v17777_v17 = vunpack.i.l.bf16 %v17776_v51  ;;  %v1548_v5 = vunpack.i.h.s16 %v995_v22  ;;  %v1157_v26 = vcombine.high %v1149_v55, %v1149_v55  ;;  %v1550_v46 = vunpack.i.h.s16 %v997_v41 }
  0xe1   :  { %17345 = vmatprep.mubr.msk.bf16.mxu0 %vm18601_vm3, %v24698_v7  ;;  %v1552_v47 = vunpack.i.h.s16 %v19378_v16  ;;  %v16665_v18 = vpack.i.b16 %v19400_v37, %v1544_v38  ;;  %v19591_v14 = vrot.slane %v1158_v25, %v19178_v4  ;;  %v1188_v29 = vcombine.high %v19577_v35, %v19577_v35 }
  0xe2   :  { %v16644_v24 = vpack.c.bf16 %v659_v2, %v659_v2  ;;  %v16664_v56 = vpack.i.b16 %v19394_v27, %v948_v15  ;;  %v16666_v51 = vpack.i.b16 %v995_v22, %v1546_v10  ;;  %v16667_v34 = vpack.i.b16 %v997_v41, %v1548_v5 }
  0xe3   :  { %v16668_v19 = vpack.i.b16 %v19378_v16, %v1550_v46  ;;  %v16669_v48 = vpack.i.b16 %v19360_v1, %v1552_v47  ;;  %v1197_v37 = vrot.slane %v680_v54, %v19178_v4  ;;  %v595_v31 = vsel %vm571_vm4, %v18561_v52, %v17778_v42  ;;  %v17806_v52 = vpop.permute.xlu0 %17805 }
  0xe4   :  { %v594_v15 = vsel %vm571_vm4, %v18562_v62, %v17777_v17  ;;  %v2035_v27 = vcombine.low %v16664_v56, %v16665_v18  ;;  %v2036_v3 = vcombine.low %v16666_v51, %v16667_v34  ;;  %v2066_v1 = vrot.slane %v2038_v50, %v19178_v4  ;;  %v17801_v17 = vpop.permute.xlu1 %17800 }
  0xe5   :  { %v2037_v59 = vcombine.low %v16668_v19, %v16669_v48  ;;  %v17788_v16 = vunpack.i.h.bf16 %v17786_v49  ;;  %v1204_v13 = vrot.slane %v16644_v24, %v19178_v4  ;;  %v17787_v22 = vunpack.i.l.bf16 %v17786_v49 }
  0xe6   :  { %v2045_v2 = vrot.slane %v2035_v27, %v19178_v4  ;;  %v17793_v25 = vunpack.i.h.bf16 %v17791_v43  ;;  %v2052_v33 = vrot.slane %v2036_v3, %v19178_v4  ;;  %v17792_v10 = vunpack.i.l.bf16 %v17791_v43 }
  0xe7   :  { %v2059_v41 = vrot.slane %v2037_v59, %v19178_v4  ;;  %v628_v38 = vsel %vm604_vm5, %v595_v31, %v17788_v16  ;;  %v1205_v54 = vcombine.high %v1197_v37, %v1197_v37  ;;  %v1606_v42 = vunpack.i.h.s16 %v19591_v14  ;;  %v18564_v16 = vld [vmem:[%s24836_s3 + $0xc0] sm:$0xff] }
  0xe8   :  { %v627_v45 = vsel %vm604_vm5, %v594_v15, %v17787_v22  ;;  %v661_v50 = vsel %vm637_vm6, %v628_v38, %v17793_v25  ;;  %v2067_v5 = vcombine.low %v2045_v2, %v2052_v33  ;;  %v17798_v47 = vunpack.i.h.bf16 %v17796_v8  ;;  %v17811_v2 = vpop.permute.xlu1 %17810 }
  0xe9   :  { %v2068_v46 = vcombine.low %v2059_v41, %v2066_v1  ;;  %v660_v49 = vsel %vm637_vm6, %v627_v45, %v17792_v10  ;;  %v19624_v18 = vrot.slane %v1149_v55, %v19178_v4  ;;  %v19627_v24 = vrot.slane %v1157_v26, %v19178_v4 }
  0xea   :  { %v1206_v56 = vcombine.high %v1204_v13, %v1204_v13  ;;  %v17797_v43 = vunpack.i.l.bf16 %v17796_v8  ;;  %v19630_v51 = vrot.slane %v1197_v37, %v19178_v4  ;;  %v19633_v34 = vrot.slane %v1204_v13, %v19178_v4  ;;  %v18563_v37 = vld [vmem:[%s24836_s3 + $0xc8] sm:$0xff] }
  0xeb   :  { %v2075_v19 = vrot.slane %v2067_v5, %v19178_v4  ;;  %v2082_v48 = vrot.slane %v2068_v46, %v19178_v4  ;;  %v19638_v31 = vrot.slane %v1205_v54, %v19178_v4  ;;  %v681_v55 = vpack.c.bf16 %v661_v50, %v660_v49 }
  0xec   :  { %v16645_v62 = vpack.c.bf16 %v661_v50, %v661_v50  ;;  %v17803_v26 = vunpack.i.h.bf16 %v17801_v17  ;;  %v19640_v15 = vpack.i.b16 %v1188_v29, %v1606_v42  ;;  %v597_v3 = vsel %vm571_vm4, %v18563_v37, %v17798_v47 }
  0xed   :  { %v2083_v27 = vcombine.low %v2075_v19, %v2082_v48  ;;  %v17802_v59 = vunpack.i.l.bf16 %v17801_v17  ;;  %v19647_v1 = vrot.slane %v1206_v56, %v19178_v4  ;;  %v596_v8 = vsel %vm571_vm4, %v18564_v16, %v17797_v43 }
  0xee   :  { %v1570_v29 = vunpack.i.h.s16 %v19507_v21  ;;  %v1572_v13 = vunpack.i.h.s16 %v19553_v57  ;;  %v1235_v22 = vcombine.high %v19630_v51, %v19630_v51  ;;  %v1236_v25 = vcombine.high %v19633_v34, %v19633_v34 }
  0xef   :  { %17346 = vmatmul.mubr.msk.bf16.gmra.mxu0 %vm2668_vm7, %v2083_v27  ;;  %v19662_v33 = vcombine.high %v19507_v21, %v19507_v21  ;;  %v16671_v41 = vpack.i.b16 %v19507_v21, %v1044_v58  ;;  %v1237_v38 = vcombine.high %v19638_v31, %v19638_v31  ;;  %v1245_v10 = vrot.slane %v681_v55, %v19178_v4  ;;  %v17816_v21 = vpop.permute.xlu0 %17815 }
  0xf0   :  { %v1252_v54 = vrot.slane %v16645_v62, %v19178_v4  ;;  %17349 = vmatprep.mubr.msk.bf16.mxu0 %vm18601_vm3, %v24698_v7  ;;  %v630_v42 = vsel %vm604_vm5, %v597_v3, %v17803_v26  ;;  %v629_v45 = vsel %vm604_vm5, %v596_v8, %v17802_v59  ;;  %v16672_v50 = vpack.i.b16 %v19553_v57, %v1570_v29  ;;  %v18566_v3 = vld [vmem:[%s24836_s3 + $0xd0] sm:$0xff] }
  0xf1   :  { %v16673_v12 = vpack.i.b16 %v19662_v33, %v1572_v13  ;;  %v2084_v58 = vcombine.low %v19432_v40, %v1043_v63  ;;  %v2086_v17 = vcombine.low %v19463_v20, %v16671_v41  ;;  %v2101_v5 = vrot.slane %v19497_v6, %v19178_v4  ;;  %v17821_v63 = vpop.permute.xlu1 %17820 }
  0xf2   :  { %v17808_v46 = vunpack.i.h.bf16 %v17806_v52  ;;  %v17807_v49 = vunpack.i.l.bf16 %v17806_v52  ;;  %v17813_v43 = vunpack.i.h.bf16 %v17811_v2  ;;  %v17812_v19 = vunpack.i.l.bf16 %v17811_v2  ;;  %v18565_v52 = vld [vmem:[%s24836_s3 + $0xd8] sm:$0xff] }
  0xf3   :  { %v2087_v47 = vcombine.low %v16672_v50, %v16673_v12  ;;  %v2094_v56 = vrot.slane %v2084_v58, %v19178_v4  ;;  %v2108_v48 = vrot.slane %v2086_v17, %v19178_v4  ;;  %v17818_v40 = vunpack.i.h.bf16 %v17816_v21 }
  0xf4   :  { %v662_v55 = vsel %vm637_vm6, %v629_v45, %v17807_v49  ;;  %v663_v9 = vsel %vm637_vm6, %v630_v42, %v17808_v46  ;;  %v1254_v27 = vcombine.high %v1252_v54, %v1252_v54  ;;  %v599_v37 = vsel %vm571_vm4, %v18565_v52, %v17813_v43 }
  0xf5   :  { %v2115_v20 = vrot.slane %v2087_v47, %v19178_v4  ;;  %v2116_v62 = vcombine.low %v2094_v56, %v2101_v5  ;;  %v682_v26 = vpack.c.bf16 %v663_v9, %v662_v55  ;;  %v16646_v6 = vpack.c.bf16 %v663_v9, %v663_v9 }
  0xf6   :  { %v598_v59 = vsel %vm571_vm4, %v18566_v3, %v17812_v19  ;;  %v17817_v16 = vunpack.i.l.bf16 %v17816_v21  ;;  %v2231_v8 = vcombine.low %v19640_v15, %v19630_v51  ;;  %v19701_v29 = vrot.slane %v1252_v54, %v19178_v4 }
  0xf7   :  { %v2117_v13 = vcombine.low %v2108_v48, %v2115_v20  ;;  %v17823_v2 = vunpack.i.h.bf16 %v17821_v63  ;;  %v1293_v41 = vrot.slane %v682_v26, %v19178_v4  ;;  %v632_v42 = vsel %vm604_vm5, %v599_v37, %v17818_v40  ;;  %v17826_v20 = vpop.permute.xlu0 %17825 }
  0xf8   :  { %v631_v45 = vsel %vm604_vm5, %v598_v59, %v17817_v16  ;;  %v17822_v50 = vunpack.i.l.bf16 %v17821_v63  ;;  %v1253_v12 = vcombine.high %v1245_v10, %v1245_v10  ;;  %v2124_v58 = vrot.slane %v2116_v62, %v19178_v4 }
  0xf9   :  { %v2131_v21 = vrot.slane %v2117_v13, %v19178_v4  ;;  %v1300_v17 = vrot.slane %v16646_v6, %v19178_v4  ;;  %v19710_v5 = vcombine.low %v1237_v38, %v19633_v34  ;;  %v19713_v54 = vrot.slane %v1245_v10, %v19178_v4 }
  0xfa   :  { %v19716_v46 = vrot.slane %v1254_v27, %v19178_v4  ;;  %v1093_v49 = vcombine.high %v19553_v57, %v19553_v57  ;;  %v1284_v47 = vcombine.high %v19701_v29, %v19701_v29  ;;  %v664_v43 = vsel %vm637_vm6, %v631_v45, %v17822_v50 }
  0xfb   :  { %v2132_v56 = vcombine.low %v2124_v58, %v2131_v21  ;;  %v665_v19 = vsel %vm637_vm6, %v632_v42, %v17823_v2  ;;  %v1630_v38 = vunpack.i.h.s16 %v19701_v29  ;;  %v1301_v48 = vcombine.high %v1293_v41, %v1293_v41 }
  0xfc   :  { %v1574_v10 = vunpack.i.h.s16 %v19662_v33  ;;  %v1576_v55 = vunpack.i.h.s16 %v1093_v49  ;;  %v19727_v9 = vrot.slane %v1253_v12, %v19178_v4  ;;  %v1302_v57 = vcombine.high %v1300_v17, %v1300_v17  ;;  %v17831_v12 = vpop.permute.xlu1 %17830 }
  0xfd   :  { %17350 = vmatmul.mubr.msk.bf16.gmra.mxu0 %vm2668_vm7, %v2132_v56  ;;  %v19731_v40 = vrot.slane %v1300_v17, %v19178_v4  ;;  %v1092_v63 = vcombine.high %v19525_v36, %v19525_v36  ;;  %v683_v62 = vpack.c.bf16 %v665_v19, %v664_v43  ;;  %v1578_v33 = vunpack.i.h.s16 %v19525_v36  ;;  %v17836_v56 = vpop.permute.xlu0 %17835 }
  0xfe   :  { %17353 = vmatprep.mubr.msk.bf16.mxu0 %vm18601_vm3, %v24698_v7  ;;  %v16674_v26 = vpack.i.b16 %v1093_v49, %v1574_v10  ;;  %v16675_v6 = vpack.i.b16 %v19525_v36, %v1576_v55  ;;  %v19741_v27 = vcombine.high %v19713_v54, %v19713_v54  ;;  %v19744_v52 = vrot.slane %v1293_v41, %v19178_v4  ;;  %v18568_v10 = vld [vmem:[%s24836_s3 + $0xe0] sm:$0xff] }
  0xff   :  { %v16677_v37 = vpack.i.b16 %v1092_v63, %v1580_v61  ;;  %v2157_v3 = vrot.slane %v2135_v0, %v19178_v4  ;;  %v19753_v59 = vrot.slane %v1301_v48, %v19178_v4  ;;  %v16647_v16 = vpack.c.bf16 %v665_v19, %v665_v19 }
 0x100   :  { %v16676_v36 = vpack.i.b16 %v19528_v11, %v1578_v33  ;;  %v2133_v13 = vcombine.low %v16674_v26, %v16675_v6  ;;  %v1622_v2 = vunpack.i.h.s16 %v19713_v54  ;;  %v1632_v41 = vunpack.i.h.s16 %v19716_v46 }
 0x101   :  { %v19759_v42 = vpack.i.b16 %v19716_v46, %v1630_v38  ;;  %v2164_v61 = vrot.slane %v16708_v23, %v19178_v4  ;;  %v19766_v0 = vrot.slane %v1302_v57, %v19178_v4  ;;  %v1332_v45 = vcombine.high %v19731_v40, %v19731_v40  ;;  %v18567_v38 = vld [vmem:[%s24836_s3 + $0xe8] sm:$0xff] }
 0x102   :  { %v1341_v11 = vrot.slane %v683_v62, %v19178_v4  ;;  %v2134_v50 = vcombine.low %v16676_v36, %v16677_v37  ;;  %v2143_v58 = vrot.slane %v2133_v13, %v19178_v4  ;;  %v17828_v17 = vunpack.i.h.bf16 %v17826_v20 }
 0x103   :  { %v2166_v21 = vcombine.low %v2157_v3, %v2164_v61  ;;  %v17827_v49 = vunpack.i.l.bf16 %v17826_v20  ;;  %v2283_v32 = vcombine.low %v19744_v52, %v19753_v59  ;;  %v1348_v53 = vrot.slane %v16647_v16, %v19178_v4  ;;  %v17841_v61 = vpop.permute.xlu1 %17840 }
 0x104   :  { %v2150_v23 = vrot.slane %v2134_v50, %v19178_v4  ;;  %v17833_v43 = vunpack.i.h.bf16 %v17831_v12  ;;  %v601_v48 = vsel %vm571_vm4, %v18567_v38, %v17828_v17  ;;  %v17832_v57 = vunpack.i.l.bf16 %v17831_v12 }
 0x105   :  { %v2180_v19 = vrot.slane %v2166_v21, %v19178_v4  ;;  %v600_v55 = vsel %vm571_vm4, %v18568_v10, %v17827_v49  ;;  %v17838_v62 = vunpack.i.h.bf16 %v17836_v56  ;;  %v17837_v33 = vunpack.i.l.bf16 %v17836_v56 }
 0x106   :  { %v2165_v63 = vcombine.low %v2143_v58, %v2150_v23  ;;  %v634_v20 = vsel %vm604_vm5, %v601_v48, %v17833_v43  ;;  %v16709_v26 = vcombine.high %v19744_v52, %v19753_v59  ;;  %v1349_v37 = vcombine.high %v1341_v11, %v1341_v11 }
 0x107   :  { %v633_v3 = vsel %vm604_vm5, %v600_v55, %v17832_v57  ;;  %v667_v13 = vsel %vm637_vm6, %v634_v20, %v17838_v62  ;;  %v1187_v50 = vcombine.high %v19624_v18, %v19624_v18  ;;  %v1350_v12 = vcombine.high %v1348_v53, %v1348_v53 }
 0x108   :  { %v2173_v16 = vrot.slane %v2165_v63, %v19178_v4  ;;  %v666_v36 = vsel %vm637_vm6, %v633_v3, %v17837_v33  ;;  %v19797_v58 = vrot.slane %v1341_v11, %v19178_v4  ;;  %v19800_v21 = vrot.slane %v1348_v53, %v19178_v4 }
 0x109   :  { %v17843_v17 = vunpack.i.h.bf16 %v17841_v61  ;;  %v1189_v56 = vcombine.high %v19627_v24, %v19627_v24  ;;  %v1596_v23 = vunpack.i.h.s16 %v19624_v18  ;;  %v1598_v43 = vunpack.i.h.s16 %v19627_v24 }
 0x10a   :  { %v2181_v49 = vcombine.low %v2173_v16, %v2180_v19  ;;  %v684_v38 = vpack.c.bf16 %v667_v13, %v666_v36  ;;  %v17842_v48 = vunpack.i.l.bf16 %v17841_v61  ;;  %v1600_v10 = vunpack.i.h.s16 %v1187_v50  ;;  %v17846_v16 = vpop.permute.xlu0 %17845 }
 0x10b   :  { %v1604_v55 = vunpack.i.h.s16 %v19577_v35  ;;  %v1602_v11 = vunpack.i.h.s16 %v1189_v56  ;;  %v16678_v53 = vpack.i.b16 %v19624_v18, %v1140_v44  ;;  %v16679_v19 = vpack.i.b16 %v19627_v24, %v1596_v23 }
 0x10c   :  { %17354 = vmatmul.mubr.msk.bf16.gmra.mxu0 %vm2668_vm7, %v2181_v49  ;;  %v16680_v57 = vpack.i.b16 %v1187_v50, %v1598_v43  ;;  %v19814_v63 = vrot.slane %v1349_v37, %v19178_v4  ;;  %v1378_v20 = vrot.slane %v1350_v12, %v19178_v4  ;;  %v19819_v62 = vcombine.high %v19797_v58, %v19797_v58  ;;  %v18569_v50 = vld [vmem:[%s24836_s3 + $0xf8] sm:$0xff]  ;;  %v17851_v49 = vpop.permute.xlu1 %17850 }
 0x10d   :  { %v1648_v33 = vunpack.i.h.s16 %v19797_v58  ;;  %17357 = vmatprep.mubr.msk.bf16.mxu0 %vm18601_vm3, %v24698_v7  ;;  %v16681_v3 = vpack.i.b16 %v1189_v56, %v1600_v10  ;;  %v16682_v44 = vpack.i.b16 %v19577_v35, %v1602_v11  ;;  %v16683_v18 = vpack.i.b16 %v19591_v14, %v1604_v55  ;;  %v18570_v35 = vld [vmem:[%s24836_s3 + $0xf0] sm:$0xff]  ;;  %s18608_s3 = smov 88  }
 0x10e   :  { %v2183_v24 = vcombine.low %v16678_v53, %v16679_v19  ;;  %v1380_v37 = vcombine.high %v19800_v21, %v19800_v21  ;;  %v1656_v36 = vunpack.i.h.s16 %v19800_v21  ;;  %v16648_v61 = vpack.c.bf16 %v667_v13, %v667_v13 }
 0x10f   :  { %v603_v12 = vsel %vm571_vm4, %v18569_v50, %v17843_v17  ;;  %v1389_v56 = vrot.slane %v684_v38, %v19178_v4  ;;  %v602_v14 = vsel %vm571_vm4, %v18570_v35, %v17842_v48  ;;  %v2184_v23 = vcombine.low %v16680_v57, %v16681_v3 }
 0x110   :  { %v2185_v43 = vcombine.low %v16682_v44, %v16683_v18  ;;  %v2192_v13 = vrot.slane %v2182_v28, %v19178_v4  ;;  %v2199_v10 = vrot.slane %v2183_v24, %v19178_v4  ;;  %v17848_v55 = vunpack.i.h.bf16 %v17846_v16 }
 0x111   :  { %v17847_v17 = vunpack.i.l.bf16 %v17846_v16  ;;  %v2206_v11 = vrot.slane %v2184_v23, %v19178_v4  ;;  %v17853_v53 = vunpack.i.h.bf16 %v17851_v49  ;;  %v17852_v19 = vunpack.i.l.bf16 %v17851_v49 }
 0x112   :  { %v2213_v38 = vrot.slane %v2185_v43, %v19178_v4  ;;  %v1658_v50 = vunpack.i.h.s16 %v1378_v20  ;;  %v2214_v6 = vcombine.low %v2192_v13, %v2199_v10  ;;  %v636_v48 = vsel %vm604_vm5, %v603_v12, %v17848_v55 }
 0x113   :  { %v635_v57 = vsel %vm604_vm5, %v602_v14, %v17847_v17  ;;  %v669_v60 = vsel %vm637_vm6, %v636_v48, %v17853_v53  ;;  %v16685_v28 = vpack.i.b16 %v19713_v54, %v1236_v25  ;;  %v19854_v44 = vrot.slane %v16648_v61, %v19178_v4 }
 0x114   :  { %v2215_v3 = vcombine.low %v2206_v11, %v2213_v38  ;;  %v668_v39 = vsel %vm637_vm6, %v635_v57, %v17852_v19  ;;  %v16649_v24 = vpack.c.bf16 %v669_v60, %v669_v60  ;;  %v2232_v16 = vcombine.low %v19638_v31, %v1235_v22 }
 0x115   :  { %v685_v18 = vpack.c.bf16 %v669_v60, %v668_v39  ;;  %v1397_v12 = vcombine.high %v1389_v56, %v1389_v56  ;;  %v2222_v49 = vrot.slane %v2214_v6, %v19178_v4  ;;  %v2234_v14 = vcombine.low %v19647_v1, %v16685_v28 }
 0x116   :  { %v2229_v35 = vrot.slane %v2215_v3, %v19178_v4  ;;  %v2241_v34 = vrot.slane %v2231_v8, %v19178_v4  ;;  %v2248_v25 = vrot.slane %v2232_v16, %v19178_v4  ;;  %v2255_v61 = vrot.slane %v19710_v5, %v19178_v4 }
 0x117   :  { %v1285_v31 = vcombine.high %v19727_v9, %v19727_v9  ;;  %v1437_v6 = vrot.slane %v685_v18, %v19178_v4  ;;  %v1444_v23 = vrot.slane %v16649_v24, %v19178_v4  ;;  %v2262_v1 = vrot.slane %v2234_v14, %v19178_v4 }
 0x118   :  { %v2230_v22 = vcombine.low %v2222_v49, %v2229_v35  ;;  %v19875_v43 = vpack.i.b16 %v1378_v20, %v1656_v36  ;;  %v19877_v13 = vpack.i.b16 %v1380_v37, %v1658_v50  ;;  %v1624_v51 = vunpack.i.h.s16 %v19727_v9 }
 0x119   :  { %v1626_v15 = vunpack.i.h.s16 %v19741_v27  ;;  %v1398_v8 = vcombine.high %v19854_v44, %v19854_v44  ;;  %v2263_v5 = vcombine.low %v2241_v34, %v2248_v25  ;;  %v2264_v10 = vcombine.low %v2255_v61, %v2262_v1 }
 0x11a   :  { %17358 = vmatmul.mubr.msk.bf16.gmra.mxu0 %vm2668_vm7, %v2230_v22  ;;  %v1628_v55 = vunpack.i.h.s16 %v1285_v31  ;;  %v19885_v17 = vrot.slane %v1389_v56, %v19178_v4  ;;  %v19889_v20 = vrot.slane %v19854_v44, %v19178_v4  ;;  %v1419_v37 = vrot.slane %v1397_v12, %v19178_v4 }
 0x11b   :  { %17361 = vmatprep.mubr.msk.bf16.mxu0 %vm18601_vm3, %v24698_v7  ;;  %v16686_v36 = vpack.i.b16 %v19727_v9, %v1622_v2  ;;  %v1445_v11 = vcombine.high %v1437_v6, %v1437_v6  ;;  %v1446_v38 = vcombine.high %v1444_v23, %v1444_v23  ;;  %v2271_v53 = vrot.slane %v2263_v5, %v19178_v4 }
 0x11c   :  { %v2278_v56 = vrot.slane %v2264_v10, %v19178_v4  ;;  %v19900_v19 = vrot.slane %v1437_v6, %v19178_v4  ;;  %v16687_v50 = vpack.i.b16 %v19741_v27, %v1624_v51  ;;  %v16688_v48 = vpack.i.b16 %v1285_v31, %v1626_v15 }
 0x11d   :  { %v16689_v57 = vpack.i.b16 %v19701_v29, %v1628_v55  ;;  %v19905_v3 = vrot.slane %v1444_v23, %v19178_v4  ;;  %v16691_v9 = vpack.i.b16 %v1284_v47, %v1632_v41  ;;  %v2311_v2 = vrot.slane %v2283_v32, %v19178_v4 }
 0x11e   :  { %v2279_v54 = vcombine.low %v2271_v53, %v2278_v56  ;;  %v2280_v39 = vcombine.low %v16686_v36, %v16687_v50  ;;  %v1381_v60 = vcombine.high %v19814_v63, %v19814_v63  ;;  %v1650_v28 = vunpack.i.h.s16 %v19814_v63 }
 0x11f   :  { %v2281_v27 = vcombine.low %v16688_v48, %v16689_v57  ;;  %v2282_v18 = vcombine.low %v19759_v42, %v16691_v9  ;;  %v1652_v46 = vunpack.i.h.s16 %v19819_v62  ;;  %v16692_v29 = vpack.i.b16 %v19797_v58, %v1332_v45 }
 0x120   :  { %v16693_v47 = vpack.i.b16 %v19814_v63, %v1648_v33  ;;  %v1427_v41 = vcombine.high %v19885_v17, %v19885_v17  ;;  %v2290_v32 = vrot.slane %v2280_v39, %v19178_v4  ;;  %v16694_v42 = vpack.i.b16 %v19819_v62, %v1650_v28 }
 0x121   :  { %v2297_v24 = vrot.slane %v2281_v27, %v19178_v4  ;;  %v1467_v16 = vrot.slane %v1445_v11, %v19178_v4  ;;  %v2304_v12 = vrot.slane %v2282_v18, %v19178_v4  ;;  %v16695_v45 = vpack.i.b16 %v1381_v60, %v1652_v46  ;;  %v16633_v11 = vld [vmem:[%s24850_s22] ss:$0 sm:$0xff]  ;;  %s18610_s22 = smov 104  }
 0x122   :  { %17362 = vmatmul.mubr.msk.bf16.gmra.mxu0 %vm2668_vm7, %v2279_v54  ;;  %v2331_v49 = vcombine.low %v16692_v29, %v16693_v47  ;;  %v1429_v58 = vcombine.high %v1419_v37, %v1419_v37  ;;  %v1474_v63 = vrot.slane %v1446_v38, %v19178_v4  ;;  %v1654_v35 = vunpack.i.h.s16 %v1381_v60 }
 0x123   :  { %17365 = vmatprep.mubr.msk.bf16.mxu0 %vm18601_vm3, %v24698_v7  ;;  %v2312_v33 = vcombine.low %v2290_v32, %v2297_v24  ;;  %v1475_v14 = vcombine.high %v19900_v19, %v19900_v19  ;;  %v1682_v62 = vunpack.i.h.s16 %v19905_v3  ;;  %v2313_v34 = vcombine.low %v2304_v12, %v2311_v2 }
 0x124   :  { %v2332_v25 = vcombine.low %v16694_v42, %v16695_v45  ;;  %v2339_v31 = vrot.slane %v16709_v26, %v19178_v4  ;;  %v24849_v22 = vcombine.low %v19731_v40, %v19766_v0  ;;  %v2353_v23 = vrot.slane %v2331_v49, %v19178_v4 }
 0x125   :  { %v2320_v61 = vrot.slane %v2312_v33, %v19178_v4  ;;  %v2327_v1 = vrot.slane %v2313_v34, %v19178_v4  ;;  %v16696_v15 = vpack.i.b16 %v19800_v21, %v1654_v35  ;;  %v1477_v5 = vcombine.high %v1467_v16, %v1467_v16 }
 0x126   :  { %v2346_v6 = vrot.slane %v24849_v22, %v19178_v4  ;;  %v2360_v51 = vrot.slane %v2332_v25, %v19178_v4  ;;  %v2381_v10 = vcombine.low %v1429_v58, %v19889_v20  ;;  %v1476_v52 = vcombine.high %v19905_v3, %v19905_v3 }
 0x127   :  { %v1684_v59 = vunpack.i.h.s16 %v1474_v63  ;;  %v2380_v26 = vcombine.low %v1419_v37, %v1427_v41  ;;  %v2328_v55 = vcombine.low %v2320_v61, %v2327_v1  ;;  %v1678_v40 = vunpack.i.h.s16 %v1475_v14 }
 0x128   :  { %v2362_v36 = vcombine.low %v2353_v23, %v2360_v51  ;;  %v1680_v0 = vunpack.i.h.s16 %v1477_v5  ;;  %v1426_v21 = vrot.slane %v1398_v8, %v19178_v4  ;;  %v2379_v38 = vcombine.low %v19877_v13, %v19885_v17 }
 0x129   :  { %v1674_v53 = vunpack.i.h.s16 %v19900_v19  ;;  %v1676_v56 = vunpack.i.h.s16 %v1467_v16  ;;  %v1428_v37 = vcombine.high %v19889_v20, %v19889_v20  ;;  %v16704_v50 = vpack.i.b16 %v1474_v63, %v1682_v62 }
 0x12a   :  { %17366 = vmatmul.mubr.msk.bf16.gmra.mxu0 %vm2668_vm7, %v2328_v55  ;;  %v2361_v48 = vcombine.low %v2339_v31, %v2346_v6  ;;  %v2378_v57 = vcombine.low %v16696_v15, %v19875_v43  ;;  %v2376_v44 = vrot.slane %v2362_v36, %v19178_v4  ;;  %v2402_v8 = vrot.slane %v2380_v26, %v19178_v4 }
 0x12b   :  { %17369 = vmatprep.mubr.msk.bf16.mxu0 %vm18601_vm3, %v24698_v7  ;;  %v2409_v13 = vrot.slane %v2381_v10, %v19178_v4  ;;  %v1686_v17 = vcombine.high %v16633_v11, %v16633_v11  ;;  %v16702_v54 = vpack.i.b16 %v1477_v5, %v1678_v40  ;;  %v16703_v9 = vpack.i.b16 %v19905_v3, %v1680_v0 }
 0x12c   :  { %v16705_v20 = vpack.i.b16 %v1476_v52, %v1684_v59  ;;  %v1693_v2 = vrot.slane %v16633_v11, %v19178_v4  ;;  %v2395_v39 = vrot.slane %v2379_v38, %v19178_v4  ;;  %v16700_v27 = vpack.i.b16 %v1467_v16, %v1674_v53 }
 0x12d   :  { %v16701_v43 = vpack.i.b16 %v1475_v14, %v1676_v56  ;;  %v1700_v60 = vrot.slane %v1686_v17, %v19178_v4  ;;  %v2369_v28 = vrot.slane %v2361_v48, %v19178_v4  ;;  %v2388_v18 = vrot.slane %v2378_v57, %v19178_v4 }
 0x12e   :  { %v1701_v46 = vcombine.high %v1693_v2, %v1693_v2  ;;  %v19984_v29 = vrot.slane %v1693_v2, %v19178_v4  ;;  %v2411_v47 = vcombine.low %v2402_v8, %v2409_v13  ;;  %v16699_v3 = vpack.i.b16 %v19900_v19, %v1428_v37 }
 0x12f   :  { %v1702_v41 = vcombine.high %v1700_v60, %v1700_v60  ;;  %v1716_v32 = vrot.slane %v1700_v60, %v19178_v4  ;;  %v2377_v24 = vcombine.low %v2369_v28, %v2376_v44  ;;  %v2429_v42 = vcombine.low %v16702_v54, %v16703_v9 }
 0x130   :  { %v2430_v16 = vcombine.low %v16704_v50, %v16705_v20  ;;  %v1723_v12 = vrot.slane %v1701_v46, %v19178_v4  ;;  %v2428_v45 = vcombine.low %v16700_v27, %v16701_v43  ;;  %v2410_v58 = vcombine.low %v2388_v18, %v2395_v39 }
 0x131   :  { %v1730_v49 = vrot.slane %v1702_v41, %v19178_v4  ;;  %v2425_v19 = vrot.slane %v2411_v47, %v19178_v4  ;;  %v2427_v35 = vcombine.low %v1426_v21, %v16699_v3  ;;  %v2451_v34 = vrot.slane %v2429_v42, %v19178_v4 }
 0x132   :  { %17370 = vmatmul.mubr.msk.bf16.gmra.mxu0 %vm2668_vm7, %v2377_v24  ;;  %v2482_v63 = vcombine.low %v19984_v29, %v1723_v12  ;;  %v16711_v33 = vcombine.high %v19984_v29, %v1723_v12  ;;  %v2458_v25 = vrot.slane %v2430_v16, %v19178_v4  ;;  %v2444_v22 = vrot.slane %v2428_v45, %v19178_v4 }
 0x133   :  { %17373 = vmatprep.mubr.msk.bf16.mxu0 %vm18601_vm3, %v24698_v7  ;;  %v2484_v14 = vcombine.low %v1716_v32, %v1730_v49  ;;  %v16712_v62 = vcombine.high %v1716_v32, %v1730_v49  ;;  %v2418_v1 = vrot.slane %v2410_v58, %v19178_v4  ;;  %v2437_v15 = vrot.slane %v2427_v35, %v19178_v4 }
 0x134   :  { %v2492_v61 = vrot.slane %v2482_v63, %v19178_v4  ;;  %v2499_v31 = vrot.slane %v16711_v33, %v19178_v4  ;;  %v2460_v52 = vcombine.low %v2451_v34, %v2458_v25  ;;  %v1731_v26 = vcombine.high %v19984_v29, %v19984_v29 }
 0x135   :  { %v2506_v6 = vrot.slane %v2484_v14, %v19178_v4  ;;  %v2513_v23 = vrot.slane %v16712_v62, %v19178_v4  ;;  %v2426_v10 = vcombine.low %v2418_v1, %v2425_v19  ;;  %v2459_v59 = vcombine.low %v2437_v15, %v2444_v22 }
 0x136   :  { %v2514_v51 = vcombine.low %v2492_v61, %v2499_v31  ;;  %v1732_v40 = vcombine.high %v1716_v32, %v1716_v32  ;;  %v1733_v0 = vcombine.high %v1723_v12, %v1723_v12  ;;  %v2474_v11 = vrot.slane %v2460_v52, %v19178_v4 }
 0x137   :  { %v2515_v5 = vcombine.low %v2506_v6, %v2513_v23  ;;  %v2467_v38 = vrot.slane %v2459_v59, %v19178_v4  ;;  %v2531_v53 = vcombine.low %v1716_v32, %v19984_v29  ;;  %v2532_v56 = vcombine.low %v1723_v12, %v1731_v26 }
 0x138   :  { %v2522_v55 = vrot.slane %v2514_v51, %v19178_v4  ;;  %v2556_v37 = vcombine.low %v1733_v0, %v1716_v32  ;;  %v2557_v50 = vcombine.low %v1730_v49, %v1732_v40  ;;  %v2598_v39 = vcombine.low %v2499_v31, %v2506_v6 }
 0x139   :  { %v2529_v36 = vrot.slane %v2515_v5, %v19178_v4  ;;  %v2475_v48 = vcombine.low %v2467_v38, %v2474_v11  ;;  %v2539_v57 = vrot.slane %v2531_v53, %v19178_v4  ;;  %v2546_v44 = vrot.slane %v2532_v56, %v19178_v4 }
 0x13a   :  { %17374 = vmatmul.mubr.msk.bf16.gmra.mxu0 %vm2668_vm7, %v2426_v10  ;;  %v2565_v8 = vrot.slane %v2556_v37, %v19178_v4  ;;  %v2572_v13 = vrot.slane %v2557_v50, %v19178_v4  ;;  %v2614_v27 = vcombine.low %v2513_v23, %v2492_v61  ;;  %v2612_v43 = vrot.slane %v2598_v39, %v19178_v4 }
 0x13b   :  { %17377 = vmatprep.mubr.msk.bf16.mxu0 %vm18601_vm3, %v24698_v7  ;;  %v20013_v21 = vcombine.low %v2529_v36, %v2522_v55  ;;  %v2547_v17 = vcombine.low %v2539_v57, %v2546_v44  ;;  %v1734_v18 = vcombine.high %v1730_v49, %v1730_v49  ;;  %v2615_v46 = vcombine.low %v2499_v31, %v2539_v57 }
 0x13c   :  { %v2580_v54 = vcombine.low %v2565_v8, %v2572_v13  ;;  %v2622_v60 = vrot.slane %v2614_v27, %v19178_v4  ;;  %v2631_v47 = vcombine.low %v2546_v44, %v2565_v8  ;;  %v2597_v16 = vcombine.low %v2565_v8, %v2492_v61 }
 0x13d   :  { %24851 = vst [vmem:[#allocation7_spill] sm:$0xff] %v20013_v21  ;;  %v2554_v9 = vrot.slane %v2547_v17, %v19178_v4  ;;  %v2558_v3 = vcombine.low %v1734_v18, %v19984_v29  ;;  %v2629_v41 = vrot.slane %v2615_v46, %v19178_v4  ;;  %v20036_v12 = vcombine.low %v2522_v55, %v2529_v36 }
 0x13e   :  { %v2588_v20 = vrot.slane %v2580_v54, %v19178_v4  ;;  %v20028_v28 = vcombine.low %v2612_v43, %v2622_v60  ;;  %v2639_v32 = vrot.slane %v2631_v47, %v19178_v4  ;;  %v2605_v49 = vrot.slane %v2597_v16, %v19178_v4 }
 0x13f   :  { %v2579_v24 = vrot.slane %v2558_v3, %v19178_v4  ;;  %24854 = vst [vmem:[#allocation10_spill] sm:$0xff] %v20036_v12  ;;  %v20040_v19 = vcombine.low %v2522_v55, %v2554_v9  ;;  %v20047_v31 = vcombine.low %v2622_v60, %v2629_v41  ;;  %vm12125_vm4 = vcmask 588800  }
 0x140   :  { %v20024_v2 = vcombine.low %v2554_v9, %v2588_v20  ;;  %24852 = vst [vmem:[#allocation8_spill] sm:$0xff] %v20028_v28  ;;  %v20034_v42 = vcombine.low %v2629_v41, %v2639_v32  ;;  %v20045_v61 = vcombine.low %v2605_v49, %v2612_v43  ;;  %v20056_v10 = vcombine.low %v2639_v32, %v2522_v55 }
 0x141   :  { %v2581_v45 = vcombine.low %v2579_v24, %v2546_v44  ;;  %v2632_v58 = vcombine.low %v2572_v13, %v2579_v24  ;;  %24855 = vst [vmem:[#allocation11_spill] sm:$0xff] %v20040_v19  ;;  %24857 = vst [vmem:[#allocation13_spill] sm:$0xff] %v20047_v31  ;;  %vm12268_vm5 = vcmask 719872   ;;  %vm12341_vm6 = vcmask 261120  }
 0x142   :  { %17378 = vmatmul.mubr.msk.bf16.gmra.mxu0 %vm2668_vm7, %v2475_v48  ;;  %24853 = vst [vmem:[#allocation9_spill] sm:$0xff] %v20034_v42  ;;  %24856 = vst [vmem:[#allocation12_spill] sm:$0xff] %v20045_v61 }
 0x143   :  { %v2595_v35 = vrot.slane %v2581_v45, %v19178_v4  ;;  %v2646_v14 = vrot.slane %v2632_v58, %v19178_v4  ;;  %24860 = vst [vmem:[#allocation16_spill] sm:$0xff] %v20056_v10 }
 0x145   :  { %v20052_v15 = vcombine.low %v2588_v20, %v2595_v35  ;;  %v20054_v5 = vcombine.low %v2639_v32, %v2646_v14  ;;  %v20058_v52 = vcombine.low %v2595_v35, %v2605_v49  ;;  %v20063_v53 = vcombine.low %v2646_v14, %v2639_v32 }
 0x147   :  { %24858 = vst [vmem:[#allocation14_spill] sm:$0xff] %v20052_v15  ;;  %24859 = vst [vmem:[#allocation15_spill] sm:$0xff] %v20054_v5 }
 0x148   :  { %24861 = vst [vmem:[#allocation17_spill] sm:$0xff] %v20063_v53 }
 0x174   :  { %v2742_v63 = vpop.f32.mrf.mxu0 }
 0x175   :  { %v2743_v33 = vadd.f32 %v2742_v63, %v20036_v12 }
 0x176   :  { %v17331_v29 = vpop.f32.mrf.mxu0 }
 0x177   :  { %v2871_v62 = vcombine.high %v2743_v33, %v2743_v33  ;;  %v2878_v34 = vrot.slane %v2743_v33, %v19178_v4 }
 0x178   :  { %v2745_v25 = vpop.f32.mrf.mxu0 }
 0x179   :  { %v2885_v22 = vrot.slane %v2871_v62, %v19178_v4  ;;  %v2886_v6 = vcombine.high %v2878_v34, %v2878_v34  ;;  %v2894_v23 = vrot.slane %v2878_v34, %v19178_v4  ;;  %v2746_v1 = vadd.f32 %v2745_v25, %v20040_v19 }
 0x17a   :  { %v17332_v51 = vpop.f32.mrf.mxu0 }
 0x17b   :  { %v2887_v59 = vcombine.high %v2885_v22, %v2885_v22  ;;  %v2901_v26 = vrot.slane %v2885_v22, %v19178_v4  ;;  %v2908_v36 = vrot.slane %v2886_v6, %v19178_v4  ;;  %v2916_v40 = vcombine.high %v2894_v23, %v2894_v23 }
 0x17c   :  { %v4353_v0 = vmax.f32 %v2894_v23, 0.0  ;;  %v2920_v11 = vcombine.high %v2746_v1, %v2746_v1  ;;  %v2927_v38 = vrot.slane %v2746_v1, %v19178_v4 }
 0x17d   :  { %v2915_v56 = vrot.slane %v2887_v59, %v19178_v4  ;;  %v2917_v37 = vcombine.high %v2901_v26, %v2901_v26  ;;  %v2918_v50 = vcombine.high %v2908_v36, %v2908_v36  ;;  %v4354_v55 = vmax.f32 %v2908_v36, 0.0 }
 0x17e   :  { %v4355_v48 = vmax.f32 %v2916_v40, 0.0  ;;  %v4357_v57 = vmax.f32 %v2901_v26, 0.0  ;;  %v2934_v44 = vrot.slane %v2920_v11, %v19178_v4  ;;  %v2935_v8 = vcombine.high %v2927_v38, %v2927_v38 }
 0x17f   :  { %v2919_v13 = vcombine.high %v2915_v56, %v2915_v56  ;;  %v4356_v17 = vmax.f32 %v2918_v50, 0.0  ;;  %v4358_v54 = vmax.f32 %v2915_v56, 0.0  ;;  %v4359_v9 = vmax.f32 %v2917_v37, 0.0 }
 0x180   :  { %v4721_v20 = vcombine.low %v4353_v0, %v4354_v55  ;;  %v20067_v39 = vcombine.low %v4354_v55, %v4355_v48  ;;  %v2936_v27 = vcombine.high %v2934_v44, %v2934_v44  ;;  %v2943_v43 = vrot.slane %v2927_v38, %v19178_v4 }
 0x181   :  { %v4722_v60 = vcombine.low %v4355_v48, %v4356_v17  ;;  %v4723_v18 = vcombine.low %v4357_v57, %v4358_v54  ;;  %v5794_v46 = vcombine.low %v4356_v17, %v4357_v57  ;;  %v5795_v47 = vcombine.low %v4358_v54, %v4359_v9 }
 0x182   :  { %v4731_v3 = vrot.slane %v4721_v20, %v19178_v4  ;;  %v5803_v41 = vrot.slane %v20067_v39, %v19178_v4  ;;  %v20074_v32 = vrot.slane %v2934_v44, %v19178_v4  ;;  %v2957_v24 = vrot.slane %v2935_v8, %v19178_v4 }
 0x183   :  { %v20078_v16 = vrot.slane %v4722_v60, %v19178_v4  ;;  %v20081_v45 = vrot.slane %v4723_v18, %v19178_v4  ;;  %v2964_v58 = vrot.slane %v2936_v27, %v19178_v4  ;;  %v2965_v63 = vcombine.high %v2943_v43, %v2943_v43 }
 0x184   :  { %v2966_v49 = vcombine.high %v20074_v32, %v20074_v32  ;;  %v2967_v33 = vcombine.high %v2957_v24, %v2957_v24  ;;  %v4360_v29 = vmax.f32 %v2919_v13, 0.0  ;;  %v4361_v35 = vmax.f32 %v2943_v43, 0.0 }
 0x185   :  { %24862 = vst [vmem:[#allocation18_spill] sm:$0xff] %v20078_v16  ;;  %24863 = vst [vmem:[#allocation19_spill] sm:$0xff] %v20081_v45  ;;  %v20087_v14 = vcombine.low %v4731_v3, %v20078_v16  ;;  %v2968_v34 = vcombine.high %v2964_v58, %v2964_v58  ;;  %v4362_v25 = vmax.f32 %v2957_v24, 0.0  ;;  %v4363_v22 = vmax.f32 %v2965_v63, 0.0 }
 0x186   :  { %v20091_v6 = vmax.f32 %v2967_v33, 0.0  ;;  %v4366_v1 = vmax.f32 %v2964_v58, 0.0  ;;  %v4367_v59 = vmax.f32 %v2966_v49, 0.0  ;;  %v4724_v26 = vcombine.low %v4359_v9, %v4360_v29 }
 0x187   :  { %24864 = vst [vmem:[#allocation20_spill] sm:$0xff] %v20087_v14  ;;  %v2750_v51 = vpop.f32.mrf.mxu0  ;;  %v4770_v36 = vcombine.low %v4361_v35, %v4362_v25  ;;  %v5796_v40 = vcombine.low %v4360_v29, %v4361_v35  ;;  %v5842_v0 = vcombine.low %v4362_v25, %v4363_v22  ;;  %v4368_v56 = vmax.f32 %v2968_v34, 0.0 }
 0x188   :  { %v6946_v11 = vcombine.low %v4363_v22, %v20091_v6  ;;  %v2751_v38 = vadd.f32 %v2750_v51, %v20052_v15  ;;  %v20097_v50 = vrot.slane %v4724_v26, %v19178_v4  ;;  %v4785_v48 = vcombine.low %v4366_v1, %v4367_v59 }
 0x189   :  { %v17335_v37 = vpop.f32.mrf.mxu0  ;;  %v20100_v55 = vrot.slane %v4770_v36, %v19178_v4  ;;  %v20103_v57 = vrot.slane %v5796_v40, %v19178_v4  ;;  %v20106_v44 = vrot.slane %v5842_v0, %v19178_v4  ;;  %v5857_v27 = vcombine.low %v4367_v59, %v4368_v56 }
 0x18a   :  { %24865 = vst [vmem:[#allocation21_spill] sm:$0xff] %v20097_v50  ;;  %v20109_v8 = vrot.slane %v6946_v11, %v19178_v4  ;;  %v2969_v13 = vcombine.high %v2751_v38, %v2751_v38  ;;  %v2976_v17 = vrot.slane %v2751_v38, %v19178_v4  ;;  %v4795_v9 = vrot.slane %v4785_v48, %v19178_v4 }
 0x18b   :  { %24866 = vst [vmem:[#allocation22_spill] sm:$0xff] %v20100_v55  ;;  %v2753_v54 = vpop.f32.mrf.mxu0  ;;  %v20119_v58 = vrot.slane %v5794_v46, %v19178_v4  ;;  %v20123_v33 = vrot.slane %v5795_v47, %v19178_v4  ;;  %v20126_v29 = vrot.slane %v5857_v27, %v19178_v4 }
 0x18c   :  { %24867 = vst [vmem:[#allocation23_spill] sm:$0xff] %v20109_v8  ;;  %v2754_v43 = vadd.f32 %v2753_v54, %v20045_v61  ;;  %v2983_v60 = vrot.slane %v2969_v13, %v19178_v4  ;;  %v2984_v18 = vcombine.high %v2976_v17, %v2976_v17  ;;  %v2992_v3 = vrot.slane %v2976_v17, %v19178_v4 }
 0x18d   :  { %v17336_v24 = vpop.f32.mrf.mxu0 }
 0x18e   :  { %v3018_v63 = vcombine.high %v2754_v43, %v2754_v43  ;;  %v3025_v49 = vrot.slane %v2754_v43, %v19178_v4  ;;  %v2985_v35 = vcombine.high %v2983_v60, %v2983_v60  ;;  %v2999_v34 = vrot.slane %v2983_v60, %v19178_v4 }
 0x18f   :  { %v3006_v25 = vrot.slane %v2984_v18, %v19178_v4  ;;  %v3014_v22 = vcombine.high %v2992_v3, %v2992_v3  ;;  %v4369_v1 = vmax.f32 %v2992_v3, 0.0 }
 0x190   :  { %v3032_v51 = vrot.slane %v3018_v63, %v19178_v4  ;;  %v3033_v46 = vcombine.high %v3025_v49, %v3025_v49  ;;  %v3041_v59 = vrot.slane %v3025_v49, %v19178_v4  ;;  %v3013_v26 = vrot.slane %v2985_v35, %v19178_v4 }
 0x191   :  { %v3015_v36 = vcombine.high %v2999_v34, %v2999_v34  ;;  %v3016_v47 = vcombine.high %v3006_v25, %v3006_v25  ;;  %v4370_v40 = vmax.f32 %v3006_v25, 0.0  ;;  %v4371_v0 = vmax.f32 %v3014_v22, 0.0 }
 0x192   :  { %v4373_v11 = vmax.f32 %v2999_v34, 0.0  ;;  %v4786_v38 = vcombine.low %v4368_v56, %v4369_v1  ;;  %v3034_v37 = vcombine.high %v3032_v51, %v3032_v51  ;;  %v3017_v48 = vcombine.high %v3013_v26, %v3013_v26 }
 0x193   :  { %v4372_v13 = vmax.f32 %v3016_v47, 0.0  ;;  %v4374_v17 = vmax.f32 %v3013_v26, 0.0  ;;  %v20133_v54 = vmax.f32 %v3015_v36, 0.0  ;;  %v2758_v27 = vpop.f32.mrf.mxu0  ;;  %v4787_v43 = vcombine.low %v4370_v40, %v4371_v0 }
 0x194   :  { %v20136_v60 = vrot.slane %v4786_v38, %v19178_v4  ;;  %v5858_v18 = vcombine.low %v4369_v1, %v4370_v40  ;;  %v3048_v3 = vrot.slane %v3032_v51, %v19178_v4  ;;  %v3055_v1 = vrot.slane %v3033_v46, %v19178_v4 }
 0x195   :  { %v4788_v24 = vcombine.low %v4372_v13, %v4373_v11  ;;  %v4834_v63 = vcombine.low %v4374_v17, %v20133_v54  ;;  %v5859_v49 = vcombine.low %v4371_v0, %v4372_v13  ;;  %v20140_v35 = vcombine.low %v4373_v11, %v4374_v17  ;;  %v17339_v56 = vpop.f32.mrf.mxu0 }
 0x196   :  { %24868 = vst [vmem:[#allocation24_spill] sm:$0xff] %v20136_v60  ;;  %v20143_v34 = vrot.slane %v4787_v43, %v19178_v4  ;;  %v20146_v25 = vcombine.low %v4795_v9, %v20136_v60  ;;  %v20149_v22 = vrot.slane %v5858_v18, %v19178_v4  ;;  %v3062_v47 = vrot.slane %v3034_v37, %v19178_v4 }
 0x197   :  { %v20153_v51 = vrot.slane %v4788_v24, %v19178_v4  ;;  %v20156_v26 = vrot.slane %v4834_v63, %v19178_v4  ;;  %v20159_v36 = vrot.slane %v5859_v49, %v19178_v4  ;;  %v2761_v40 = vpop.f32.mrf.mxu0  ;;  %v3063_v0 = vcombine.high %v3041_v59, %v3041_v59 }
 0x198   :  { %24869 = vst [vmem:[#allocation25_spill] sm:$0xff] %v20143_v34  ;;  %24870 = vst [vmem:[#allocation26_spill] sm:$0xff] %v20146_v25  ;;  %v3064_v11 = vcombine.high %v3048_v3, %v3048_v3  ;;  %v3065_v38 = vcombine.high %v3055_v1, %v3055_v1  ;;  %v3066_v17 = vcombine.high %v3062_v47, %v3062_v47  ;;  %v20168_v43 = vmax.f32 %v3017_v48, 0.0 }
 0x199   :  { %24871 = vst [vmem:[#allocation27_spill] sm:$0xff] %v20153_v51  ;;  %24872 = vst [vmem:[#allocation28_spill] sm:$0xff] %v20156_v26  ;;  %v17340_v18 = vpop.f32.mrf.mxu0  ;;  %v4377_v24 = vmax.f32 %v3041_v59, 0.0  ;;  %v4378_v63 = vmax.f32 %v3055_v1, 0.0  ;;  %v4379_v37 = vmax.f32 %v3063_v0, 0.0  ;;  %v4381_v56 = vmax.f32 %v3048_v3, 0.0 }
 0x19a   :  { %v4380_v49 = vmax.f32 %v3065_v38, 0.0  ;;  %v4382_v7 = vmax.f32 %v3062_v47, 0.0  ;;  %v4383_v9 = vmax.f32 %v3064_v11, 0.0  ;;  %v2759_v48 = vadd.f32 %v2758_v27, %v20047_v31 }
 0x19b   :  { %v20173_v46 = vcombine.low %v20168_v43, %v4377_v24  ;;  %v20175_v23 = vcombine.low %v4377_v24, %v4378_v63  ;;  %v4384_v1 = vmax.f32 %v3066_v17, 0.0  ;;  %v2762_v27 = vadd.f32 %v2761_v40, %v20054_v5 }
 0x19c   :  { %v4849_v62 = vcombine.low %v4379_v37, %v4380_v49  ;;  %v4850_v13 = vcombine.low %v4381_v56, %v4382_v7  ;;  %v20178_v18 = vcombine.low %v4380_v49, %v4381_v56  ;;  %v20180_v59 = vcombine.low %v4382_v7, %v4383_v9 }
 0x19d   :  { %24873 = vst [vmem:[#allocation29_spill] sm:$0xff] %v20173_v46  ;;  %v3067_v0 = vcombine.high %v2759_v48, %v2759_v48  ;;  %v3074_v11 = vrot.slane %v2759_v48, %v19178_v4  ;;  %v4851_v24 = vcombine.low %v4383_v9, %v4384_v1  ;;  %v20196_v7 = vcombine.low %v5803_v41, %v20119_v58 }
 0x19e   :  { %v20183_v3 = vrot.slane %v4849_v62, %v19178_v4  ;;  %v20189_v38 = vrot.slane %v4850_v13, %v19178_v4  ;;  %v3116_v13 = vcombine.high %v2762_v27, %v2762_v27  ;;  %v3123_v39 = vrot.slane %v2762_v27, %v19178_v4 }
 0x19f   :  { %v3081_v62 = vrot.slane %v3067_v0, %v19178_v4  ;;  %v3082_v17 = vcombine.high %v3074_v11, %v3074_v11  ;;  %v3090_v63 = vrot.slane %v3074_v11, %v19178_v4  ;;  %v20205_v40 = vrot.slane %v4851_v24, %v19178_v4 }
 0x1a0   :  { %24874 = vst [vmem:[#allocation30_spill] sm:$0xff] %v20183_v3  ;;  %24875 = vst [vmem:[#allocation31_spill] sm:$0xff] %v20189_v38  ;;  %v2766_v37 = vpop.f32.mrf.mxu0  ;;  %v3130_v20 = vrot.slane %v3116_v13, %v19178_v4  ;;  %v3131_v49 = vcombine.high %v3123_v39, %v3123_v39  ;;  %v3139_v9 = vrot.slane %v3123_v39, %v19178_v4 }
 0x1a1   :  { %24876 = vst [vmem:[#allocation32_spill] sm:$0xff] %v20205_v40  ;;  %v3083_v41 = vcombine.high %v3081_v62, %v3081_v62  ;;  %v20209_v56 = vrot.slane %v3081_v62, %v19178_v4  ;;  %v3104_v48 = vrot.slane %v3082_v17, %v19178_v4  ;;  %v3112_v0 = vcombine.high %v3090_v63, %v3090_v63 }
 0x1a2   :  { %v17343_v11 = vpop.f32.mrf.mxu0  ;;  %v4385_v47 = vmax.f32 %v3090_v63, 0.0  ;;  %v3153_v55 = vrot.slane %v3131_v49, %v19178_v4  ;;  %v4393_v16 = vmax.f32 %v3139_v9, 0.0  ;;  %v2767_v49 = vadd.f32 %v2766_v37, %v20056_v10 }
 0x1a3   :  { %v20215_v24 = vrot.slane %v3083_v41, %v19178_v4  ;;  %v3113_v27 = vcombine.high %v20209_v56, %v20209_v56  ;;  %v3114_v30 = vcombine.high %v3104_v48, %v3104_v48  ;;  %v4386_v46 = vmax.f32 %v3104_v48, 0.0 }
 0x1a4   :  { %v2769_v62 = vpop.f32.mrf.mxu0  ;;  %v4387_v38 = vmax.f32 %v3112_v0, 0.0  ;;  %v24712_v17 = vmax.f32 %v20209_v56, 0.0  ;;  %v5923_v3 = vcombine.low %v4384_v1, %v4385_v47  ;;  %v3132_v11 = vcombine.high %v3130_v20, %v3130_v20 }
 0x1a5   :  { %v3115_v63 = vcombine.high %v20215_v24, %v20215_v24  ;;  %v20222_v13 = vmax.f32 %v3114_v30, 0.0  ;;  %v24711_v39 = vmax.f32 %v20215_v24, 0.0  ;;  %v20225_v41 = vmax.f32 %v3113_v27, 0.0 }
 0x1a6   :  { %v17344_v8 = vpop.f32.mrf.mxu0  ;;  %v4852_v26 = vcombine.low %v4385_v47, %v4386_v46  ;;  %v5924_v60 = vcombine.low %v4386_v46, %v4387_v38  ;;  %v20228_v48 = vrot.slane %v5923_v3, %v19178_v4  ;;  %v3146_v0 = vrot.slane %v3130_v20, %v19178_v4 }
 0x1a7   :  { %v4898_v1 = vcombine.low %v4387_v38, %v20222_v13  ;;  %v20236_v30 = vcombine.low %v24712_v17, %v24711_v39  ;;  %v3160_v27 = vrot.slane %v3132_v11, %v19178_v4  ;;  %v3161_v3 = vcombine.high %v3139_v9, %v3139_v9 }
 0x1a8   :  { %v20241_v8 = vrot.slane %v4852_v26, %v19178_v4  ;;  %v20244_v46 = vrot.slane %v5924_v60, %v19178_v4  ;;  %v3162_v20 = vcombine.high %v3146_v0, %v3146_v0  ;;  %v3163_v39 = vcombine.high %v3153_v55, %v3153_v55 }
 0x1a9   :  { %24877 = vst [vmem:[#allocation33_spill] sm:$0xff] %v20236_v30  ;;  %v20247_v47 = vrot.slane %v4898_v1, %v19178_v4  ;;  %v3164_v17 = vcombine.high %v3160_v27, %v3160_v27  ;;  %v4392_v11 = vmax.f32 %v3115_v63, 0.0  ;;  %v4394_v26 = vmax.f32 %v3153_v55, 0.0 }
 0x1aa   :  { %24878 = vst [vmem:[#allocation34_spill] sm:$0xff] %v20241_v8  ;;  %v4395_v51 = vmax.f32 %v3161_v3, 0.0  ;;  %v4396_v34 = vmax.f32 %v3163_v39, 0.0  ;;  %v4397_v25 = vmax.f32 %v3146_v0, 0.0  ;;  %v4398_v14 = vmax.f32 %v3160_v27, 0.0 }
 0x1ab   :  { %24879 = vst [vmem:[#allocation35_spill] sm:$0xff] %v20247_v47  ;;  %v20255_v1 = vmax.f32 %v3162_v20, 0.0  ;;  %v4913_v45 = vcombine.low %v4392_v11, %v4393_v16  ;;  %v20257_v50 = vcombine.low %v4393_v16, %v4394_v26  ;;  %v24884_v11 = vcombine.low %v20123_v33, %v20103_v57 }
 0x1ac   :  { %v4914_v38 = vcombine.low %v4394_v26, %v4395_v51  ;;  %v4915_v30 = vcombine.low %v4396_v34, %v4397_v25  ;;  %v5986_v5 = vcombine.low %v4395_v51, %v4396_v34  ;;  %v20262_v63 = vcombine.low %v4397_v25, %v4398_v14 }
 0x1ad   :  { %v4916_v9 = vcombine.low %v4398_v14, %v20255_v1  ;;  %v4923_v55 = vrot.slane %v4913_v45, %v19178_v4  ;;  %v3165_v51 = vcombine.high %v2767_v49, %v2767_v49  ;;  %v3172_v45 = vrot.slane %v2767_v49, %v19178_v4 }
 0x1ae   :  { %v20269_v27 = vrot.slane %v4914_v38, %v19178_v4  ;;  %v20272_v16 = vrot.slane %v4915_v30, %v19178_v4  ;;  %v20275_v34 = vrot.slane %v5986_v5, %v19178_v4  ;;  %v20281_v14 = vmax.f32 %v3164_v17, 0.0 }
 0x1af   :  { %v20266_v0 = vpop.f32.mrf.mxu0  ;;  %v20278_v37 = vrot.slane %v4916_v9, %v19178_v4  ;;  %v2770_v25 = vadd.f32 %v2769_v62, %v20013_v21  ;;  %v3179_v5 = vrot.slane %v3165_v51, %v19178_v4  ;;  %v5833_v38 = vrot.slane %v20196_v7, %v19178_v4 }
 0x1b0   :  { %24880 = vst [vmem:[#allocation36_spill] sm:$0xff] %v20269_v27  ;;  %24881 = vst [vmem:[#allocation37_spill] sm:$0xff] %v20272_v16  ;;  %v20285_v20 = vcombine.low %v4923_v55, %v20269_v27  ;;  %v3180_v49 = vcombine.high %v3172_v45, %v3172_v45  ;;  %v3188_v17 = vrot.slane %v3172_v45, %v19178_v4 }
 0x1b1   :  { %24882 = vst [vmem:[#allocation38_spill] sm:$0xff] %v20278_v37  ;;  %v17347_v3 = vpop.f32.mrf.mxu0  ;;  %v3181_v9 = vcombine.high %v3179_v5, %v3179_v5  ;;  %v3195_v55 = vrot.slane %v3179_v5, %v19178_v4  ;;  %v3221_v51 = vrot.slane %v2770_v25, %v19178_v4  ;;  %v5840_v45 = vrot.slane %v24884_v11, %v19178_v4 }
 0x1b2   :  { %24883 = vst [vmem:[#allocation39_spill] sm:$0xff] %v20285_v20  ;;  %v3214_v3 = vcombine.high %v2770_v25, %v2770_v25  ;;  %v3202_v30 = vrot.slane %v3180_v49, %v19178_v4  ;;  %v3210_v7 = vcombine.high %v3188_v17, %v3188_v17  ;;  %v4401_v60 = vmax.f32 %v3188_v17, 0.0 }
 0x1b3   :  { %v20297_v26 = vpop.f32.mrf.mxu0  ;;  %v3209_v62 = vrot.slane %v3181_v9, %v19178_v4  ;;  %v3211_v27 = vcombine.high %v3195_v55, %v3195_v55  ;;  %v4405_v16 = vmax.f32 %v3195_v55, 0.0  ;;  %v3229_v21 = vcombine.high %v3221_v51, %v3221_v51 }
 0x1b4   :  { %v3228_v20 = vrot.slane %v3214_v3, %v19178_v4  ;;  %v3212_v5 = vcombine.high %v3202_v30, %v3202_v30  ;;  %v4402_v8 = vmax.f32 %v3202_v30, 0.0  ;;  %v20308_v40 = vmax.f32 %v3210_v7, 0.0 }
 0x1b5   :  { %v17348_v39 = vpop.f32.mrf.mxu0  ;;  %v4962_v25 = vcombine.low %v20281_v14, %v4401_v60  ;;  %v3213_v49 = vcombine.high %v3209_v62, %v3209_v62  ;;  %v4406_v17 = vmax.f32 %v3209_v62, 0.0  ;;  %v4407_v47 = vmax.f32 %v3211_v27, 0.0 }
 0x1b6   :  { %v20311_v10 = vmax.f32 %v3212_v5, 0.0  ;;  %v6034_v11 = vcombine.low %v4401_v60, %v4402_v8  ;;  %v20317_v9 = vcombine.low %v4402_v8, %v20308_v40  ;;  %v3230_v3 = vcombine.high %v3228_v20, %v3228_v20 }
 0x1b7   :  { %v20314_v39 = vrot.slane %v4962_v25, %v19178_v4  ;;  %v20319_v55 = vcombine.low %v4405_v16, %v4406_v17  ;;  %v20321_v30 = vcombine.low %v4406_v17, %v4407_v47  ;;  %v3237_v7 = vrot.slane %v3221_v51, %v19178_v4 }
 0x1b8   :  { %24886 = vst [vmem:[#allocation41_spill] sm:$0xff] %v20317_v9  ;;  %v20325_v62 = vrot.slane %v6034_v11, %v19178_v4  ;;  %v3244_v16 = vrot.slane %v3228_v20, %v19178_v4  ;;  %v3251_v25 = vrot.slane %v3229_v21, %v19178_v4  ;;  %v3258_v51 = vrot.slane %v3230_v3, %v19178_v4 }
 0x1b9   :  { %24885 = vst [vmem:[#allocation40_spill] sm:$0xff] %v20314_v39  ;;  %24887 = vst [vmem:[#allocation42_spill] sm:$0xff] %v20319_v55  ;;  %v3259_v17 = vcombine.high %v3237_v7, %v3237_v7  ;;  %v4408_v11 = vmax.f32 %v3213_v49, 0.0  ;;  %v4409_v31 = vmax.f32 %v3237_v7, 0.0  ;;  %v5841_v61 = vcombine.low %v5833_v38, %v5840_v45 }
 0x1ba   :  { %24888 = vst [vmem:[#allocation43_spill] sm:$0xff] %v20321_v30  ;;  %v3260_v39 = vcombine.high %v3244_v16, %v3244_v16  ;;  %v3261_v5 = vcombine.high %v3251_v25, %v3251_v25  ;;  %v3262_v9 = vcombine.high %v3258_v51, %v3258_v51  ;;  %v4410_v37 = vmax.f32 %v3251_v25, 0.0 }
 0x1bb   :  { %v4411_v8 = vmax.f32 %v3259_v17, 0.0  ;;  %v4413_v15 = vmax.f32 %v3244_v16, 0.0  ;;  %v4414_v19 = vmax.f32 %v3258_v51, 0.0  ;;  %v4978_v60 = vcombine.low %v4407_v47, %v4408_v11 }
 0x1bc   :  { %v4412_v20 = vmax.f32 %v3261_v5, 0.0  ;;  %v20340_v30 = vmax.f32 %v3260_v39, 0.0  ;;  %v4979_v21 = vcombine.low %v4409_v31, %v4410_v37  ;;  %v6050_v3 = vcombine.low %v4408_v11, %v4409_v31 }
 0x1bd   :  { %v20338_v27 = vpop.f32.mrf.mxu0  ;;  %v20343_v49 = vrot.slane %v4978_v60, %v19178_v4  ;;  %v5026_v38 = vcombine.low %v4413_v15, %v4414_v19  ;;  %v6051_v45 = vcombine.low %v4410_v37, %v4411_v8  ;;  %v5888_v7 = vrot.slane %v20140_v35, %v19178_v4 }
 0x1be   :  { %24889 = vst [vmem:[#allocation44_spill] sm:$0xff] %v20340_v30  ;;  %v4980_v25 = vcombine.low %v4411_v8, %v4412_v20  ;;  %v20350_v16 = vrot.slane %v4979_v21, %v19178_v4  ;;  %v20352_v47 = vcombine.low %v4412_v20, %v4413_v15  ;;  %v20355_v39 = vrot.slane %v6050_v3, %v19178_v4 }
 0x1bf   :  { %v17351_v55 = vpop.f32.mrf.mxu0  ;;  %24890 = vst [vmem:[#allocation45_spill] sm:$0xff] %v20343_v49  ;;  %v20358_v31 = vrot.slane %v5026_v38, %v19178_v4  ;;  %v20364_v37 = vcombine.low %v4414_v19, %v20340_v30  ;;  %v5889_v35 = vcombine.low %v20126_v29, %v20149_v22  ;;  %v5890_v60 = vcombine.low %v20159_v36, %v5888_v7 }
 0x1c0   :  { %24891 = vst [vmem:[#allocation46_spill] sm:$0xff] %v20350_v16  ;;  %v20361_v55 = vrot.slane %v6051_v45, %v19178_v4  ;;  %v20369_v8 = vrot.slane %v4980_v25, %v19178_v4  ;;  %v2775_v51 = vadd.f32 %v20266_v0, %v20024_v2  ;;  %v20377_v11 = vmax.f32 %v3262_v9, 0.0 }
 0x1c1   :  { %v20347_v12 = vpop.f32.mrf.mxu0  ;;  %24892 = vst [vmem:[#allocation47_spill] sm:$0xff] %v20358_v31  ;;  %v5897_v17 = vrot.slane %v5889_v35, %v19178_v4  ;;  %v24895_v19 = vcombine.low %v20133_v54, %v20168_v43  ;;  %v7489_v20 = vcombine.low %v20119_v58, %v20123_v33  ;;  %v5904_v0 = vrot.slane %v5890_v60, %v19178_v4 }
 0x1c2   :  { %24893 = vst [vmem:[#allocation48_spill] sm:$0xff] %v20369_v8  ;;  %24894 = vst [vmem:[#allocation49_spill] sm:$0xff] %v20377_v11  ;;  %v3263_v38 = vcombine.high %v2775_v51, %v2775_v51  ;;  %v3270_v9 = vrot.slane %v2775_v51, %v19178_v4  ;;  %v7490_v54 = vcombine.low %v20103_v57, %v20106_v44 }
 0x1c3   :  { %v17352_v5 = vpop.f32.mrf.mxu0  ;;  %v20383_v29 = vrot.slane %v24895_v19, %v19178_v4  ;;  %v7497_v43 = vrot.slane %v7489_v20, %v19178_v4  ;;  %v5905_v58 = vcombine.low %v5897_v17, %v5904_v0  ;;  %v7521_v25 = vcombine.low %v20149_v22, %v20159_v36 }
 0x1c4   :  { %v3277_v33 = vrot.slane %v3263_v38, %v19178_v4  ;;  %v3278_v5 = vcombine.high %v3270_v9, %v3270_v9  ;;  %v3286_v60 = vrot.slane %v3270_v9, %v19178_v4  ;;  %v7504_v51 = vrot.slane %v7490_v54, %v19178_v4 }
 0x1c5   :  { %v7522_v35 = vcombine.low %v5888_v7, %v20383_v29  ;;  %v5856_v19 = vrot.slane %v20106_v44, %v19178_v4  ;;  %v17854_v45 = vpack.i.bf16 %v5905_v58, %v5841_v61  ;;  %v7529_v17 = vrot.slane %v7521_v25, %v19178_v4 }
 0x1c6   :  { %v3279_v57 = vcombine.high %v3277_v33, %v3277_v33  ;;  %v3293_v20 = vrot.slane %v3277_v33, %v19178_v4  ;;  %v3300_v0 = vrot.slane %v3278_v5, %v19178_v4  ;;  %v3308_v38 = vcombine.high %v3286_v60, %v3286_v60 }
 0x1c7   :  { %v4417_v22 = vmax.f32 %v3286_v60, 0.0  ;;  %v7505_v36 = vcombine.low %v7497_v43, %v7504_v51  ;;  %17855 = vrot.lane.b32.xlu0 %v17854_v45, %s18603_s23  ;;  %v7536_v44 = vrot.slane %v7522_v35, %v19178_v4  ;;  %v2778_v21 = vadd.f32 %v20297_v26, %v20058_v52 }
 0x1c8   :  { %v3307_v7 = vrot.slane %v3279_v57, %v19178_v4  ;;  %v3309_v9 = vcombine.high %v3293_v20, %v3293_v20  ;;  %v4421_v54 = vmax.f32 %v3293_v20, 0.0  ;;  %v3310_v58 = vcombine.high %v3300_v0, %v3300_v0 }
 0x1c9   :  { %v4418_v33 = vmax.f32 %v3300_v0, 0.0  ;;  %v4419_v3 = vmax.f32 %v3308_v38, 0.0  ;;  %v20415_v25 = vcombine.low %v20377_v11, %v4417_v22  ;;  %v7537_v51 = vcombine.low %v7529_v17, %v7536_v44 }
 0x1ca   :  { %v3311_v5 = vcombine.high %v3307_v7, %v3307_v7  ;;  %v4422_v60 = vmax.f32 %v3307_v7, 0.0  ;;  %v20417_v43 = vmax.f32 %v3309_v9, 0.0  ;;  %v4420_v15 = vmax.f32 %v3310_v58, 0.0 }
 0x1cb   :  { %v5041_v57 = vcombine.low %v4418_v33, %v4419_v3  ;;  %v24896_v20 = vmax.f32 %v20074_v32, 0.0  ;;  %v17859_v22 = vpack.i.bf16 %v7537_v51, %v7505_v36  ;;  %v3312_v26 = vcombine.high %v2778_v21, %v2778_v21 }
 0x1cc   :  { %v20412_v61 = vpop.f32.mrf.mxu0  ;;  %v5043_v0 = vcombine.low %v4422_v60, %v20417_v43  ;;  %v20425_v38 = vcombine.low %v4421_v54, %v4422_v60  ;;  %v20427_v11 = vmax.f32 %v3311_v5, 0.0  ;;  %v5042_v17 = vcombine.low %v4420_v15, %v4421_v54 }
 0x1cd   :  { %v7506_v35 = vcombine.low %v20091_v6, %v24896_v20  ;;  %v5051_v9 = vrot.slane %v5041_v57, %v19178_v4  ;;  %v6113_v44 = vcombine.low %v4419_v3, %v4420_v15  ;;  %17860 = vrot.lane.b32.xlu1 %v17859_v22, %s18603_s23  ;;  %v3319_v58 = vrot.slane %v2778_v21, %v19178_v4 }
 0x1ce   :  { %v17355_v45 = vpop.f32.mrf.mxu0  ;;  %v20434_v6 = vrot.slane %v5043_v0, %v19178_v4  ;;  %v20441_v5 = vrot.slane %v5042_v17, %v19178_v4  ;;  %v5920_v3 = vrot.slane %v20383_v29, %v19178_v4  ;;  %v3326_v60 = vrot.slane %v3312_v26, %v19178_v4 }
 0x1cf   :  { %v7513_v32 = vrot.slane %v7506_v35, %v19178_v4  ;;  %v20444_v54 = vrot.slane %v6113_v44, %v19178_v4  ;;  %v3327_v51 = vcombine.high %v3319_v58, %v3319_v58  ;;  %v3335_v21 = vrot.slane %v3319_v58, %v19178_v4 }
 0x1d0   :  { %v20429_v7 = vpop.f32.mrf.mxu0  ;;  %24897 = vst [vmem:[#allocation50_spill] sm:$0xff] %v20434_v6  ;;  %24898 = vst [vmem:[#allocation51_spill] sm:$0xff] %v20441_v5  ;;  %v24899_v45 = vmax.f32 %v20209_v56, 0.0  ;;  %v20455_v20 = vcombine.low %v5051_v9, %v20441_v5  ;;  %v2783_v22 = vadd.f32 %v20338_v27, %v20028_v28  ;;  %v3328_v29 = vcombine.high %v3326_v60, %v3326_v60 }
 0x1d1   :  { %v7520_v15 = vrot.slane %v7513_v32, %v19178_v4  ;;  %v20462_v17 = vrot.slane %v3326_v60, %v19178_v4  ;;  %v3349_v44 = vrot.slane %v3327_v51, %v19178_v4  ;;  %v3357_v32 = vcombine.high %v3335_v21, %v3335_v21 }
 0x1d2   :  { %v17356_v33 = vpop.f32.mrf.mxu0  ;;  %v5970_v57 = vcombine.low %v20222_v13, %v24899_v45  ;;  %24900 = vst [vmem:[#allocation52_spill] sm:$0xff] %v20455_v20  ;;  %v4425_v56 = vmax.f32 %v3335_v21, 0.0  ;;  %v3361_v9 = vcombine.high %v2783_v22, %v2783_v22  ;;  %v3368_v26 = vrot.slane %v2783_v22, %v19178_v4 }
 0x1d3   :  { %v17864_v0 = vpack.i.bf16 %v7520_v15, %v5856_v19  ;;  %v20471_v19 = vrot.slane %v3328_v29, %v19178_v4  ;;  %v3358_v27 = vcombine.high %v20462_v17, %v20462_v17  ;;  %v3359_v58 = vcombine.high %v3349_v44, %v3349_v44 }
 0x1d4   :  { %v20467_v13 = vrot.slane %v5970_v57, %v19178_v4  ;;  %v4426_v33 = vmax.f32 %v3349_v44, 0.0  ;;  %v4427_v15 = vmax.f32 %v3357_v32, 0.0  ;;  %v5044_v51 = vcombine.low %v20427_v11, %v4425_v56 }
 0x1d5   :  { %17865 = vrot.lane.b32.xlu0 %v17864_v0, %s18603_s23  ;;  %v3360_v45 = vcombine.high %v20471_v19, %v20471_v19  ;;  %v4428_v57 = vmax.f32 %v3359_v58, 0.0  ;;  %v4431_v22 = vmax.f32 %v3358_v27, 0.0  ;;  %v24902_v30 = vmax.f32 %v20462_v17, 0.0 }
 0x1d6   :  { %v5984_v21 = vrot.slane %v20467_v13, %v19178_v4  ;;  %v20485_v35 = vrot.slane %v5044_v51, %v19178_v4  ;;  %v5090_v44 = vcombine.low %v4426_v33, %v4427_v15  ;;  %v6116_v32 = vcombine.low %v4425_v56, %v4426_v33 }
 0x1d7   :  { %v6162_v60 = vcombine.low %v4427_v15, %v4428_v57  ;;  %v20489_v5 = vcombine.low %v4428_v57, %v24902_v30  ;;  %v3375_v20 = vrot.slane %v3361_v9, %v19178_v4  ;;  %v3376_v31 = vcombine.high %v3368_v26, %v3368_v26 }
 0x1d8   :  { %24901 = vst [vmem:[#allocation53_spill] sm:$0xff] %v20485_v35  ;;  %v17869_v36 = vpack.i.bf16 %v5984_v21, %v5920_v3  ;;  %v20495_v0 = vrot.slane %v5090_v44, %v19178_v4  ;;  %v20498_v51 = vrot.slane %v6116_v32, %v19178_v4  ;;  %v3384_v3 = vrot.slane %v3368_v26, %v19178_v4 }
 0x1d9   :  { %24903 = vst [vmem:[#allocation54_spill] sm:$0xff] %v20489_v5  ;;  %v20503_v30 = vrot.slane %v6162_v60, %v19178_v4  ;;  %v3377_v9 = vcombine.high %v3375_v20, %v3375_v20  ;;  %v3391_v33 = vrot.slane %v3375_v20, %v19178_v4  ;;  %v3398_v57 = vrot.slane %v3376_v31, %v19178_v4 }
 0x1da   :  { %v20482_v29 = vpop.f32.mrf.mxu0  ;;  %24904 = vst [vmem:[#allocation55_spill] sm:$0xff] %v20495_v0  ;;  %17870 = vrot.lane.b32.xlu0 %v17869_v36, %s18603_s23  ;;  %v3406_v44 = vcombine.high %v3384_v3, %v3384_v3  ;;  %v4432_v36 = vmax.f32 %v3360_v45, 0.0  ;;  %v4433_v60 = vmax.f32 %v3384_v3, 0.0 }
 0x1db   :  { %v3405_v26 = vrot.slane %v3377_v9, %v19178_v4  ;;  %v3407_v32 = vcombine.high %v3391_v33, %v3391_v33  ;;  %v3408_v6 = vcombine.high %v3398_v57, %v3398_v57  ;;  %v4434_v56 = vmax.f32 %v3398_v57, 0.0 }
 0x1dc   :  { %v17359_v58 = vpop.f32.mrf.mxu0  ;;  %v4435_v5 = vmax.f32 %v3406_v44, 0.0  ;;  %v5105_v8 = vcombine.low %v4431_v22, %v4432_v36  ;;  %v20514_v28 = vcombine.low %v4432_v36, %v4433_v60  ;;  %v5931_v22 = vrot.slane %v20178_v18, %v19178_v4 }
 0x1dd   :  { %v4437_v58 = vmax.f32 %v3391_v33, 0.0  ;;  %v3409_v20 = vcombine.high %v3405_v26, %v3405_v26  ;;  %v4438_v16 = vmax.f32 %v3405_v26, 0.0  ;;  %v4439_v49 = vmax.f32 %v3407_v32, 0.0 }
 0x1de   :  { %v20508_v15 = vpop.f32.mrf.mxu0  ;;  %v4436_v31 = vmax.f32 %v3408_v6, 0.0  ;;  %v5106_v0 = vcombine.low %v4433_v60, %v4434_v56  ;;  %v20519_v45 = vrot.slane %v5105_v8, %v19178_v4  ;;  %v6178_v9 = vcombine.low %v4434_v56, %v4435_v5 }
 0x1df   :  { %v5108_v3 = vcombine.low %v4437_v58, %v4438_v16  ;;  %v20521_v33 = vcombine.low %v4438_v16, %v4439_v49  ;;  %v5938_v16 = vrot.slane %v20180_v59, %v19178_v4  ;;  %v5954_v26 = vcombine.low %v20228_v48, %v20244_v46 }
 0x1e0   :  { %v17360_v27 = vpop.f32.mrf.mxu0  ;;  %24905 = vst [vmem:[#allocation56_spill] sm:$0xff] %v20519_v45  ;;  %v5107_v44 = vcombine.low %v4435_v5, %v4436_v31  ;;  %v20528_v36 = vrot.slane %v5106_v0, %v19178_v4  ;;  %v20530_v6 = vcombine.low %v4436_v31, %v4437_v58  ;;  %v20533_v8 = vrot.slane %v6178_v9, %v19178_v4 }
 0x1e1   :  { %v20536_v56 = vrot.slane %v5108_v3, %v19178_v4  ;;  %v7554_v18 = vcombine.low %v20244_v46, %v20467_v13  ;;  %v2786_v60 = vadd.f32 %v20347_v12, %v20034_v42  ;;  %v4440_v58 = vmax.f32 %v3409_v20, 0.0 }
 0x1e2   :  { %v20516_v21 = vpop.f32.mrf.mxu0  ;;  %24906 = vst [vmem:[#allocation57_spill] sm:$0xff] %v20528_v36  ;;  %v20547_v0 = vrot.slane %v5107_v44, %v19178_v4  ;;  %v5953_v31 = vcombine.low %v5931_v22, %v5938_v16  ;;  %v5968_v59 = vrot.slane %v5954_v26, %v19178_v4  ;;  %v7553_v9 = vcombine.low %v5938_v16, %v20228_v48 }
 0x1e3   :  { %24907 = vst [vmem:[#allocation58_spill] sm:$0xff] %v20536_v56  ;;  %v7568_v3 = vrot.slane %v7554_v18, %v19178_v4  ;;  %v3410_v44 = vcombine.high %v2786_v60, %v2786_v60  ;;  %v3417_v32 = vrot.slane %v2786_v60, %v19178_v4  ;;  %v5154_v22 = vcombine.low %v4439_v49, %v4440_v58 }
 0x1e4   :  { %v17363_v57 = vpop.f32.mrf.mxu0  ;;  %24908 = vst [vmem:[#allocation59_spill] sm:$0xff] %v20547_v0  ;;  %v5961_v12 = vrot.slane %v5953_v31, %v19178_v4  ;;  %v7561_v20 = vrot.slane %v7553_v9, %v19178_v4  ;;  %v6009_v48 = vrot.slane %v20262_v63, %v19178_v4  ;;  %v24911_v63 = vrot.slane %v20257_v50, %v19178_v4 }
 0x1e5   :  { %v3424_v26 = vrot.slane %v3410_v44, %v19178_v4  ;;  %v3425_v18 = vcombine.high %v3417_v32, %v3417_v32  ;;  %v24909_v57 = vcombine.low %v20255_v1, %v20281_v14  ;;  %v20574_v9 = vrot.slane %v5154_v22, %v19178_v4 }
 0x1e6   :  { %v20544_v5 = vpop.f32.mrf.mxu0  ;;  %v5969_v13 = vcombine.low %v5961_v12, %v5968_v59  ;;  %v7569_v31 = vcombine.low %v7561_v20, %v7568_v3  ;;  %v6017_v49 = vcombine.low %v24911_v63, %v20275_v34 }
 0x1e7   :  { %v6016_v60 = vrot.slane %v24909_v57, %v19178_v4  ;;  %24910 = vst [vmem:[#allocation60_spill] sm:$0xff] %v20574_v9  ;;  %v3426_v44 = vcombine.high %v3424_v26, %v3424_v26  ;;  %v3440_v56 = vrot.slane %v3424_v26, %v19178_v4 }
 0x1e8   :  { %v17364_v46 = vpop.f32.mrf.mxu0  ;;  %v17874_v36 = vpack.i.bf16 %v7569_v31, %v5969_v13  ;;  %v6025_v59 = vrot.slane %v6017_v49, %v19178_v4 }
 0x1e9   :  { %v3433_v46 = vrot.slane %v3417_v32, %v19178_v4  ;;  %v3447_v32 = vrot.slane %v3425_v18, %v19178_v4  ;;  %v6018_v14 = vcombine.low %v6009_v48, %v6016_v60  ;;  %v3454_v57 = vrot.slane %v3426_v44, %v19178_v4 }
 0x1ea   :  { %v20565_v16 = vpop.f32.mrf.mxu0  ;;  %v3456_v12 = vcombine.high %v3440_v56, %v3440_v56  ;;  %17875 = vrot.lane.b32.xlu1 %v17874_v36, %s18603_s23  ;;  %v4445_v22 = vmax.f32 %v3440_v56, 0.0 }
 0x1eb   :  { %v3455_v0 = vcombine.high %v3433_v46, %v3433_v46  ;;  %v4441_v1 = vmax.f32 %v3433_v46, 0.0  ;;  %v3457_v20 = vcombine.high %v3447_v32, %v3447_v32  ;;  %v4442_v50 = vmax.f32 %v3447_v32, 0.0 }
 0x1ec   :  { %v17367_v27 = vpop.f32.mrf.mxu0  ;;  %v6032_v18 = vrot.slane %v6018_v14, %v19178_v4  ;;  %v3458_v13 = vcombine.high %v3454_v57, %v3454_v57  ;;  %v4446_v31 = vmax.f32 %v3454_v57, 0.0  ;;  %v20588_v9 = vmax.f32 %v3456_v12, 0.0 }
 0x1ed   :  { %v4443_v27 = vmax.f32 %v3455_v0, 0.0  ;;  %v6226_v26 = vcombine.low %v4440_v58, %v4441_v1  ;;  %v4444_v46 = vmax.f32 %v3457_v20, 0.0  ;;  %v20593_v44 = vcombine.low %v4441_v1, %v4442_v50 }
 0x1ee   :  { %v20583_v3 = vpop.f32.mrf.mxu0  ;;  %v6033_v32 = vcombine.low %v6025_v59, %v6032_v18  ;;  %v5170_v0 = vcombine.low %v4446_v31, %v20588_v9  ;;  %v20600_v58 = vcombine.low %v4445_v22, %v4446_v31  ;;  %v7545_v14 = vrot.slane %v20175_v23, %v19178_v4 }
 0x1ef   :  { %v20591_v49 = vrot.slane %v6226_v26, %v19178_v4  ;;  %24912 = vst [vmem:[#allocation61_spill] sm:$0xff] %v20593_v44  ;;  %v20595_v45 = vcombine.low %v4442_v50, %v4443_v27  ;;  %v5169_v56 = vcombine.low %v4444_v46, %v4445_v22  ;;  %v24913_v1 = vmax.f32 %v20215_v24, 0.0 }
 0x1f0   :  { %v17368_v63 = vpop.f32.mrf.mxu0  ;;  %v7585_v20 = vcombine.low %v20275_v34, %v6009_v48  ;;  %v7586_v59 = vcombine.low %v6016_v60, %v20325_v62  ;;  %v20613_v22 = vrot.slane %v5170_v0, %v19178_v4  ;;  %v7552_v26 = vrot.slane %v7545_v14, %v19178_v4 }
 0x1f1   :  { %v7570_v12 = vcombine.low %v24913_v1, %v20225_v41  ;;  %v5179_v27 = vrot.slane %v5169_v56, %v19178_v4  ;;  %v2791_v23 = vadd.f32 %v20412_v61, %v20063_v53  ;;  %v20621_v34 = vmax.f32 %v3458_v13, 0.0 }
 0x1f2   :  { %v20597_v36 = vpop.f32.mrf.mxu0  ;;  %24914 = vst [vmem:[#allocation62_spill] sm:$0xff] %v20613_v22  ;;  %v7593_v24 = vrot.slane %v7585_v20, %v19178_v4  ;;  %v7600_v41 = vrot.slane %v7586_v59, %v19178_v4  ;;  %v17879_v63 = vpack.i.bf16 %v7552_v26, %v6033_v32  ;;  %v6048_v14 = vrot.slane %v20325_v62, %v19178_v4 }
 0x1f3   :  { %v7577_v18 = vrot.slane %v7570_v12, %v19178_v4  ;;  %v20626_v60 = vcombine.low %v5179_v27, %v20613_v22  ;;  %v3459_v46 = vcombine.high %v2791_v23, %v2791_v23  ;;  %v3466_v31 = vrot.slane %v2791_v23, %v19178_v4  ;;  %v24917_v27 = vld [vmem:[#allocation10_spill] sm:$0xff]  ;;  %v24918_v23 = vld [vmem:[#allocation43_spill] sm:$0xff] }
 0x1f4   :  { %v17371_v50 = vpop.f32.mrf.mxu0  ;;  %v7601_v61 = vcombine.low %v7593_v24, %v7600_v41  ;;  %17880 = vrot.lane.b32.xlu1 %v17879_v63, %s18603_s23  ;;  %v24916_v20 = vcombine.low %v20308_v40, %v20311_v10  ;;  %v2794_v26 = vadd.f32 %v20429_v7, %v24917_v27  ;;  %v6059_v62 = vrot.slane %v24918_v23, %v19178_v4 }
 0x1f5   :  { %24915 = vst [vmem:[#allocation63_spill] sm:$0xff] %v20626_v60  ;;  %v7584_v56 = vrot.slane %v7577_v18, %v19178_v4  ;;  %v3473_v1 = vrot.slane %v3459_v46, %v19178_v4  ;;  %v3474_v12 = vcombine.high %v3466_v31, %v3466_v31  ;;  %v3482_v32 = vrot.slane %v3466_v31, %v19178_v4 }
 0x1f6   :  { %v20623_v48 = vpop.f32.mrf.mxu0  ;;  %v7609_v59 = vrot.slane %v24916_v20, %v19178_v4  ;;  %v20647_v18 = vrot.slane %v20352_v47, %v19178_v4  ;;  %v3508_v31 = vcombine.high %v2794_v26, %v2794_v26 }
 0x1f7   :  { %v17884_v50 = vpack.i.bf16 %v7601_v61, %v7584_v56  ;;  %v3475_v41 = vcombine.high %v3473_v1, %v3473_v1  ;;  %v3489_v63 = vrot.slane %v3473_v1, %v19178_v4  ;;  %v3496_v46 = vrot.slane %v3474_v12, %v19178_v4 }
 0x1f8   :  { %v17372_v13 = vpop.f32.mrf.mxu0  ;;  %v3504_v10 = vcombine.high %v3482_v32, %v3482_v32  ;;  %v4449_v40 = vmax.f32 %v3482_v32, 0.0  ;;  %v7616_v7 = vrot.slane %v7609_v59, %v19178_v4  ;;  %v3515_v56 = vrot.slane %v2794_v26, %v19178_v4 }
 0x1f9   :  { %17885 = vrot.lane.b32.xlu0 %v17884_v50, %s18603_s23  ;;  %v3503_v47 = vrot.slane %v3475_v41, %v19178_v4  ;;  %v3505_v13 = vcombine.high %v3489_v63, %v3489_v63  ;;  %v3506_v20 = vcombine.high %v3496_v46, %v3496_v46  ;;  %v4450_v27 = vmax.f32 %v3496_v46, 0.0 }
 0x1fa   :  { %v20649_v24 = vpop.f32.mrf.mxu0  ;;  %v4451_v23 = vmax.f32 %v3504_v10, 0.0  ;;  %v4453_v57 = vmax.f32 %v3489_v63, 0.0  ;;  %v5171_v1 = vcombine.low %v20621_v34, %v4449_v40  ;;  %v17894_v12 = vpack.i.bf16 %v7616_v7, %v6048_v14 }
 0x1fb   :  { %24919 = vst [vmem:[#allocation10_spill] sm:$0xff] %v20649_v24  ;;  %v3507_v50 = vcombine.high %v3503_v47, %v3503_v47  ;;  %v4452_v32 = vmax.f32 %v3506_v20, 0.0  ;;  %v4454_v44 = vmax.f32 %v3503_v47, 0.0  ;;  %v20660_v59 = vmax.f32 %v3505_v13, 0.0 }
 0x1fc   :  { %v17375_v61 = vpop.f32.mrf.mxu0  ;;  %v5172_v60 = vcombine.low %v4450_v27, %v4451_v23  ;;  %v20663_v26 = vrot.slane %v5171_v1, %v19178_v4  ;;  %v6243_v41 = vcombine.low %v4449_v40, %v4450_v27  ;;  %v3522_v46 = vrot.slane %v3508_v31, %v19178_v4 }
 0x1fd   :  { %17895 = vrot.lane.b32.xlu0 %v17894_v12, %s18603_s23  ;;  %v20667_v10 = vmax.f32 %v3507_v50, 0.0  ;;  %v5218_v14 = vcombine.low %v4452_v32, %v4453_v57  ;;  %v6244_v7 = vcombine.low %v4451_v23, %v4452_v32  ;;  %v20669_v61 = vcombine.low %v4453_v57, %v4454_v44 }
 0x1fe   :  { %v20658_v0 = vpop.f32.mrf.mxu0  ;;  %24921 = vst [vmem:[#allocation64_spill] sm:$0xff] %v20663_v26  ;;  %v20672_v47 = vrot.slane %v5172_v60, %v19178_v4  ;;  %v20675_v13 = vrot.slane %v6243_v41, %v19178_v4  ;;  %v20680_v20 = vcombine.low %v4454_v44, %v20660_v59  ;;  %v3523_v57 = vcombine.high %v3515_v56, %v3515_v56 }
 0x1ff   :  { %24920 = vst [vmem:[#allocation43_spill] sm:$0xff] %v20658_v0  ;;  %v20683_v31 = vrot.slane %v5218_v14, %v19178_v4  ;;  %v20686_v27 = vrot.slane %v6244_v7, %v19178_v4  ;;  %v3524_v23 = vcombine.high %v3522_v46, %v3522_v46  ;;  %v3531_v12 = vrot.slane %v3515_v56, %v19178_v4 }
 0x200   :  { %v17376_v63 = vpop.f32.mrf.mxu0  ;;  %24922 = vst [vmem:[#allocation65_spill] sm:$0xff] %v20672_v47  ;;  %24923 = vst [vmem:[#allocation66_spill] sm:$0xff] %v20680_v20  ;;  %v3538_v50 = vrot.slane %v3522_v46, %v19178_v4  ;;  %v3545_v32 = vrot.slane %v3523_v57, %v19178_v4  ;;  %v6082_v46 = vcombine.low %v20361_v55, %v20647_v18 }
 0x201   :  { %24924 = vst [vmem:[#allocation67_spill] sm:$0xff] %v20683_v31  ;;  %v3552_v41 = vrot.slane %v3524_v23, %v19178_v4  ;;  %v6081_v63 = vcombine.low %v6059_v62, %v20355_v39  ;;  %v3553_v14 = vcombine.high %v3531_v12, %v3531_v12  ;;  %v4457_v40 = vmax.f32 %v3531_v12, 0.0 }
 0x202   :  { %v3554_v7 = vcombine.high %v3538_v50, %v3538_v50  ;;  %v4461_v60 = vmax.f32 %v3538_v50, 0.0  ;;  %v3555_v22 = vcombine.high %v3545_v32, %v3545_v32  ;;  %v4458_v1 = vmax.f32 %v3545_v32, 0.0 }
 0x203   :  { %v3556_v26 = vcombine.high %v3552_v41, %v3552_v41  ;;  %v4462_v20 = vmax.f32 %v3552_v41, 0.0  ;;  %v4459_v56 = vmax.f32 %v3553_v14, 0.0  ;;  %v6089_v44 = vrot.slane %v6081_v63, %v19178_v4  ;;  %v20719_v63 = vpop.f32.mrf.mxu0 }
 0x204   :  { %v4463_v35 = vmax.f32 %v3554_v7, 0.0  ;;  %v4460_v57 = vmax.f32 %v3555_v22, 0.0  ;;  %v5233_v31 = vcombine.low %v4457_v40, %v4458_v1  ;;  %v20704_v62 = vrot.slane %v20364_v37, %v19178_v4  ;;  %24926 = vst [vmem:[#allocation69_spill] sm:$0xff] %v20719_v63 }
 0x205   :  { %v5235_v23 = vcombine.low %v4461_v60, %v4462_v20  ;;  %v20706_v12 = vcombine.low %v4458_v1, %v4459_v56  ;;  %v6096_v32 = vrot.slane %v6082_v46, %v19178_v4  ;;  %v7617_v41 = vcombine.low %v20355_v39, %v20361_v55  ;;  %v24928_v55 = vld [vmem:[#allocation11_spill] sm:$0xff] }
 0x206   :  { %v20708_v50 = vcombine.low %v4462_v20, %v4463_v35  ;;  %v5234_v14 = vcombine.low %v4459_v56, %v4460_v57  ;;  %v5243_v7 = vrot.slane %v5233_v31, %v19178_v4  ;;  %v20717_v40 = vcombine.low %v4460_v57, %v4461_v60  ;;  %v24929_v60 = vld [vmem:[#allocation14_spill] sm:$0xff] }
 0x207   :  { %v20715_v22 = vrot.slane %v5235_v23, %v19178_v4  ;;  %v6097_v20 = vcombine.low %v6089_v44, %v6096_v32  ;;  %v7618_v1 = vcombine.low %v20647_v18, %v20704_v62  ;;  %v7625_v46 = vrot.slane %v7617_v41, %v19178_v4  ;;  %v17379_v23 = vpop.f32.mrf.mxu0 }
 0x208   :  { %v20727_v39 = vrot.slane %v5234_v14, %v19178_v4  ;;  %v2799_v31 = vadd.f32 %v20482_v29, %v24928_v55  ;;  %v4464_v56 = vmax.f32 %v3556_v26, 0.0  ;;  %v2802_v57 = vadd.f32 %v20508_v15, %v24929_v60 }
 0x209   :  { %24925 = vst [vmem:[#allocation68_spill] sm:$0xff] %v20715_v22  ;;  %v7632_v47 = vrot.slane %v7618_v1, %v19178_v4  ;;  %v20736_v44 = vrot.slane %v20425_v38, %v19178_v4  ;;  %v24930_v18 = vcombine.low %v20417_v43, %v20427_v11 }
 0x20a   :  { %24927 = vst [vmem:[#allocation70_spill] sm:$0xff] %v20727_v39  ;;  %v20747_v26 = vcombine.low %v5243_v7, %v20727_v39  ;;  %v3557_v41 = vcombine.high %v2799_v31, %v2799_v31  ;;  %v3564_v14 = vrot.slane %v2799_v31, %v19178_v4  ;;  %v5236_v1 = vcombine.low %v4463_v35, %v4464_v56 }
 0x20b   :  { %v20742_v32 = vrot.slane %v24930_v18, %v19178_v4  ;;  %v7633_v38 = vcombine.low %v7625_v46, %v7632_v47  ;;  %v3606_v55 = vcombine.high %v2802_v57, %v2802_v57  ;;  %v3613_v60 = vrot.slane %v2802_v57, %v19178_v4 }
 0x20c   :  { %24931 = vst [vmem:[#allocation11_spill] sm:$0xff] %v20747_v26  ;;  %v3571_v11 = vrot.slane %v3557_v41, %v19178_v4  ;;  %v3572_v43 = vcombine.high %v3564_v14, %v3564_v14  ;;  %v3580_v23 = vrot.slane %v3564_v14, %v19178_v4  ;;  %v20758_v37 = vrot.slane %v5236_v1, %v19178_v4 }
 0x20d   :  { %v17889_v18 = vpack.i.bf16 %v7633_v38, %v6097_v20  ;;  %v3620_v15 = vrot.slane %v3606_v55, %v19178_v4  ;;  %v3621_v31 = vcombine.high %v3613_v60, %v3613_v60  ;;  %v3629_v29 = vrot.slane %v3613_v60, %v19178_v4 }
 0x20e   :  { %v3573_v47 = vcombine.high %v3571_v11, %v3571_v11  ;;  %v20762_v35 = vrot.slane %v3571_v11, %v19178_v4  ;;  %v3594_v46 = vrot.slane %v3572_v43, %v19178_v4  ;;  %v3602_v57 = vcombine.high %v3580_v23, %v3580_v23 }
 0x20f   :  { %17890 = vrot.lane.b32.xlu1 %v17889_v18, %s18603_s23  ;;  %v4465_v41 = vmax.f32 %v3580_v23, 0.0  ;;  %v3622_v14 = vcombine.high %v3620_v15, %v3620_v15  ;;  %v3636_v20 = vrot.slane %v3620_v15, %v19178_v4  ;;  %v3643_v26 = vrot.slane %v3621_v31, %v19178_v4  ;;  %v20777_v15 = vpop.f32.mrf.mxu0 }
 0x210   :  { %24932 = vst [vmem:[#allocation14_spill] sm:$0xff] %v20762_v35  ;;  %v3601_v38 = vrot.slane %v3573_v47, %v19178_v4  ;;  %v3603_v1 = vcombine.high %v20762_v35, %v20762_v35  ;;  %v3604_v55 = vcombine.high %v3594_v46, %v3594_v46  ;;  %v4466_v7 = vmax.f32 %v3594_v46, 0.0  ;;  %24934 = vst [vmem:[#allocation72_spill] sm:$0xff] %v20777_v15 }
 0x211   :  { %v4467_v11 = vmax.f32 %v3602_v57, 0.0  ;;  %v6308_v43 = vcombine.low %v4464_v56, %v4465_v41  ;;  %v3650_v46 = vrot.slane %v3622_v14, %v19178_v4  ;;  %v3651_v31 = vcombine.high %v3629_v29, %v3629_v29 }
 0x212   :  { %v3605_v18 = vcombine.high %v3601_v38, %v3601_v38  ;;  %v20773_v23 = vmax.f32 %v3604_v55, 0.0  ;;  %v4470_v22 = vmax.f32 %v3601_v38, 0.0  ;;  %v20775_v60 = vmax.f32 %v3603_v1, 0.0  ;;  %v17380_v55 = vpop.f32.mrf.mxu0 }
 0x213   :  { %v5282_v47 = vcombine.low %v4465_v41, %v4466_v7  ;;  %v20780_v53 = vrot.slane %v6308_v43, %v19178_v4  ;;  %v6354_v63 = vcombine.low %v4466_v7, %v4467_v11  ;;  %v3652_v39 = vcombine.high %v3636_v20, %v3636_v20 }
 0x214   :  { %24933 = vst [vmem:[#allocation71_spill] sm:$0xff] %v20773_v23  ;;  %v5297_v57 = vcombine.low %v4470_v22, %v20775_v60  ;;  %v7202_v56 = vcombine.low %v4467_v11, %v20773_v23  ;;  %v3653_v41 = vcombine.high %v3643_v26, %v3643_v26  ;;  %v3654_v15 = vcombine.high %v3650_v46, %v3650_v46 }
 0x215   :  { %v20786_v38 = vrot.slane %v5282_v47, %v19178_v4  ;;  %v20789_v1 = vrot.slane %v6354_v63, %v19178_v4  ;;  %v20795_v14 = vmax.f32 %v3605_v18, 0.0  ;;  %v4473_v22 = vmax.f32 %v3629_v29, 0.0 }
 0x216   :  { %v5307_v43 = vrot.slane %v5297_v57, %v19178_v4  ;;  %v20793_v7 = vrot.slane %v7202_v56, %v19178_v4  ;;  %v4474_v55 = vmax.f32 %v3643_v26, 0.0  ;;  %v4475_v42 = vmax.f32 %v3651_v31, 0.0 }
 0x217   :  { %24935 = vst [vmem:[#allocation73_spill] sm:$0xff] %v20786_v38  ;;  %v4476_v47 = vmax.f32 %v3653_v41, 0.0  ;;  %v4477_v0 = vmax.f32 %v3636_v20, 0.0  ;;  %v4478_v23 = vmax.f32 %v3650_v46, 0.0  ;;  %v20799_v63 = vmax.f32 %v3652_v39, 0.0 }
 0x218   :  { %24936 = vst [vmem:[#allocation74_spill] sm:$0xff] %v20793_v7  ;;  %v5298_v35 = vcombine.low %v20795_v14, %v4473_v22  ;;  %v5299_v24 = vcombine.low %v4474_v55, %v4475_v42  ;;  %v6370_v56 = vcombine.low %v4473_v22, %v4474_v55 }
 0x219   :  { %v6371_v18 = vcombine.low %v4475_v42, %v4476_v47  ;;  %v5300_v7 = vcombine.low %v4476_v47, %v4477_v0  ;;  %v5346_v26 = vcombine.low %v4478_v23, %v20799_v63  ;;  %v20808_v31 = vcombine.low %v4477_v0, %v4478_v23 }
 0x21a   :  { %v20805_v29 = vrot.slane %v5298_v35, %v19178_v4  ;;  %v20811_v20 = vrot.slane %v5299_v24, %v19178_v4  ;;  %v20814_v39 = vrot.slane %v6370_v56, %v19178_v4  ;;  %v6146_v42 = vcombine.low %v20742_v32, %v20498_v51 }
 0x21b   :  { %v20817_v46 = vrot.slane %v6371_v18, %v19178_v4  ;;  %v20822_v41 = vrot.slane %v5300_v7, %v19178_v4  ;;  %v20828_v0 = vrot.slane %v5346_v26, %v19178_v4  ;;  %v24939_v24 = vcombine.low %v20444_v54, %v20736_v44  ;;  %v24941_v18 = vld [vmem:[#allocation12_spill] sm:$0xff] }
 0x21c   :  { %24937 = vst [vmem:[#allocation75_spill] sm:$0xff] %v20805_v29  ;;  %v20825_v35 = vcombine.low %v5307_v43, %v20805_v29  ;;  %v6160_v55 = vrot.slane %v6146_v42, %v19178_v4  ;;  %v7649_v7 = vcombine.low %v20736_v44, %v20742_v32  ;;  %v24940_v43 = vcombine.low %v20498_v51, %v20503_v30 }
 0x21d   :  { %24938 = vst [vmem:[#allocation76_spill] sm:$0xff] %v20828_v0  ;;  %v6153_v23 = vrot.slane %v24939_v24, %v19178_v4  ;;  %v2807_v26 = vadd.f32 %v20516_v21, %v24941_v18  ;;  %v20849_v24 = vmax.f32 %v3654_v15, 0.0  ;;  %v6112_v44 = vrot.slane %v20704_v62, %v19178_v4 }
 0x21e   :  { %v7664_v47 = vrot.slane %v24940_v43, %v19178_v4  ;;  %v7657_v22 = vrot.slane %v7649_v7, %v19178_v4  ;;  %v6176_v51 = vrot.slane %v20503_v30, %v19178_v4  ;;  %v6201_v21 = vrot.slane %v20530_v6, %v19178_v4 }
 0x21f   :  { %v6161_v42 = vcombine.low %v6153_v23, %v6160_v55  ;;  %v3655_v32 = vcombine.high %v2807_v26, %v2807_v26  ;;  %v3662_v43 = vrot.slane %v2807_v26, %v19178_v4  ;;  %v6208_v23 = vrot.slane %v20521_v33, %v19178_v4 }
 0x220   :  { %v7665_v15 = vcombine.low %v7657_v22, %v7664_v47  ;;  %v17904_v18 = vpack.i.bf16 %v6176_v51, %v6112_v44  ;;  %v24942_v62 = vrot.slane %v20514_v28, %v19178_v4  ;;  %v7681_v11 = vcombine.low %v20533_v8, %v6201_v21 }
 0x221   :  { %v3669_v30 = vrot.slane %v3655_v32, %v19178_v4  ;;  %v3670_v7 = vcombine.high %v3662_v43, %v3662_v43  ;;  %v3678_v26 = vrot.slane %v3662_v43, %v19178_v4  ;;  %v6210_v54 = vcombine.low %v6201_v21, %v6208_v23 }
 0x222   :  { %v6209_v55 = vcombine.low %v24942_v62, %v20533_v8  ;;  %v17899_v56 = vpack.i.bf16 %v7665_v15, %v6161_v42  ;;  %v7682_v22 = vcombine.low %v6208_v23, %v20591_v49  ;;  %v7689_v43 = vrot.slane %v7681_v11, %v19178_v4 }
 0x223   :  { %v3671_v47 = vcombine.high %v3669_v30, %v3669_v30  ;;  %v3685_v33 = vrot.slane %v3669_v30, %v19178_v4  ;;  %v3692_v44 = vrot.slane %v3670_v7, %v19178_v4  ;;  %v3700_v28 = vcombine.high %v3678_v26, %v3678_v26 }
 0x224   :  { %v6217_v6 = vrot.slane %v6209_v55, %v19178_v4  ;;  %17900 = vrot.lane.b32.xlu1 %v17899_v56, %s18603_s23  ;;  %v4481_v51 = vmax.f32 %v3678_v26, 0.0  ;;  %v6224_v32 = vrot.slane %v6210_v54, %v19178_v4  ;;  %v7696_v8 = vrot.slane %v7682_v22, %v19178_v4 }
 0x225   :  { %v3699_v42 = vrot.slane %v3671_v47, %v19178_v4  ;;  %v3701_v21 = vcombine.high %v3685_v33, %v3685_v33  ;;  %v3702_v15 = vcombine.high %v3692_v44, %v3692_v44  ;;  %v4482_v23 = vmax.f32 %v3692_v44, 0.0  ;;  %v24944_v47 = vld [vmem:[#allocation13_spill] sm:$0xff] }
 0x226   :  { %v4483_v62 = vmax.f32 %v3700_v28, 0.0  ;;  %v4485_v55 = vmax.f32 %v3685_v33, 0.0  ;;  %v20880_v30 = vcombine.low %v20849_v24, %v4481_v51  ;;  %v6225_v7 = vcombine.low %v6217_v6, %v6224_v32 }
 0x227   :  { %v3703_v57 = vcombine.high %v3699_v42, %v3699_v42  ;;  %v4484_v56 = vmax.f32 %v3702_v15, 0.0  ;;  %v4486_v26 = vmax.f32 %v3699_v42, 0.0  ;;  %v4487_v0 = vmax.f32 %v3701_v21, 0.0 }
 0x228   :  { %24943 = vst [vmem:[#allocation12_spill] sm:$0xff] %v20880_v30  ;;  %v20884_v54 = vcombine.low %v4481_v51, %v4482_v23  ;;  %17905 = vrot.lane.b32.xlu1 %v17904_v18, %s18603_s23  ;;  %v7697_v22 = vcombine.low %v7689_v43, %v7696_v8  ;;  %v2810_v44 = vadd.f32 %v20544_v5, %v24944_v47  ;;  %v24947_v43 = vmax.f32 %v20471_v19, 0.0 }
 0x229   :  { %v5361_v33 = vcombine.low %v4483_v62, %v4484_v56  ;;  %v5362_v28 = vcombine.low %v4485_v55, %v4486_v26  ;;  %v20889_v29 = vcombine.low %v4484_v56, %v4485_v55  ;;  %v20891_v6 = vcombine.low %v4486_v26, %v4487_v0 }
 0x22a   :  { %v17909_v32 = vpack.i.bf16 %v7697_v22, %v6225_v7  ;;  %v3704_v42 = vcombine.high %v2810_v44, %v2810_v44  ;;  %v3711_v21 = vrot.slane %v2810_v44, %v19178_v4  ;;  %v4488_v15 = vmax.f32 %v3703_v57, 0.0  ;;  %v24949_v22 = vld [vmem:[#allocation15_spill] sm:$0xff] }
 0x22b   :  { %v20895_v51 = vrot.slane %v5361_v33, %v19178_v4  ;;  %v20898_v18 = vrot.slane %v5362_v28, %v19178_v4  ;;  %v7641_v5 = vrot.slane %v20415_v25, %v19178_v4  ;;  %v24948_v8 = vmax.f32 %v20462_v17, 0.0 }
 0x22c   :  { %17910 = vrot.lane.b32.xlu0 %v17909_v32, %s18603_s23  ;;  %v3718_v62 = vrot.slane %v3704_v42, %v19178_v4  ;;  %v3719_v55 = vcombine.high %v3711_v21, %v3711_v21  ;;  %v3727_v57 = vrot.slane %v3711_v21, %v19178_v4  ;;  %v5363_v7 = vcombine.low %v4487_v0, %v4488_v15 }
 0x22d   :  { %24945 = vst [vmem:[#allocation13_spill] sm:$0xff] %v20895_v51  ;;  %24946 = vst [vmem:[#allocation77_spill] sm:$0xff] %v20898_v18  ;;  %v7666_v23 = vcombine.low %v24948_v8, %v24947_v43  ;;  %v7648_v26 = vrot.slane %v7641_v5, %v19178_v4  ;;  %v2815_v19 = vadd.f32 %v20565_v16, %v24949_v22 }
 0x22e   :  { %v3720_v17 = vcombine.high %v3718_v62, %v3718_v62  ;;  %v3734_v47 = vrot.slane %v3718_v62, %v19178_v4  ;;  %v3741_v44 = vrot.slane %v3719_v55, %v19178_v4  ;;  %v3749_v33 = vcombine.high %v3727_v57, %v3727_v57  ;;  %v18087_v55 = vld [vmem:[%s24951_s26 + $0x78] sm:$0xff]  }
 0x22f   :  { %v7673_v25 = vrot.slane %v7666_v23, %v19178_v4  ;;  %v4489_v28 = vmax.f32 %v3727_v57, 0.0  ;;  %v20918_v32 = vrot.slane %v5363_v7, %v19178_v4  ;;  %v3753_v42 = vcombine.high %v2815_v19, %v2815_v19  ;;  %v18088_v57 = vld [vmem:[%s24951_s26 + $0x38] sm:$0xff]   ;;  %17021 = vmatprep.subr.bf16.mxu1 %v18087_v55 }
 0x230   :  { %v20922_v21 = vrot.slane %v3720_v17, %v19178_v4  ;;  %v3750_v5 = vcombine.high %v3734_v47, %v3734_v47  ;;  %v3751_v43 = vcombine.high %v3741_v44, %v3741_v44  ;;  %v4490_v8 = vmax.f32 %v3741_v44, 0.0  ;;  %17022 = vmatpush3.bf16.msra.mxu1 %v18088_v57  ;;  %v18092_v57 = vld [vmem:[%s24951_s26 + $0x28] sm:$0xff]  }
 0x231   :  { %24950 = vst [vmem:[#allocation15_spill] sm:$0xff] %v20918_v32  ;;  %v7680_v0 = vrot.slane %v7673_v25, %v19178_v4  ;;  %v4491_v16 = vmax.f32 %v3749_v33, 0.0  ;;  %v4493_v23 = vmax.f32 %v3734_v47, 0.0  ;;  %v6435_v22 = vcombine.low %v4488_v15, %v4489_v28  ;;  %v18089_v15 = vld [vmem:[%s24951_s26 + $0x70] sm:$0xff]  }
 0x232   :  { %v3752_v7 = vcombine.high %v20922_v21, %v20922_v21  ;;  %v4492_v25 = vmax.f32 %v3751_v43, 0.0  ;;  %v24792_v17 = vmax.f32 %v20922_v21, 0.0  ;;  %v20933_v11 = vmax.f32 %v3750_v5, 0.0  ;;  %17023 = vmatprep.subr.bf16.mxu1 %v18089_v15 }
 0x233   :  { %v17914_v62 = vpack.i.bf16 %v7680_v0, %v7648_v26  ;;  %v5364_v26 = vcombine.low %v4489_v28, %v4490_v8  ;;  %v6436_v47 = vcombine.low %v4490_v8, %v4491_v16  ;;  %v20939_v44 = vrot.slane %v6435_v22, %v19178_v4 }
 0x234   :  { %v3760_v33 = vrot.slane %v2815_v19, %v19178_v4  ;;  %v5410_v0 = vcombine.low %v4491_v16, %v4492_v25  ;;  %v20943_v56 = vcombine.low %v4492_v25, %v4493_v23  ;;  %v20947_v5 = vcombine.low %v4493_v23, %v24792_v17  ;;  %v18090_v19 = vld [vmem:[%s24951_s26 + $0x30] sm:$0xff]   ;;  %v18091_v25 = vld [vmem:[%s24951_s26 + $0x68] sm:$0xff]  }
 0x235   :  { %17915 = vrot.lane.b32.xlu0 %v17914_v62, %s18603_s23  ;;  %v3767_v43 = vrot.slane %v3753_v42, %v19178_v4  ;;  %v20951_v28 = vrot.slane %v5364_v26, %v19178_v4  ;;  %v20954_v8 = vrot.slane %v6436_v47, %v19178_v4  ;;  %17024 = vmatpush3.bf16.msra.mxu1 %v18090_v19 }
 0x236   :  { %24952 = vst [vmem:[#allocation78_spill] sm:$0xff] %v20947_v5  ;;  %v3768_v22 = vcombine.high %v3760_v33, %v3760_v33  ;;  %v3776_v62 = vrot.slane %v3760_v33, %v19178_v4  ;;  %v20961_v16 = vrot.slane %v5410_v0, %v19178_v4  ;;  %v4496_v33 = vmax.f32 %v3752_v7, 0.0  ;;  %17025 = vmatprep.subr.bf16.mxu1 %v18091_v25 }
 0x237   :  { %24953 = vst [vmem:[#allocation79_spill] sm:$0xff] %v20951_v28  ;;  %v3769_v23 = vcombine.high %v3767_v43, %v3767_v43  ;;  %v3783_v55 = vrot.slane %v3767_v43, %v19178_v4  ;;  %v6251_v19 = vrot.slane %v20600_v58, %v19178_v4  ;;  %v18094_v58 = vld [vmem:[%s24951_s26 + $0x20] sm:$0xff]  }
 0x238   :  { %24954 = vst [vmem:[#allocation80_spill] sm:$0xff] %v20961_v16  ;;  %v3790_v26 = vrot.slane %v3768_v22, %v19178_v4  ;;  %v3798_v47 = vcombine.high %v3776_v62, %v3776_v62  ;;  %v4497_v5 = vmax.f32 %v3776_v62, 0.0 }
 0x239   :  { %v3797_v42 = vrot.slane %v3769_v23, %v19178_v4  ;;  %v3799_v17 = vcombine.high %v3783_v55, %v3783_v55  ;;  %v4501_v18 = vmax.f32 %v3783_v55, 0.0  ;;  %v18093_v23 = vld [vmem:[%s24951_s26 + $0x60] sm:$0xff]   ;;  %17026 = vmatpush3.bf16.msra.mxu1 %v18092_v57 }
 0x23a   :  { %v3800_v43 = vcombine.high %v3790_v26, %v3790_v26  ;;  %v4498_v15 = vmax.f32 %v3790_v26, 0.0  ;;  %v4499_v30 = vmax.f32 %v3798_v47, 0.0  ;;  %v5425_v7 = vcombine.low %v4496_v33, %v4497_v5  ;;  %17027 = vmatprep.subr.bf16.mxu1 %v18093_v23 }
 0x23b   :  { %v3801_v32 = vcombine.high %v3797_v42, %v3797_v42  ;;  %v4502_v22 = vmax.f32 %v3797_v42, 0.0  ;;  %v20978_v51 = vmax.f32 %v3799_v17, 0.0  ;;  %v24955_v17 = vcombine.low %v20588_v9, %v20621_v34 }
 0x23c   :  { %v4500_v62 = vmax.f32 %v3800_v43, 0.0  ;;  %v5426_v0 = vcombine.low %v4498_v15, %v4499_v30  ;;  %v20983_v26 = vcombine.low %v4497_v5, %v4498_v15  ;;  %v5435_v47 = vrot.slane %v5425_v7, %v19178_v4 }
 0x23d   :  { %v5428_v55 = vcombine.low %v4502_v22, %v20978_v51  ;;  %v20989_v42 = vcombine.low %v4501_v18, %v4502_v22  ;;  %v6258_v25 = vrot.slane %v24955_v17, %v19178_v4  ;;  %v6274_v9 = vcombine.low %v20675_v13, %v20686_v27  ;;  %17028 = vmatpush3.bf16.msra.mxu1 %v18094_v58 }
 0x23e   :  { %v5427_v33 = vcombine.low %v4500_v62, %v4501_v18  ;;  %v20996_v43 = vrot.slane %v5426_v0, %v19178_v4  ;;  %v6498_v5 = vcombine.low %v4499_v30, %v4500_v62  ;;  %v6297_v34 = vrot.slane %v20669_v61, %v19178_v4  ;;  %v18095_v30 = vld [vmem:[%s24951_s26 + $0x58] sm:$0xff]  }
 0x23f   :  { %v21004_v22 = vrot.slane %v5428_v55, %v19178_v4  ;;  %v6273_v7 = vcombine.low %v6251_v19, %v6258_v25  ;;  %v7713_v62 = vcombine.low %v6258_v25, %v20675_v13  ;;  %v6288_v61 = vrot.slane %v6274_v9, %v19178_v4  ;;  %17029 = vmatprep.subr.bf16.mxu1 %v18095_v30 }
 0x240   :  { %24956 = vst [vmem:[#allocation81_spill] sm:$0xff] %v20996_v43  ;;  %v21014_v18 = vrot.slane %v5427_v33, %v19178_v4  ;;  %v21017_v57 = vcombine.low %v5435_v47, %v20996_v43  ;;  %v21020_v0 = vrot.slane %v6498_v5, %v19178_v4  ;;  %v7714_v23 = vcombine.low %v20686_v27, %v6297_v34 }
 0x241   :  { %v6281_v19 = vrot.slane %v6273_v7, %v19178_v4  ;;  %v6240_v55 = vrot.slane %v20591_v49, %v19178_v4  ;;  %v7721_v33 = vrot.slane %v7713_v62, %v19178_v4  ;;  %v6304_v5 = vrot.slane %v6297_v34, %v19178_v4  ;;  %v24959_v7 = vld [vmem:[#allocation16_spill] sm:$0xff]  ;;  %v24960_v34 = vld [vmem:[#allocation7_spill] sm:$0xff] }
 0x242   :  { %24957 = vst [vmem:[#allocation82_spill] sm:$0xff] %v21014_v18  ;;  %24958 = vst [vmem:[#allocation83_spill] sm:$0xff] %v21017_v57  ;;  %v7728_v25 = vrot.slane %v7714_v23, %v19178_v4  ;;  %v2818_v27 = vadd.f32 %v20583_v3, %v24959_v7  ;;  %v21037_v9 = vmax.f32 %v3801_v32, 0.0  ;;  %v18096_v49 = vld [vmem:[%s24951_s26 + $0x18] sm:$0xff]   ;;  %v7705_v62 = vrot.slane %v20595_v45, %v19178_v4  ;;  %v18097_v3 = vld [vmem:[%s24951_s26 + $0x50] sm:$0xff]  }
 0x243   :  { %v6289_v13 = vcombine.low %v6281_v19, %v6288_v61  ;;  %v17919_v17 = vpack.i.bf16 %v6304_v5, %v6240_v55  ;;  %v7730_v58 = vcombine.low %v20660_v59, %v20667_v10  ;;  %v2823_v19 = vadd.f32 %v20597_v36, %v24960_v34  ;;  %17030 = vmatpush3.bf16.msra.mxu1 %v18096_v49 }
 0x244   :  { %v7729_v32 = vcombine.low %v7721_v33, %v7728_v25  ;;  %v3802_v30 = vcombine.high %v2818_v27, %v2818_v27  ;;  %v3809_v61 = vrot.slane %v2818_v27, %v19178_v4  ;;  %v7712_v45 = vrot.slane %v7705_v62, %v19178_v4  ;;  %v18098_v25 = vld [vmem:[%s24951_s26 + $0x10] sm:$0xff]   ;;  %17031 = vmatprep.subr.bf16.mxu1 %v18097_v3 }
 0x245   :  { %17920 = vrot.lane.b32.xlu0 %v17919_v17, %s18603_s23  ;;  %v7737_v59 = vrot.slane %v7730_v58, %v19178_v4  ;;  %v3851_v10 = vcombine.high %v2823_v19, %v2823_v19  ;;  %v3858_v36 = vrot.slane %v2823_v19, %v19178_v4 }
 0x246   :  { %v17924_v55 = vpack.i.bf16 %v7729_v32, %v6289_v13  ;;  %v3816_v5 = vrot.slane %v3802_v30, %v19178_v4  ;;  %v3817_v7 = vcombine.high %v3809_v61, %v3809_v61  ;;  %v3825_v33 = vrot.slane %v3809_v61, %v19178_v4  ;;  %v18099_v13 = vld [vmem:[%s24951_s26 + $0x48] sm:$0xff]  }
 0x247   :  { %v7744_v17 = vrot.slane %v7737_v59, %v19178_v4  ;;  %v3865_v27 = vrot.slane %v3851_v10, %v19178_v4  ;;  %v3866_v62 = vcombine.high %v3858_v36, %v3858_v36  ;;  %v3874_v58 = vrot.slane %v3858_v36, %v19178_v4  ;;  %17032 = vmatpush3.bf16.msra.mxu1 %v18098_v25 }
 0x248   :  { %17925 = vrot.lane.b32.xlu1 %v17924_v55, %s18603_s23  ;;  %v3818_v34 = vcombine.high %v3816_v5, %v3816_v5  ;;  %v3832_v49 = vrot.slane %v3816_v5, %v19178_v4  ;;  %v3839_v19 = vrot.slane %v3817_v7, %v19178_v4  ;;  %v3847_v32 = vcombine.high %v3825_v33, %v3825_v33  ;;  %v18100_v55 = vld [vmem:[%s24951_s26 + $0x8] sm:$0xff]  }
 0x249   :  { %v4505_v30 = vmax.f32 %v3825_v33, 0.0  ;;  %v17929_v61 = vpack.i.bf16 %v7744_v17, %v7712_v45  ;;  %v3867_v59 = vcombine.high %v3865_v27, %v3865_v27  ;;  %v3881_v10 = vrot.slane %v3865_v27, %v19178_v4  ;;  %17033 = vmatprep.subr.bf16.mxu1 %v18099_v13  ;;  %v18101_v33 = vld [vmem:[%s24951_s26 + $0x40] sm:$0xff]  }
 0x24a   :  { %v3846_v36 = vrot.slane %v3818_v34, %v19178_v4  ;;  %v3848_v3 = vcombine.high %v3832_v49, %v3832_v49  ;;  %v3849_v47 = vcombine.high %v3839_v19, %v3839_v19  ;;  %v4506_v15 = vmax.f32 %v3839_v19, 0.0 }
 0x24b   :  { %v21077_v23 = vmax.f32 %v3847_v32, 0.0  ;;  %v4509_v5 = vmax.f32 %v3832_v49, 0.0  ;;  %v5474_v7 = vcombine.low %v21037_v9, %v4505_v30  ;;  %v3888_v45 = vrot.slane %v3866_v62, %v19178_v4  ;;  %17034 = vmatpush3.bf16.msra.mxu1 %v18100_v55 }
 0x24c   :  { %v3850_v17 = vcombine.high %v3846_v36, %v3846_v36  ;;  %v21084_v27 = vmax.f32 %v3849_v47, 0.0  ;;  %v4510_v25 = vmax.f32 %v3846_v36, 0.0  ;;  %v4511_v34 = vmax.f32 %v3848_v3, 0.0  ;;  %17930 = vrot.lane.b32.xlu1 %v17929_v61, %s18603_s23  ;;  %v18102_v61 = vld [vmem:[%s24951_s26] sm:$0xff]   ;;  %17035 = vmatprep.subr.bf16.mxu1 %v18101_v33  ;;  %s25135_s26 = sld [smem:[#allocation97_spill]] }
 0x24d   :  { %v21088_v19 = vrot.slane %v5474_v7, %v19178_v4  ;;  %v6546_v49 = vcombine.low %v4505_v30, %v4506_v15  ;;  %v21091_v32 = vcombine.low %v4506_v15, %v21077_v23  ;;  %v3895_v62 = vrot.slane %v3867_v59, %v19178_v4 }
 0x24e   :  { %v21094_v13 = vcombine.low %v4509_v5, %v4510_v25  ;;  %v21096_v43 = vcombine.low %v4510_v25, %v4511_v34  ;;  %v3896_v36 = vcombine.high %v3874_v58, %v3874_v58  ;;  %v3897_v3 = vcombine.high %v3881_v10, %v3881_v10 }
 0x24f   :  { %24961 = vst [vmem:[#allocation16_spill] sm:$0xff] %v21088_v19  ;;  %24962 = vst [vmem:[#allocation7_spill] sm:$0xff] %v21091_v32  ;;  %v21104_v30 = vrot.slane %v6546_v49, %v19178_v4  ;;  %v3898_v7 = vcombine.high %v3888_v45, %v3888_v45  ;;  %v3899_v55 = vcombine.high %v3895_v62, %v3895_v62  ;;  %v4512_v25 = vmax.f32 %v3850_v17, 0.0 }
 0x250   :  { %24963 = vst [vmem:[#allocation84_spill] sm:$0xff] %v21094_v13  ;;  %v4513_v47 = vmax.f32 %v3874_v58, 0.0  ;;  %v4514_v18 = vmax.f32 %v3888_v45, 0.0  ;;  %v4515_v57 = vmax.f32 %v3896_v36, 0.0  ;;  %v4517_v16 = vmax.f32 %v3881_v10, 0.0  ;;  %17036 = vmatpush3.bf16.msra.mxu1 %v18102_v61 }
 0x251   :  { %v4516_v49 = vmax.f32 %v3898_v7, 0.0  ;;  %v4518_v28 = vmax.f32 %v3895_v62, 0.0  ;;  %v21112_v38 = vmax.f32 %v3897_v3, 0.0  ;;  %v5490_v15 = vcombine.low %v4511_v34, %v4512_v25 }
 0x252   :  { %v5491_v19 = vcombine.low %v4513_v47, %v4514_v18  ;;  %v6562_v59 = vcombine.low %v4512_v25, %v4513_v47  ;;  %v6563_v32 = vcombine.low %v4514_v18, %v4515_v57  ;;  %v2826_v33 = vadd.f32 %v20623_v48, %v20024_v2 }
 0x253   :  { %24964 = vst [vmem:[#allocation85_spill] sm:$0xff] %v21112_v38  ;;  %v5492_v5 = vcombine.low %v4515_v57, %v4516_v49  ;;  %v21117_v13 = vrot.slane %v5490_v15, %v19178_v4  ;;  %v5538_v58 = vcombine.low %v4517_v16, %v4518_v28  ;;  %v21119_v45 = vcombine.low %v4516_v49, %v4517_v16 }
 0x254   :  { %v21122_v10 = vrot.slane %v5491_v19, %v19178_v4  ;;  %v21125_v17 = vrot.slane %v6562_v59, %v19178_v4  ;;  %v21128_v34 = vrot.slane %v6563_v32, %v19178_v4  ;;  %v21131_v18 = vcombine.low %v4518_v28, %v21112_v38 }
 0x255   :  { %v21134_v2 = vrot.slane %v5492_v5, %v19178_v4  ;;  %v21137_v48 = vrot.slane %v5538_v58, %v19178_v4  ;;  %v3900_v16 = vcombine.high %v2826_v33, %v2826_v33  ;;  %v3907_v57 = vrot.slane %v2826_v33, %v19178_v4 }
 0x256   :  { %24965 = vst [vmem:[#allocation86_spill] sm:$0xff] %v21122_v10  ;;  %v21142_v62 = vmax.f32 %v3899_v55, 0.0  ;;  %v6322_v32 = vrot.slane %v20717_v40, %v19178_v4  ;;  %v6329_v28 = vrot.slane %v20708_v50, %v19178_v4  ;;  %v24969_v40 = vrot.slane %v20706_v12, %v19178_v4 }
 0x257   :  { %24966 = vst [vmem:[#allocation87_spill] sm:$0xff] %v21134_v2  ;;  %24967 = vst [vmem:[#allocation88_spill] sm:$0xff] %v21137_v48  ;;  %v3914_v61 = vrot.slane %v3900_v16, %v19178_v4  ;;  %v3915_v15 = vcombine.high %v3907_v57, %v3907_v57  ;;  %v3923_v59 = vrot.slane %v3907_v57, %v19178_v4 }
 0x258   :  { %24968 = vst [vmem:[#allocation89_spill] sm:$0xff] %v21142_v62  ;;  %v6337_v5 = vcombine.low %v24969_v40, %v6322_v32  ;;  %v6338_v50 = vcombine.low %v6329_v28, %v20780_v53  ;;  %v24970_v49 = vcombine.low %v20775_v60, %v20795_v14 }
 0x259   :  { %v3916_v7 = vcombine.high %v3914_v61, %v3914_v61  ;;  %v3930_v55 = vrot.slane %v3914_v61, %v19178_v4  ;;  %v3937_v25 = vrot.slane %v3915_v15, %v19178_v4  ;;  %v3945_v58 = vcombine.high %v3923_v59, %v3923_v59 }
 0x25a   :  { %v6379_v33 = vrot.slane %v24970_v49, %v19178_v4  ;;  %v4521_v16 = vmax.f32 %v3923_v59, 0.0  ;;  %v6345_v57 = vrot.slane %v6337_v5, %v19178_v4  ;;  %v6352_v3 = vrot.slane %v6338_v50, %v19178_v4 }
 0x25b   :  { %v3944_v12 = vrot.slane %v3916_v7, %v19178_v4  ;;  %v3946_v40 = vcombine.high %v3930_v55, %v3930_v55  ;;  %v3947_v36 = vcombine.high %v3937_v25, %v3937_v25  ;;  %v4522_v19 = vmax.f32 %v3937_v25, 0.0 }
 0x25c   :  { %v4523_v47 = vmax.f32 %v3945_v58, 0.0  ;;  %v4525_v61 = vmax.f32 %v3930_v55, 0.0  ;;  %v21170_v15 = vcombine.low %v21142_v62, %v4521_v16  ;;  %v6353_v38 = vcombine.low %v6345_v57, %v6352_v3 }
 0x25d   :  { %v3948_v48 = vcombine.high %v3944_v12, %v3944_v12  ;;  %v4524_v60 = vmax.f32 %v3947_v36, 0.0  ;;  %v4526_v14 = vmax.f32 %v3944_v12, 0.0  ;;  %v21172_v49 = vmax.f32 %v3946_v40, 0.0 }
 0x25e   :  { %v5553_v59 = vcombine.low %v4522_v19, %v4523_v47  ;;  %v6400_v5 = vrot.slane %v20808_v31, %v19178_v4  ;;  %v6401_v50 = vcombine.low %v6379_v33, %v20814_v39  ;;  %v24971_v7 = vcombine.low %v20799_v63, %v20849_v24 }
 0x25f   :  { %v5554_v25 = vcombine.low %v4524_v60, %v4525_v61  ;;  %v5555_v3 = vcombine.low %v4526_v14, %v21172_v49  ;;  %v6625_v58 = vcombine.low %v4523_v47, %v4524_v60  ;;  %v21184_v36 = vcombine.low %v4525_v61, %v4526_v14 }
 0x260   :  { %v21181_v55 = vrot.slane %v24971_v7, %v19178_v4  ;;  %v5563_v16 = vrot.slane %v5553_v59, %v19178_v4  ;;  %v6402_v19 = vcombine.low %v20817_v46, %v6400_v5  ;;  %v6409_v31 = vrot.slane %v6401_v50, %v19178_v4  ;;  %v24975_v59 = vld [vmem:[#allocation10_spill] sm:$0xff] }
 0x261   :  { %v7745_v57 = vcombine.low %v6322_v32, %v6329_v28  ;;  %v21190_v33 = vrot.slane %v5554_v25, %v19178_v4  ;;  %v21193_v63 = vrot.slane %v5555_v3, %v19178_v4  ;;  %v21196_v24 = vrot.slane %v6625_v58, %v19178_v4 }
 0x262   :  { %v7746_v47 = vcombine.low %v20780_v53, %v20789_v1  ;;  %v6416_v12 = vrot.slane %v6402_v19, %v19178_v4  ;;  %v7777_v61 = vcombine.low %v20814_v39, %v20817_v46  ;;  %v7778_v32 = vcombine.low %v6400_v5, %v21181_v55 }
 0x263   :  { %24972 = vst [vmem:[#allocation90_spill] sm:$0xff] %v21190_v33  ;;  %24973 = vst [vmem:[#allocation91_spill] sm:$0xff] %v21193_v63  ;;  %v7753_v40 = vrot.slane %v7745_v57, %v19178_v4  ;;  %v21206_v28 = vcombine.low %v5563_v16, %v21190_v33  ;;  %v2831_v53 = vadd.f32 %v24975_v59, %v20058_v52  ;;  %v21215_v3 = vmax.f32 %v3948_v48, 0.0  ;;  %v24976_v52 = vld [vmem:[#allocation14_spill] sm:$0xff] }
 0x264   :  { %v7760_v14 = vrot.slane %v7746_v47, %v19178_v4  ;;  %v6417_v50 = vcombine.low %v6409_v31, %v6416_v12  ;;  %v7785_v7 = vrot.slane %v7777_v61, %v19178_v4  ;;  %v7792_v25 = vrot.slane %v7778_v32, %v19178_v4  ;;  %v24978_v47 = vld [vmem:[#allocation71_spill] sm:$0xff]  ;;  %v24979_v32 = vld [vmem:[#allocation8_spill] sm:$0xff] }
 0x265   :  { %24974 = vst [vmem:[#allocation92_spill] sm:$0xff] %v21206_v28  ;;  %v3949_v46 = vcombine.high %v2831_v53, %v2831_v53  ;;  %v3956_v5 = vrot.slane %v2831_v53, %v19178_v4  ;;  %v6368_v58 = vrot.slane %v20789_v1, %v19178_v4  ;;  %v24977_v31 = vmax.f32 %v24976_v52, 0.0 }
 0x266   :  { %v7761_v39 = vcombine.low %v7753_v40, %v7760_v14  ;;  %v17934_v16 = vpack.i.bf16 %v6417_v50, %v6353_v38  ;;  %v7793_v19 = vcombine.low %v7785_v7, %v7792_v25  ;;  %v24980_v14 = vld [vmem:[#allocation43_spill] sm:$0xff]  ;;  %v6443_v53 = vrot.slane %v20889_v29, %v19178_v4 }
 0x267   :  { %v7762_v12 = vcombine.low %v24978_v47, %v24977_v31  ;;  %v3963_v61 = vrot.slane %v3949_v46, %v19178_v4  ;;  %v3964_v48 = vcombine.high %v3956_v5, %v3956_v5  ;;  %v3972_v40 = vrot.slane %v3956_v5, %v19178_v4 }
 0x268   :  { %v2834_v59 = vadd.f32 %v24980_v14, %v24979_v32  ;;  %17935 = vrot.lane.b32.xlu0 %v17934_v16, %s18603_s23  ;;  %v17939_v1 = vpack.i.bf16 %v7793_v19, %v7761_v39  ;;  %v21235_v50 = vrot.slane %v20891_v6, %v19178_v4 }
 0x269   :  { %v7769_v38 = vrot.slane %v7762_v12, %v19178_v4  ;;  %v3965_v7 = vcombine.high %v3963_v61, %v3963_v61  ;;  %v21238_v25 = vrot.slane %v3963_v61, %v19178_v4  ;;  %v3986_v46 = vrot.slane %v3964_v48, %v19178_v4 }
 0x26a   :  { %v3994_v5 = vcombine.high %v3972_v40, %v3972_v40  ;;  %17940 = vrot.lane.b32.xlu1 %v17939_v1, %s18603_s23  ;;  %v4529_v16 = vmax.f32 %v3972_v40, 0.0  ;;  %v3998_v19 = vcombine.high %v2834_v59, %v2834_v59  ;;  %v4005_v52 = vrot.slane %v2834_v59, %v19178_v4 }
 0x26b   :  { %v7776_v39 = vrot.slane %v7769_v38, %v19178_v4  ;;  %v21245_v29 = vrot.slane %v3965_v7, %v19178_v4  ;;  %v3995_v6 = vcombine.high %v21238_v25, %v21238_v25  ;;  %v3996_v31 = vcombine.high %v3986_v46, %v3986_v46 }
 0x26c   :  { %v4530_v47 = vmax.f32 %v3986_v46, 0.0  ;;  %v4531_v12 = vmax.f32 %v3994_v5, 0.0  ;;  %v24816_v61 = vmax.f32 %v21238_v25, 0.0  ;;  %v5556_v48 = vcombine.low %v21215_v3, %v4529_v16 }
 0x26d   :  { %v17944_v32 = vpack.i.bf16 %v7776_v39, %v6368_v58  ;;  %v3997_v40 = vcombine.high %v21245_v29, %v21245_v29  ;;  %v4532_v14 = vmax.f32 %v3996_v31, 0.0  ;;  %v4535_v1 = vmax.f32 %v3995_v6, 0.0 }
 0x26e   :  { %v21255_v38 = vrot.slane %v5556_v48, %v19178_v4  ;;  %v5602_v7 = vcombine.low %v4530_v47, %v4531_v12  ;;  %v6628_v60 = vcombine.low %v4529_v16, %v4530_v47  ;;  %v4012_v46 = vrot.slane %v3998_v19, %v19178_v4 }
 0x26f   :  { %17945 = vrot.lane.b32.xlu0 %v17944_v32, %s18603_s23  ;;  %v6674_v5 = vcombine.low %v4531_v12, %v4532_v14  ;;  %v21261_v58 = vcombine.low %v4532_v14, %v24816_v61  ;;  %v4013_v39 = vcombine.high %v4005_v52, %v4005_v52  ;;  %v4021_v31 = vrot.slane %v4005_v52, %v19178_v4 }
 0x270   :  { %v21267_v48 = vrot.slane %v5602_v7, %v19178_v4  ;;  %v21270_v16 = vrot.slane %v6628_v60, %v19178_v4  ;;  %v4014_v47 = vcombine.high %v4012_v46, %v4012_v46  ;;  %v4028_v32 = vrot.slane %v4012_v46, %v19178_v4 }
 0x271   :  { %24981 = vst [vmem:[#allocation10_spill] sm:$0xff] %v21261_v58  ;;  %v21273_v19 = vrot.slane %v6674_v5, %v19178_v4  ;;  %v4035_v52 = vrot.slane %v4013_v39, %v19178_v4  ;;  %v4043_v6 = vcombine.high %v4021_v31, %v4021_v31  ;;  %v4536_v61 = vmax.f32 %v3997_v40, 0.0 }
 0x272   :  { %24982 = vst [vmem:[#allocation14_spill] sm:$0xff] %v21267_v48  ;;  %v4042_v7 = vrot.slane %v4014_v47, %v19178_v4  ;;  %v4044_v60 = vcombine.high %v4028_v32, %v4028_v32  ;;  %v4537_v57 = vmax.f32 %v4021_v31, 0.0  ;;  %v4541_v63 = vmax.f32 %v4028_v32, 0.0  ;;  %v24983_v32 = vld [vmem:[#allocation9_spill] sm:$0xff] }
 0x273   :  { %v4045_v59 = vcombine.high %v4035_v52, %v4035_v52  ;;  %v4538_v62 = vmax.f32 %v4035_v52, 0.0  ;;  %v4539_v33 = vmax.f32 %v4043_v6, 0.0  ;;  %v5617_v46 = vcombine.low %v4535_v1, %v4536_v61 }
 0x274   :  { %v4046_v5 = vcombine.high %v4042_v7, %v4042_v7  ;;  %v4542_v28 = vmax.f32 %v4042_v7, 0.0  ;;  %v4543_v58 = vmax.f32 %v4044_v60, 0.0  ;;  %v21282_v10 = vcombine.low %v4536_v61, %v4537_v57 }
 0x275   :  { %v4540_v12 = vmax.f32 %v4045_v59, 0.0  ;;  %v5618_v2 = vcombine.low %v4537_v57, %v4538_v62  ;;  %v6690_v14 = vcombine.low %v4538_v62, %v4539_v33  ;;  %v6465_v47 = vcombine.low %v6443_v53, %v21235_v50 }
 0x276   :  { %v5620_v39 = vcombine.low %v4541_v63, %v4542_v28  ;;  %v21286_v40 = vrot.slane %v5617_v46, %v19178_v4  ;;  %v21296_v1 = vcombine.low %v4542_v28, %v4543_v58  ;;  %v6489_v28 = vrot.slane %v20943_v56, %v19178_v4 }
 0x277   :  { %v5619_v48 = vcombine.low %v4539_v33, %v4540_v12  ;;  %v21289_v31 = vrot.slane %v5618_v2, %v19178_v4  ;;  %v21291_v6 = vcombine.low %v4540_v12, %v4541_v63  ;;  %v21301_v62 = vrot.slane %v6690_v14, %v19178_v4 }
 0x278   :  { %v21294_v59 = vrot.slane %v5620_v39, %v19178_v4  ;;  %v6466_v63 = vcombine.low %v20939_v44, %v20954_v8  ;;  %v6473_v53 = vrot.slane %v6465_v47, %v19178_v4  ;;  %v7809_v61 = vcombine.low %v21235_v50, %v20939_v44 }
 0x279   :  { %v21304_v33 = vrot.slane %v5619_v48, %v19178_v4  ;;  %v6432_v12 = vrot.slane %v21181_v55, %v19178_v4  ;;  %v24984_v48 = vld [vmem:[#allocation69_spill] sm:$0xff]  ;;  %v4544_v46 = vmax.f32 %v4046_v5, 0.0  ;;  %v7810_v56 = vcombine.low %v20954_v8, %v6489_v28 }
 0x27a   :  { %v2839_v52 = vadd.f32 %v24984_v48, %v24983_v32  ;;  %v6480_v60 = vrot.slane %v6466_v63, %v19178_v4  ;;  %v7817_v39 = vrot.slane %v7809_v61, %v19178_v4  ;;  %v6496_v44 = vrot.slane %v6489_v28, %v19178_v4 }
 0x27b   :  { %v5666_v32 = vcombine.low %v4543_v58, %v4544_v46  ;;  %v6521_v48 = vrot.slane %v20989_v42, %v19178_v4  ;;  %v7824_v14 = vrot.slane %v7810_v56, %v19178_v4  ;;  %v24985_v8 = vcombine.low %v20978_v51, %v21037_v9 }
 0x27c   :  { %v4047_v50 = vcombine.high %v2839_v52, %v2839_v52  ;;  %v6481_v55 = vcombine.low %v6473_v53, %v6480_v60  ;;  %v4054_v47 = vrot.slane %v2839_v52, %v19178_v4  ;;  %v17949_v7 = vpack.i.bf16 %v6496_v44, %v6432_v12 }
 0x27d   :  { %v6528_v5 = vrot.slane %v24985_v8, %v19178_v4  ;;  %v21338_v53 = vrot.slane %v5666_v32, %v19178_v4  ;;  %v24986_v42 = vrot.slane %v20983_v26, %v19178_v4  ;;  %v7825_v52 = vcombine.low %v7817_v39, %v7824_v14 }
 0x27e   :  { %v4061_v63 = vrot.slane %v4047_v50, %v19178_v4  ;;  %v4062_v61 = vcombine.high %v4054_v47, %v4054_v47  ;;  %v4070_v28 = vrot.slane %v4054_v47, %v19178_v4  ;;  %17950 = vrot.lane.b32.xlu0 %v17949_v7, %s18603_s23 }
 0x27f   :  { %v6529_v58 = vcombine.low %v24986_v42, %v21020_v0  ;;  %v6530_v56 = vcombine.low %v6521_v48, %v6528_v5  ;;  %v17954_v47 = vpack.i.bf16 %v7825_v52, %v6481_v55 }
 0x280   :  { %v4063_v12 = vcombine.high %v4061_v63, %v4061_v63  ;;  %v4077_v60 = vrot.slane %v4061_v63, %v19178_v4  ;;  %v4084_v51 = vrot.slane %v4062_v61, %v19178_v4  ;;  %v4092_v9 = vcombine.high %v4070_v28, %v4070_v28 }
 0x281   :  { %v4545_v44 = vmax.f32 %v4070_v28, 0.0  ;;  %v6537_v50 = vrot.slane %v6529_v58, %v19178_v4  ;;  %17955 = vrot.lane.b32.xlu1 %v17954_v47, %s18603_s23  ;;  %v6544_v61 = vrot.slane %v6530_v56, %v19178_v4  ;;  %v24987_v47 = vmax.f32 %v20922_v21, 0.0 }
 0x282   :  { %v4091_v32 = vrot.slane %v4063_v12, %v19178_v4  ;;  %v4093_v8 = vcombine.high %v4077_v60, %v4077_v60  ;;  %v4549_v2 = vmax.f32 %v4077_v60, 0.0  ;;  %v4094_v26 = vcombine.high %v4084_v51, %v4084_v51 }
 0x283   :  { %v4546_v42 = vmax.f32 %v4084_v51, 0.0  ;;  %v4547_v14 = vmax.f32 %v4092_v9, 0.0  ;;  %v6738_v39 = vcombine.low %v4544_v46, %v4545_v44  ;;  %v6545_v46 = vcombine.low %v6537_v50, %v6544_v61 }
 0x284   :  { %v4095_v7 = vcombine.high %v4091_v32, %v4091_v32  ;;  %v4550_v63 = vmax.f32 %v4091_v32, 0.0  ;;  %v21350_v57 = vmax.f32 %v4093_v8, 0.0  ;;  %v4548_v28 = vmax.f32 %v4094_v26, 0.0 }
 0x285   :  { %v21354_v58 = vrot.slane %v6738_v39, %v19178_v4  ;;  %v21356_v55 = vcombine.low %v4545_v44, %v4546_v42  ;;  %v21358_v52 = vcombine.low %v4546_v42, %v4547_v14  ;;  %v7801_v51 = vrot.slane %v20884_v54, %v19178_v4  ;;  %v24988_v42 = vld [vmem:[#allocation17_spill] sm:$0xff]  ;;  %v24989_v14 = vld [vmem:[#allocation72_spill] sm:$0xff] }
 0x286   :  { %v5682_v12 = vcombine.low %v4550_v63, %v21350_v57  ;;  %v21361_v60 = vcombine.low %v4549_v2, %v4550_v63  ;;  %v5681_v9 = vcombine.low %v4548_v28, %v4549_v2  ;;  %v7826_v32 = vcombine.low %v24987_v47, %v20933_v11 }
 0x287   :  { %v7841_v44 = vcombine.low %v21020_v0, %v6521_v48  ;;  %v7808_v26 = vrot.slane %v7801_v51, %v19178_v4  ;;  %v7842_v50 = vcombine.low %v6528_v5, %v21104_v30  ;;  %v2842_v54 = vadd.f32 %v24989_v14, %v24988_v42 }
 0x288   :  { %v21372_v8 = vrot.slane %v5682_v12, %v19178_v4  ;;  %v5691_v2 = vrot.slane %v5681_v9, %v19178_v4  ;;  %v7833_v39 = vrot.slane %v7826_v32, %v19178_v4  ;;  %v21381_v21 = vmax.f32 %v4095_v7, 0.0 }
 0x289   :  { %v7849_v63 = vrot.slane %v7841_v44, %v19178_v4  ;;  %v17959_v11 = vpack.i.bf16 %v7808_v26, %v6545_v46  ;;  %v7856_v0 = vrot.slane %v7842_v50, %v19178_v4  ;;  %v4096_v48 = vcombine.high %v2842_v54, %v2842_v54 }
 0x28a   :  { %v4103_v61 = vrot.slane %v2842_v54, %v19178_v4  ;;  %v21386_v28 = vcombine.low %v5691_v2, %v21372_v8  ;;  %v7840_v5 = vrot.slane %v7833_v39, %v19178_v4  ;;  %v6754_v12 = vcombine.low %v21350_v57, %v21381_v21 }
 0x28b   :  { %v6560_v51 = vrot.slane %v21104_v30, %v19178_v4  ;;  %17960 = vrot.lane.b32.xlu1 %v17959_v11, %s18603_s23  ;;  %v7857_v7 = vcombine.low %v7849_v63, %v7856_v0  ;;  %v4110_v46 = vrot.slane %v4096_v48, %v19178_v4  ;;  %v24990_v32 = vcombine.low %v21077_v23, %v21084_v27 }
 0x28c   :  { %v4111_v9 = vcombine.high %v4103_v61, %v4103_v61  ;;  %v4119_v47 = vrot.slane %v4103_v61, %v19178_v4  ;;  %v6571_v26 = vrot.slane %v21096_v43, %v19178_v4  ;;  %v6592_v50 = vrot.slane %v21119_v45, %v19178_v4 }
 0x28d   :  { %v7865_v44 = vrot.slane %v24990_v32, %v19178_v4  ;;  %v21406_v30 = vrot.slane %v21131_v18, %v19178_v4  ;;  %v17964_v42 = vpack.i.bf16 %v7857_v7, %v7840_v5  ;;  %v4112_v14 = vcombine.high %v4110_v46, %v4110_v46 }
 0x28e   :  { %v4126_v54 = vrot.slane %v4110_v46, %v19178_v4  ;;  %v4133_v2 = vrot.slane %v4111_v9, %v19178_v4  ;;  %v4141_v39 = vcombine.high %v4119_v47, %v4119_v47  ;;  %v4553_v63 = vmax.f32 %v4119_v47, 0.0 }
 0x28f   :  { %v7872_v23 = vrot.slane %v7865_v44, %v19178_v4  ;;  %v6593_v27 = vcombine.low %v6571_v26, %v21125_v17  ;;  %17965 = vrot.lane.b32.xlu0 %v17964_v42, %s18603_s23  ;;  %v4140_v43 = vrot.slane %v4112_v14, %v19178_v4  ;;  %v6594_v42 = vcombine.low %v21128_v34, %v6592_v50 }
 0x290   :  { %v4142_v45 = vcombine.high %v4126_v54, %v4126_v54  ;;  %v4143_v11 = vcombine.high %v4133_v2, %v4133_v2  ;;  %v4554_v18 = vmax.f32 %v4133_v2, 0.0  ;;  %v4555_v0 = vmax.f32 %v4141_v39, 0.0 }
 0x291   :  { %v4557_v48 = vmax.f32 %v4126_v54, 0.0  ;;  %v5683_v61 = vcombine.low %v21381_v21, %v4553_v63  ;;  %v17974_v5 = vpack.i.bf16 %v7872_v23, %v6560_v51  ;;  %v4144_v7 = vcombine.high %v4140_v43, %v4140_v43 }
 0x292   :  { %v4556_v46 = vmax.f32 %v4143_v11, 0.0  ;;  %v4558_v9 = vmax.f32 %v4140_v43, 0.0  ;;  %v21415_v47 = vmax.f32 %v4142_v45, 0.0  ;;  %v5684_v32 = vcombine.low %v4554_v18, %v4555_v0 }
 0x293   :  { %v21418_v44 = vrot.slane %v5683_v61, %v19178_v4  ;;  %v6755_v26 = vcombine.low %v4553_v63, %v4554_v18  ;;  %v21421_v14 = vmax.f32 %v4144_v7, 0.0  ;;  %17975 = vrot.lane.b32.xlu0 %v17974_v5, %s18603_s23  ;;  %v6601_v18 = vrot.slane %v6593_v27, %v19178_v4 }
 0x294   :  { %v5730_v2 = vcombine.low %v4556_v46, %v4557_v48  ;;  %v6756_v39 = vcombine.low %v4555_v0, %v4556_v46  ;;  %v6802_v54 = vcombine.low %v4557_v48, %v4558_v9  ;;  %v21425_v51 = vrot.slane %v5684_v32, %v19178_v4 }
 0x295   :  { %v21428_v23 = vrot.slane %v6755_v26, %v19178_v4  ;;  %v7409_v43 = vcombine.low %v21372_v8, %v21418_v44  ;;  %v21433_v63 = vcombine.low %v4558_v9, %v21415_v47  ;;  %v6608_v0 = vrot.slane %v6594_v42, %v19178_v4 }
 0x296   :  { %v21436_v45 = vrot.slane %v5730_v2, %v19178_v4  ;;  %v21439_v11 = vrot.slane %v6756_v39, %v19178_v4  ;;  %v5714_v48 = vcombine.low %v21418_v44, %v21425_v51  ;;  %v7873_v5 = vcombine.low %v21125_v17, %v21128_v34 }
 0x297   :  { %v7874_v7 = vcombine.low %v6592_v50, %v21406_v30  ;;  %v6609_v9 = vcombine.low %v6601_v18, %v6608_v0  ;;  %v6642_v27 = vrot.slane %v21184_v36, %v19178_v4  ;;  %v24991_v32 = vcombine.low %v21172_v49, %v21215_v3 }
 0x298   :  { %v7881_v42 = vrot.slane %v7873_v5, %v19178_v4  ;;  %v7906_v17 = vcombine.low %v21270_v16, %v21273_v19  ;;  %v6624_v34 = vrot.slane %v21406_v30, %v19178_v4  ;;  %v6688_v18 = vrot.slane %v21273_v19, %v19178_v4 }
 0x299   :  { %v6649_v26 = vrot.slane %v24991_v32, %v19178_v4  ;;  %v7888_v2 = vrot.slane %v7874_v7, %v19178_v4  ;;  %v6657_v50 = vcombine.low %v21196_v24, %v6642_v27  ;;  %v6713_v0 = vrot.slane %v21291_v6, %v19178_v4 }
 0x29a   :  { %v7920_v3 = vrot.slane %v7906_v17, %v19178_v4  ;;  %v6720_v5 = vrot.slane %v21296_v1, %v19178_v4  ;;  %v24992_v19 = vrot.slane %v21282_v10, %v19178_v4  ;;  %v7897_v17 = vrot.slane %v21170_v15, %v19178_v4 }
 0x29b   :  { %v6658_v39 = vcombine.low %v6649_v26, %v21270_v16  ;;  %v7905_v36 = vcombine.low %v6642_v27, %v6649_v26  ;;  %v7889_v49 = vcombine.low %v7881_v42, %v7888_v2  ;;  %v6665_v7 = vrot.slane %v6657_v50, %v19178_v4 }
 0x29c   :  { %v17984_v16 = vpack.i.bf16 %v6688_v18, %v6624_v34  ;;  %v6721_v32 = vcombine.low %v24992_v19, %v21301_v62  ;;  %v6722_v26 = vcombine.low %v6713_v0, %v6720_v5  ;;  %v7937_v42 = vcombine.low %v21301_v62, %v6713_v0 }
 0x29d   :  { %v6672_v30 = vrot.slane %v6658_v39, %v19178_v4  ;;  %v7913_v24 = vrot.slane %v7905_v36, %v19178_v4  ;;  %v17969_v27 = vpack.i.bf16 %v7889_v49, %v6609_v9  ;;  %v7938_v1 = vcombine.low %v6720_v5, %v21354_v58  ;;  %v17856_v36 = vpop.permute.xlu0 %17855 }
 0x29e   :  { %v6729_v34 = vrot.slane %v6721_v32, %v19178_v4  ;;  %v6736_v9 = vrot.slane %v6722_v26, %v19178_v4  ;;  %v7945_v50 = vrot.slane %v7937_v42, %v19178_v4  ;;  %v24993_v10 = vmax.f32 %v21245_v29, 0.0 }
 0x29f   :  { %v6673_v6 = vcombine.low %v6665_v7, %v6672_v30  ;;  %v7921_v2 = vcombine.low %v7913_v24, %v7920_v3  ;;  %17970 = vrot.lane.b32.xlu1 %v17969_v27, %s18603_s23  ;;  %v24994_v39 = vmax.f32 %v21238_v25, 0.0  ;;  %v7952_v49 = vrot.slane %v7938_v1, %v19178_v4 }
 0x2a0   :  { %v7904_v3 = vrot.slane %v7897_v17, %v19178_v4  ;;  %v6763_v15 = vrot.slane %v21361_v60, %v19178_v4  ;;  %v6737_v0 = vcombine.low %v6729_v34, %v6736_v9  ;;  %v6770_v29 = vrot.slane %v6754_v12, %v19178_v4  ;;  %v24995_v17 = vld [vmem:[#allocation21_spill] sm:$0xff]  ;;  %v24997_v9 = vld [vmem:[#allocation20_spill] sm:$0xff] }
 0x2a1   :  { %v7922_v62 = vcombine.low %v24994_v39, %v24993_v10  ;;  %v17979_v18 = vpack.i.bf16 %v7921_v2, %v6673_v6  ;;  %v6786_v25 = vcombine.low %v21428_v23, %v21439_v11  ;;  %v7953_v7 = vcombine.low %v7945_v50, %v7952_v49  ;;  %v17866_v2 = vpop.permute.xlu0 %17865 }
 0x2a2   :  { %v6809_v30 = vrot.slane %v6802_v54, %v19178_v4  ;;  %v6752_v24 = vrot.slane %v21354_v58, %v19178_v4  ;;  %v7961_v60 = vrot.slane %v21358_v52, %v19178_v4  ;;  %v6785_v19 = vcombine.low %v6763_v15, %v6770_v29 }
 0x2a3   :  { %v7929_v5 = vrot.slane %v7922_v62, %v19178_v4  ;;  %17980 = vrot.lane.b32.xlu1 %v17979_v18, %s18603_s23  ;;  %v6800_v57 = vrot.slane %v6786_v25, %v19178_v4  ;;  %v7969_v21 = vcombine.low %v6770_v29, %v21428_v23  ;;  %v17989_v12 = vpack.i.bf16 %v7953_v7, %v6737_v0  ;;  %v24998_v62 = vld [vmem:[#allocation26_spill] sm:$0xff]  ;;  %v25000_v18 = vld [vmem:[#allocation27_spill] sm:$0xff]  ;;  %v17861_v29 = vpop.permute.xlu1 %17860 }
 0x2a4   :  { %v7970_v32 = vcombine.low %v21439_v11, %v6809_v30  ;;  %v6816_v54 = vrot.slane %v6809_v30, %v19178_v4  ;;  %v7968_v26 = vrot.slane %v7961_v60, %v19178_v4  ;;  %v6793_v42 = vrot.slane %v6785_v19, %v19178_v4  ;;  %v24996_v11 = vld [vmem:[#allocation19_spill] sm:$0xff]  ;;  %v25002_v30 = vld [vmem:[#allocation18_spill] sm:$0xff] }
 0x2a5   :  { %v7936_v27 = vrot.slane %v7929_v5, %v19178_v4  ;;  %v7977_v52 = vrot.slane %v7969_v21, %v19178_v4  ;;  %v7986_v6 = vcombine.low %v21415_v47, %v21421_v14  ;;  %17990 = vrot.lane.b32.xlu0 %v17989_v12, %s18603_s23  ;;  %v4754_v34 = vcombine.low %v24996_v11, %v24995_v17  ;;  %v24999_v14 = vld [vmem:[#allocation25_spill] sm:$0xff] }
 0x2a6   :  { %v7984_v23 = vrot.slane %v7970_v32, %v19178_v4  ;;  %v17999_v1 = vpack.i.bf16 %v6816_v54, %v6752_v24  ;;  %v4761_v50 = vrot.slane %v24997_v9, %v19178_v4  ;;  %v6801_v10 = vcombine.low %v6793_v42, %v6800_v57  ;;  %v25004_v57 = vld [vmem:[#allocation22_spill] sm:$0xff]  ;;  %v25006_v32 = vld [vmem:[#allocation24_spill] sm:$0xff] }
 0x2a7   :  { %v17994_v58 = vpack.i.bf16 %v7936_v27, %v7904_v3  ;;  %17985 = vrot.lane.b32.xlu1 %v17984_v16, %s18603_s23  ;;  %v7993_v39 = vrot.slane %v7986_v6, %v19178_v4  ;;  %v4825_v47 = vrot.slane %v24998_v62, %v19178_v4  ;;  %v25001_v49 = vcombine.low %v24999_v14, %v25000_v18  ;;  %v25008_v6 = vld [vmem:[#allocation28_spill] sm:$0xff] }
 0x2a8   :  { %v7985_v15 = vcombine.low %v7977_v52, %v7984_v23  ;;  %v4768_v0 = vrot.slane %v4754_v34, %v19178_v4  ;;  %v17858_v5 = vunpack.i.h.bf16 %v17856_v36  ;;  %v17857_v7 = vunpack.i.l.bf16 %v17856_v36  ;;  %v17871_v34 = vpop.permute.xlu0 %17870 }
 0x2a9   :  { %v4832_v3 = vrot.slane %v25001_v49, %v19178_v4  ;;  %v8000_v25 = vrot.slane %v7993_v39, %v19178_v4  ;;  %v25003_v24 = vcombine.low %v25002_v30, %v24996_v11  ;;  %17995 = vrot.lane.b32.xlu0 %v17994_v58, %s18603_s23  ;;  %v25005_v21 = vcombine.low %v24995_v17, %v25004_v57  ;;  %v17876_v49 = vpop.permute.xlu1 %17875 }
 0x2aa   :  { %v18004_v27 = vpack.i.bf16 %v7985_v15, %v6801_v10  ;;  %v4769_v19 = vcombine.low %v4761_v50, %v4768_v0  ;;  %v25007_v54 = vcombine.low %v25006_v32, %v24999_v14  ;;  %v25009_v23 = vcombine.low %v25000_v18, %v25008_v6  ;;  %v25011_v15 = vld [vmem:[#allocation35_spill] sm:$0xff]  ;;  %v25015_v32 = vld [vmem:[#allocation32_spill] sm:$0xff] }
 0x2ab   :  { %v4833_v16 = vcombine.low %v4825_v47, %v4832_v3  ;;  %v6937_v60 = vrot.slane %v25003_v24, %v19178_v4  ;;  %v6944_v12 = vrot.slane %v25005_v21, %v19178_v4  ;;  %v18009_v36 = vpack.i.bf16 %v8000_v25, %v7968_v26  ;;  %v25010_v26 = vld [vmem:[#allocation23_spill] sm:$0xff] }
 0x2ac   :  { %v6969_v42 = vrot.slane %v25007_v54, %v19178_v4  ;;  %v6976_v58 = vrot.slane %v25009_v23, %v19178_v4  ;;  %v17863_v11 = vunpack.i.h.bf16 %v17861_v29  ;;  %18005 = vrot.lane.b32.xlu1 %v18004_v27, %s18603_s23  ;;  %v8098_v17 = vsel %vm8097_vm8, %v4769_v19, %v17857_v7  ;;  %v25012_v19 = vld [vmem:[#allocation30_spill] sm:$0xff] }
 0x2ad   :  { %v8100_v52 = vsel %vm8097_vm8, %v4833_v16, %v17858_v5  ;;  %v6945_v9 = vcombine.low %v6937_v60, %v6944_v12  ;;  %v17862_v50 = vunpack.i.l.bf16 %v17861_v29  ;;  %v4784_v10 = vrot.slane %v25004_v57, %v19178_v4  ;;  %18000 = vrot.lane.b32.xlu0 %v17999_v1, %s18603_s23  ;;  %v17886_v60 = vpop.permute.xlu0 %17885  ;;  %v25013_v57 = vld [vmem:[#allocation31_spill] sm:$0xff]  ;;  %v25016_v54 = vld [vmem:[#allocation34_spill] sm:$0xff] }
 0x2ae   :  { %v6977_v39 = vcombine.low %v6969_v42, %v6976_v58  ;;  %v6960_v62 = vrot.slane %v25010_v26, %v19178_v4  ;;  %v17868_v47 = vunpack.i.h.bf16 %v17866_v2  ;;  %v17867_v14 = vunpack.i.l.bf16 %v17866_v2  ;;  %v25019_v26 = vld [vmem:[#allocation39_spill] sm:$0xff] }
 0x2af   :  { %v8130_v18 = vsel %vm8097_vm8, %v6945_v9, %v17862_v50  ;;  %v4848_v3 = vrot.slane %v25008_v6, %v19178_v4  ;;  %v4912_v0 = vrot.slane %v25011_v15, %v19178_v4  ;;  %v17873_v5 = vunpack.i.h.bf16 %v17871_v34 }
 0x2b0   :  { %v8132_v29 = vsel %vm8097_vm8, %v6977_v39, %v17863_v11  ;;  %v16727_v25 = vpack.c.bf16 %v8130_v18, %v8098_v17  ;;  %v8131_v16 = vsel %vm8097_vm8, %v6960_v62, %v17868_v47  ;;  %v8099_v7 = vsel %vm8097_vm8, %v4784_v10, %v17867_v14  ;;  %18010 = vrot.lane.b32.xlu1 %v18009_v36, %s18603_s23  ;;  %v25020_v47 = vld [vmem:[#allocation37_spill] sm:$0xff]  ;;  %v25021_v14 = vld [vmem:[#allocation38_spill] sm:$0xff] }
 0x2b1   :  { %v16729_v2 = vpack.c.bf16 %v8132_v29, %v8100_v52  ;;  %v16728_v1 = vpack.c.bf16 %v8131_v16, %v8099_v7  ;;  %v8103_v30 = vsel %vm8097_vm8, %v4912_v0, %v17873_v5  ;;  %v17872_v24 = vunpack.i.l.bf16 %v17871_v34  ;;  %v17881_v52 = vpop.permute.xlu1 %17880 }
 0x2b2   :  { %v21571_v27 = vrot.slane %v16727_v25, %v19178_v4  ;;  %v25014_v21 = vcombine.low %v25012_v19, %v25013_v57  ;;  %v25017_v42 = vcombine.low %v25015_v32, %v25016_v54  ;;  %v6993_v36 = vcombine.low %v25013_v57, %v25015_v32  ;;  %v25027_v57 = vld [vmem:[#allocation36_spill] sm:$0xff] }
 0x2b3   :  { %v21584_v23 = vrot.slane %v16729_v2, %v19178_v4  ;;  %v21587_v58 = vrot.slane %v16728_v1, %v19178_v4  ;;  %v8101_v11 = vsel %vm8097_vm8, %v4848_v3, %v17872_v24  ;;  %v25018_v34 = vcombine.low %v25016_v54, %v25011_v15  ;;  %v25023_v3 = vld [vmem:[#allocation29_spill] sm:$0xff]  ;;  %v25029_v32 = vld [vmem:[#allocation40_spill] sm:$0xff] }
 0x2b4   :  { %v4889_v12 = vrot.slane %v25014_v21, %v19178_v4  ;;  %v4896_v6 = vrot.slane %v25017_v42, %v19178_v4  ;;  %v7001_v50 = vrot.slane %v6993_v36, %v19178_v4  ;;  %v17878_v10 = vunpack.i.h.bf16 %v17876_v49 }
 0x2b5   :  { %v7008_v17 = vrot.slane %v25018_v34, %v19178_v4  ;;  %v17877_v39 = vunpack.i.l.bf16 %v17876_v49  ;;  %v4953_v62 = vrot.slane %v25019_v26, %v19178_v4  ;;  %v25022_v18 = vcombine.low %v25020_v47, %v25021_v14  ;;  %v25025_v49 = vld [vmem:[#allocation33_spill] sm:$0xff] }
 0x2b6   :  { %v4897_v9 = vcombine.low %v4889_v12, %v4896_v6  ;;  %v25024_v5 = vrot.slane %v25023_v3, %v19178_v4  ;;  %v17883_v15 = vunpack.i.h.bf16 %v17881_v52  ;;  %v17882_v7 = vunpack.i.l.bf16 %v17881_v52  ;;  %v17896_v6 = vpop.permute.xlu0 %17895 }
 0x2b7   :  { %v4960_v0 = vrot.slane %v25022_v18, %v19178_v4  ;;  %v7009_v25 = vcombine.low %v7001_v50, %v7008_v17  ;;  %v25026_v2 = vrot.slane %v25025_v49, %v19178_v4  ;;  %v25028_v21 = vcombine.low %v25027_v57, %v25020_v47 }
 0x2b8   :  { %v6992_v29 = vrot.slane %v25024_v5, %v19178_v4  ;;  %v8102_v16 = vsel %vm8097_vm8, %v4897_v9, %v17877_v39  ;;  %v25030_v54 = vcombine.low %v25021_v14, %v25029_v32  ;;  %v17888_v34 = vunpack.i.h.bf16 %v17886_v60  ;;  %v25031_v14 = vld [vmem:[#allocation41_spill] sm:$0xff] }
 0x2b9   :  { %v7024_v1 = vrot.slane %v25026_v2, %v19178_v4  ;;  %v4961_v24 = vcombine.low %v4953_v62, %v4960_v0  ;;  %v7033_v12 = vrot.slane %v25028_v21, %v19178_v4  ;;  %v8134_v36 = vsel %vm8097_vm8, %v7009_v25, %v17878_v10 }
 0x2ba   :  { %v8133_v19 = vsel %vm8097_vm8, %v6992_v29, %v17883_v15  ;;  %v7040_v42 = vrot.slane %v25030_v54, %v19178_v4  ;;  %v17887_v17 = vunpack.i.l.bf16 %v17886_v60  ;;  %v16731_v9 = vpack.c.bf16 %v8134_v36, %v8102_v16  ;;  %v25033_v16 = vld [vmem:[#allocation45_spill] sm:$0xff]  ;;  %v25036_v54 = vld [vmem:[#allocation46_spill] sm:$0xff] }
 0x2bb   :  { %v16730_v52 = vpack.c.bf16 %v8133_v19, %v8101_v11  ;;  %v8104_v50 = vsel %vm8097_vm8, %v4961_v24, %v17882_v7  ;;  %v4976_v26 = vrot.slane %v25029_v32, %v19178_v4  ;;  %v25032_v18 = vrot.slane %v25031_v14, %v19178_v4  ;;  %v25034_v7 = vld [vmem:[#allocation42_spill] sm:$0xff] }
 0x2bc   :  { %v7041_v39 = vcombine.low %v7033_v12, %v7040_v42  ;;  %v8135_v47 = vsel %vm8097_vm8, %v7024_v1, %v17887_v17  ;;  %v17898_v11 = vunpack.i.h.bf16 %v17896_v6  ;;  %v21632_v60 = vrot.slane %v16731_v9, %v19178_v4  ;;  %v17891_v1 = vpop.permute.xlu1 %17890  ;;  %v25037_v42 = vld [vmem:[#allocation48_spill] sm:$0xff] }
 0x2bd   :  { %v21624_v62 = vrot.slane %v16730_v52, %v19178_v4  ;;  %v7056_v10 = vrot.slane %v25032_v18, %v19178_v4  ;;  %v16732_v3 = vpack.c.bf16 %v8135_v47, %v8103_v30  ;;  %v17897_v5 = vunpack.i.l.bf16 %v17896_v6  ;;  %v25040_v18 = vld [vmem:[#allocation47_spill] sm:$0xff] }
 0x2be   :  { %v8136_v0 = vsel %vm8097_vm8, %v7041_v39, %v17888_v34  ;;  %v25035_v49 = vrot.slane %v25034_v7, %v19178_v4  ;;  %v8360_v24 = vcombine.high %v21632_v60, %v21632_v60  ;;  %v21646_v19 = vrot.slane %v21632_v60, %v19178_v4  ;;  %v18118_v60 = vld [vmem:[%s25048_s0 + $0x170] ss:$8 sps:$4 sm:$0xff]  }
 0x2bf   :  { %v8334_v29 = vrot.slane %v21624_v62, %v19178_v4  ;;  %v16733_v15 = vpack.c.bf16 %v8136_v0, %v8104_v50  ;;  %v8137_v25 = vsel %vm8097_vm8, %v7056_v10, %v17898_v11  ;;  %v21649_v30 = vrot.slane %v16732_v3, %v19178_v4  ;;  %v18109_v62 = vld [vmem:[%s25048_s0 + $0x50] ss:$8 sps:$4 sm:$0xff]  }
 0x2c0   :  { %v5009_v2 = vcombine.low %v25035_v49, %v25033_v16  ;;  %v8105_v57 = vsel %vm8097_vm8, %v4976_v26, %v17897_v5  ;;  %v25038_v6 = vcombine.low %v25036_v54, %v25037_v42  ;;  %v25039_v34 = vcombine.low %v25033_v16, %v25036_v54  ;;  %v17901_v54 = vpop.permute.xlu1 %17900 }
 0x2c1   :  { %v21653_v21 = vrot.slane %v16733_v15, %v19178_v4  ;;  %v16734_v12 = vpack.c.bf16 %v8137_v25, %v8105_v57  ;;  %v8374_v52 = vrot.slane %v21649_v30, %v19178_v4  ;;  %v17893_v9 = vunpack.i.h.bf16 %v17891_v1  ;;  %v25043_v57 = vld [vmem:[#allocation50_spill] sm:$0xff] }
 0x2c2   :  { %v5017_v32 = vrot.slane %v5009_v2, %v19178_v4  ;;  %v5024_v36 = vrot.slane %v25038_v6, %v19178_v4  ;;  %v7065_v17 = vrot.slane %v25039_v34, %v19178_v4  ;;  %v17892_v50 = vunpack.i.l.bf16 %v17891_v1  ;;  %v25042_v1 = vld [vmem:[#allocation52_spill] sm:$0xff]  ;;  %v25046_v34 = vld [vmem:[#allocation51_spill] sm:$0xff] }
 0x2c3   :  { %v8400_v39 = vcombine.high %v21653_v21, %v21653_v21  ;;  %v21670_v26 = vrot.slane %v21653_v21, %v19178_v4  ;;  %v21673_v47 = vrot.slane %v16734_v12, %v19178_v4  ;;  %v25041_v10 = vcombine.low %v25037_v42, %v25040_v18 }
 0x2c4   :  { %v5025_v14 = vcombine.low %v5017_v32, %v5024_v36  ;;  %v8280_v0 = vcombine.high %v21571_v27, %v21571_v27  ;;  %v8287_v3 = vrot.slane %v21571_v27, %v19178_v4  ;;  %v8294_v5 = vrot.slane %v21587_v58, %v19178_v4  ;;  %v25044_v58 = vld [vmem:[#allocation53_spill] sm:$0xff] }
 0x2c5   :  { %v7072_v11 = vrot.slane %v25041_v10, %v19178_v4  ;;  %v8414_v15 = vrot.slane %v21673_v47, %v19178_v4  ;;  %v8320_v16 = vcombine.high %v21584_v23, %v21584_v23  ;;  %v8327_v7 = vrot.slane %v21584_v23, %v19178_v4 }
 0x2c6   :  { %v8106_v25 = vsel %vm8097_vm8, %v5025_v14, %v17892_v50  ;;  %v8301_v2 = vrot.slane %v8280_v0, %v19178_v4  ;;  %v5081_v27 = vrot.slane %v25042_v1, %v19178_v4  ;;  %v25045_v12 = vcombine.low %v25043_v57, %v25044_v58 }
 0x2c7   :  { %v7073_v49 = vcombine.low %v7065_v17, %v7072_v11  ;;  %v8341_v42 = vrot.slane %v8320_v16, %v19178_v4  ;;  %v8342_v6 = vcombine.high %v8327_v7, %v8327_v7  ;;  %v8923_v36 = vcombine.low %v8294_v5, %v8327_v7  ;;  %v18103_v16 = vld [vmem:[%s25048_s0 + $0x70] ss:$8 sps:$4 sm:$0xff]   ;;  %v18105_v5 = vld [vmem:[%s25048_s0 + $0x74] ss:$8 sps:$4 sm:$0xff]  }
 0x2c8   :  { %v5088_v32 = vrot.slane %v25045_v12, %v19178_v4  ;;  %v25047_v23 = vcombine.low %v25046_v34, %v25043_v57  ;;  %v8921_v14 = vcombine.low %v8287_v3, %v8301_v2  ;;  %v16759_v10 = vcombine.high %v8287_v3, %v8301_v2  ;;  %v25049_v3 = vld [vmem:[#allocation55_spill] sm:$0xff]  ;;  %11704 = vmatprep.subr.bf16.mxu0 %v18105_v5 }
 0x2c9   :  { %v8138_v50 = vsel %vm8097_vm8, %v7073_v49, %v17893_v9  ;;  %v8343_v1 = vcombine.high %v8341_v42, %v8341_v42  ;;  %v8924_v61 = vcombine.low %v8341_v42, %v8342_v6  ;;  %v8945_v12 = vrot.slane %v8923_v36, %v19178_v4  ;;  %11705 = vmatpush1.bf16.msra.mxu0 %v18103_v16 }
 0x2ca   :  { %v7097_v17 = vrot.slane %v25047_v23, %v19178_v4  ;;  %v5089_v11 = vcombine.low %v5081_v27, %v5088_v32  ;;  %v16735_v0 = vpack.c.bf16 %v8138_v50, %v8106_v25  ;;  %v8931_v7 = vrot.slane %v8921_v14, %v19178_v4  ;;  %v18108_v27 = vld [vmem:[%s25048_s0 + $0x64] ss:$8 sps:$4 sm:$0xff]   ;;  %v17906_v50 = vpop.permute.xlu1 %17905  ;;  %v18106_v14 = vld [vmem:[%s25048_s0 + $0x60] ss:$8 sps:$4 sm:$0xff]  }
 0x2cb   :  { %v8938_v9 = vrot.slane %v16759_v10, %v19178_v4  ;;  %v25050_v25 = vcombine.low %v25044_v58, %v25049_v3  ;;  %v17903_v2 = vunpack.i.h.bf16 %v17901_v54  ;;  %v8952_v32 = vrot.slane %v8924_v61, %v19178_v4  ;;  %v18120_v61 = vld [vmem:[%s25048_s0 + $0x174] ss:$8 sps:$4 sm:$0xff]   ;;  %11706 = vmatprep.subr.bf16.mxu0 %v18108_v27 }
 0x2cc   :  { %v21722_v57 = vrot.slane %v16735_v0, %v19178_v4  ;;  %v17902_v42 = vunpack.i.l.bf16 %v17901_v54  ;;  %v5040_v6 = vrot.slane %v25040_v18, %v19178_v4  ;;  %v5104_v58 = vrot.slane %v25049_v3, %v19178_v4  ;;  %v18111_v0 = vld [vmem:[%s25048_s0 + $0x54] ss:$8 sps:$4 sm:$0xff]   ;;  %11817 = vmatprep.subr.bf16.mxu1 %v18120_v61 }
 0x2cd   :  { %v7104_v49 = vrot.slane %v25050_v25, %v19178_v4  ;;  %v8954_v36 = vcombine.high %v8931_v7, %v8938_v9  ;;  %v8953_v34 = vcombine.low %v8931_v7, %v8938_v9  ;;  %v8955_v10 = vcombine.low %v8945_v12, %v8952_v32  ;;  %11707 = vmatpush1.bf16.msra.mxu0 %v18106_v14  ;;  %v25051_v61 = vld [vmem:[#allocation56_spill] sm:$0xff] }
 0x2ce   :  { %v8440_v18 = vcombine.high %v21722_v57, %v21722_v57  ;;  %v21739_v54 = vrot.slane %v21722_v57, %v19178_v4  ;;  %v8108_v9 = vsel %vm8097_vm8, %v5089_v11, %v17902_v42  ;;  %v17907_v27 = vunpack.i.l.bf16 %v17906_v50  ;;  %11708 = vmatprep.subr.bf16.mxu0 %v18111_v0  ;;  %v18132_v0 = vld [vmem:[%s25048_s0 + $0x164] ss:$8 sps:$4 sm:$0xff]  }
 0x2cf   :  { %v7105_v23 = vcombine.low %v7097_v17, %v7104_v49  ;;  %v8956_v17 = vcombine.high %v8945_v12, %v8952_v32  ;;  %v8970_v16 = vrot.slane %v8954_v36, %v19178_v4  ;;  %v8963_v5 = vrot.slane %v8953_v34, %v19178_v4 }
 0x2d0   :  { %v8977_v25 = vrot.slane %v8955_v10, %v19178_v4  ;;  %v17908_v12 = vunpack.i.h.bf16 %v17906_v50  ;;  %v8381_v32 = vrot.slane %v8360_v24, %v19178_v4  ;;  %v8987_v36 = vcombine.low %v8343_v1, %v8334_v29  ;;  %v18114_v1 = vld [vmem:[%s25048_s0 + $0x44] ss:$8 sps:$4 sm:$0xff]  }
 0x2d1   :  { %v8140_v7 = vsel %vm8097_vm8, %v7105_v23, %v17903_v2  ;;  %v8984_v3 = vrot.slane %v8956_v17, %v19178_v4  ;;  %v8990_v11 = vcombine.low %v8374_v52, %v21670_v26  ;;  %v17911_v2 = vpop.permute.xlu0 %17910  ;;  %v21774_v29 = vsel %vm8097_vm8, %v5040_v6, %v17907_v27  ;;  %v25052_v17 = vld [vmem:[#allocation57_spill] sm:$0xff]  ;;  %11709 = vmatpush1.bf16.msra.mxu0 %v18109_v62 }
 0x2d2   :  { %v16737_v49 = vpack.c.bf16 %v8140_v7, %v8108_v9  ;;  %v8985_v34 = vcombine.low %v8963_v5, %v8977_v25  ;;  %v21765_v50 = vsel %vm8097_vm8, %v5104_v58, %v17908_v12  ;;  %v8988_v24 = vcombine.low %v21646_v19, %v8381_v32  ;;  %v25054_v7 = vld [vmem:[#allocation59_spill] sm:$0xff]  ;;  %v25055_v9 = vld [vmem:[#allocation58_spill] sm:$0xff]  ;;  %11710 = vmatprep.subr.bf16.mxu0 %v18114_v1  ;;  %v18117_v62 = vld [vmem:[%s25048_s0 + $0x34] ss:$8 sps:$4 sm:$0xff]  }
 0x2d3   :  { %v8986_v42 = vcombine.low %v8970_v16, %v8984_v3  ;;  %v16760_v30 = vcombine.high %v21646_v19, %v8381_v32  ;;  %v8997_v52 = vrot.slane %v8987_v36, %v19178_v4  ;;  %v9018_v6 = vrot.slane %v8990_v11, %v19178_v4 }
 0x2d4   :  { %v21762_v23 = vrot.slane %v16737_v49, %v19178_v4  ;;  %v25053_v19 = vcombine.low %v25051_v61, %v25052_v17  ;;  %v9004_v16 = vrot.slane %v8988_v24, %v19178_v4  ;;  %v25056_v3 = vcombine.low %v25054_v7, %v25055_v9  ;;  %v25057_v49 = vld [vmem:[#allocation60_spill] sm:$0xff]  ;;  %v18112_v61 = vld [vmem:[%s25048_s0 + $0x40] ss:$8 sps:$4 sm:$0xff]  }
 0x2d5   :  { %9779 = vmatprep.mubr.bf16.mxu1 %v8986_v42  ;;  %v9011_v5 = vrot.slane %v16760_v30, %v19178_v4  ;;  %v7122_v12 = vcombine.low %v25055_v9, %v25057_v49  ;;  %v25058_v27 = vcombine.low %v25052_v17, %v25054_v7  ;;  %v17913_v36 = vunpack.i.h.bf16 %v17911_v2  ;;  %v25059_v42 = vld [vmem:[#allocation44_spill] sm:$0xff]  ;;  %11711 = vmatpush1.bf16.msra.mxu0 %v18112_v61  ;;  %v18123_v61 = vld [vmem:[%s25048_s0 + $0x24] ss:$8 sps:$4 sm:$0xff]  }
 0x2d6   :  { %v8480_v58 = vcombine.high %v21762_v23, %v21762_v23  ;;  %v21786_v14 = vrot.slane %v21762_v23, %v19178_v4  ;;  %v5145_v10 = vrot.slane %v25053_v19, %v19178_v4  ;;  %9780 = vmatmul.mubr.bf16.vlgmr.msra.gmra.mxu1 %v8985_v34  ;;  %v5152_v25 = vrot.slane %v25056_v3, %v19178_v4  ;;  %v25060_v34 = vld [vmem:[#allocation49_spill] sm:$0xff]  ;;  %v17916_v3 = vpop.permute.xlu0 %17915 }
 0x2d7   :  { %v7129_v32 = vrot.slane %v25058_v27, %v19178_v4  ;;  %v17912_v11 = vunpack.i.l.bf16 %v17911_v2  ;;  %v25061_v24 = vcombine.low %v25059_v42, %v25060_v34  ;;  %11818 = vmatpush1.bf16.msra.mxu1 %v18118_v60  ;;  %v18130_v19 = vld [vmem:[%s25048_s0 + $0x160] ss:$8 sps:$4 sm:$0xff]   ;;  %v9020_v9 = vcombine.high %v8997_v52, %v9004_v16  ;;  %11712 = vmatprep.subr.bf16.mxu0 %v18117_v62 }
 0x2d8   :  { %v9022_v17 = vcombine.high %v9011_v5, %v9018_v6  ;;  %v5153_v7 = vcombine.low %v5145_v10, %v5152_v25  ;;  %v7136_v2 = vrot.slane %v7122_v12, %v19178_v4  ;;  %v9019_v27 = vcombine.low %v8997_v52, %v9004_v16  ;;  %v25062_v60 = vld [vmem:[#allocation54_spill] sm:$0xff]  ;;  %11819 = vmatprep.subr.bf16.mxu1 %v18132_v0 }
 0x2d9   :  { %v7081_v30 = vrot.slane %v25061_v24, %v19178_v4  ;;  %v9021_v42 = vcombine.low %v9011_v5, %v9018_v6  ;;  %v25063_v24 = vrot.slane %v25062_v60, %v19178_v4  ;;  %v9036_v10 = vrot.slane %v9020_v9, %v19178_v4  ;;  %v18115_v5 = vld [vmem:[%s25048_s0 + $0x30] ss:$8 sps:$4 sm:$0xff]  }
 0x2da   :  { %v9050_v25 = vrot.slane %v9022_v17, %v19178_v4  ;;  %v7137_v12 = vcombine.low %v7129_v32, %v7136_v2  ;;  %v8110_v1 = vsel %vm8097_vm8, %v5153_v7, %v17912_v11  ;;  %v9029_v46 = vrot.slane %v9019_v27, %v19178_v4  ;;  %v25064_v9 = vld [vmem:[#allocation63_spill] sm:$0xff]  ;;  %v25065_v11 = vld [vmem:[#allocation64_spill] sm:$0xff]  ;;  %v25066_v17 = vld [vmem:[#allocation65_spill] sm:$0xff]  ;;  %v17926_v27 = vpop.permute.xlu1 %17925  ;;  %11713 = vmatpush1.bf16.msra.mxu0 %v18115_v5 }
 0x2db   :  { %v7088_v34 = vrot.slane %v7081_v30, %v19178_v4  ;;  %v7120_v56 = vrot.slane %v25063_v24, %v19178_v4  ;;  %v9043_v52 = vrot.slane %v9021_v42, %v19178_v4  ;;  %v17918_v6 = vunpack.i.h.bf16 %v17916_v3  ;;  %11820 = vmatpush1.bf16.msra.mxu1 %v18130_v19  ;;  %11714 = vmatprep.subr.bf16.mxu0 %v18123_v61  ;;  %v18126_v5 = vld [vmem:[%s25048_s0 + $0x14] ss:$8 sps:$4 sm:$0xff]  }
 0x2dc   :  { %v17917_v16 = vunpack.i.l.bf16 %v17916_v3  ;;  %v9052_v0 = vcombine.low %v9036_v10, %v9050_v25  ;;  %v8142_v30 = vsel %vm8097_vm8, %v7137_v12, %v17913_v36  ;;  %v5209_v32 = vrot.slane %v25064_v9, %v19178_v4  ;;  %v25068_v25 = vld [vmem:[#allocation62_spill] sm:$0xff] }
 0x2dd   :  { %v25067_v7 = vcombine.low %v25065_v11, %v25066_v17  ;;  %v16739_v3 = vpack.c.bf16 %v8142_v30, %v8110_v1  ;;  %v9051_v42 = vcombine.low %v9029_v46, %v9043_v52  ;;  %v8141_v19 = vsel %vm8097_vm8, %v7120_v56, %v17918_v6  ;;  %v25070_v56 = vld [vmem:[#allocation67_spill] sm:$0xff] }
 0x2de   :  { %v8139_v36 = vsel %vm8097_vm8, %v7088_v34, %v17917_v16  ;;  %9787 = vmatprep.mubr.bf16.mxu1 %v9052_v0  ;;  %v16738_v60 = vpack.c.bf16 %v8141_v19, %v21765_v50  ;;  %v25069_v62 = vcombine.low %v25068_v25, %v25065_v11  ;;  %v25071_v46 = vcombine.low %v25066_v17, %v25070_v56  ;;  %v18121_v50 = vld [vmem:[%s25048_s0 + $0x20] ss:$8 sps:$4 sm:$0xff]   ;;  %v18124_v19 = vld [vmem:[%s25048_s0 + $0x10] ss:$8 sps:$4 sm:$0xff]  }
 0x2df   :  { %v5216_v2 = vrot.slane %v25067_v7, %v19178_v4  ;;  %v16736_v24 = vpack.c.bf16 %v8139_v36, %v21774_v29  ;;  %v21854_v9 = vrot.slane %v16739_v3, %v19178_v4  ;;  %9788 = vmatmul.mubr.bf16.gmra.mxu1 %v9051_v42  ;;  %v17928_v1 = vunpack.i.h.bf16 %v17926_v27  ;;  %11715 = vmatpush1.bf16.msra.mxu0 %v18121_v50  ;;  %v25074_v50 = vld [vmem:[#allocation66_spill] sm:$0xff] }
 0x2e0   :  { %v7161_v12 = vrot.slane %v25069_v62, %v19178_v4  ;;  %v7168_v34 = vrot.slane %v25071_v46, %v19178_v4  ;;  %v17927_v52 = vunpack.i.l.bf16 %v17926_v27  ;;  %v21864_v29 = vrot.slane %v16738_v60, %v19178_v4  ;;  %11716 = vmatprep.subr.bf16.mxu0 %v18126_v5 }
 0x2e1   :  { %v5217_v10 = vcombine.low %v5209_v32, %v5216_v2  ;;  %v21867_v6 = vrot.slane %v16736_v24, %v19178_v4  ;;  %v8421_v16 = vrot.slane %v8400_v39, %v19178_v4  ;;  %v8422_v0 = vcombine.high %v21670_v26, %v21670_v26  ;;  %v17921_v2 = vpop.permute.xlu0 %17920  ;;  %v17931_v24 = vpop.permute.xlu1 %17930 }
 0x2e2   :  { %v8520_v30 = vcombine.high %v21854_v9, %v21854_v9  ;;  %v21882_v32 = vrot.slane %v21854_v9, %v19178_v4  ;;  %v7169_v11 = vcombine.low %v7161_v12, %v7168_v34  ;;  %v8494_v21 = vrot.slane %v21864_v29, %v19178_v4  ;;  %v25072_v12 = vld [vmem:[#allocation61_spill] sm:$0xff] }
 0x2e3   :  { %v8112_v17 = vsel %vm8097_vm8, %v5217_v10, %v17927_v52  ;;  %v8454_v39 = vrot.slane %v21867_v6, %v19178_v4  ;;  %v8423_v26 = vcombine.high %v8421_v16, %v8421_v16  ;;  %v8461_v7 = vrot.slane %v8440_v18, %v19178_v4  ;;  %11717 = vmatpush1.bf16.msra.mxu0 %v18124_v19 }
 0x2e4   :  { %v8144_v27 = vsel %vm8097_vm8, %v7169_v11, %v17928_v1  ;;  %v9053_v61 = vcombine.low %v8421_v16, %v8422_v0  ;;  %v5168_v3 = vrot.slane %v25057_v49, %v19178_v4  ;;  %v5232_v42 = vrot.slane %v25070_v56, %v19178_v4  ;;  %v18129_v49 = vld [vmem:[%s25048_s0 + $0x4] ss:$8 sps:$4 sm:$0xff]   ;;  %v18127_v11 = vld [vmem:[%s25048_s0] ss:$8 sps:$4 sm:$0xff]  }
 0x2e5   :  { %v16741_v36 = vpack.c.bf16 %v8144_v27, %v8112_v17  ;;  %v9054_v57 = vcombine.low %v8423_v26, %v8414_v15  ;;  %v9055_v18 = vcombine.low %v21739_v54, %v8461_v7  ;;  %v16761_v60 = vcombine.high %v21739_v54, %v8461_v7  ;;  %11718 = vmatprep.subr.bf16.mxu0 %v18129_v49  ;;  %v17936_v19 = vpop.permute.xlu0 %17935 }
 0x2e6   :  { %v9063_v10 = vrot.slane %v9053_v61, %v19178_v4  ;;  %v17923_v25 = vunpack.i.h.bf16 %v17921_v2  ;;  %v17922_v62 = vunpack.i.l.bf16 %v17921_v2  ;;  %v25073_v56 = vrot.slane %v25072_v12, %v19178_v4 }
 0x2e7   :  { %v21915_v15 = vrot.slane %v16741_v36, %v19178_v4  ;;  %v9070_v54 = vrot.slane %v9054_v57, %v19178_v4  ;;  %v9077_v46 = vrot.slane %v9055_v18, %v19178_v4  ;;  %v9084_v34 = vrot.slane %v16761_v60, %v19178_v4  ;;  %v25076_v60 = vld [vmem:[#allocation68_spill] sm:$0xff]  ;;  %11719 = vmatpush1.bf16.msra.mxu0 %v18127_v11 }
 0x2e8   :  { %v7152_v47 = vrot.slane %v25073_v56, %v19178_v4  ;;  %v8113_v1 = vsel %vm8097_vm8, %v5232_v42, %v17923_v25  ;;  %v8111_v52 = vsel %vm8097_vm8, %v5168_v3, %v17922_v62  ;;  %v25075_v16 = vrot.slane %v25074_v50, %v19178_v4 }
 0x2e9   :  { %v17933_v5 = vunpack.i.h.bf16 %v17931_v24  ;;  %v8560_v17 = vcombine.high %v21915_v15, %v21915_v15  ;;  %v21933_v26 = vrot.slane %v21915_v15, %v19178_v4  ;;  %v9086_v7 = vcombine.high %v9063_v10, %v9070_v54 }
 0x2ea   :  { %v7184_v0 = vrot.slane %v25075_v16, %v19178_v4  ;;  %v9088_v2 = vcombine.high %v9077_v46, %v9084_v34  ;;  %v9085_v27 = vcombine.low %v9063_v10, %v9070_v54  ;;  %v9087_v61 = vcombine.low %v9077_v46, %v9084_v34  ;;  %v25077_v10 = vld [vmem:[#allocation11_spill] sm:$0xff] }
 0x2eb   :  { %v17932_v42 = vunpack.i.l.bf16 %v17931_v24  ;;  %v9102_v36 = vrot.slane %v9086_v7, %v19178_v4  ;;  %v5266_v25 = vcombine.low %v25076_v60, %v20758_v37  ;;  %v5273_v56 = vrot.slane %v25077_v10, %v19178_v4 }
 0x2ec   :  { %v8145_v3 = vsel %vm8097_vm8, %v7184_v0, %v17933_v5  ;;  %v9116_v57 = vrot.slane %v9088_v2, %v19178_v4  ;;  %v9095_v62 = vrot.slane %v9085_v27, %v19178_v4  ;;  %v9109_v12 = vrot.slane %v9087_v61, %v19178_v4  ;;  %v17941_v5 = vpop.permute.xlu1 %17940 }
 0x2ed   :  { %v16742_v18 = vpack.c.bf16 %v8145_v3, %v8113_v1  ;;  %v8143_v49 = vsel %vm8097_vm8, %v7152_v47, %v17932_v42  ;;  %v5280_v34 = vrot.slane %v5266_v25, %v19178_v4  ;;  %v5337_v50 = vrot.slane %v20825_v35, %v19178_v4  ;;  %v25079_v35 = vld [vmem:[#allocation70_spill] sm:$0xff]  ;;  %v25081_v42 = vld [vmem:[#allocation73_spill] sm:$0xff] }
 0x2ee   :  { %v9118_v24 = vcombine.low %v9102_v36, %v9116_v57  ;;  %v16740_v46 = vpack.c.bf16 %v8143_v49, %v8111_v52  ;;  %v9117_v1 = vcombine.low %v9095_v62, %v9109_v12  ;;  %v25078_v16 = vcombine.low %v20811_v20, %v20822_v41  ;;  %v17946_v12 = vpop.permute.xlu0 %17945 }
 0x2ef   :  { %v21946_v54 = vrot.slane %v16742_v18, %v19178_v4  ;;  %v17938_v0 = vunpack.i.h.bf16 %v17936_v19  ;;  %v5281_v52 = vcombine.low %v5273_v56, %v5280_v34  ;;  %v17937_v2 = vunpack.i.l.bf16 %v17936_v19  ;;  %v25083_v18 = vld [vmem:[#allocation75_spill] sm:$0xff] }
 0x2f0   :  { %v5344_v47 = vrot.slane %v25078_v16, %v19178_v4  ;;  %9795 = vmatprep.mubr.bf16.mxu1 %v9118_v24  ;;  %v21958_v7 = vrot.slane %v16740_v46, %v19178_v4  ;;  %v25080_v61 = vcombine.low %v25079_v35, %v25076_v60  ;;  %v25082_v36 = vcombine.low %v20758_v37, %v25081_v42  ;;  %v25085_v60 = vld [vmem:[#allocation76_spill] sm:$0xff] }
 0x2f1   :  { %v8574_v11 = vrot.slane %v21946_v54, %v19178_v4  ;;  %9796 = vmatmul.mubr.bf16.gmra.mxu1 %v9117_v1  ;;  %v25084_v25 = vcombine.low %v25083_v18, %v20811_v20  ;;  %v8114_v49 = vsel %vm8097_vm8, %v5281_v52, %v17937_v2  ;;  %v25086_v10 = vcombine.low %v20822_v41, %v25085_v60  ;;  %v25088_v18 = vld [vmem:[#allocation13_spill] sm:$0xff] }
 0x2f2   :  { %v5345_v27 = vcombine.low %v5337_v50, %v5344_v47  ;;  %v7193_v3 = vrot.slane %v25080_v61, %v19178_v4  ;;  %v7200_v57 = vrot.slane %v25082_v36, %v19178_v4  ;;  %v8534_v19 = vrot.slane %v21958_v7, %v19178_v4  ;;  %v25087_v50 = vld [vmem:[#allocation74_spill] sm:$0xff] }
 0x2f3   :  { %v7225_v62 = vrot.slane %v25084_v25, %v19178_v4  ;;  %v7232_v56 = vrot.slane %v25086_v10, %v19178_v4  ;;  %v17943_v24 = vunpack.i.h.bf16 %v17941_v5  ;;  %v17942_v34 = vunpack.i.l.bf16 %v17941_v5  ;;  %v25089_v25 = vld [vmem:[#allocation77_spill] sm:$0xff] }
 0x2f4   :  { %v8116_v37 = vsel %vm8097_vm8, %v5345_v27, %v17938_v0  ;;  %v7201_v46 = vcombine.low %v7193_v3, %v7200_v57  ;;  %v5296_v20 = vrot.slane %v25081_v42, %v19178_v4  ;;  %v7216_v16 = vrot.slane %v25087_v50, %v19178_v4  ;;  %v25091_v50 = vld [vmem:[#allocation15_spill] sm:$0xff] }
 0x2f5   :  { %v7233_v1 = vcombine.low %v7225_v62, %v7232_v56  ;;  %v17948_v47 = vunpack.i.h.bf16 %v17946_v12  ;;  %v17947_v35 = vunpack.i.l.bf16 %v17946_v12  ;;  %v8501_v41 = vrot.slane %v8480_v58, %v19178_v4 }
 0x2f6   :  { %v8146_v52 = vsel %vm8097_vm8, %v7201_v46, %v17942_v34  ;;  %v8502_v0 = vcombine.high %v21786_v14, %v21786_v14  ;;  %v21995_v5 = vrot.slane %v8520_v30, %v19178_v4  ;;  %v9119_v58 = vcombine.low %v8454_v39, %v21786_v14 }
 0x2f7   :  { %v8148_v2 = vsel %vm8097_vm8, %v7233_v1, %v17943_v24  ;;  %v16743_v27 = vpack.c.bf16 %v8146_v52, %v8114_v49  ;;  %v8147_v61 = vsel %vm8097_vm8, %v7216_v16, %v17948_v47  ;;  %v8115_v3 = vsel %vm8097_vm8, %v5296_v20, %v17947_v35  ;;  %v25092_v16 = vld [vmem:[#allocation79_spill] sm:$0xff] }
 0x2f8   :  { %v16745_v42 = vpack.c.bf16 %v8148_v2, %v8116_v37  ;;  %v16744_v36 = vpack.c.bf16 %v8147_v61, %v8115_v3  ;;  %v8503_v23 = vcombine.high %v8501_v41, %v8501_v41  ;;  %v9120_v9 = vcombine.low %v8501_v41, %v8502_v0  ;;  %v25094_v2 = vld [vmem:[#allocation80_spill] sm:$0xff] }
 0x2f9   :  { %v22005_v57 = vrot.slane %v16743_v27, %v19178_v4  ;;  %v9122_v30 = vcombine.low %v21882_v32, %v21995_v5  ;;  %v25090_v62 = vcombine.low %v25088_v18, %v25089_v25  ;;  %v9129_v6 = vrot.slane %v9119_v58, %v19178_v4 }
 0x2fa   :  { %v22014_v49 = vrot.slane %v16745_v42, %v19178_v4  ;;  %v22017_v10 = vrot.slane %v16744_v36, %v19178_v4  ;;  %v9121_v14 = vcombine.low %v8503_v23, %v8494_v21  ;;  %v9136_v24 = vrot.slane %v9120_v9, %v19178_v4  ;;  %v17951_v42 = vpop.permute.xlu0 %17950 }
 0x2fb   :  { %v5401_v12 = vrot.slane %v25090_v62, %v19178_v4  ;;  %v8600_v39 = vcombine.high %v22005_v57, %v22005_v57  ;;  %v22027_v56 = vrot.slane %v22005_v57, %v19178_v4  ;;  %v9150_v37 = vrot.slane %v9122_v30, %v19178_v4  ;;  %v17956_v30 = vpop.permute.xlu1 %17955 }
 0x2fc   :  { %v8640_v46 = vcombine.high %v22014_v49, %v22014_v49  ;;  %v22035_v29 = vrot.slane %v22014_v49, %v19178_v4  ;;  %v8614_v21 = vrot.slane %v22017_v10, %v19178_v4  ;;  %v9143_v34 = vrot.slane %v9121_v14, %v19178_v4 }
 0x2fd   :  { %v9152_v20 = vcombine.high %v9129_v6, %v9136_v24  ;;  %v9151_v1 = vcombine.low %v9129_v6, %v9136_v24  ;;  %v25093_v47 = vcombine.low %v25091_v50, %v25092_v16  ;;  %v7249_v52 = vcombine.low %v25089_v25, %v25091_v50 }
 0x2fe   :  { %v9154_v41 = vcombine.high %v9143_v34, %v9150_v37  ;;  %v9153_v0 = vcombine.low %v9143_v34, %v9150_v37  ;;  %v25095_v27 = vcombine.low %v25092_v16, %v25094_v2  ;;  %v5360_v3 = vrot.slane %v25085_v60, %v19178_v4 }
 0x2ff   :  { %v5408_v35 = vrot.slane %v25093_v47, %v19178_v4  ;;  %v9168_v36 = vrot.slane %v9152_v20, %v19178_v4  ;;  %v9161_v23 = vrot.slane %v9151_v1, %v19178_v4  ;;  %v7257_v9 = vrot.slane %v7249_v52, %v19178_v4 }
 0x300   :  { %v7264_v61 = vrot.slane %v25095_v27, %v19178_v4  ;;  %v9182_v18 = vrot.slane %v9154_v41, %v19178_v4  ;;  %v9175_v25 = vrot.slane %v9153_v0, %v19178_v4  ;;  %v17958_v62 = vunpack.i.h.bf16 %v17956_v30 }
 0x301   :  { %v5409_v58 = vcombine.low %v5401_v12, %v5408_v35  ;;  %v17957_v14 = vunpack.i.l.bf16 %v17956_v30  ;;  %v5424_v24 = vrot.slane %v25094_v2, %v19178_v4  ;;  %v17953_v60 = vunpack.i.h.bf16 %v17951_v42  ;;  %v25096_v2 = vld [vmem:[#allocation83_spill] sm:$0xff]  ;;  %v17961_v30 = vpop.permute.xlu1 %17960 }
 0x302   :  { %v7265_v6 = vcombine.low %v7257_v9, %v7264_v61  ;;  %v17952_v37 = vunpack.i.l.bf16 %v17951_v42  ;;  %v9184_v34 = vcombine.low %v9168_v36, %v9182_v18  ;;  %v9183_v20 = vcombine.low %v9161_v23, %v9175_v25  ;;  %v25097_v61 = vld [vmem:[#allocation82_spill] sm:$0xff]  ;;  %v25099_v36 = vld [vmem:[#allocation12_spill] sm:$0xff] }
 0x303   :  { %v8118_v1 = vsel %vm8097_vm8, %v5409_v58, %v17957_v14  ;;  %v8581_v12 = vrot.slane %v8560_v17, %v19178_v4  ;;  %v22066_v16 = vsel %vm8097_vm8, %v5424_v24, %v17953_v60  ;;  %v8582_v35 = vcombine.high %v21933_v26, %v21933_v26  ;;  %v25101_v18 = vld [vmem:[#allocation78_spill] sm:$0xff]  ;;  %v25103_v14 = vld [vmem:[#allocation81_spill] sm:$0xff] }
 0x304   :  { %v8150_v50 = vsel %vm8097_vm8, %v7265_v6, %v17958_v62  ;;  %v8117_v47 = vsel %vm8097_vm8, %v5360_v3, %v17952_v37  ;;  %9803 = vmatprep.mubr.bf16.mxu1 %v9184_v34  ;;  %v16762_v0 = vcombine.high %v21882_v32, %v21995_v5  ;;  %v9186_v15 = vcombine.low %v8534_v19, %v21933_v26 }
 0x305   :  { %v16747_v52 = vpack.c.bf16 %v8150_v50, %v8118_v1  ;;  %v8583_v41 = vcombine.high %v8581_v12, %v8581_v12  ;;  %9804 = vmatmul.mubr.bf16.gmra.mxu1 %v9183_v20  ;;  %v9187_v17 = vcombine.low %v8581_v12, %v8582_v35  ;;  %v5465_v27 = vrot.slane %v25096_v2, %v19178_v4  ;;  %v25105_v1 = vld [vmem:[#allocation16_spill] sm:$0xff] }
 0x306   :  { %v25098_v3 = vcombine.low %v25097_v61, %v21004_v22  ;;  %v25100_v23 = vrot.slane %v25099_v36, %v19178_v4  ;;  %v9195_v7 = vrot.slane %v16762_v0, %v19178_v4  ;;  %v9202_v19 = vrot.slane %v9186_v15, %v19178_v4 }
 0x307   :  { %v22088_v5 = vrot.slane %v16747_v52, %v19178_v4  ;;  %v9188_v26 = vcombine.low %v8583_v41, %v8574_v11  ;;  %v9209_v58 = vrot.slane %v9187_v17, %v19178_v4  ;;  %v25102_v25 = vrot.slane %v25101_v18, %v19178_v4  ;;  %v25111_v18 = vld [vmem:[#allocation86_spill] sm:$0xff] }
 0x308   :  { %v5472_v42 = vrot.slane %v25098_v3, %v19178_v4  ;;  %v7248_v32 = vrot.slane %v25100_v23, %v19178_v4  ;;  %v25104_v6 = vcombine.low %v25103_v14, %v25097_v61  ;;  %v9218_v37 = vcombine.high %v9195_v7, %v9202_v19  ;;  %v17966_v61 = vpop.permute.xlu0 %17965 }
 0x309   :  { %v7280_v62 = vrot.slane %v25102_v25, %v19178_v4  ;;  %v8680_v54 = vcombine.high %v22088_v5, %v22088_v5  ;;  %v22108_v11 = vrot.slane %v22088_v5, %v19178_v4  ;;  %v9216_v60 = vrot.slane %v9188_v26, %v19178_v4  ;;  %v25112_v25 = vld [vmem:[#allocation87_spill] sm:$0xff] }
 0x30a   :  { %v5473_v9 = vcombine.low %v5465_v27, %v5472_v42  ;;  %v7289_v24 = vrot.slane %v25104_v6, %v19178_v4  ;;  %v17963_v34 = vunpack.i.h.bf16 %v17961_v30  ;;  %v17962_v20 = vunpack.i.l.bf16 %v17961_v30 }
 0x30b   :  { %v25106_v12 = vcombine.low %v21004_v22, %v25105_v1  ;;  %v9217_v35 = vcombine.low %v9195_v7, %v9202_v19  ;;  %v9220_v52 = vcombine.high %v9209_v58, %v9216_v60  ;;  %v9234_v41 = vrot.slane %v9218_v37, %v19178_v4  ;;  %v25107_v7 = vld [vmem:[#allocation7_spill] sm:$0xff] }
 0x30c   :  { %v9219_v0 = vcombine.low %v9209_v58, %v9216_v60  ;;  %v5488_v15 = vrot.slane %v25105_v1, %v19178_v4  ;;  %v8149_v17 = vsel %vm8097_vm8, %v7248_v32, %v17963_v34  ;;  %v8120_v2 = vsel %vm8097_vm8, %v5473_v9, %v17962_v20  ;;  %v25109_v32 = vld [vmem:[#allocation84_spill] sm:$0xff] }
 0x30d   :  { %v7296_v50 = vrot.slane %v25106_v12, %v19178_v4  ;;  %v9227_v3 = vrot.slane %v9217_v35, %v19178_v4  ;;  %v9248_v42 = vrot.slane %v9220_v52, %v19178_v4  ;;  %v16746_v22 = vpack.c.bf16 %v8149_v17, %v8117_v47  ;;  %v17976_v12 = vpop.permute.xlu0 %17975 }
 0x30e   :  { %v17968_v36 = vunpack.i.h.bf16 %v17966_v61  ;;  %v17967_v23 = vunpack.i.l.bf16 %v17966_v61  ;;  %v9241_v26 = vrot.slane %v9219_v0, %v19178_v4  ;;  %v25108_v19 = vrot.slane %v25107_v7, %v19178_v4 }
 0x30f   :  { %v7297_v27 = vcombine.low %v7289_v24, %v7296_v50  ;;  %v25110_v9 = vrot.slane %v25109_v32, %v19178_v4  ;;  %v25113_v14 = vcombine.low %v25111_v18, %v25112_v25  ;;  %v9250_v47 = vcombine.low %v9234_v41, %v9248_v42  ;;  %v25117_v32 = vld [vmem:[#allocation92_spill] sm:$0xff] }
 0x310   :  { %v7312_v58 = vrot.slane %v25108_v19, %v19178_v4  ;;  %v8639_v24 = vrot.slane %v16746_v22, %v19178_v4  ;;  %v8151_v37 = vsel %vm8097_vm8, %v7280_v62, %v17967_v23  ;;  %v9249_v1 = vcombine.low %v9227_v3, %v9241_v26 }
 0x311   :  { %v5521_v30 = vcombine.low %v25110_v9, %v21117_v13  ;;  %v5536_v6 = vrot.slane %v25113_v14, %v19178_v4  ;;  %v8152_v60 = vsel %vm8097_vm8, %v7297_v27, %v17968_v36  ;;  %v16748_v20 = vpack.c.bf16 %v8151_v37, %v22066_v16  ;;  %9811 = vmatprep.mubr.bf16.mxu1 %v9250_v47  ;;  %v25120_v47 = vld [vmem:[#allocation90_spill] sm:$0xff] }
 0x312   :  { %v16749_v34 = vpack.c.bf16 %v8152_v60, %v8120_v2  ;;  %v8654_v35 = vrot.slane %v8639_v24, %v19178_v4  ;;  %v17978_v52 = vunpack.i.h.bf16 %v17976_v12  ;;  %v17977_v0 = vunpack.i.l.bf16 %v17976_v12  ;;  %9812 = vmatmul.mubr.bf16.gmra.mxu1 %v9249_v1  ;;  %v25115_v2 = vld [vmem:[#allocation88_spill] sm:$0xff]  ;;  %v25122_v37 = vld [vmem:[#allocation14_spill] sm:$0xff] }
 0x313   :  { %v5529_v50 = vrot.slane %v5521_v30, %v19178_v4  ;;  %v25114_v41 = vcombine.low %v21117_v13, %v25111_v18  ;;  %v8679_v62 = vrot.slane %v16748_v20, %v19178_v4  ;;  %v25116_v61 = vcombine.low %v25112_v25, %v25115_v2  ;;  %v25118_v30 = vld [vmem:[#allocation91_spill] sm:$0xff] }
 0x314   :  { %v22146_v27 = vrot.slane %v16749_v34, %v19178_v4  ;;  %v8153_v42 = vsel %vm8097_vm8, %v7312_v58, %v17978_v52  ;;  %v8121_v22 = vsel %vm8097_vm8, %v5488_v15, %v17977_v0  ;;  %v8621_v13 = vrot.slane %v8600_v39, %v19178_v4 }
 0x315   :  { %v7321_v17 = vrot.slane %v25114_v41, %v19178_v4  ;;  %v5537_v16 = vcombine.low %v5529_v50, %v5536_v6  ;;  %v7328_v3 = vrot.slane %v25116_v61, %v19178_v4  ;;  %v8661_v36 = vrot.slane %v8640_v46, %v19178_v4  ;;  %v17971_v61 = vpop.permute.xlu1 %17970 }
 0x316   :  { %v8720_v23 = vcombine.high %v22146_v27, %v22146_v27  ;;  %v22167_v26 = vrot.slane %v22146_v27, %v19178_v4  ;;  %v8694_v7 = vrot.slane %v8679_v62, %v19178_v4  ;;  %v16750_v15 = vpack.c.bf16 %v8153_v42, %v8121_v22  ;;  %v18138_v27 = vld [vmem:[%s25048_s0 + $0xe4] ss:$8 sps:$4 sm:$0xff]  }
 0x317   :  { %v7329_v19 = vcombine.low %v7321_v17, %v7328_v3  ;;  %v8662_v57 = vcombine.high %v22035_v29, %v22035_v29  ;;  %v9251_v39 = vcombine.low %v22027_v56, %v8621_v13  ;;  %v16763_v58 = vcombine.high %v22027_v56, %v8621_v13 }
 0x318   :  { %v22175_v49 = vrot.slane %v16750_v15, %v19178_v4  ;;  %v9253_v46 = vcombine.low %v8614_v21, %v22035_v29  ;;  %v5593_v9 = vrot.slane %v25117_v32, %v19178_v4  ;;  %v25119_v18 = vcombine.low %v25118_v30, %v21255_v38 }
 0x319   :  { %v9254_v14 = vcombine.low %v8661_v36, %v8662_v57  ;;  %v9261_v6 = vrot.slane %v9251_v39, %v19178_v4  ;;  %v9268_v56 = vrot.slane %v16763_v58, %v19178_v4  ;;  %v25121_v24 = vcombine.low %v25120_v47, %v25118_v30 }
 0x31a   :  { %v5600_v25 = vrot.slane %v25119_v18, %v19178_v4  ;;  %v8734_v10 = vrot.slane %v22175_v49, %v19178_v4  ;;  %v9275_v29 = vrot.slane %v9253_v46, %v19178_v4  ;;  %v25123_v34 = vcombine.low %v21255_v38, %v25122_v37  ;;  %v18142_v49 = vld [vmem:[%s25048_s0 + $0xd0] ss:$8 sps:$4 sm:$0xff]  }
 0x31b   :  { %v7353_v60 = vrot.slane %v25121_v24, %v19178_v4  ;;  %v9282_v1 = vrot.slane %v9254_v14, %v19178_v4  ;;  %v9284_v12 = vcombine.high %v9261_v6, %v9268_v56  ;;  %v9283_v50 = vcombine.low %v9261_v6, %v9268_v56 }
 0x31c   :  { %v5601_v21 = vcombine.low %v5593_v9, %v5600_v25  ;;  %v7360_v20 = vrot.slane %v25123_v34, %v19178_v4  ;;  %v5552_v52 = vrot.slane %v25115_v2, %v19178_v4  ;;  %v5616_v41 = vrot.slane %v25122_v37, %v19178_v4  ;;  %v17981_v25 = vpop.permute.xlu1 %17980 }
 0x31d   :  { %v8663_v17 = vcombine.high %v8661_v36, %v8661_v36  ;;  %v8701_v62 = vrot.slane %v8680_v54, %v19178_v4  ;;  %v9286_v38 = vcombine.high %v9275_v29, %v9282_v1  ;;  %v9300_v3 = vrot.slane %v9284_v12, %v19178_v4  ;;  %v17991_v12 = vpop.permute.xlu0 %17990 }
 0x31e   :  { %v7361_v0 = vcombine.low %v7353_v60, %v7360_v20  ;;  %v9285_v42 = vcombine.low %v9275_v29, %v9282_v1  ;;  %v9293_v22 = vrot.slane %v9283_v50, %v19178_v4  ;;  %v17973_v13 = vunpack.i.h.bf16 %v17971_v61 }
 0x31f   :  { %v17972_v15 = vunpack.i.l.bf16 %v17971_v61  ;;  %v9317_v2 = vcombine.low %v8663_v17, %v8654_v35  ;;  %v9318_v57 = vcombine.low %v22108_v11, %v8701_v62  ;;  %v9314_v39 = vrot.slane %v9286_v38, %v19178_v4 }
 0x320   :  { %v9307_v36 = vrot.slane %v9285_v42, %v19178_v4  ;;  %v16764_v58 = vcombine.high %v22108_v11, %v8701_v62  ;;  %v9320_v5 = vcombine.low %v8694_v7, %v22167_v26  ;;  %v8154_v46 = vsel %vm8097_vm8, %v7329_v19, %v17973_v13  ;;  %v17986_v62 = vpop.permute.xlu1 %17985 }
 0x321   :  { %v8122_v54 = vsel %vm8097_vm8, %v5537_v16, %v17972_v15  ;;  %v9327_v32 = vrot.slane %v9317_v2, %v19178_v4  ;;  %v9334_v9 = vrot.slane %v9318_v57, %v19178_v4  ;;  %v9316_v35 = vcombine.low %v9300_v3, %v9314_v39 }
 0x322   :  { %v16751_v30 = vpack.c.bf16 %v8154_v46, %v8122_v54  ;;  %v9315_v18 = vcombine.low %v9293_v22, %v9307_v36  ;;  %v9341_v14 = vrot.slane %v16764_v58, %v19178_v4  ;;  %v17983_v6 = vunpack.i.h.bf16 %v17981_v25  ;;  %v17996_v58 = vpop.permute.xlu0 %17995 }
 0x323   :  { %v17982_v56 = vunpack.i.l.bf16 %v17981_v25  ;;  %v9348_v11 = vrot.slane %v9320_v5, %v19178_v4  ;;  %v9350_v47 = vcombine.high %v9327_v32, %v9334_v9  ;;  %9819 = vmatprep.mubr.bf16.mxu1 %v9316_v35  ;;  %v25124_v16 = vcombine.low %v21286_v40, %v21289_v31 }
 0x324   :  { %v22223_v7 = vrot.slane %v16751_v30, %v19178_v4  ;;  %v25125_v24 = vcombine.low %v21304_v33, %v21294_v59  ;;  %v7378_v29 = vcombine.low %v21294_v59, %v21338_v53  ;;  %9820 = vmatmul.mubr.bf16.gmra.mxu1 %v9315_v18  ;;  %v8156_v37 = vsel %vm8097_vm8, %v7361_v0, %v17983_v6  ;;  %v18006_v6 = vpop.permute.xlu1 %18005 }
 0x325   :  { %v5657_v19 = vrot.slane %v25124_v16, %v19178_v4  ;;  %v8124_v34 = vsel %vm8097_vm8, %v5601_v21, %v17982_v56  ;;  %v9352_v20 = vcombine.high %v9341_v14, %v9348_v11  ;;  %v9366_v1 = vrot.slane %v9350_v47, %v19178_v4 }
 0x326   :  { %v5664_v60 = vrot.slane %v25125_v24, %v19178_v4  ;;  %v8760_v40 = vcombine.high %v22223_v7, %v22223_v7  ;;  %v22242_v50 = vrot.slane %v22223_v7, %v19178_v4  ;;  %v16753_v17 = vpack.c.bf16 %v8156_v37, %v8124_v34 }
 0x327   :  { %v17988_v59 = vunpack.i.h.bf16 %v17986_v62  ;;  %v17987_v38 = vunpack.i.l.bf16 %v17986_v62  ;;  %v9380_v0 = vrot.slane %v9352_v20, %v19178_v4  ;;  %v25126_v21 = vcombine.low %v21289_v31, %v21304_v33 }
 0x328   :  { %v5665_v61 = vcombine.low %v5657_v19, %v5664_v60  ;;  %v22250_v42 = vrot.slane %v16753_v17, %v19178_v4  ;;  %v7392_v22 = vrot.slane %v7378_v29, %v19178_v4  ;;  %v17993_v13 = vunpack.i.h.bf16 %v17991_v12 }
 0x329   :  { %v7385_v3 = vrot.slane %v25126_v21, %v19178_v4  ;;  %v17992_v15 = vunpack.i.l.bf16 %v17991_v12  ;;  %v8125_v2 = vsel %vm8097_vm8, %v5616_v41, %v17988_v59  ;;  %v8123_v57 = vsel %vm8097_vm8, %v5552_v52, %v17987_v38  ;;  %v25127_v41 = vld [vmem:[#allocation85_spill] sm:$0xff] }
 0x32a   :  { %v9382_v39 = vcombine.low %v9366_v1, %v9380_v0  ;;  %v9349_v36 = vcombine.low %v9327_v32, %v9334_v9  ;;  %v8800_v5 = vcombine.high %v22250_v42, %v22250_v42  ;;  %v22259_v31 = vrot.slane %v22250_v42, %v19178_v4  ;;  %v25128_v52 = vld [vmem:[#allocation89_spill] sm:$0xff]  ;;  %v25130_v9 = vld [vmem:[#allocation10_spill] sm:$0xff] }
 0x32b   :  { %v7393_v33 = vcombine.low %v7385_v3, %v7392_v22  ;;  %v8126_v54 = vsel %vm8097_vm8, %v5665_v61, %v17992_v15  ;;  %v9351_v46 = vcombine.low %v9341_v14, %v9348_v11  ;;  %v25129_v35 = vcombine.low %v25127_v41, %v25128_v52  ;;  %v18133_v1 = vld [vmem:[%s25048_s0 + $0xf0] ss:$8 sps:$4 sm:$0xff]  }
 0x32c   :  { %9827 = vmatprep.mubr.bf16.mxu1 %v9382_v39  ;;  %v9359_v30 = vrot.slane %v9349_v36, %v19178_v4  ;;  %v25131_v18 = vrot.slane %v25130_v9, %v19178_v4  ;;  %v17998_v47 = vunpack.i.h.bf16 %v17996_v58  ;;  %v17997_v16 = vunpack.i.l.bf16 %v17996_v58  ;;  %v18001_v58 = vpop.permute.xlu0 %18000  ;;  %v18151_v42 = vld [vmem:[%s25048_s0 + $0x130] ss:$8 sps:$4 sm:$0xff]  }
 0x32d   :  { %v7337_v32 = vrot.slane %v25129_v35, %v19178_v4  ;;  %v8158_v56 = vsel %vm8097_vm8, %v7393_v33, %v17993_v13  ;;  %v5721_v14 = vrot.slane %v21386_v28, %v19178_v4  ;;  %v9373_v19 = vrot.slane %v9351_v46, %v19178_v4  ;;  %v18141_v33 = vld [vmem:[%s25048_s0 + $0x154] ss:$8 sps:$4 sm:$0xff]  }
 0x32e   :  { %v7376_v25 = vrot.slane %v25131_v18, %v19178_v4  ;;  %v16755_v11 = vpack.c.bf16 %v8158_v56, %v8126_v54  ;;  %v5728_v60 = vrot.slane %v5714_v48, %v19178_v4  ;;  %v7417_v37 = vrot.slane %v7409_v43, %v19178_v4  ;;  %v18135_v48 = vld [vmem:[%s25048_s0 + $0xf4] ss:$8 sps:$4 sm:$0xff]   ;;  %11821 = vmatprep.subr.bf16.mxu1 %v18141_v33  ;;  %v18011_v56 = vpop.permute.xlu1 %18010 }
 0x32f   :  { %v7344_v24 = vrot.slane %v7337_v32, %v19178_v4  ;;  %v25132_v28 = vcombine.low %v21425_v51, %v21436_v45  ;;  %v18008_v20 = vunpack.i.h.bf16 %v18006_v6  ;;  %v9381_v17 = vcombine.low %v9359_v30, %v9373_v19  ;;  %11720 = vmatprep.subr.bf16.mxu0 %v18135_v48  ;;  %v18144_v54 = vld [vmem:[%s25048_s0 + $0xd4] ss:$8 sps:$4 sm:$0xff]  }
 0x330   :  { %v8157_v29 = vsel %vm8097_vm8, %v7376_v25, %v17998_v47  ;;  %v22296_v12 = vrot.slane %v16755_v11, %v19178_v4  ;;  %v5729_v62 = vcombine.low %v5721_v14, %v5728_v60  ;;  %v18007_v61 = vunpack.i.l.bf16 %v18006_v6  ;;  %11721 = vmatpush2.bf16.msra.mxu0 %v18133_v1  ;;  %v18153_v1 = vld [vmem:[%s25048_s0 + $0x134] ss:$8 sps:$4 sm:$0xff]  }
 0x331   :  { %v7424_v34 = vrot.slane %v25132_v28, %v19178_v4  ;;  %v16754_v8 = vpack.c.bf16 %v8157_v29, %v8125_v2  ;;  %v8155_v44 = vsel %vm8097_vm8, %v7344_v24, %v17997_v16  ;;  %9828 = vmatmul.mubr.bf16.gmra.mxu1 %v9381_v17  ;;  %v8741_v21 = vrot.slane %v8720_v23, %v19178_v4  ;;  %v18136_v2 = vld [vmem:[%s25048_s0 + $0xe0] ss:$8 sps:$4 sm:$0xff]   ;;  %v18139_v23 = vld [vmem:[%s25048_s0 + $0x150] ss:$8 sps:$4 sm:$0xff]   ;;  %v18150_v29 = vld [vmem:[%s25048_s0 + $0xc4] ss:$8 sps:$4 sm:$0xff]  }
 0x332   :  { %v16752_v43 = vpack.c.bf16 %v8155_v44, %v8123_v57  ;;  %v8840_v59 = vcombine.high %v22296_v12, %v22296_v12  ;;  %v22303_v38 = vrot.slane %v22296_v12, %v19178_v4  ;;  %v8128_v13 = vsel %vm8097_vm8, %v5729_v62, %v18007_v61  ;;  %11722 = vmatprep.subr.bf16.mxu0 %v18138_v27  ;;  %v18148_v44 = vld [vmem:[%s25048_s0 + $0xc0] ss:$8 sps:$4 sm:$0xff]  }
 0x333   :  { %v7425_v51 = vcombine.low %v7417_v37, %v7424_v34  ;;  %v22306_v0 = vrot.slane %v16754_v8, %v19178_v4  ;;  %v8742_v15 = vcombine.high %v22167_v26, %v22167_v26  ;;  %v8743_v36 = vcombine.high %v8741_v21, %v8741_v21  ;;  %11822 = vmatpush1.bf16.msra.mxu1 %v18139_v23 }
 0x334   :  { %v22313_v3 = vrot.slane %v16752_v43, %v19178_v4  ;;  %v8781_v26 = vrot.slane %v8760_v40, %v19178_v4  ;;  %v5680_v41 = vrot.slane %v21338_v53, %v19178_v4  ;;  %v5744_v7 = vrot.slane %v21436_v45, %v19178_v4  ;;  %v18147_v40 = vld [vmem:[%s25048_s0 + $0x144] ss:$8 sps:$4 sm:$0xff]   ;;  %11723 = vmatpush2.bf16.msra.mxu0 %v18136_v2 }
 0x335   :  { %v8160_v22 = vsel %vm8097_vm8, %v7425_v51, %v18008_v20  ;;  %v8814_v57 = vrot.slane %v22306_v0, %v19178_v4  ;;  %v9383_v30 = vcombine.low %v8741_v21, %v8742_v15  ;;  %v9384_v35 = vcombine.low %v8743_v36, %v8734_v10  ;;  %11724 = vmatprep.subr.bf16.mxu0 %v18144_v54  ;;  %v18154_v54 = vld [vmem:[%s25048_s0 + $0xb0] ss:$8 sps:$4 sm:$0xff]  }
 0x336   :  { %v16757_v39 = vpack.c.bf16 %v8160_v22, %v8128_v13  ;;  %v8774_v46 = vrot.slane %v22313_v3, %v19178_v4  ;;  %v9385_v32 = vcombine.low %v22242_v50, %v8781_v26  ;;  %v16765_v9 = vcombine.high %v22242_v50, %v8781_v26  ;;  %11823 = vmatprep.subr.bf16.mxu1 %v18147_v40 }
 0x337   :  { %v9393_v53 = vrot.slane %v9383_v30, %v19178_v4  ;;  %v18003_v45 = vunpack.i.h.bf16 %v18001_v58  ;;  %v18002_v18 = vunpack.i.l.bf16 %v18001_v58  ;;  %v25133_v25 = vrot.slane %v21356_v55, %v19178_v4  ;;  %v18145_v55 = vld [vmem:[%s25048_s0 + $0x140] ss:$8 sps:$4 sm:$0xff]   ;;  %v18156_v58 = vld [vmem:[%s25048_s0 + $0xb4] ss:$8 sps:$4 sm:$0xff]  }
 0x338   :  { %v22350_v52 = vrot.slane %v16757_v39, %v19178_v4  ;;  %v9400_v47 = vrot.slane %v9384_v35, %v19178_v4  ;;  %v9407_v16 = vrot.slane %v9385_v32, %v19178_v4  ;;  %v9414_v14 = vrot.slane %v16765_v9, %v19178_v4  ;;  %11725 = vmatpush2.bf16.msra.mxu0 %v18142_v49  ;;  %v18157_v32 = vld [vmem:[%s25048_s0 + $0x120] ss:$8 sps:$4 sm:$0xff]  }
 0x339   :  { %v7408_v6 = vrot.slane %v25133_v25, %v19178_v4  ;;  %v8129_v11 = vsel %vm8097_vm8, %v5744_v7, %v18003_v45  ;;  %v8127_v19 = vsel %vm8097_vm8, %v5680_v41, %v18002_v18  ;;  %v25134_v24 = vrot.slane %v21433_v63, %v19178_v4  ;;  %11824 = vmatpush1.bf16.msra.mxu1 %v18145_v55 }
 0x33a   :  { %v8880_v10 = vcombine.high %v22350_v52, %v22350_v52  ;;  %v22369_v50 = vrot.slane %v22350_v52, %v19178_v4  ;;  %v9416_v37 = vcombine.high %v9393_v53, %v9400_v47  ;;  %v9415_v28 = vcombine.low %v9393_v53, %v9400_v47  ;;  %11726 = vmatprep.subr.bf16.mxu0 %v18150_v29  ;;  %v18165_v29 = vld [vmem:[%s25048_s0 + $0x114] ss:$8 sps:$4 sm:$0xff]  }
 0x33b   :  { %v7440_v60 = vrot.slane %v25134_v24, %v19178_v4  ;;  %v18013_v34 = vunpack.i.h.bf16 %v18011_v56  ;;  %v18012_v20 = vunpack.i.l.bf16 %v18011_v56  ;;  %v9418_v48 = vcombine.high %v9407_v16, %v9414_v14  ;;  %11825 = vmatprep.subr.bf16.mxu1 %v18153_v1 }
 0x33c   :  { %v9417_v17 = vcombine.low %v9407_v16, %v9414_v14  ;;  %v8821_v63 = vrot.slane %v8800_v5, %v19178_v4  ;;  %v8822_v8 = vcombine.high %v22259_v31, %v22259_v31  ;;  %v9432_v43 = vrot.slane %v9416_v37, %v19178_v4  ;;  %11727 = vmatpush2.bf16.msra.mxu0 %v18148_v44  ;;  %v18162_v14 = vld [vmem:[%s25048_s0 + $0xa4] ss:$8 sps:$4 sm:$0xff]  }
 0x33d   :  { %v9425_v62 = vrot.slane %v9415_v28, %v19178_v4  ;;  %v8161_v51 = vsel %vm8097_vm8, %v7440_v60, %v18013_v34  ;;  %v8159_v61 = vsel %vm8097_vm8, %v7408_v6, %v18012_v20  ;;  %v9446_v5 = vrot.slane %v9418_v48, %v19178_v4  ;;  %11826 = vmatpush1.bf16.msra.mxu1 %v18151_v42  ;;  %v18163_v34 = vld [vmem:[%s25048_s0 + $0x110] ss:$8 sps:$4 sm:$0xff]   ;;  %v18171_v42 = vld [vmem:[%s25048_s0 + $0x104] ss:$8 sps:$4 sm:$0xff]  }
 0x33e   :  { %v9439_v21 = vrot.slane %v9417_v17, %v19178_v4  ;;  %v16758_v3 = vpack.c.bf16 %v8161_v51, %v8129_v11  ;;  %v16756_v22 = vpack.c.bf16 %v8159_v61, %v8127_v19  ;;  %v8823_v13 = vcombine.high %v8821_v63, %v8821_v63  ;;  %11728 = vmatprep.subr.bf16.mxu0 %v18156_v58  ;;  %v18168_v51 = vld [vmem:[%s25048_s0 + $0x94] ss:$8 sps:$4 sm:$0xff]   ;;  %v18169_v61 = vld [vmem:[%s25048_s0 + $0x100] ss:$8 sps:$4 sm:$0xff]  }
 0x33f   :  { %v8861_v15 = vrot.slane %v8840_v59, %v19178_v4  ;;  %v9449_v2 = vcombine.low %v8774_v46, %v22259_v31  ;;  %v9450_v27 = vcombine.low %v8821_v63, %v8822_v8  ;;  %v9448_v23 = vcombine.low %v9432_v43, %v9446_v5  ;;  %v18174_v5 = vld [vmem:[%s25048_s0 + $0x84] ss:$8 sps:$4 sm:$0xff]  }
 0x340   :  { %v9447_v39 = vcombine.low %v9425_v62, %v9439_v21  ;;  %v8879_v36 = vrot.slane %v16758_v3, %v19178_v4  ;;  %v8839_v26 = vrot.slane %v16756_v22, %v19178_v4  ;;  %v9451_v12 = vcombine.low %v8823_v13, %v8814_v57  ;;  %v18159_v57 = vld [vmem:[%s25048_s0 + $0x124] ss:$8 sps:$4 sm:$0xff]   ;;  %11729 = vmatpush2.bf16.msra.mxu0 %v18154_v54  ;;  %v18166_v62 = vld [vmem:[%s25048_s0 + $0x90] ss:$8 sps:$4 sm:$0xff]   ;;  %v18172_v21 = vld [vmem:[%s25048_s0 + $0x80] ss:$8 sps:$4 sm:$0xff]  }
 0x341   :  { %v9452_v59 = vcombine.low %v22303_v38, %v8861_v15  ;;  %v9459_v31 = vrot.slane %v9449_v2, %v19178_v4  ;;  %v9466_v33 = vrot.slane %v9450_v27, %v19178_v4  ;;  %9835 = vmatprep.mubr.bf16.mxu1 %v9448_v23  ;;  %v8901_v41 = vrot.slane %v8880_v10, %v19178_v4  ;;  %v16726_v2 = vld [vmem:[%s25135_s26] ss:$0 sm:$0xff]  ;;  %v25136_v23 = vld [vmem:[#allocation6_spill] sm:$0xff] }
 0x342   :  { %v8894_v46 = vrot.slane %v8879_v36, %v19178_v4  ;;  %v8854_v30 = vrot.slane %v8839_v26, %v19178_v4  ;;  %v8902_v0 = vcombine.high %v22369_v50, %v22369_v50  ;;  %9836 = vmatmul.mubr.bf16.gmra.mxu1 %v9447_v39  ;;  %v9473_v7 = vrot.slane %v9451_v12, %v19178_v4 }
 0x343   :  { %v9480_v40 = vrot.slane %v9452_v59, %v19178_v4  ;;  %v9482_v52 = vcombine.high %v9459_v31, %v9466_v33  ;;  %v9481_v35 = vcombine.low %v9459_v31, %v9466_v33  ;;  %v8903_v9 = vcombine.high %v8901_v41, %v8901_v41  ;;  %11827 = vmatprep.subr.bf16.mxu1 %v18159_v57 }
 0x344   :  { %v16766_v53 = vcombine.high %v22303_v38, %v8861_v15  ;;  %v9516_v45 = vcombine.low %v8854_v30, %v22369_v50  ;;  %v9517_v18 = vcombine.low %v8901_v41, %v8902_v0  ;;  %11828 = vmatpush1.bf16.msra.mxu1 %v18157_v32  ;;  %v18160_v50 = vld [vmem:[%s25048_s0 + $0xa0] ss:$8 sps:$4 sm:$0xff]   ;;  %11730 = vmatprep.subr.bf16.mxu0 %v18162_v14  ;;  %v18604_v3 = vmov 0  }
 0x345   :  { %v9484_v25 = vcombine.high %v9473_v7, %v9480_v40  ;;  %v9498_v6 = vrot.slane %v9482_v52, %v19178_v4  ;;  %v9483_v56 = vcombine.low %v9473_v7, %v9480_v40  ;;  %v9491_v49 = vrot.slane %v9481_v35, %v19178_v4  ;;  %11731 = vmatpush2.bf16.msra.mxu0 %v18160_v50 }
 0x346   :  { %v9518_v10 = vcombine.low %v8903_v9, %v8894_v46  ;;  %v9525_v47 = vrot.slane %v16766_v53, %v19178_v4  ;;  %v9532_v16 = vrot.slane %v9516_v45, %v19178_v4  ;;  %v9539_v11 = vrot.slane %v9517_v18, %v19178_v4  ;;  %11829 = vmatprep.subr.bf16.mxu1 %v18165_v29 }
 0x347   :  { %v9512_v55 = vrot.slane %v9484_v25, %v19178_v4  ;;  %v9505_v38 = vrot.slane %v9483_v56, %v19178_v4  ;;  %11732 = vmatprep.subr.bf16.mxu0 %v18168_v51  ;;  %18085 = vset.pattern.permute.xlu1 %v18604_v3  ;;  %v18605_v22 = vmov 1983009808   ;;  %v8904_v27 = vcombine.high %v16726_v2, %v16726_v2 }
 0x348   :  { %v9546_v19 = vrot.slane %v9518_v10, %v19178_v4  ;;  %v9548_v24 = vcombine.high %v9525_v47, %v9532_v16  ;;  %v9547_v60 = vcombine.low %v9525_v47, %v9532_v16  ;;  %11830 = vmatpush1.bf16.msra.mxu1 %v18163_v34  ;;  %18084 = vset.pattern.permute.xlu0 %v18604_v3  ;;  %v8906_v13 = vunpack.c.l.s4 %v18605_v22 }
 0x349   :  { %v9514_v37 = vcombine.low %v9498_v6, %v9512_v55  ;;  %v9513_v28 = vcombine.low %v9491_v49, %v9505_v38  ;;  %11733 = vmatpush2.bf16.msra.mxu0 %v18166_v62  ;;  %11831 = vmatprep.subr.bf16.mxu1 %v18171_v42 }
 0x34a   :  { %v9550_v20 = vcombine.high %v9539_v11, %v9546_v19  ;;  %v9564_v1 = vrot.slane %v9548_v24, %v19178_v4  ;;  %v9549_v48 = vcombine.low %v9539_v11, %v9546_v19  ;;  %v9557_v17 = vrot.slane %v9547_v60, %v19178_v4  ;;  %11734 = vmatprep.subr.bf16.mxu0 %v18174_v5 }
 0x34b   :  { %9843 = vmatprep.mubr.bf16.mxu1 %v9514_v37  ;;  %v8907_v15 = vunpack.c.0.s8 %v8906_v13 }
 0x34c   :  { %9844 = vmatmul.mubr.bf16.gmra.mxu1 %v9513_v28  ;;  %v9578_v63 = vrot.slane %v9550_v20, %v19178_v4  ;;  %v9571_v8 = vrot.slane %v9549_v48, %v19178_v4 }
 0x34d   :  { %11832 = vmatpush1.bf16.msra.mxu1 %v18169_v61  ;;  %11735 = vmatpush2.bf16.msra.mxu0 %v18172_v21  ;;  %v22490_v39 = vsub.s32 %v8907_v15, %v25136_v23 }
 0x34e   :  { %v9580_v44 = vcombine.low %v9564_v1, %v9578_v63  ;;  %v9579_v43 = vcombine.low %v9557_v17, %v9571_v8 }
 0x34f   :  { %v8911_v36 = vrot.slane %v16726_v2, %v22490_v39  ;;  %v8918_v26 = vrot.slane %v8904_v27, %v22490_v39 }
 0x350   :  { %9851 = vmatprep.mubr.bf16.mxu1 %v9580_v44 }
 0x351   :  { %v8919_v58 = vcombine.high %v8911_v36, %v8911_v36  ;;  %v8920_v12 = vcombine.high %v8918_v26, %v8918_v26  ;;  %v9714_v46 = vcombine.low %v8911_v36, %v8911_v36 }
 0x353   :  { %v9697_v59 = vcombine.low %v8911_v36, %v8919_v58  ;;  %v9698_v31 = vcombine.low %v8918_v26, %v8920_v12  ;;  %v9715_v30 = vcombine.low %v8919_v58, %v8918_v26  ;;  %v9722_v57 = vrot.slane %v9714_v46, %v22490_v39 }
 0x354   :  { %9852 = vmatmul.mubr.bf16.gmra.mxu1 %v9579_v43  ;;  %v9731_v52 = vcombine.low %v8920_v12, %v8911_v36 }
 0x355   :  { %11849 = vmatprep.mubr.bf16.mxu1 %v18604_v3  ;;  %v9705_v33 = vrot.slane %v9697_v59, %v22490_v39  ;;  %v9712_v54 = vrot.slane %v9698_v31, %v22490_v39  ;;  %v9729_v7 = vrot.slane %v9715_v30, %v22490_v39 }
 0x356   :  { %v9738_v18 = vrot.slane %v9731_v52, %v22490_v39 }
 0x357   :  { %v22496_v0 = vcombine.low %v9705_v33, %v9712_v54  ;;  %v22501_v53 = vcombine.low %v9722_v57, %v9729_v7  ;;  %v22512_v61 = vcombine.low %v9712_v54, %v9722_v57 }
 0x358   :  { %v22507_v55 = vcombine.low %v9738_v18, %v9705_v33 }
 0x396   :  { %v17037_v41 = vpop.f32.mrf.mxu1 }
 0x398   :  { %v17038_v40 = vpop.f32.mrf.mxu1 }
 0x399   :  { %v17039_v35 = vadd.f32 %v17038_v40, %v17037_v41 }
 0x39a   :  { %v17040_v32 = vpop.f32.mrf.mxu1 }
 0x39b   :  { %v9782_v9 = vadd.f32 %v17039_v35, %v22496_v0  ;;  %v22522_v35 = vcombine.low %v9729_v7, %v9738_v18 }
 0x39c   :  { %v17041_v45 = vpop.f32.mrf.mxu1 }
 0x39d   :  { %v9880_v25 = vcombine.high %v9782_v9, %v9782_v9  ;;  %v9887_v6 = vrot.slane %v9782_v9, %v22490_v39  ;;  %v17042_v56 = vadd.f32 %v17041_v45, %v17040_v32 }
 0x39f   :  { %v9894_v49 = vrot.slane %v9880_v25, %v22490_v39  ;;  %v9895_v10 = vcombine.high %v9887_v6, %v9887_v6  ;;  %v9785_v47 = vadd.f32 %v17042_v56, %v22501_v53  ;;  %v17043_v16 = vpop.f32.mrf.mxu1  ;;  %v10300_v60 = vmax.f32 %v9887_v6, 0.0 }
 0x3a1   :  { %v9896_v38 = vcombine.high %v9894_v49, %v9894_v49  ;;  %v10301_v50 = vmax.f32 %v9895_v10, 0.0  ;;  %v9897_v14 = vcombine.high %v9785_v47, %v9785_v47  ;;  %v17044_v11 = vpop.f32.mrf.mxu1  ;;  %v9904_v19 = vrot.slane %v9785_v47, %v22490_v39 }
 0x3a2   :  { %v17045_v24 = vadd.f32 %v17044_v11, %v17043_v16  ;;  %v10302_v29 = vmax.f32 %v9894_v49, 0.0 }
 0x3a3   :  { %v10303_v37 = vmax.f32 %v9896_v38, 0.0  ;;  %v9911_v28 = vrot.slane %v9897_v14, %v22490_v39  ;;  %v17046_v34 = vpop.f32.mrf.mxu1  ;;  %v9912_v20 = vcombine.high %v9904_v19, %v9904_v19  ;;  %v10304_v1 = vmax.f32 %v9904_v19, 0.0 }
 0x3a4   :  { %v9790_v48 = vadd.f32 %v17045_v24, %v22507_v55  ;;  %v10444_v17 = vcombine.low %v10300_v60, %v10301_v50  ;;  %v10924_v13 = vcombine.low %v10301_v50, %v10302_v29 }
 0x3a5   :  { %v10445_v63 = vcombine.low %v10302_v29, %v10303_v37  ;;  %v9913_v8 = vcombine.high %v9911_v28, %v9911_v28  ;;  %v17047_v44 = vpop.f32.mrf.mxu1  ;;  %v10305_v43 = vmax.f32 %v9912_v20, 0.0  ;;  %v10306_v62 = vmax.f32 %v9911_v28, 0.0 }
 0x3a6   :  { %v10925_v51 = vcombine.low %v10303_v37, %v10304_v1  ;;  %v9914_v21 = vcombine.high %v9790_v48, %v9790_v48  ;;  %v9921_v22 = vrot.slane %v9790_v48, %v22490_v39  ;;  %v17048_v15 = vadd.f32 %v17047_v44, %v17046_v34 }
 0x3a7   :  { %v10459_v42 = vrot.slane %v10445_v63, %v22490_v39  ;;  %v10307_v5 = vmax.f32 %v9913_v8, 0.0  ;;  %v10452_v2 = vrot.slane %v10444_v17, %v22490_v39  ;;  %v10461_v58 = vcombine.low %v10305_v43, %v10306_v62 }
 0x3a8   :  { %v9928_v27 = vrot.slane %v9914_v21, %v22490_v39  ;;  %v9929_v36 = vcombine.high %v9921_v22, %v9921_v22  ;;  %v10308_v26 = vmax.f32 %v9921_v22, 0.0  ;;  %v9793_v12 = vadd.f32 %v17048_v15, %v22512_v61 }
 0x3a9   :  { %v10939_v59 = vrot.slane %v10925_v51, %v22490_v39  ;;  %v10941_v31 = vcombine.low %v10306_v62, %v10307_v5  ;;  %v10460_v54 = vcombine.low %v10452_v2, %v10459_v42  ;;  %v10932_v40 = vrot.slane %v10924_v13, %v22490_v39 }
 0x3aa   :  { %v10309_v33 = vmax.f32 %v9929_v36, 0.0  ;;  %v9930_v46 = vcombine.high %v9928_v27, %v9928_v27  ;;  %v10462_v30 = vcombine.low %v10307_v5, %v10308_v26  ;;  %v9931_v41 = vcombine.high %v9793_v12, %v9793_v12 }
 0x3ab   :  { %v9938_v57 = vrot.slane %v9793_v12, %v22490_v39  ;;  %v10754_v32 = vrot.slane %v10304_v1, %v22490_v39  ;;  %v10469_v6 = vrot.slane %v10461_v58, %v22490_v39  ;;  %v10949_v56 = vrot.slane %v10941_v31, %v22490_v39 }
 0x3ac   :  { %v10942_v52 = vcombine.low %v10308_v26, %v10309_v33  ;;  %v10476_v9 = vrot.slane %v10462_v30, %v22490_v39  ;;  %v9945_v45 = vrot.slane %v9931_v41, %v22490_v39  ;;  %v10761_v49 = vrot.slane %v10309_v33, %v22490_v39 }
 0x3ad   :  { %v9946_v25 = vcombine.high %v9938_v57, %v9938_v57  ;;  %v10940_v16 = vcombine.low %v10932_v40, %v10939_v59  ;;  %v10311_v38 = vmax.f32 %v9930_v46, 0.0  ;;  %v10860_v18 = vrot.slane %v10460_v54, 1 }
 0x3ae   :  { %v10956_v10 = vrot.slane %v10942_v52, %v22490_v39  ;;  %v9947_v14 = vcombine.high %v9945_v45, %v9945_v45  ;;  %v10312_v11 = vmax.f32 %v9938_v57, 0.0  ;;  %v10477_v24 = vcombine.low %v10469_v6, %v10476_v9 }
 0x3af   :  { %v10313_v7 = vmax.f32 %v9946_v25, 0.0  ;;  %v10861_v60 = vrot.slane %v10754_v32, 1  ;;  %v10310_v29 = vmax.f32 %v9928_v27, 0.0  ;;  %v10864_v48 = vrot.slane %v10761_v49, 1 }
 0x3b0   :  { %v10957_v50 = vcombine.low %v10949_v56, %v10956_v10  ;;  %v10863_v1 = vrot.slane %v10477_v24, 1  ;;  %v10314_v8 = vmax.f32 %v9945_v45, 0.0  ;;  %v10315_v44 = vmax.f32 %v9947_v14, 0.0 }
 0x3b1   :  { %v17049_v47 = vpop.f32.mrf.mxu1  ;;  %v10479_v28 = vcombine.low %v10312_v11, %v10313_v7  ;;  %v10478_v17 = vcombine.low %v10310_v29, %v10311_v38  ;;  %v10862_v62 = vsel %vm136_vm1, %v10860_v18, %v10861_v60  ;;  %v16983_v15 = vpack.c.bf16 %v10477_v24, %v10460_v54 }
 0x3b2   :  { %v16985_v20 = vpack.c.bf16 %v10957_v50, %v10940_v16  ;;  %v10865_v51 = vsel %vm136_vm1, %v10863_v1, %v10864_v48  ;;  %v10959_v12 = vcombine.low %v10313_v7, %v10314_v8  ;;  %v10958_v30 = vcombine.low %v10311_v38, %v10312_v11 }
 0x3b3   :  { %v17050_v19 = vpop.f32.mrf.mxu1  ;;  %v16984_v22 = vpack.c.bf16 %v10865_v51, %v10862_v62  ;;  %v10493_v13 = vrot.slane %v10479_v28, %v22490_v39  ;;  %v10486_v58 = vrot.slane %v10478_v17, %v22490_v39  ;;  %v10768_v25 = vrot.slane %v10314_v8, %v22490_v39 }
 0x3b4   :  { %v17051_v37 = vadd.f32 %v17050_v19, %v17049_v47  ;;  %11850 = vmatmul.mubr.bf16.vlgmr.msra.gmra.mxu1 %v16985_v20  ;;  %v10973_v45 = vrot.slane %v10959_v12, %v22490_v39  ;;  %v10966_v16 = vrot.slane %v10958_v30, %v22490_v39 }
 0x3b5   :  { %v17052_v34 = vpop.f32.mrf.mxu1  ;;  %11859 = vmatprep.mubr.bf16.mxu1 %v18604_v3  ;;  %11736 = vmatprep.mubr.bf16.mxu0 %v16984_v22  ;;  %v10494_v57 = vcombine.low %v10486_v58, %v10493_v13  ;;  %v10867_v19 = vrot.slane %v10768_v25, 1 }
 0x3b6   :  { %v9798_v63 = vadd.f32 %v17051_v37, %v22522_v35  ;;  %11737 = vmatmul.mubr.bf16.vlgmr.msra.gmra.mxu0 %v16983_v15  ;;  %v10974_v11 = vcombine.low %v10966_v16, %v10973_v45 }
 0x3b7   :  { %v17053_v43 = vpop.f32.mrf.mxu1  ;;  %v10866_v38 = vrot.slane %v10494_v57, 1 }
 0x3b8   :  { %v9948_v42 = vcombine.high %v9798_v63, %v9798_v63  ;;  %v9955_v5 = vrot.slane %v9798_v63, %v22490_v39  ;;  %v17054_v21 = vadd.f32 %v17053_v43, %v17052_v34 }
 0x3b9   :  { %v10868_v34 = vsel %vm136_vm1, %v10866_v38, %v10867_v19 }
 0x3ba   :  { %v9962_v2 = vrot.slane %v9948_v42, %v22490_v39  ;;  %v9963_v27 = vcombine.high %v9955_v5, %v9955_v5  ;;  %v10316_v36 = vmax.f32 %v9955_v5, 0.0  ;;  %v9801_v26 = vadd.f32 %v17054_v21, %v22496_v0 }
 0x3bc   :  { %v9964_v59 = vcombine.high %v9962_v2, %v9962_v2  ;;  %v10317_v31 = vmax.f32 %v9963_v27, 0.0  ;;  %v10318_v33 = vmax.f32 %v9962_v2, 0.0  ;;  %v10495_v46 = vcombine.low %v10315_v44, %v10316_v36 }
 0x3bd   :  { %v9965_v41 = vcombine.high %v9801_v26, %v9801_v26  ;;  %v9972_v32 = vrot.slane %v9801_v26, %v22490_v39 }
 0x3be   :  { %v10319_v40 = vmax.f32 %v9964_v59, 0.0  ;;  %v10496_v54 = vcombine.low %v10317_v31, %v10318_v33  ;;  %v10975_v52 = vcombine.low %v10316_v36, %v10317_v31  ;;  %v10503_v6 = vrot.slane %v10495_v46, %v22490_v39 }
 0x3bf   :  { %v9979_v9 = vrot.slane %v9965_v41, %v22490_v39  ;;  %v9980_v7 = vcombine.high %v9972_v32, %v9972_v32  ;;  %v10320_v43 = vmax.f32 %v9972_v32, 0.0 }
 0x3c0   :  { %v10510_v56 = vrot.slane %v10496_v54, %v22490_v39  ;;  %v10976_v49 = vcombine.low %v10318_v33, %v10319_v40  ;;  %v10775_v10 = vrot.slane %v10319_v40, %v22490_v39  ;;  %v10983_v18 = vrot.slane %v10975_v52, %v22490_v39 }
 0x3c1   :  { %v9981_v47 = vcombine.high %v9979_v9, %v9979_v9  ;;  %v10321_v20 = vmax.f32 %v9980_v7, 0.0  ;;  %v10322_v1 = vmax.f32 %v9979_v9, 0.0 }
 0x3c2   :  { %v10990_v50 = vrot.slane %v10976_v49, %v22490_v39  ;;  %v10511_v14 = vcombine.low %v10503_v6, %v10510_v56  ;;  %v10870_v28 = vrot.slane %v10775_v10, 1 }
 0x3c3   :  { %v10323_v24 = vmax.f32 %v9981_v47, 0.0  ;;  %v10512_v21 = vcombine.low %v10320_v43, %v10321_v20  ;;  %v10992_v41 = vcombine.low %v10321_v20, %v10322_v1 }
 0x3c4   :  { %v10991_v29 = vcombine.low %v10983_v18, %v10990_v50  ;;  %v10869_v37 = vrot.slane %v10511_v14, 1  ;;  %v16986_v42 = vpack.c.bf16 %v10511_v14, %v10494_v57 }
 0x3c5   :  { %v17055_v60 = vpop.f32.mrf.mxu1  ;;  %v10513_v62 = vcombine.low %v10322_v1, %v10323_v24  ;;  %v10520_v59 = vrot.slane %v10512_v21, %v22490_v39  ;;  %v11000_v18 = vrot.slane %v10992_v41, %v22490_v39 }
 0x3c6   :  { %v16988_v17 = vpack.c.bf16 %v10991_v29, %v10974_v11  ;;  %v10871_v63 = vsel %vm136_vm1, %v10869_v37, %v10870_v28 }
 0x3c7   :  { %v17056_v48 = vpop.f32.mrf.mxu1  ;;  %v16987_v44 = vpack.c.bf16 %v10871_v63, %v10868_v34  ;;  %v10527_v27 = vrot.slane %v10513_v62, %v22490_v39 }
 0x3c8   :  { %v17057_v8 = vadd.f32 %v17056_v48, %v17055_v60  ;;  %11860 = vmatmul.mubr.bf16.gmra.mxu1 %v16988_v17 }
 0x3c9   :  { %v17058_v51 = vpop.f32.mrf.mxu1  ;;  %11746 = vmatprep.mubr.bf16.mxu0 %v16987_v44  ;;  %11869 = vmatprep.mubr.bf16.mxu1 %v18604_v3  ;;  %v22561_v9 = vcombine.low %v10520_v59, %v10527_v27 }
 0x3ca   :  { %v9806_v5 = vadd.f32 %v17057_v8, %v22501_v53  ;;  %11747 = vmatmul.mubr.bf16.gmra.mxu0 %v16986_v42 }
 0x3cb   :  { %v17059_v22 = vpop.f32.mrf.mxu1 }
 0x3cc   :  { %v9982_v13 = vcombine.high %v9806_v5, %v9806_v5  ;;  %v9989_v15 = vrot.slane %v9806_v5, %v22490_v39  ;;  %v17060_v2 = vadd.f32 %v17059_v22, %v17058_v51 }
 0x3ce   :  { %v9996_v36 = vrot.slane %v9982_v13, %v22490_v39  ;;  %v9997_v26 = vcombine.high %v9989_v15, %v9989_v15  ;;  %v10324_v58 = vmax.f32 %v9989_v15, 0.0  ;;  %v9809_v12 = vadd.f32 %v17060_v2, %v22507_v55 }
 0x3d0   :  { %v9998_v31 = vcombine.high %v9996_v36, %v9996_v36  ;;  %v10325_v33 = vmax.f32 %v9997_v26, 0.0  ;;  %v10326_v46 = vmax.f32 %v9996_v36, 0.0  ;;  %v10782_v30 = vrot.slane %v10324_v58, %v22490_v39 }
 0x3d1   :  { %v9999_v57 = vcombine.high %v9809_v12, %v9809_v12  ;;  %v10006_v40 = vrot.slane %v9809_v12, %v22490_v39  ;;  %v10993_v32 = vcombine.low %v10323_v24, %v10324_v58  ;;  %v10872_v24 = vrot.slane %v22561_v9, 1 }
 0x3d2   :  { %v17061_v54 = vpop.f32.mrf.mxu1  ;;  %v10327_v52 = vmax.f32 %v9998_v31, 0.0  ;;  %v10529_v45 = vcombine.low %v10325_v33, %v10326_v46  ;;  %v10873_v10 = vrot.slane %v10782_v30, 1 }
 0x3d3   :  { %v10013_v25 = vrot.slane %v9999_v57, %v22490_v39  ;;  %v10014_v6 = vcombine.high %v10006_v40, %v10006_v40  ;;  %v10328_v56 = vmax.f32 %v10006_v40, 0.0  ;;  %v11007_v19 = vrot.slane %v10993_v32, %v22490_v39 }
 0x3d4   :  { %v17062_v49 = vpop.f32.mrf.mxu1  ;;  %v11009_v50 = vcombine.low %v10326_v46, %v10327_v52  ;;  %v10537_v60 = vrot.slane %v10529_v45, %v22490_v39  ;;  %v10874_v17 = vsel %vm136_vm1, %v10872_v24, %v10873_v10 }
 0x3d5   :  { %v17063_v47 = vadd.f32 %v17062_v49, %v17061_v54  ;;  %v10329_v16 = vmax.f32 %v10014_v6, 0.0  ;;  %v10530_v38 = vcombine.low %v10327_v52, %v10328_v56  ;;  %v10015_v14 = vcombine.high %v10013_v25, %v10013_v25 }
 0x3d6   :  { %v17064_v7 = vpop.f32.mrf.mxu1  ;;  %v10330_v63 = vmax.f32 %v10013_v25, 0.0  ;;  %v11017_v8 = vrot.slane %v11009_v50, %v22490_v39  ;;  %v11008_v21 = vcombine.low %v11000_v18, %v11007_v19 }
 0x3d7   :  { %v9814_v11 = vadd.f32 %v17063_v47, %v22512_v61  ;;  %v10544_v29 = vrot.slane %v10530_v38, %v22490_v39  ;;  %v10789_v37 = vrot.slane %v10329_v16, %v22490_v39  ;;  %v11010_v28 = vcombine.low %v10328_v56, %v10329_v16 }
 0x3d8   :  { %v17065_v34 = vpop.f32.mrf.mxu1  ;;  %v10331_v62 = vmax.f32 %v10015_v14, 0.0 }
 0x3d9   :  { %v10016_v20 = vcombine.high %v9814_v11, %v9814_v11  ;;  %v10023_v1 = vrot.slane %v9814_v11, %v22490_v39  ;;  %v17066_v48 = vadd.f32 %v17065_v34, %v17064_v7  ;;  %v11024_v44 = vrot.slane %v11010_v28, %v22490_v39 }
 0x3da   :  { %v10545_v43 = vcombine.low %v10537_v60, %v10544_v29  ;;  %v10876_v15 = vrot.slane %v10789_v37, 1  ;;  %v10546_v33 = vcombine.low %v10330_v63, %v10331_v62 }
 0x3db   :  { %v10030_v51 = vrot.slane %v10016_v20, %v22490_v39  ;;  %v10031_v42 = vcombine.high %v10023_v1, %v10023_v1  ;;  %v9817_v5 = vadd.f32 %v17066_v48, %v22522_v35  ;;  %v11025_v22 = vcombine.low %v11017_v8, %v11024_v44 }
 0x3dc   :  { %v10875_v13 = vrot.slane %v10545_v43, 1  ;;  %v10332_v27 = vmax.f32 %v10023_v1, 0.0  ;;  %v16989_v52 = vpack.c.bf16 %v10545_v43, %v22561_v9  ;;  %v10554_v47 = vrot.slane %v10546_v33, %v22490_v39 }
 0x3dd   :  { %v10032_v2 = vcombine.high %v10030_v51, %v10030_v51  ;;  %v10333_v36 = vmax.f32 %v10031_v42, 0.0  ;;  %v10334_v26 = vmax.f32 %v10030_v51, 0.0  ;;  %v10033_v58 = vcombine.high %v9817_v5, %v9817_v5 }
 0x3de   :  { %v10040_v12 = vrot.slane %v9817_v5, %v22490_v39  ;;  %v16991_v59 = vpack.c.bf16 %v11025_v22, %v11008_v21  ;;  %v10877_v31 = vsel %vm136_vm1, %v10875_v13, %v10876_v15  ;;  %v11026_v16 = vcombine.low %v10331_v62, %v10332_v27 }
 0x3df   :  { %v10335_v46 = vmax.f32 %v10032_v2, 0.0  ;;  %v10547_v30 = vcombine.low %v10332_v27, %v10333_v36  ;;  %v16990_v41 = vpack.c.bf16 %v10877_v31, %v10874_v17  ;;  %v10047_v57 = vrot.slane %v10033_v58, %v22490_v39 }
 0x3e0   :  { %v10048_v40 = vcombine.high %v10040_v12, %v10040_v12  ;;  %v10336_v54 = vmax.f32 %v10040_v12, 0.0  ;;  %11870 = vmatmul.mubr.bf16.gmra.mxu1 %v16991_v59  ;;  %v11027_v45 = vcombine.low %v10333_v36, %v10334_v26  ;;  %v10796_v34 = vrot.slane %v10334_v26, %v22490_v39 }
 0x3e1   :  { %v10561_v32 = vrot.slane %v10547_v30, %v22490_v39  ;;  %11756 = vmatprep.mubr.bf16.mxu0 %v16990_v41  ;;  %11879 = vmatprep.mubr.bf16.mxu1 %v18604_v3  ;;  %v10049_v25 = vcombine.high %v10047_v57, %v10047_v57  ;;  %v10338_v56 = vmax.f32 %v10047_v57, 0.0  ;;  %v11034_v1 = vrot.slane %v11026_v16, %v22490_v39 }
 0x3e2   :  { %v10337_v6 = vmax.f32 %v10048_v40, 0.0  ;;  %v10563_v49 = vcombine.low %v10335_v46, %v10336_v54  ;;  %11757 = vmatmul.mubr.bf16.gmra.mxu0 %v16989_v52  ;;  %v11041_v14 = vrot.slane %v11027_v45, %v22490_v39  ;;  %v10879_v2 = vrot.slane %v10796_v34, 1 }
 0x3e3   :  { %v10339_v38 = vmax.f32 %v10049_v25, 0.0  ;;  %v10562_v11 = vcombine.low %v10554_v47, %v10561_v32 }
 0x3e4   :  { %v17067_v10 = vpop.f32.mrf.mxu1  ;;  %v10564_v7 = vcombine.low %v10337_v6, %v10338_v56  ;;  %v11043_v18 = vcombine.low %v10336_v54, %v10337_v6  ;;  %v10571_v19 = vrot.slane %v10563_v49, %v22490_v39  ;;  %v11042_v51 = vcombine.low %v11034_v1, %v11041_v14 }
 0x3e5   :  { %v11044_v29 = vcombine.low %v10338_v56, %v10339_v38  ;;  %v10803_v37 = vrot.slane %v10339_v38, %v22490_v39  ;;  %v10878_v62 = vrot.slane %v10562_v11, 1 }
 0x3e6   :  { %v17068_v50 = vpop.f32.mrf.mxu1  ;;  %v10578_v24 = vrot.slane %v10564_v7, %v22490_v39  ;;  %v11051_v48 = vrot.slane %v11043_v18, %v22490_v39 }
 0x3e7   :  { %v17069_v9 = vadd.f32 %v17068_v50, %v17067_v10  ;;  %v11058_v17 = vrot.slane %v11044_v29, %v22490_v39  ;;  %v10882_v21 = vrot.slane %v10803_v37, 1  ;;  %v10880_v12 = vsel %vm136_vm1, %v10878_v62, %v10879_v2 }
 0x3e8   :  { %v17070_v60 = vpop.f32.mrf.mxu1  ;;  %v10579_v63 = vcombine.low %v10571_v19, %v10578_v24 }
 0x3e9   :  { %v9822_v28 = vadd.f32 %v17069_v9, %v22496_v0  ;;  %v11059_v42 = vcombine.low %v11051_v48, %v11058_v17 }
 0x3ea   :  { %v17071_v20 = vpop.f32.mrf.mxu1  ;;  %v10881_v5 = vrot.slane %v10579_v63, 1  ;;  %v16992_v46 = vpack.c.bf16 %v10579_v63, %v10562_v11 }
 0x3eb   :  { %v10050_v8 = vcombine.high %v9822_v28, %v9822_v28  ;;  %v10057_v44 = vrot.slane %v9822_v28, %v22490_v39  ;;  %v17072_v43 = vadd.f32 %v17071_v20, %v17070_v60  ;;  %v16994_v27 = vpack.c.bf16 %v11059_v42, %v11042_v51 }
 0x3ec   :  { %v10883_v36 = vsel %vm136_vm1, %v10881_v5, %v10882_v21 }
 0x3ed   :  { %v10064_v22 = vrot.slane %v10050_v8, %v22490_v39  ;;  %v10065_v13 = vcombine.high %v10057_v44, %v10057_v44  ;;  %v9825_v15 = vadd.f32 %v17072_v43, %v22501_v53  ;;  %11880 = vmatmul.mubr.bf16.gmra.mxu1 %v16994_v27  ;;  %v16993_v33 = vpack.c.bf16 %v10883_v36, %v10880_v12 }
 0x3ee   :  { %11889 = vmatprep.mubr.bf16.mxu1 %v18604_v3  ;;  %v10340_v32 = vmax.f32 %v10057_v44, 0.0 }
 0x3ef   :  { %v10066_v26 = vcombine.high %v10064_v22, %v10064_v22  ;;  %v10067_v58 = vcombine.high %v9825_v15, %v9825_v15  ;;  %v10074_v59 = vrot.slane %v9825_v15, %v22490_v39  ;;  %v10341_v30 = vmax.f32 %v10065_v13, 0.0  ;;  %11766 = vmatprep.mubr.bf16.mxu0 %v16993_v33 }
 0x3f0   :  { %v10342_v41 = vmax.f32 %v10064_v22, 0.0  ;;  %11767 = vmatmul.mubr.bf16.gmra.mxu0 %v16992_v46 }
 0x3f1   :  { %v17073_v31 = vpop.f32.mrf.mxu1  ;;  %v10343_v57 = vmax.f32 %v10066_v26, 0.0  ;;  %v10081_v40 = vrot.slane %v10067_v58, %v22490_v39  ;;  %v10082_v54 = vcombine.high %v10074_v59, %v10074_v59  ;;  %v10344_v6 = vmax.f32 %v10074_v59, 0.0 }
 0x3f2   :  { %v10580_v10 = vcombine.low %v10340_v32, %v10341_v30  ;;  %v11060_v38 = vcombine.low %v10341_v30, %v10342_v41 }
 0x3f3   :  { %v17074_v52 = vpop.f32.mrf.mxu1  ;;  %v10581_v45 = vcombine.low %v10342_v41, %v10343_v57  ;;  %v10083_v25 = vcombine.high %v10081_v40, %v10081_v40  ;;  %v10345_v47 = vmax.f32 %v10082_v54, 0.0  ;;  %v10346_v16 = vmax.f32 %v10081_v40, 0.0 }
 0x3f4   :  { %v17075_v56 = vadd.f32 %v17074_v52, %v17073_v31  ;;  %v11061_v11 = vcombine.low %v10343_v57, %v10344_v6  ;;  %v10588_v60 = vrot.slane %v10580_v10, %v22490_v39  ;;  %v10810_v37 = vrot.slane %v10344_v6, %v22490_v39 }
 0x3f5   :  { %v17076_v49 = vpop.f32.mrf.mxu1  ;;  %v10595_v50 = vrot.slane %v10581_v45, %v22490_v39  ;;  %v10347_v9 = vmax.f32 %v10083_v25, 0.0  ;;  %v10597_v29 = vcombine.low %v10345_v47, %v10346_v16  ;;  %v11068_v48 = vrot.slane %v11060_v38, %v22490_v39 }
 0x3f6   :  { %v9830_v7 = vadd.f32 %v17075_v56, %v22507_v55  ;;  %v11075_v42 = vrot.slane %v11061_v11, %v22490_v39  ;;  %v10885_v57 = vrot.slane %v10810_v37, 1 }
 0x3f7   :  { %v17077_v18 = vpop.f32.mrf.mxu1  ;;  %v11077_v8 = vcombine.low %v10346_v16, %v10347_v9  ;;  %v10596_v44 = vcombine.low %v10588_v60, %v10595_v50  ;;  %v10605_v5 = vrot.slane %v10597_v29, %v22490_v39 }
 0x3f8   :  { %v17078_v14 = vadd.f32 %v17077_v18, %v17076_v49  ;;  %v10084_v19 = vcombine.high %v9830_v7, %v9830_v7  ;;  %v10091_v24 = vrot.slane %v9830_v7, %v22490_v39  ;;  %v11076_v52 = vcombine.low %v11068_v48, %v11075_v42 }
 0x3f9   :  { %v11085_v12 = vrot.slane %v11077_v8, %v22490_v39  ;;  %v10884_v59 = vrot.slane %v10596_v44, 1 }
 0x3fa   :  { %v9833_v28 = vadd.f32 %v17078_v14, %v22512_v61  ;;  %v10098_v34 = vrot.slane %v10084_v19, %v22490_v39  ;;  %v10099_v20 = vcombine.high %v10091_v24, %v10091_v24  ;;  %v10348_v1 = vmax.f32 %v10091_v24, 0.0 }
 0x3fb   :  { %v10886_v10 = vsel %vm136_vm1, %v10884_v59, %v10885_v57 }
 0x3fc   :  { %v10101_v17 = vcombine.high %v9833_v28, %v9833_v28  ;;  %v10108_v63 = vrot.slane %v9833_v28, %v22490_v39  ;;  %v10100_v43 = vcombine.high %v10098_v34, %v10098_v34  ;;  %v10349_v62 = vmax.f32 %v10099_v20, 0.0 }
 0x3fd   :  { %v10598_v51 = vcombine.low %v10347_v9, %v10348_v1  ;;  %v10350_v21 = vmax.f32 %v10098_v34, 0.0 }
 0x3fe   :  { %v10115_v22 = vrot.slane %v10101_v17, %v22490_v39  ;;  %v10116_v13 = vcombine.high %v10108_v63, %v10108_v63  ;;  %v10351_v15 = vmax.f32 %v10100_v43, 0.0  ;;  %v10817_v27 = vrot.slane %v10349_v62, %v22490_v39 }
 0x3ff   :  { %v10612_v2 = vrot.slane %v10598_v51, %v22490_v39  ;;  %v11078_v36 = vcombine.low %v10348_v1, %v10349_v62  ;;  %v10352_v26 = vmax.f32 %v10108_v63, 0.0 }
 0x400   :  { %v10353_v58 = vmax.f32 %v10116_v13, 0.0  ;;  %v10614_v31 = vcombine.low %v10350_v21, %v10351_v15  ;;  %v10354_v33 = vmax.f32 %v10115_v22, 0.0  ;;  %v10888_v25 = vrot.slane %v10817_v27, 1 }
 0x401   :  { %v11092_v30 = vrot.slane %v11078_v36, %v22490_v39  ;;  %v10613_v41 = vcombine.low %v10605_v5, %v10612_v2  ;;  %v10117_v6 = vcombine.high %v10115_v22, %v10115_v22  ;;  %v11094_v14 = vcombine.low %v10351_v15, %v10352_v26 }
 0x402   :  { %v17079_v46 = vpop.f32.mrf.mxu1  ;;  %v10615_v40 = vcombine.low %v10352_v26, %v10353_v58  ;;  %v10622_v47 = vrot.slane %v10614_v31, %v22490_v39  ;;  %v11095_v16 = vcombine.low %v10353_v58, %v10354_v33  ;;  %v10824_v20 = vrot.slane %v10354_v33, %v22490_v39 }
 0x403   :  { %v11093_v32 = vcombine.low %v11085_v12, %v11092_v30  ;;  %v10887_v45 = vrot.slane %v10613_v41, 1  ;;  %v16995_v19 = vpack.c.bf16 %v10613_v41, %v10596_v44  ;;  %v10355_v60 = vmax.f32 %v10117_v6, 0.0 }
 0x404   :  { %v17080_v54 = vpop.f32.mrf.mxu1  ;;  %v10629_v56 = vrot.slane %v10615_v40, %v22490_v39  ;;  %v11109_v34 = vrot.slane %v11095_v16, %v22490_v39  ;;  %v11102_v44 = vrot.slane %v11094_v14, %v22490_v39  ;;  %v10891_v2 = vrot.slane %v10824_v20, 1 }
 0x405   :  { %v17081_v49 = vadd.f32 %v17080_v54, %v17079_v46  ;;  %v16997_v7 = vpack.c.bf16 %v11093_v32, %v11076_v52  ;;  %v10889_v18 = vsel %vm136_vm1, %v10887_v45, %v10888_v25 }
 0x406   :  { %v17082_v38 = vpop.f32.mrf.mxu1  ;;  %v16996_v9 = vpack.c.bf16 %v10889_v18, %v10886_v10  ;;  %v22622_v24 = vcombine.low %v10622_v47, %v10629_v56 }
 0x407   :  { %v9838_v50 = vadd.f32 %v17081_v49, %v22522_v35  ;;  %11890 = vmatmul.mubr.bf16.gmra.mxu1 %v16997_v7 }
 0x408   :  { %v17083_v11 = vpop.f32.mrf.mxu1  ;;  %11776 = vmatprep.mubr.bf16.mxu0 %v16996_v9  ;;  %11899 = vmatprep.mubr.bf16.mxu1 %v18604_v3  ;;  %v10890_v43 = vrot.slane %v22622_v24, 1 }
 0x409   :  { %v10118_v29 = vcombine.high %v9838_v50, %v9838_v50  ;;  %v10125_v37 = vrot.slane %v9838_v50, %v22490_v39  ;;  %v17084_v28 = vadd.f32 %v17083_v11, %v17082_v38  ;;  %11777 = vmatmul.mubr.bf16.gmra.mxu0 %v16995_v19 }
 0x40a   :  { %v22636_v33 = vsel %vm136_vm1, %v10890_v43, %v10891_v2 }
 0x40b   :  { %v10132_v1 = vrot.slane %v10118_v29, %v22490_v39  ;;  %v10133_v48 = vcombine.high %v10125_v37, %v10125_v37  ;;  %v10356_v17 = vmax.f32 %v10125_v37, 0.0  ;;  %v9841_v63 = vadd.f32 %v17084_v28, %v22496_v0 }
 0x40c   :  { %v17085_v8 = vpop.f32.mrf.mxu1  ;;  %v11110_v0 = vcombine.low %v11102_v44, %v11109_v34 }
 0x40d   :  { %v10134_v62 = vcombine.high %v10132_v1, %v10132_v1  ;;  %v10357_v51 = vmax.f32 %v10133_v48, 0.0  ;;  %v10358_v42 = vmax.f32 %v10132_v1, 0.0  ;;  %v10631_v5 = vcombine.low %v10355_v60, %v10356_v17 }
 0x40e   :  { %v17086_v21 = vpop.f32.mrf.mxu1  ;;  %v10135_v22 = vcombine.high %v9841_v63, %v9841_v63  ;;  %v10142_v13 = vrot.slane %v9841_v63, %v22490_v39 }
 0x40f   :  { %v17087_v15 = vadd.f32 %v17086_v21, %v17085_v8  ;;  %v10359_v27 = vmax.f32 %v10134_v62, 0.0  ;;  %v10632_v36 = vcombine.low %v10357_v51, %v10358_v42  ;;  %v11111_v26 = vcombine.low %v10356_v17, %v10357_v51 }
 0x410   :  { %v17088_v58 = vpop.f32.mrf.mxu1  ;;  %v10149_v12 = vrot.slane %v10135_v22, %v22490_v39  ;;  %v10150_v59 = vcombine.high %v10142_v13, %v10142_v13  ;;  %v10639_v46 = vrot.slane %v10631_v5, %v22490_v39  ;;  %v10360_v41 = vmax.f32 %v10142_v13, 0.0 }
 0x411   :  { %v9846_v31 = vadd.f32 %v17087_v15, %v22501_v53  ;;  %v10646_v30 = vrot.slane %v10632_v36, %v22490_v39  ;;  %v11112_v40 = vcombine.low %v10358_v42, %v10359_v27  ;;  %v11119_v45 = vrot.slane %v11111_v26, %v22490_v39 }
 0x412   :  { %v17089_v57 = vpop.f32.mrf.mxu1  ;;  %v10151_v54 = vcombine.high %v10149_v12, %v10149_v12  ;;  %v10361_v52 = vmax.f32 %v10150_v59, 0.0  ;;  %v10362_v25 = vmax.f32 %v10149_v12, 0.0  ;;  %v10831_v29 = vrot.slane %v10359_v27, %v22490_v39 }
 0x413   :  { %v10152_v32 = vcombine.high %v9846_v31, %v9846_v31  ;;  %v10159_v6 = vrot.slane %v9846_v31, %v22490_v39  ;;  %v17090_v56 = vadd.f32 %v17089_v57, %v17088_v58  ;;  %v11126_v53 = vrot.slane %v11112_v40, %v22490_v39 }
 0x414   :  { %v17091_v49 = vpop.f32.mrf.mxu1  ;;  %v10363_v10 = vmax.f32 %v10151_v54, 0.0  ;;  %v22643_v47 = vcombine.low %v10360_v41, %v10361_v52  ;;  %v10647_v38 = vcombine.low %v10639_v46, %v10646_v30  ;;  %v11128_v37 = vcombine.low %v10361_v52, %v10362_v25 }
 0x415   :  { %v10166_v16 = vrot.slane %v10152_v32, %v22490_v39  ;;  %v10167_v7 = vcombine.high %v10159_v6, %v10159_v6  ;;  %v10364_v18 = vmax.f32 %v10159_v6, 0.0  ;;  %v9849_v50 = vadd.f32 %v17090_v56, %v22507_v55 }
 0x416   :  { %v11127_v9 = vcombine.low %v11119_v45, %v11126_v53  ;;  %v17092_v14 = vpop.f32.mrf.mxu1  ;;  %v22647_v11 = vcombine.low %v10362_v25, %v10363_v10  ;;  %v10656_v48 = vrot.slane %v22643_v47, %v22490_v39  ;;  %v10893_v62 = vrot.slane %v10647_v38, 1 }
 0x417   :  { %v10168_v19 = vcombine.high %v10166_v16, %v10166_v16  ;;  %v10366_v60 = vmax.f32 %v10166_v16, 0.0  ;;  %v10365_v28 = vmax.f32 %v10167_v7, 0.0  ;;  %v22651_v34 = vrot.slane %v10364_v18, %v22490_v39 }
 0x418   :  { %v10169_v20 = vcombine.high %v9849_v50, %v9849_v50  ;;  %v17094_v1 = vpop.f32.mrf.mxu1  ;;  %v10176_v55 = vrot.slane %v9849_v50, %v22490_v39  ;;  %v17000_v63 = vpack.c.bf16 %v11127_v9, %v11110_v0  ;;  %v11129_v44 = vcombine.low %v10363_v10, %v10364_v18 }
 0x419   :  { %v10367_v17 = vmax.f32 %v10168_v19, 0.0  ;;  %v22656_v8 = vcombine.low %v10365_v28, %v10366_v60  ;;  %v10663_v42 = vrot.slane %v22647_v11, %v22490_v39  ;;  %v10894_v22 = vrot.slane %v10831_v29, 1 }
 0x41a   :  { %v10183_v43 = vrot.slane %v10169_v20, %v22490_v39  ;;  %v17095_v51 = vpop.f32.mrf.mxu1  ;;  %v10184_v5 = vcombine.high %v10176_v55, %v10176_v55  ;;  %v10368_v21 = vmax.f32 %v10176_v55, 0.0  ;;  %11900 = vmatmul.mubr.bf16.gmra.mxu1 %v17000_v63  ;;  %v10897_v13 = vrot.slane %v22651_v34, 1 }
 0x41b   :  { %v16998_v2 = vpack.c.bf16 %v10647_v38, %v22622_v24  ;;  %v17093_v27 = vadd.f32 %v17092_v14, %v17091_v49  ;;  %11909 = vmatprep.mubr.bf16.mxu1 %v18604_v3  ;;  %v10895_v58 = vsel %vm136_vm1, %v10893_v62, %v10894_v22  ;;  %v17096_v0 = vadd.f32 %v17095_v51, %v17094_v1 }
 0x41c   :  { %v10185_v15 = vcombine.high %v10183_v43, %v10183_v43  ;;  %v10369_v36 = vmax.f32 %v10184_v5, 0.0  ;;  %v10666_v26 = vcombine.low %v10367_v17, %v10368_v21  ;;  %v10673_v12 = vrot.slane %v22656_v8, %v22490_v39 }
 0x41d   :  { %v16999_v31 = vpack.c.bf16 %v10895_v58, %v22636_v33  ;;  %v9854_v46 = vadd.f32 %v17093_v27, %v22512_v61  ;;  %v10370_v30 = vmax.f32 %v10183_v43, 0.0  ;;  %v9857_v24 = vadd.f32 %v17096_v0, %v22522_v35 }
 0x41e   :  { %v10371_v59 = vmax.f32 %v10185_v15, 0.0  ;;  %v11146_v41 = vcombine.low %v10368_v21, %v10369_v36  ;;  %v11136_v57 = vrot.slane %v11128_v37, %v22490_v39  ;;  %v10680_v40 = vrot.slane %v10666_v26, %v22490_v39 }
 0x41f   :  { %11786 = vmatprep.mubr.bf16.mxu0 %v16999_v31  ;;  %v10186_v54 = vcombine.high %v9854_v46, %v9854_v46  ;;  %v10193_v52 = vrot.slane %v9854_v46, %v22490_v39  ;;  %v11143_v32 = vrot.slane %v11129_v44, %v22490_v39  ;;  %v10845_v45 = vrot.slane %v10369_v36, %v22490_v39 }
 0x420   :  { %11787 = vmatmul.mubr.bf16.gmra.mxu0 %v16998_v2  ;;  %v10203_v33 = vcombine.high %v9857_v24, %v9857_v24  ;;  %v10210_v61 = vrot.slane %v9857_v24, %v22490_v39  ;;  %v11145_v25 = vcombine.low %v10366_v60, %v10367_v17  ;;  %v10682_v6 = vcombine.low %v10370_v30, %v10371_v59 }
 0x421   :  { %v10200_v35 = vrot.slane %v10186_v54, %v22490_v39  ;;  %v10201_v56 = vcombine.high %v10193_v52, %v10193_v52  ;;  %v10372_v53 = vmax.f32 %v10193_v52, 0.0  ;;  %v11160_v16 = vrot.slane %v11146_v41, %v22490_v39 }
 0x422   :  { %v10217_v49 = vrot.slane %v10203_v33, %v22490_v39  ;;  %v10218_v10 = vcombine.high %v10210_v61, %v10210_v61  ;;  %v10376_v47 = vmax.f32 %v10210_v61, 0.0  ;;  %v11144_v50 = vcombine.low %v11136_v57, %v11143_v32 }
 0x423   :  { %v10202_v38 = vcombine.high %v10200_v35, %v10200_v35  ;;  %v10373_v7 = vmax.f32 %v10201_v56, 0.0  ;;  %v10374_v18 = vmax.f32 %v10200_v35, 0.0  ;;  %v11153_v19 = vrot.slane %v11145_v25, %v22490_v39  ;;  %v11308_v56 = vld [vmem:[%s24679_s6] sm:$0x3] }
 0x424   :  { %v10219_v9 = vcombine.high %v10217_v49, %v10217_v49  ;;  %v10377_v14 = vmax.f32 %v10218_v10, 0.0  ;;  %v10378_v11 = vmax.f32 %v10217_v49, 0.0  ;;  %v11162_v37 = vcombine.low %v10371_v59, %v10372_v53 }
 0x425   :  { %v10375_v60 = vmax.f32 %v10202_v38, 0.0  ;;  %v10683_v29 = vcombine.low %v10372_v53, %v10373_v7  ;;  %v10664_v28 = vcombine.low %v10656_v48, %v10663_v42  ;;  %v11163_v20 = vcombine.low %v10373_v7, %v10374_v18 }
 0x426   :  { %v10379_v1 = vmax.f32 %v10219_v9, 0.0  ;;  %v10700_v17 = vcombine.low %v10377_v14, %v10378_v11  ;;  %v11161_v55 = vcombine.low %v11153_v19, %v11160_v16  ;;  %v10690_v63 = vrot.slane %v10682_v6, %v22490_v39 }
 0x427   :  { %v10697_v8 = vrot.slane %v10683_v29, %v22490_v39  ;;  %v10699_v44 = vcombine.low %v10375_v60, %v10376_v47  ;;  %v10681_v43 = vcombine.low %v10673_v12, %v10680_v40  ;;  %v11179_v51 = vcombine.low %v10376_v47, %v10377_v14 }
 0x428   :  { %v10714_v62 = vrot.slane %v10700_v17, %v22490_v39  ;;  %v17003_v5 = vpack.c.bf16 %v11161_v55, %v11144_v50  ;;  %v10896_v21 = vrot.slane %v10664_v28, 1  ;;  %v10900_v2 = vrot.slane %v10845_v45, 1 }
 0x429   :  { %v10707_v22 = vrot.slane %v10699_v44, %v22490_v39  ;;  %v10899_v15 = vrot.slane %v10681_v43, 1  ;;  %v11170_v48 = vrot.slane %v11162_v37, %v22490_v39  ;;  %v11177_v27 = vrot.slane %v11163_v20, %v22490_v39 }
 0x42a   :  { %11910 = vmatmul.mubr.bf16.gmra.mxu1 %v17003_v5  ;;  %v10898_v42 = vsel %vm136_vm1, %v10896_v21, %v10897_v13  ;;  %v11180_v36 = vcombine.low %v10378_v11, %v10379_v1  ;;  %v10698_v26 = vcombine.low %v10690_v63, %v10697_v8  ;;  %v10852_v12 = vrot.slane %v10374_v18, %v22490_v39 }
 0x42b   :  { %v10901_v58 = vsel %vm136_vm1, %v10899_v15, %v10900_v2  ;;  %11919 = vmatprep.mubr.bf16.mxu1 %v18604_v3  ;;  %v10715_v0 = vcombine.low %v10707_v22, %v10714_v62  ;;  %v10859_v59 = vrot.slane %v10379_v1, %v22490_v39  ;;  %v11187_v46 = vrot.slane %v11179_v51, %v22490_v39 }
 0x42c   :  { %v17002_v31 = vpack.c.bf16 %v10901_v58, %v10898_v42  ;;  %v11194_v34 = vrot.slane %v11180_v36, %v22490_v39  ;;  %v10902_v30 = vrot.slane %v10698_v26, 1  ;;  %v17001_v13 = vpack.c.bf16 %v10681_v43, %v10664_v28 }
 0x42d   :  { %v10903_v41 = vrot.slane %v10852_v12, 1  ;;  %v10905_v24 = vrot.slane %v10715_v0, 1  ;;  %v10906_v57 = vrot.slane %v10859_v59, 1  ;;  %v11178_v40 = vcombine.low %v11170_v48, %v11177_v27 }
 0x42e   :  { %11796 = vmatprep.mubr.bf16.mxu0 %v17002_v31  ;;  %v11195_v54 = vcombine.low %v11187_v46, %v11194_v34  ;;  %v17004_v33 = vpack.c.bf16 %v10715_v0, %v10698_v26  ;;  %v22698_v6 = vsub.s32 0, %v25136_v23  ;;  %v11316_v53 = vsub.s32 1, %v25136_v23 }
 0x42f   :  { %11797 = vmatmul.mubr.bf16.gmra.mxu0 %v17001_v13  ;;  %v10904_v3 = vsel %vm136_vm1, %v10902_v30, %v10903_v41  ;;  %v10907_v52 = vsel %vm136_vm1, %v10905_v24, %v10906_v57 }
 0x430   :  { %v17006_v32 = vpack.c.bf16 %v11195_v54, %v11178_v40  ;;  %v17005_v45 = vpack.c.bf16 %v10907_v52, %v10904_v3  ;;  %25137 = vst [vmem:[#allocation71_spill] sm:$0xff] %v22698_v6  ;;  %v22705_v10 = vrot.slane %v11308_v56, %v22698_v6  ;;  %v22707_v16 = vrot.slane %v11308_v56, %v11316_v53 }
 0x432   :  { %11920 = vmatmul.mubr.bf16.gmra.mxu1 %v17006_v32  ;;  %11806 = vmatprep.mubr.bf16.mxu0 %v17005_v45 }
 0x437   :  { %11807 = vmatmul.mubr.bf16.gmra.mxu0 %v17004_v33 }
 0x474   :  { %v11851_v39 = vpop.f32.mrf.mxu1 }
 0x476   :  { %v11738_v61 = vpop.f32.mrf.mxu0  ;;  %v11853_v35 = vpop.f32.mrf.mxu1 }
 0x477   :  { %v11739_v7 = vadd.f32 %v11738_v61, %v22705_v10 }
 0x478   :  { %v11740_v25 = vpop.f32.mrf.mxu0  ;;  %v11855_v47 = vpop.f32.mrf.mxu1 }
 0x479   :  { %v11741_v9 = vadd.f32 %v11740_v25, %v22707_v16  ;;  %v11852_v19 = vadd.f32 %v11851_v39, %v11739_v7 }
 0x47a   :  { %v11742_v49 = vpop.f32.mrf.mxu0  ;;  %v11857_v50 = vpop.f32.mrf.mxu1 }
 0x47b   :  { %v11743_v18 = vadd.f32 %v11742_v49, %v22705_v10  ;;  %v11854_v29 = vadd.f32 %v11853_v35, %v11741_v9  ;;  %v22715_v55 = vmax.f32 %v11852_v19, 0.0 }
 0x47c   :  { %v11744_v38 = vpop.f32.mrf.mxu0 }
 0x47d   :  { %v11745_v14 = vadd.f32 %v11744_v38, %v22707_v16  ;;  %v11856_v23 = vadd.f32 %v11855_v47, %v11743_v18  ;;  %v22719_v44 = vmax.f32 %v11854_v29, 0.0  ;;  %v12061_v2 = vrot.slane %v22715_v55, 1  ;;  %v18177_v29 = vld [vmem:[%s24680_s7 + $0x70] sm:$0xff]  }
 0x47e   :  { %v12134_v48 = vrot.slane %v22715_v55, 2  ;;  %v12204_v34 = vrot.slane %v22715_v55, 3  ;;  %v12277_v45 = vrot.slane %v22715_v55, 4  ;;  %v12348_v47 = vrot.slane %v22715_v55, 5 }
 0x47f   :  { %v11858_v28 = vadd.f32 %v11857_v50, %v11745_v14  ;;  %v22717_v63 = vmax.f32 %v11856_v23, 0.0  ;;  %v12075_v58 = vrot.slane %v22719_v44, 1  ;;  %v12148_v0 = vrot.slane %v22719_v44, 2  ;;  %v18175_v23 = vld [vmem:[%s24680_s7 + $0x78] sm:$0xff]  }
 0x480   :  { %v12218_v13 = vrot.slane %v22719_v44, 3  ;;  %v12291_v35 = vrot.slane %v22719_v44, 4  ;;  %17097 = vmatprep.subr.bf16.mxu0 %v18175_v23 }
 0x481   :  { %v22722_v51 = vmax.f32 %v11858_v28, 0.0  ;;  %v12135_v42 = vrot.slane %v22717_v63, 1  ;;  %v12205_v27 = vrot.slane %v22717_v63, 2  ;;  %v12062_v31 = vsel %vm11995_vm9, %v22717_v63, %v12061_v2 }
 0x482   :  { %v12278_v24 = vrot.slane %v22717_v63, 3  ;;  %v12349_v33 = vrot.slane %v22717_v63, 4  ;;  %v11994_v23 = vrot.slane %v22717_v63, 7 }
 0x483   :  { %v12149_v46 = vrot.slane %v22722_v51, 1  ;;  %v12219_v41 = vrot.slane %v22722_v51, 2  ;;  %v12076_v57 = vsel %vm11995_vm9, %v22722_v51, %v12075_v58  ;;  %v12136_v40 = vsel %vm11995_vm9, %v12135_v42, %v12134_v48 }
 0x484   :  { %v12206_v54 = vsel %vm11995_vm9, %v12205_v27, %v12204_v34  ;;  %v12292_v3 = vrot.slane %v22722_v51, 3  ;;  %v12279_v49 = vsel %vm11995_vm9, %v12278_v24, %v12277_v45  ;;  %v12350_v19 = vsel %vm11995_vm9, %v12349_v33, %v12348_v47  ;;  %v18178_v27 = vld [vmem:[%s24680_s7 + $0x30] sm:$0xff]  }
 0x485   :  { %v12150_v61 = vsel %vm11995_vm9, %v12149_v46, %v12148_v0  ;;  %v12220_v53 = vsel %vm11995_vm9, %v12219_v41, %v12218_v13  ;;  %v12363_v41 = vrot.slane %v22722_v51, 4  ;;  %v18184_v24 = vld [vmem:[%s24680_s7 + $0xb0] sm:$0xff]  }
 0x486   :  { %v12293_v50 = vsel %vm11995_vm9, %v12292_v3, %v12291_v35  ;;  %v18182_v35 = vld [vmem:[%s24680_s7 + $0x28] sm:$0xff]  }
 0x488   :  { %v11861_v11 = vpop.f32.mrf.mxu1 }
 0x48a   :  { %v11748_v60 = vpop.f32.mrf.mxu0  ;;  %v11863_v20 = vpop.f32.mrf.mxu1 }
 0x48b   :  { %v11749_v37 = vadd.f32 %v11748_v60, %v22705_v10  ;;  %v18176_v60 = vld [vmem:[%s24680_s7 + $0x38] sm:$0xff]  }
 0x48c   :  { %v11750_v1 = vpop.f32.mrf.mxu0  ;;  %v11865_v21 = vpop.f32.mrf.mxu1  ;;  %17098 = vmatpush3.bf16.msra.mxu0 %v18176_v60 }
 0x48d   :  { %v11751_v17 = vadd.f32 %v11750_v1, %v22707_v16  ;;  %v11862_v43 = vadd.f32 %v11861_v11, %v11749_v37  ;;  %17099 = vmatprep.subr.bf16.mxu0 %v18177_v29 }
 0x48e   :  { %v11752_v8 = vpop.f32.mrf.mxu0  ;;  %v11867_v59 = vpop.f32.mrf.mxu1 }
 0x48f   :  { %v11753_v62 = vadd.f32 %v11752_v8, %v22705_v10  ;;  %v11864_v5 = vadd.f32 %v11863_v20, %v11751_v17  ;;  %v22729_v36 = vmax.f32 %v11862_v43, 0.0  ;;  %v18179_v17 = vld [vmem:[%s24680_s7 + $0xf8] sm:$0xff]  }
 0x490   :  { %v11754_v22 = vpop.f32.mrf.mxu0  ;;  %v18180_v8 = vld [vmem:[%s24680_s7 + $0xb8] sm:$0xff]   ;;  %17119 = vmatprep.subr.bf16.mxu1 %v18179_v17  ;;  %17100 = vmatpush3.bf16.msra.mxu0 %v18178_v27 }
 0x491   :  { %v11755_v15 = vadd.f32 %v11754_v22, %v22707_v16  ;;  %v11866_v26 = vadd.f32 %v11865_v21, %v11753_v62  ;;  %v22733_v12 = vmax.f32 %v11864_v5, 0.0  ;;  %v12207_v32 = vrot.slane %v22729_v36, 1  ;;  %v18183_v22 = vld [vmem:[%s24680_s7 + $0xf0] sm:$0xff]   ;;  %17120 = vmatpush3.bf16.msra.mxu1 %v18180_v8  ;;  %v18189_v27 = vld [vmem:[%s24680_s7 + $0x58] sm:$0xff]  }
 0x492   :  { %v12063_v39 = vrot.slane %v22729_v36, 7  ;;  %v12137_v7 = vsel %vm11998_vm10, %v22729_v36, %v12136_v40  ;;  %v12280_v18 = vrot.slane %v22729_v36, 2  ;;  %17121 = vmatprep.subr.bf16.mxu1 %v18183_v22 }
 0x493   :  { %v11868_v30 = vadd.f32 %v11867_v59, %v11755_v15  ;;  %v22747_v52 = vmax.f32 %v11866_v26, 0.0  ;;  %v12221_v25 = vrot.slane %v22733_v12, 1  ;;  %v12077_v38 = vrot.slane %v22733_v12, 7 }
 0x494   :  { %v12208_v11 = vsel %vm11998_vm10, %v12207_v32, %v12206_v54  ;;  %v12064_v37 = vsel %vm11998_vm10, %v12063_v39, %v12062_v31  ;;  %v12294_v1 = vrot.slane %v22733_v12, 2  ;;  %v12151_v62 = vsel %vm11998_vm10, %v22733_v12, %v12150_v61  ;;  %v18181_v31 = vld [vmem:[%s24680_s7 + $0x68] sm:$0xff]  }
 0x495   :  { %v22756_v56 = vmax.f32 %v11868_v30, 0.0  ;;  %v12065_v9 = vrot.slane %v22747_v52, 6  ;;  %v12138_v14 = vrot.slane %v22747_v52, 7  ;;  %v12222_v28 = vsel %vm11998_vm10, %v12221_v25, %v12220_v53  ;;  %v18187_v32 = vld [vmem:[%s24680_s7 + $0xe8] sm:$0xff]   ;;  %17101 = vmatprep.subr.bf16.mxu0 %v18181_v31  ;;  %17122 = vmatpush3.bf16.msra.mxu1 %v18184_v24 }
 0x496   :  { %v12282_v20 = vrot.slane %v22747_v52, 1  ;;  %v12078_v2 = vsel %vm11998_vm10, %v12077_v38, %v12076_v57  ;;  %v22800_v48 = vsel %vm12001_vm11, %v22747_v52, %v12208_v11  ;;  %v12281_v42 = vsel %vm11998_vm10, %v12280_v18, %v12279_v49  ;;  %v18185_v18 = vld [vmem:[%s24680_s7 + $0x60] sm:$0xff]   ;;  %v18188_v11 = vld [vmem:[%s24680_s7 + $0xa8] sm:$0xff]   ;;  %17123 = vmatprep.subr.bf16.mxu1 %v18187_v32  ;;  %17102 = vmatpush3.bf16.msra.mxu0 %v18182_v35  ;;  %v18195_v32 = vld [vmem:[%s24680_s7 + $0xd8] sm:$0xff]  }
 0x497   :  { %v12079_v43 = vrot.slane %v22756_v56, 6  ;;  %v12152_v5 = vrot.slane %v22756_v56, 7  ;;  %v12296_v21 = vrot.slane %v22756_v56, 1  ;;  %v22807_v26 = vsel %vm12001_vm11, %v12065_v9, %v12064_v37  ;;  %17103 = vmatprep.subr.bf16.mxu0 %v18185_v18 }
 0x498   :  { %v22810_v58 = vsel %vm12001_vm11, %v12138_v14, %v12137_v7  ;;  %v22814_v0 = vsel %vm12001_vm11, %v22756_v56, %v12222_v28  ;;  %v12351_v59 = vrot.slane %v22729_v36, 3  ;;  %v22821_v34 = vsel %vm12001_vm11, %v12282_v20, %v12281_v42  ;;  %v18191_v20 = vld [vmem:[%s24680_s7 + $0xe0] sm:$0xff]  }
 0x499   :  { %v12295_v30 = vsel %vm11998_vm10, %v12294_v1, %v12293_v50  ;;  %v12353_v13 = vrot.slane %v22747_v52, 2  ;;  %v22830_v57 = vsel %vm12001_vm11, %v12079_v43, %v12078_v2  ;;  %v22833_v40 = vsel %vm12001_vm11, %v12152_v5, %v12151_v62  ;;  %v18186_v5 = vld [vmem:[%s24680_s7 + $0x20] sm:$0xff]   ;;  %17124 = vmatpush3.bf16.msra.mxu1 %v18188_v11 }
 0x49a   :  { %v22836_v54 = vsel %vm12001_vm11, %v12296_v21, %v12295_v30  ;;  %v12365_v3 = vrot.slane %v22733_v12, 3  ;;  %v12362_v61 = vrot.slane %v22719_v44, 5  ;;  %v12422_v25 = vrot.slane %v22717_v63, 5  ;;  %17125 = vmatprep.subr.bf16.mxu1 %v18191_v20  ;;  %17104 = vmatpush3.bf16.msra.mxu0 %v18186_v5 }
 0x49b   :  { %v12015_v53 = vrot.slane %v22722_v51, 7  ;;  %v12352_v47 = vsel %vm11998_vm10, %v12351_v59, %v12350_v19  ;;  %v12367_v38 = vrot.slane %v22756_v56, 2  ;;  %v12421_v7 = vrot.slane %v22715_v55, 6  ;;  %17105 = vmatprep.subr.bf16.mxu0 %v18189_v27 }
 0x49c   :  { %v22857_v9 = vsel %vm12001_vm11, %v12353_v13, %v12352_v47  ;;  %v12364_v14 = vsel %vm11995_vm9, %v12363_v41, %v12362_v61  ;;  %v12424_v37 = vrot.slane %v22729_v36, 4  ;;  %v12426_v28 = vrot.slane %v22747_v52, 3  ;;  %v18192_v13 = vld [vmem:[%s24680_s7 + $0xa0] sm:$0xff]   ;;  %v18193_v47 = vld [vmem:[%s24680_s7 + $0x50] sm:$0xff]  }
 0x49d   :  { %v22865_v19 = vsel %vm11995_vm9, %v12015_v53, %v22719_v44  ;;  %v12366_v29 = vsel %vm11998_vm10, %v12365_v3, %v12364_v14  ;;  %v12423_v43 = vsel %vm11995_vm9, %v12422_v25, %v12421_v7  ;;  %v12436_v62 = vrot.slane %v22722_v51, 5  ;;  %17126 = vmatpush3.bf16.msra.mxu1 %v18192_v13 }
 0x49e   :  { %v22882_v21 = vsel %vm11995_vm9, %v11994_v23, %v22715_v55  ;;  %v22885_v2 = vsel %vm12001_vm11, %v12367_v38, %v12366_v29  ;;  %v12493_v42 = vrot.slane %v22717_v63, 6  ;;  %v12495_v30 = vrot.slane %v22729_v36, 5  ;;  %17127 = vmatprep.subr.bf16.mxu1 %v18195_v32 }
 0x49f   :  { %v12440_v41 = vrot.slane %v22756_v56, 3  ;;  %v12492_v63 = vrot.slane %v22715_v55, 7  ;;  %v12497_v24 = vrot.slane %v22747_v52, 4  ;;  %v12507_v3 = vrot.slane %v22722_v51, 6  ;;  %v18190_v55 = vld [vmem:[%s24680_s7 + $0x18] sm:$0xff]  }
 0x4a0   :  { %v11871_v15 = vpop.f32.mrf.mxu1  ;;  %v12509_v25 = vrot.slane %v22733_v12, 5  ;;  %v12506_v53 = vrot.slane %v22719_v44, 7  ;;  %17106 = vmatpush3.bf16.msra.mxu0 %v18190_v55  ;;  %v12017_v13 = vrot.slane %v22733_v12, 6 }
 0x4a1   :  { %v12494_v35 = vsel %vm11995_vm9, %v12493_v42, %v12492_v63  ;;  %17107 = vmatprep.subr.bf16.mxu0 %v18193_v47  ;;  %v18197_v42 = vld [vmem:[%s24680_s7 + $0x48] sm:$0xff]  }
 0x4a2   :  { %v11758_v46 = vpop.f32.mrf.mxu0  ;;  %v11873_v33 = vpop.f32.mrf.mxu1  ;;  %v12496_v14 = vsel %vm11998_vm10, %v12495_v30, %v12494_v35  ;;  %v12508_v29 = vsel %vm11995_vm9, %v12507_v3, %v12506_v53  ;;  %v18200_v30 = vld [vmem:[%s24680_s7 + $0x90] sm:$0xff]  }
 0x4a3   :  { %v11759_v45 = vadd.f32 %v11758_v46, %v22705_v10  ;;  %v12438_v46 = vrot.slane %v22733_v12, 4 }
 0x4a4   :  { %v11760_v39 = vpop.f32.mrf.mxu0  ;;  %v11875_v17 = vpop.f32.mrf.mxu1 }
 0x4a5   :  { %v11761_v49 = vadd.f32 %v11760_v39, %v22707_v16  ;;  %v11872_v1 = vadd.f32 %v11871_v15, %v11759_v45  ;;  %v12435_v15 = vrot.slane %v22719_v44, 6  ;;  %v12425_v39 = vsel %vm11998_vm10, %v12424_v37, %v12423_v43  ;;  %v18196_v44 = vld [vmem:[%s24680_s7 + $0x98] sm:$0xff]   ;;  %v18199_v37 = vld [vmem:[%s24680_s7 + $0xd0] sm:$0xff]  }
 0x4a6   :  { %v11762_v50 = vpop.f32.mrf.mxu0  ;;  %v22929_v11 = vsel %vm12001_vm11, %v12426_v28, %v12425_v39  ;;  %v12510_v28 = vsel %vm11998_vm10, %v12509_v25, %v12508_v29  ;;  %17128 = vmatpush3.bf16.msra.mxu1 %v18196_v44 }
 0x4a7   :  { %v11763_v60 = vadd.f32 %v11762_v50, %v22705_v10  ;;  %v11874_v22 = vadd.f32 %v11873_v33, %v11761_v49  ;;  %v22905_v45 = vmax.f32 %v11872_v1, 0.0  ;;  %v11877_v33 = vpop.f32.mrf.mxu1  ;;  %v12437_v61 = vsel %vm11995_vm9, %v12436_v62, %v12435_v15  ;;  %17129 = vmatprep.subr.bf16.mxu1 %v18199_v37 }
 0x4a8   :  { %v11764_v8 = vpop.f32.mrf.mxu0  ;;  %v12511_v49 = vrot.slane %v22756_v56, 4  ;;  %v12439_v50 = vsel %vm11998_vm10, %v12438_v46, %v12437_v61 }
 0x4a9   :  { %v11876_v59 = vadd.f32 %v11875_v17, %v11763_v60  ;;  %v11765_v31 = vadd.f32 %v11764_v8, %v22707_v16  ;;  %v22913_v51 = vmax.f32 %v11874_v22, 0.0  ;;  %v22932_v23 = vsel %vm12001_vm11, %v12440_v41, %v12439_v50  ;;  %v18194_v17 = vld [vmem:[%s24680_s7 + $0x10] sm:$0xff]  }
 0x4aa   :  { %v22935_v60 = vsel %vm12001_vm11, %v12497_v24, %v12496_v14  ;;  %v12067_v20 = vrot.slane %v22905_v45, 5  ;;  %v12140_v1 = vrot.slane %v22905_v45, 6  ;;  %v11997_v8 = vrot.slane %v22729_v36, 6  ;;  %17108 = vmatpush3.bf16.msra.mxu0 %v18194_v17  ;;  %17130 = vmatpush3.bf16.msra.mxu1 %v18200_v30 }
 0x4ab   :  { %v22921_v38 = vmax.f32 %v11876_v59, 0.0  ;;  %v11878_v7 = vadd.f32 %v11877_v33, %v11765_v31  ;;  %v12081_v62 = vrot.slane %v22913_v51, 5  ;;  %v12154_v5 = vrot.slane %v22913_v51, 6  ;;  %v18203_v33 = vld [vmem:[%s24680_s7 + $0xc8] sm:$0xff]   ;;  %17109 = vmatprep.subr.bf16.mxu0 %v18197_v42 }
 0x4ac   :  { %v12210_v22 = vrot.slane %v22905_v45, 7  ;;  %v22952_v15 = vsel %vm12001_vm11, %v12511_v49, %v12510_v28  ;;  %v12224_v46 = vrot.slane %v22913_v51, 7  ;;  %v12284_v3 = vsel %vm12004_vm12, %v22905_v45, %v22821_v34  ;;  %v18198_v34 = vld [vmem:[%s24680_s7 + $0x8] sm:$0xff]   ;;  %17131 = vmatprep.subr.bf16.mxu1 %v18203_v33 }
 0x4ad   :  { %v11881_v18 = vpop.f32.mrf.mxu1  ;;  %v22957_v27 = vmax.f32 %v11878_v7, 0.0  ;;  %v12069_v31 = vrot.slane %v22921_v38, 4  ;;  %v12142_v24 = vrot.slane %v22921_v38, 5  ;;  %v12355_v32 = vrot.slane %v22905_v45, 1 }
 0x4ae   :  { %v12068_v61 = vsel %vm12004_vm12, %v12067_v20, %v22807_v26  ;;  %v12141_v25 = vsel %vm12004_vm12, %v12140_v1, %v22810_v58  ;;  %v12212_v55 = vrot.slane %v22921_v38, 6  ;;  %v12082_v53 = vsel %vm12004_vm12, %v12081_v62, %v22830_v57  ;;  %v18201_v58 = vld [vmem:[%s24680_s7 + $0x40] sm:$0xff]   ;;  %17110 = vmatpush3.bf16.msra.mxu0 %v18198_v34 }
 0x4af   :  { %v11883_v59 = vpop.f32.mrf.mxu1  ;;  %v12155_v49 = vsel %vm12004_vm12, %v12154_v5, %v22833_v40  ;;  %v12211_v26 = vsel %vm12004_vm12, %v12210_v22, %v22800_v48  ;;  %v12285_v47 = vrot.slane %v22921_v38, 7  ;;  %v12070_v14 = vsel %vm12007_vm13, %v12069_v31, %v12068_v61  ;;  %17111 = vmatprep.subr.bf16.mxu0 %v18201_v58 }
 0x4b0   :  { %v11768_v43 = vpop.f32.mrf.mxu0  ;;  %v12083_v57 = vrot.slane %v22957_v27, 4  ;;  %v12225_v40 = vsel %vm12004_vm12, %v12224_v46, %v22814_v0  ;;  %v12143_v29 = vsel %vm12007_vm13, %v12142_v24, %v12141_v25  ;;  %v12156_v37 = vrot.slane %v22957_v27, 5  ;;  %v18202_v0 = vld [vmem:[%s24680_s7] sm:$0xff]  }
 0x4b1   :  { %v11769_v41 = vadd.f32 %v11768_v43, %v22705_v10  ;;  %v11885_v7 = vpop.f32.mrf.mxu1  ;;  %v12369_v20 = vrot.slane %v22913_v51, 1  ;;  %v12213_v17 = vsel %vm12007_vm13, %v12212_v55, %v12211_v26  ;;  %v12226_v43 = vrot.slane %v22957_v27, 6 }
 0x4b2   :  { %v11770_v63 = vpop.f32.mrf.mxu0  ;;  %v12298_v62 = vsel %vm12004_vm12, %v22913_v51, %v22836_v54  ;;  %v12299_v5 = vrot.slane %v22957_v27, 7  ;;  %v12428_v22 = vrot.slane %v22905_v45, 2  ;;  %v12356_v31 = vsel %vm12004_vm12, %v12355_v32, %v22857_v9  ;;  %17112 = vmatpush3.bf16.msra.mxu0 %v18202_v0 }
 0x4b3   :  { %v11771_v39 = vadd.f32 %v11770_v63, %v22707_v16  ;;  %v11882_v44 = vadd.f32 %v11881_v18, %v11769_v41  ;;  %v12286_v18 = vsel %vm12007_vm13, %v12285_v47, %v12284_v3  ;;  %v12430_v46 = vrot.slane %v22921_v38, 1 }
 0x4b4   :  { %v11772_v35 = vpop.f32.mrf.mxu0  ;;  %v12442_v30 = vrot.slane %v22913_v51, 2  ;;  %v12370_v54 = vsel %vm12004_vm12, %v12369_v20, %v22885_v2  ;;  %v12444_v24 = vrot.slane %v22957_v27, 1  ;;  %v12084_v33 = vsel %vm12007_vm13, %v12083_v57, %v12082_v53 }
 0x4b5   :  { %v11773_v50 = vadd.f32 %v11772_v35, %v22705_v10  ;;  %v11884_v1 = vadd.f32 %v11883_v59, %v11771_v39  ;;  %v11887_v59 = vpop.f32.mrf.mxu1  ;;  %v23017_v41 = vmax.f32 %v11882_v44, 0.0  ;;  %v12157_v39 = vsel %vm12007_vm13, %v12156_v37, %v12155_v49 }
 0x4b6   :  { %v11774_v48 = vpop.f32.mrf.mxu0  ;;  %v12499_v9 = vrot.slane %v22905_v45, 3  ;;  %v12227_v32 = vsel %vm12007_vm13, %v12226_v43, %v12225_v40  ;;  %v12300_v61 = vsel %vm12007_vm13, %v12299_v5, %v12298_v62  ;;  %v12357_v25 = vsel %vm12007_vm13, %v22921_v38, %v12356_v31 }
 0x4b7   :  { %v11775_v28 = vadd.f32 %v11774_v48, %v22707_v16  ;;  %v11886_v42 = vadd.f32 %v11885_v7, %v11773_v50  ;;  %v23022_v3 = vmax.f32 %v11884_v1, 0.0  ;;  %v12429_v2 = vsel %vm12004_vm12, %v12428_v22, %v22929_v11 }
 0x4b8   :  { %v23037_v34 = vsel %vm12007_vm13, %v22957_v27, %v12370_v54  ;;  %v23040_v35 = vsel %vm12007_vm13, %v12430_v46, %v12429_v2  ;;  %v12443_v53 = vsel %vm12004_vm12, %v12442_v30, %v22932_v23  ;;  %v12071_v26 = vrot.slane %v23017_v41, 3 }
 0x4b9   :  { %v11888_v63 = vadd.f32 %v11887_v59, %v11775_v28  ;;  %v23033_v55 = vmax.f32 %v11886_v42, 0.0  ;;  %v12144_v47 = vrot.slane %v23017_v41, 4  ;;  %v23049_v11 = vsel %vm12007_vm13, %v12444_v24, %v12443_v53 }
 0x4ba   :  { %v12085_v58 = vrot.slane %v23022_v3, 3  ;;  %v12158_v7 = vrot.slane %v23022_v3, 4  ;;  %v12214_v50 = vrot.slane %v23017_v41, 5  ;;  %v23056_v57 = vsel %vm12004_vm12, %v12499_v9, %v22935_v60 }
 0x4bb   :  { %v23044_v49 = vmax.f32 %v11888_v63, 0.0  ;;  %v12228_v23 = vrot.slane %v23022_v3, 5  ;;  %v12287_v40 = vrot.slane %v23017_v41, 6  ;;  %v12501_v44 = vrot.slane %v22921_v38, 2 }
 0x4bc   :  { %v12513_v48 = vrot.slane %v22913_v51, 3  ;;  %v12073_v37 = vrot.slane %v23033_v55, 2  ;;  %v12146_v20 = vrot.slane %v23033_v55, 3  ;;  %v12216_v1 = vrot.slane %v23033_v55, 4 }
 0x4bd   :  { %v12358_v28 = vrot.slane %v23017_v41, 7  ;;  %v12072_v43 = vsel %vm12010_vm14, %v12071_v26, %v12070_v14  ;;  %v12087_v60 = vrot.slane %v23044_v49, 2  ;;  %v12145_v0 = vsel %vm12010_vm14, %v12144_v47, %v12143_v29 }
 0x4be   :  { %v12160_v62 = vrot.slane %v23044_v49, 3  ;;  %v12086_v22 = vsel %vm12010_vm14, %v12085_v58, %v12084_v33  ;;  %v12159_v42 = vsel %vm12010_vm14, %v12158_v7, %v12157_v39  ;;  %v12215_v59 = vsel %vm12010_vm14, %v12214_v50, %v12213_v17 }
 0x4bf   :  { %v12230_v31 = vrot.slane %v23044_v49, 4  ;;  %v12229_v46 = vsel %vm12010_vm14, %v12228_v23, %v12227_v32  ;;  %v12288_v30 = vsel %vm12010_vm14, %v12287_v40, %v12286_v18  ;;  %v12289_v14 = vrot.slane %v23033_v55, 5 }
 0x4c0   :  { %v12301_v63 = vrot.slane %v23022_v3, 6  ;;  %v23079_v54 = vsel %vm12013_vm15, %v12073_v37, %v12072_v43  ;;  %v23082_v24 = vsel %vm12013_vm15, %v12146_v20, %v12145_v0  ;;  %v23085_v33 = vsel %vm12013_vm15, %v12216_v1, %v12215_v59 }
 0x4c1   :  { %v12018_v17 = vsel %vm11998_vm10, %v12017_v13, %v22865_v19  ;;  %v23092_v39 = vsel %vm12013_vm15, %v12087_v60, %v12086_v22  ;;  %v23095_v9 = vsel %vm12013_vm15, %v12160_v62, %v12159_v42  ;;  %v12019_v32 = vrot.slane %v22756_v56, 5 }
 0x4c2   :  { %v12021_v2 = vrot.slane %v22913_v51, 4  ;;  %v23100_v26 = vsel %vm12013_vm15, %v12230_v31, %v12229_v46  ;;  %v12303_v47 = vrot.slane %v23044_v49, 5  ;;  %v12359_v12 = vsel %vm12010_vm14, %v12358_v28, %v12357_v25 }
 0x4c3   :  { %v12023_v19 = vrot.slane %v22957_v27, 3  ;;  %v23107_v58 = vsel %vm12013_vm15, %v12289_v14, %v12288_v30  ;;  %v12302_v7 = vsel %vm12010_vm14, %v12301_v63, %v12300_v61  ;;  %v12020_v56 = vsel %vm12001_vm11, %v12019_v32, %v12018_v17 }
 0x4c4   :  { %v12360_v23 = vrot.slane %v23033_v55, 6  ;;  %v12022_v40 = vsel %vm12004_vm12, %v12021_v2, %v12020_v56  ;;  %v11999_v25 = vsel %vm11998_vm10, %v11997_v8, %v22882_v21  ;;  %v12503_v1 = vrot.slane %v23017_v41, 1 }
 0x4c5   :  { %v12515_v28 = vrot.slane %v22957_v27, 2  ;;  %v23124_v60 = vsel %vm12013_vm15, %v12303_v47, %v12302_v7  ;;  %v12372_v0 = vrot.slane %v23022_v3, 7  ;;  %v12517_v36 = vrot.slane %v23022_v3, 1 }
 0x4c6   :  { %v12024_v21 = vsel %vm12007_vm13, %v12023_v19, %v12022_v40  ;;  %v12374_v22 = vrot.slane %v23044_v49, 6  ;;  %v12433_v42 = vrot.slane %v23033_v55, 7  ;;  %v12447_v27 = vrot.slane %v23044_v49, 7 }
 0x4c7   :  { %v11891_v5 = vpop.f32.mrf.mxu1  ;;  %v12502_v31 = vsel %vm12007_vm13, %v12501_v44, %v23056_v57  ;;  %v12514_v46 = vsel %vm12004_vm12, %v12513_v48, %v22952_v15  ;;  %v12373_v32 = vsel %vm12010_vm14, %v12372_v0, %v23037_v34  ;;  %v12432_v48 = vsel %vm12010_vm14, %v23017_v41, %v23040_v35 }
 0x4c8   :  { %v12504_v63 = vsel %vm12010_vm14, %v12503_v1, %v12502_v31  ;;  %v23150_v15 = vsel %vm12013_vm15, %v12374_v22, %v12373_v32  ;;  %v12446_v2 = vsel %vm12010_vm14, %v23022_v3, %v23049_v11  ;;  %v23161_v47 = vsel %vm12013_vm15, %v12433_v42, %v12432_v48 }
 0x4c9   :  { %v11778_v29 = vpop.f32.mrf.mxu0  ;;  %v11893_v18 = vpop.f32.mrf.mxu1  ;;  %v23164_v34 = vsel %vm12013_vm15, %v12447_v27, %v12446_v2  ;;  %v12025_v11 = vrot.slane %v23022_v3, 2  ;;  %v12000_v56 = vrot.slane %v22747_v52, 5  ;;  %v12009_v31 = vrot.slane %v23017_v41, 2 }
 0x4ca   :  { %v11779_v13 = vadd.f32 %v11778_v29, %v22705_v10  ;;  %v12516_v29 = vsel %vm12007_vm13, %v12515_v28, %v12514_v46 }
 0x4cb   :  { %v11780_v53 = vpop.f32.mrf.mxu0  ;;  %v11895_v37 = vpop.f32.mrf.mxu1  ;;  %v12518_v57 = vsel %vm12010_vm14, %v12517_v36, %v12516_v29  ;;  %v12002_v22 = vsel %vm12001_vm11, %v12000_v56, %v11999_v25 }
 0x4cc   :  { %v11781_v51 = vadd.f32 %v11780_v53, %v22707_v16  ;;  %v11892_v8 = vadd.f32 %v11891_v5, %v11779_v13  ;;  %v23174_v35 = vsel %vm12013_vm15, %v23044_v49, %v12518_v57  ;;  %v12027_v13 = vrot.slane %v23044_v49, 1 }
 0x4cd   :  { %v11782_v50 = vpop.f32.mrf.mxu0  ;;  %v11897_v14 = vpop.f32.mrf.mxu1 }
 0x4ce   :  { %v11783_v20 = vadd.f32 %v11782_v50, %v22705_v10  ;;  %v11894_v59 = vadd.f32 %v11893_v18, %v11781_v51  ;;  %v23142_v18 = vsel %vm12013_vm15, %v12360_v23, %v12359_v12  ;;  %v23147_v44 = vmax.f32 %v11892_v8, 0.0 }
 0x4cf   :  { %v11784_v43 = vpop.f32.mrf.mxu0  ;;  %v23168_v12 = vsel %vm12013_vm15, %v23033_v55, %v12504_v63  ;;  %v12003_v51 = vrot.slane %v22905_v45, 4  ;;  %v12006_v50 = vrot.slane %v22921_v38, 3  ;;  %v12026_v8 = vsel %vm12010_vm14, %v12025_v11, %v12024_v21 }
 0x4d0   :  { %v11785_v62 = vadd.f32 %v11784_v43, %v22707_v16  ;;  %v11896_v30 = vadd.f32 %v11895_v37, %v11783_v20  ;;  %v23158_v53 = vmax.f32 %v11894_v59, 0.0  ;;  %v12089_v23 = vrot.slane %v23147_v44, 1 }
 0x4d1   :  { %v12162_v40 = vrot.slane %v23147_v44, 2  ;;  %v12232_v37 = vrot.slane %v23147_v44, 3  ;;  %v12305_v20 = vrot.slane %v23147_v44, 4  ;;  %v12376_v52 = vrot.slane %v23147_v44, 5 }
 0x4d2   :  { %v11898_v17 = vadd.f32 %v11897_v14, %v11785_v62  ;;  %v23170_v19 = vmax.f32 %v11896_v30, 0.0  ;;  %v12103_v3 = vrot.slane %v23158_v53, 1  ;;  %v12176_v49 = vrot.slane %v23158_v53, 2 }
 0x4d3   :  { %v12246_v1 = vrot.slane %v23158_v53, 3  ;;  %v12319_v38 = vrot.slane %v23158_v53, 4  ;;  %v12390_v28 = vrot.slane %v23158_v53, 5  ;;  %v12449_v43 = vrot.slane %v23147_v44, 6 }
 0x4d4   :  { %v23178_v7 = vmax.f32 %v11898_v17, 0.0  ;;  %v12163_v45 = vrot.slane %v23170_v19, 1  ;;  %v12233_v36 = vrot.slane %v23170_v19, 2  ;;  %v12306_v42 = vrot.slane %v23170_v19, 3 }
 0x4d5   :  { %v23201_v59 = vsel %vm12013_vm15, %v12027_v13, %v12026_v8  ;;  %v12005_v27 = vsel %vm12004_vm12, %v12003_v51, %v12002_v22  ;;  %v12012_v21 = vrot.slane %v23033_v55, 1  ;;  %v12029_v14 = vrot.slane %v23170_v19, 7 }
 0x4d6   :  { %v12043_v62 = vrot.slane %v23178_v7, 7  ;;  %v12008_v30 = vsel %vm12007_vm13, %v12006_v50, %v12005_v27  ;;  %v12090_v25 = vsel %vm11995_vm9, %v23170_v19, %v12089_v23  ;;  %v12177_v63 = vrot.slane %v23178_v7, 1 }
 0x4d7   :  { %v12377_v29 = vrot.slane %v23170_v19, 4  ;;  %v12011_v17 = vsel %vm12010_vm14, %v12009_v31, %v12008_v30  ;;  %v12450_v57 = vrot.slane %v23170_v19, 5  ;;  %v12463_v48 = vrot.slane %v23158_v53, 6 }
 0x4d8   :  { %v23207_v46 = vsel %vm11995_vm9, %v12043_v62, %v23158_v53  ;;  %v23220_v2 = vsel %vm12013_vm15, %v12012_v21, %v12011_v17  ;;  %v23224_v55 = vsel %vm11995_vm9, %v12029_v14, %v23147_v44  ;;  %v12104_v13 = vsel %vm11995_vm9, %v23178_v7, %v12103_v3 }
 0x4d9   :  { %v12164_v56 = vsel %vm11995_vm9, %v12163_v45, %v12162_v40  ;;  %v12247_v51 = vrot.slane %v23178_v7, 2  ;;  %v12234_v23 = vsel %vm11995_vm9, %v12233_v36, %v12232_v37  ;;  %v12307_v8 = vsel %vm11995_vm9, %v12306_v42, %v12305_v20 }
 0x4da   :  { %v11901_v0 = vpop.f32.mrf.mxu1  ;;  %v12320_v62 = vrot.slane %v23178_v7, 3  ;;  %v12391_v22 = vrot.slane %v23178_v7, 4  ;;  %v12178_v30 = vsel %vm11995_vm9, %v12177_v63, %v12176_v49  ;;  %v23238_v3 = vsel %vm11995_vm9, %v12377_v29, %v12376_v52 }
 0x4db   :  { %v23241_v21 = vsel %vm11995_vm9, %v12450_v57, %v12449_v43  ;;  %v12464_v37 = vrot.slane %v23178_v7, 5  ;;  %v12521_v20 = vrot.slane %v23170_v19, 6  ;;  %v12535_v36 = vrot.slane %v23178_v7, 6 }
 0x4dc   :  { %v11903_v32 = vpop.f32.mrf.mxu1  ;;  %v12248_v49 = vsel %vm11995_vm9, %v12247_v51, %v12246_v1  ;;  %v12321_v63 = vsel %vm11995_vm9, %v12320_v62, %v12319_v38  ;;  %v12392_v29 = vsel %vm11995_vm9, %v12391_v22, %v12390_v28  ;;  %v12520_v43 = vrot.slane %v23147_v44, 7 }
 0x4dd   :  { %v12534_v17 = vrot.slane %v23158_v53, 7  ;;  %v12465_v1 = vsel %vm11995_vm9, %v12464_v37, %v12463_v48 }
 0x4de   :  { %v11905_v40 = vpop.f32.mrf.mxu1  ;;  %v23261_v38 = vsel %vm11995_vm9, %v12521_v20, %v12520_v43 }
 0x4df   :  { %v23264_v28 = vsel %vm11995_vm9, %v12535_v36, %v12534_v17 }
 0x4e0   :  { %v11788_v41 = vpop.f32.mrf.mxu0  ;;  %v11907_v57 = vpop.f32.mrf.mxu1 }
 0x4e1   :  { %v11789_v11 = vadd.f32 %v11788_v41, %v22705_v10 }
 0x4e2   :  { %v11790_v50 = vpop.f32.mrf.mxu0 }
 0x4e3   :  { %v11902_v27 = vadd.f32 %v11901_v0, %v11789_v11  ;;  %v11791_v31 = vadd.f32 %v11790_v50, %v22707_v16 }
 0x4e4   :  { %v11792_v45 = vpop.f32.mrf.mxu0 }
 0x4e5   :  { %v23246_v42 = vmax.f32 %v11902_v27, 0.0  ;;  %v11904_v0 = vadd.f32 %v11903_v32, %v11791_v31  ;;  %v11793_v14 = vadd.f32 %v11792_v45, %v22705_v10 }
 0x4e6   :  { %v11794_v52 = vpop.f32.mrf.mxu0 }
 0x4e7   :  { %v23254_v41 = vmax.f32 %v11904_v0, 0.0  ;;  %v11906_v19 = vadd.f32 %v11905_v40, %v11793_v14  ;;  %v11795_v7 = vadd.f32 %v11794_v52, %v22707_v16  ;;  %v12091_v32 = vrot.slane %v23246_v42, 7 }
 0x4e8   :  { %v12235_v11 = vrot.slane %v23246_v42, 1  ;;  %v12308_v50 = vrot.slane %v23246_v42, 2  ;;  %v12165_v27 = vsel %vm11998_vm10, %v23246_v42, %v12164_v56  ;;  %v12379_v31 = vrot.slane %v23246_v42, 3 }
 0x4e9   :  { %v23266_v44 = vmax.f32 %v11906_v19, 0.0  ;;  %v11908_v53 = vadd.f32 %v11907_v57, %v11795_v7  ;;  %v12105_v51 = vrot.slane %v23254_v41, 7  ;;  %v12092_v22 = vsel %vm11998_vm10, %v12091_v32, %v12090_v25 }
 0x4ea   :  { %v11911_v62 = vpop.f32.mrf.mxu1  ;;  %v12249_v48 = vrot.slane %v23254_v41, 1  ;;  %v12236_v20 = vsel %vm11998_vm10, %v12235_v11, %v12234_v23  ;;  %v12179_v0 = vsel %vm11998_vm10, %v23254_v41, %v12178_v30  ;;  %v12322_v14 = vrot.slane %v23254_v41, 2 }
 0x4eb   :  { %v23275_v40 = vmax.f32 %v11908_v53, 0.0  ;;  %v12093_v45 = vrot.slane %v23266_v44, 6  ;;  %v12166_v37 = vrot.slane %v23266_v44, 7  ;;  %v12310_v56 = vrot.slane %v23266_v44, 1 }
 0x4ec   :  { %v11913_v36 = vpop.f32.mrf.mxu1  ;;  %v12250_v25 = vsel %vm11998_vm10, %v12249_v48, %v12248_v49  ;;  %v12106_v52 = vsel %vm11998_vm10, %v12105_v51, %v12104_v13  ;;  %v12309_v19 = vsel %vm11998_vm10, %v12308_v50, %v12307_v8  ;;  %v23295_v30 = vsel %vm12001_vm11, %v23266_v44, %v12236_v20 }
 0x4ed   :  { %v12107_v43 = vrot.slane %v23275_v40, 6  ;;  %v12180_v17 = vrot.slane %v23275_v40, 7  ;;  %v12094_v23 = vsel %vm12001_vm11, %v12093_v45, %v12092_v22  ;;  %v23291_v32 = vsel %vm12001_vm11, %v12166_v37, %v12165_v27 }
 0x4ee   :  { %v11915_v7 = vpop.f32.mrf.mxu1  ;;  %v23299_v49 = vsel %vm12001_vm11, %v23275_v40, %v12250_v25  ;;  %v12311_v8 = vsel %vm12001_vm11, %v12310_v56, %v12309_v19  ;;  %v12323_v11 = vsel %vm11998_vm10, %v12322_v14, %v12321_v63  ;;  %v12324_v53 = vrot.slane %v23275_v40, 1 }
 0x4ef   :  { %v11798_v13 = vpop.f32.mrf.mxu0  ;;  %v23302_v57 = vsel %vm12001_vm11, %v12107_v43, %v12106_v52  ;;  %v23309_v50 = vsel %vm12001_vm11, %v12180_v17, %v12179_v0  ;;  %v12381_v22 = vrot.slane %v23266_v44, 2  ;;  %v12393_v27 = vrot.slane %v23254_v41, 3 }
 0x4f0   :  { %v11799_v51 = vadd.f32 %v11798_v13, %v22705_v10  ;;  %v11917_v45 = vpop.f32.mrf.mxu1  ;;  %v12395_v37 = vrot.slane %v23275_v40, 2  ;;  %v12452_v20 = vrot.slane %v23246_v42, 4  ;;  %v12454_v25 = vrot.slane %v23266_v44, 3 }
 0x4f1   :  { %v11800_v48 = vpop.f32.mrf.mxu0  ;;  %v12466_v63 = vrot.slane %v23254_v41, 4  ;;  %v12380_v0 = vsel %vm11998_vm10, %v12379_v31, %v23238_v3  ;;  %v12468_v52 = vrot.slane %v23275_v40, 3  ;;  %v23322_v19 = vsel %vm12001_vm11, %v12324_v53, %v12323_v11 }
 0x4f2   :  { %v11912_v56 = vadd.f32 %v11911_v62, %v11799_v51  ;;  %v11801_v14 = vadd.f32 %v11800_v48, %v22707_v16  ;;  %v11921_v17 = vpop.f32.mrf.mxu1  ;;  %v12394_v13 = vsel %vm11998_vm10, %v12393_v27, %v12392_v29  ;;  %v12453_v5 = vsel %vm11998_vm10, %v12452_v20, %v23241_v21 }
 0x4f3   :  { %v11802_v43 = vpop.f32.mrf.mxu0  ;;  %v12523_v61 = vrot.slane %v23246_v42, 5  ;;  %v12467_v3 = vsel %vm11998_vm10, %v12466_v63, %v12465_v1  ;;  %v23333_v6 = vsel %vm12001_vm11, %v12381_v22, %v12380_v0  ;;  %v23336_v11 = vsel %vm12001_vm11, %v12395_v37, %v12394_v13 }
 0x4f4   :  { %v23328_v62 = vmax.f32 %v11912_v56, 0.0  ;;  %v11914_v51 = vadd.f32 %v11913_v36, %v11801_v14  ;;  %v11803_v48 = vadd.f32 %v11802_v43, %v22705_v10  ;;  %v23339_v29 = vsel %vm12001_vm11, %v12454_v25, %v12453_v5  ;;  %v11923_v63 = vpop.f32.mrf.mxu1 }
 0x4f5   :  { %v11804_v31 = vpop.f32.mrf.mxu0  ;;  %v23342_v21 = vsel %vm12001_vm11, %v12468_v52, %v12467_v3  ;;  %v23352_v5 = vsel %vm11998_vm10, %v12523_v61, %v23261_v38 }
 0x4f6   :  { %v23344_v53 = vmax.f32 %v11914_v51, 0.0  ;;  %v11916_v36 = vadd.f32 %v11915_v7, %v11803_v48  ;;  %v11805_v27 = vadd.f32 %v11804_v31, %v22707_v16  ;;  %v12095_v1 = vrot.slane %v23328_v62, 5  ;;  %v18204_v31 = vld [vmem:[%s24680_s7 + $0x88] sm:$0xff]  }
 0x4f7   :  { %v11808_v20 = vpop.f32.mrf.mxu0  ;;  %v12168_v22 = vrot.slane %v23328_v62, 6  ;;  %v12238_v37 = vrot.slane %v23328_v62, 7  ;;  %v23363_v51 = vsel %vm12004_vm12, %v23328_v62, %v12311_v8  ;;  %17132 = vmatpush3.bf16.msra.mxu1 %v18204_v31 }
 0x4f8   :  { %v23355_v56 = vmax.f32 %v11916_v36, 0.0  ;;  %v11918_v14 = vadd.f32 %v11917_v45, %v11805_v27  ;;  %v11809_v7 = vadd.f32 %v11808_v20, %v22705_v10  ;;  %v12109_v43 = vrot.slane %v23344_v53, 5  ;;  %v11925_v36 = vpop.f32.mrf.mxu1 }
 0x4f9   :  { %v11810_v52 = vpop.f32.mrf.mxu0  ;;  %v12182_v13 = vrot.slane %v23344_v53, 6  ;;  %v12096_v3 = vsel %vm12004_vm12, %v12095_v1, %v12094_v23  ;;  %v12169_v8 = vsel %vm12004_vm12, %v12168_v22, %v23291_v32 }
 0x4fa   :  { %v23366_v38 = vmax.f32 %v11918_v14, 0.0  ;;  %v11922_v48 = vadd.f32 %v11921_v17, %v11809_v7  ;;  %v11811_v45 = vadd.f32 %v11810_v52, %v22707_v16  ;;  %v12097_v20 = vrot.slane %v23355_v56, 4 }
 0x4fb   :  { %v11812_v27 = vpop.f32.mrf.mxu0  ;;  %v12170_v0 = vrot.slane %v23355_v56, 5  ;;  %v12239_v17 = vsel %vm12004_vm12, %v12238_v37, %v23295_v30  ;;  %v12240_v1 = vrot.slane %v23355_v56, 6  ;;  %v12110_v25 = vsel %vm12004_vm12, %v12109_v43, %v23302_v57 }
 0x4fc   :  { %v23379_v14 = vmax.f32 %v11922_v48, 0.0  ;;  %v11924_v7 = vadd.f32 %v11923_v63, %v11811_v45  ;;  %v11813_v23 = vadd.f32 %v11812_v27, %v22705_v10  ;;  %v12111_v61 = vrot.slane %v23366_v38, 4  ;;  %v11927_v48 = vpop.f32.mrf.mxu1 }
 0x4fd   :  { %v11814_v52 = vpop.f32.mrf.mxu0  ;;  %v12183_v32 = vsel %vm12004_vm12, %v12182_v13, %v23309_v50  ;;  %v12184_v22 = vrot.slane %v23366_v38, 5  ;;  %v12098_v45 = vsel %vm12007_vm13, %v12097_v20, %v12096_v3  ;;  %v12171_v31 = vsel %vm12007_vm13, %v12170_v0, %v12169_v8  ;;  %v18205_v50 = vld [vmem:[%s24680_s7 + $0xc0] sm:$0xff]   ;;  %v18206_v13 = vld [vmem:[%s24680_s7 + $0x178] sm:$0xff]  }
 0x4fe   :  { %v23389_v30 = vmax.f32 %v11924_v7, 0.0  ;;  %v11926_v37 = vadd.f32 %v11925_v36, %v11813_v23  ;;  %v11815_v63 = vadd.f32 %v11814_v52, %v22707_v16  ;;  %v12099_v10 = vrot.slane %v23379_v14, 3  ;;  %17133 = vmatprep.subr.bf16.mxu1 %v18205_v50  ;;  %17141 = vmatprep.subr.bf16.mxu0 %v18206_v13  ;;  %v18209_v50 = vld [vmem:[%s24680_s7 + $0x1f8] sm:$0xff]  }
 0x4ff   :  { %v12172_v57 = vrot.slane %v23379_v14, 4  ;;  %v12242_v43 = vrot.slane %v23379_v14, 5  ;;  %v12241_v3 = vsel %vm12007_vm13, %v12240_v1, %v12239_v17  ;;  %v12112_v0 = vsel %vm12007_vm13, %v12111_v61, %v12110_v25  ;;  %v18207_v25 = vld [vmem:[%s24680_s7 + $0x80] sm:$0xff]  }
 0x500   :  { %v23403_v16 = vmax.f32 %v11926_v37, 0.0  ;;  %v11928_v36 = vadd.f32 %v11927_v48, %v11815_v63  ;;  %v12113_v27 = vrot.slane %v23389_v30, 3  ;;  %v12185_v20 = vsel %vm12007_vm13, %v12184_v22, %v12183_v32  ;;  %17134 = vmatpush3.bf16.msra.mxu1 %v18207_v25 }
 0x501   :  { %v12186_v8 = vrot.slane %v23389_v30, 4  ;;  %v12252_v7 = vrot.slane %v23344_v53, 7  ;;  %v12100_v52 = vsel %vm12010_vm14, %v12099_v10, %v12098_v45  ;;  %v12173_v17 = vsel %vm12010_vm14, %v12172_v57, %v12171_v31  ;;  %17163 = vmatprep.subr.bf16.mxu1 %v18209_v50 }
 0x502   :  { %v23411_v23 = vmax.f32 %v11928_v36, 0.0  ;;  %v12101_v37 = vrot.slane %v23403_v16, 2  ;;  %v12174_v63 = vrot.slane %v23403_v16, 3  ;;  %v12114_v61 = vsel %vm12010_vm14, %v12113_v27, %v12112_v0 }
 0x503   :  { %v12243_v1 = vsel %vm12010_vm14, %v12242_v43, %v12241_v3  ;;  %v12254_v32 = vrot.slane %v23366_v38, 6  ;;  %v12244_v45 = vrot.slane %v23403_v16, 4  ;;  %v12187_v57 = vsel %vm12010_vm14, %v12186_v8, %v12185_v20 }
 0x504   :  { %v12102_v22 = vsel %vm12013_vm15, %v12101_v37, %v12100_v52  ;;  %v12115_v10 = vrot.slane %v23411_v23, 2  ;;  %v12188_v48 = vrot.slane %v23411_v23, 3  ;;  %v12175_v31 = vsel %vm12013_vm15, %v12174_v63, %v12173_v17 }
 0x505   :  { %v18014_v13 = vpack.i.bf16 %v12102_v22, %v23079_v54  ;;  %v12253_v43 = vsel %vm12004_vm12, %v12252_v7, %v23299_v49  ;;  %v12256_v3 = vrot.slane %v23389_v30, 5  ;;  %v12258_v0 = vrot.slane %v23411_v23, 4 }
 0x506   :  { %v12116_v36 = vsel %vm12013_vm15, %v12115_v10, %v12114_v61  ;;  %v12189_v27 = vsel %vm12013_vm15, %v12188_v48, %v12187_v57  ;;  %v12255_v52 = vsel %vm12007_vm13, %v12254_v32, %v12253_v43  ;;  %v12313_v20 = vrot.slane %v23355_v56, 7 }
 0x507   :  { %18015 = vrot.lane.b32.xlu0 %v18014_v13, %s18606_s30  ;;  %v18019_v54 = vpack.i.bf16 %v12116_v36, %v23092_v39  ;;  %v12315_v8 = vrot.slane %v23379_v14, 6  ;;  %v18024_v49 = vpack.i.bf16 %v12175_v31, %v23082_v24  ;;  %v12245_v7 = vsel %vm12013_vm15, %v12244_v45, %v12243_v1 }
 0x508   :  { %v12257_v37 = vsel %vm12010_vm14, %v12256_v3, %v12255_v52  ;;  %v12327_v63 = vrot.slane %v23366_v38, 7  ;;  %v18034_v25 = vpack.i.bf16 %v12189_v27, %v23095_v9  ;;  %v12329_v39 = vrot.slane %v23389_v30, 6 }
 0x509   :  { %18020 = vrot.lane.b32.xlu1 %v18019_v54, %s18606_s30  ;;  %v12259_v61 = vsel %vm12013_vm15, %v12258_v0, %v12257_v37  ;;  %v12331_v17 = vrot.slane %v23411_v23, 5  ;;  %v12314_v32 = vsel %vm12007_vm13, %v12313_v20, %v23363_v51  ;;  %v12317_v24 = vrot.slane %v23403_v16, 5 }
 0x50a   :  { %v12326_v1 = vsel %vm12004_vm12, %v23344_v53, %v23322_v19  ;;  %v25138_v22 = vrot.slane %v23328_v62, 1  ;;  %v18039_v10 = vpack.i.bf16 %v12259_v61, %v12245_v7  ;;  %v12316_v48 = vsel %vm12010_vm14, %v12315_v8, %v12314_v32 }
 0x50b   :  { %18025 = vrot.lane.b32.xlu0 %v18024_v49, %s18607_s16  ;;  %v12328_v45 = vsel %vm12007_vm13, %v12327_v63, %v12326_v1  ;;  %v12386_v51 = vrot.slane %v23379_v14, 7  ;;  %v12388_v13 = vrot.slane %v23403_v16, 6  ;;  %v12397_v19 = vrot.slane %v23344_v53, 1 }
 0x50c   :  { %v12384_v9 = vsel %vm12004_vm12, %v25138_v22, %v23333_v6  ;;  %v12330_v50 = vsel %vm12010_vm14, %v12329_v39, %v12328_v45  ;;  %v12400_v31 = vrot.slane %v23389_v30, 7  ;;  %v12402_v43 = vrot.slane %v23411_v23, 6 }
 0x50d   :  { %18035 = vrot.lane.b32.xlu1 %v18034_v25, %s18607_s16  ;;  %v12332_v6 = vsel %vm12013_vm15, %v12331_v17, %v12330_v50  ;;  %v12385_v57 = vsel %vm12007_vm13, %v23355_v56, %v12384_v9  ;;  %v12456_v36 = vrot.slane %v23328_v62, 2  ;;  %v12398_v3 = vsel %vm12004_vm12, %v12397_v19, %v23336_v11 }
 0x50e   :  { %v12387_v27 = vsel %vm12010_vm14, %v12386_v51, %v12385_v57  ;;  %v12458_v0 = vrot.slane %v23355_v56, 1  ;;  %v12461_v54 = vrot.slane %v23403_v16, 7  ;;  %v25139_v52 = vpack.i.bf16 %v23100_v26, %v23085_v33 }
 0x50f   :  { %v12389_v20 = vsel %vm12013_vm15, %v12388_v13, %v12387_v27  ;;  %v12399_v8 = vsel %vm12007_vm13, %v23366_v38, %v12398_v3  ;;  %v12457_v49 = vsel %vm12004_vm12, %v12456_v36, %v23339_v29  ;;  %v12470_v7 = vrot.slane %v23344_v53, 2 }
 0x510   :  { %18030 = vrot.lane.b32.xlu0 %v25139_v52, %s18608_s3  ;;  %v12401_v11 = vsel %vm12010_vm14, %v12400_v31, %v12399_v8  ;;  %v12459_v37 = vsel %vm12007_vm13, %v12458_v0, %v12457_v49  ;;  %v12472_v63 = vrot.slane %v23366_v38, 1  ;;  %v12475_v25 = vrot.slane %v23411_v23, 7 }
 0x511   :  { %18040 = vrot.lane.b32.xlu1 %v18039_v10, %s18608_s3  ;;  %v12318_v33 = vsel %vm12013_vm15, %v12317_v24, %v12316_v48  ;;  %v12403_v26 = vsel %vm12013_vm15, %v12402_v43, %v12401_v11  ;;  %v12460_v61 = vsel %vm12010_vm14, %v23379_v14, %v12459_v37  ;;  %v12471_v29 = vsel %vm12004_vm12, %v12470_v7, %v23342_v21 }
 0x512   :  { %v18049_v39 = vpack.i.bf16 %v12332_v6, %v12318_v33  ;;  %v12462_v17 = vsel %vm12013_vm15, %v12461_v54, %v12460_v61  ;;  %v12473_v32 = vsel %vm12007_vm13, %v12472_v63, %v12471_v29  ;;  %v12527_v1 = vrot.slane %v23328_v62, 3 }
 0x513   :  { %v25140_v24 = vpack.i.bf16 %v23124_v60, %v23107_v58  ;;  %v18054_v22 = vpack.i.bf16 %v12389_v20, %v23142_v18  ;;  %v12474_v9 = vsel %vm12010_vm14, %v23389_v30, %v12473_v32  ;;  %v25141_v21 = vrot.slane %v23266_v44, 4 }
 0x514   :  { %v12529_v48 = vrot.slane %v23355_v56, 2  ;;  %v18059_v45 = vpack.i.bf16 %v12403_v26, %v23150_v15  ;;  %v12476_v51 = vsel %vm12013_vm15, %v12475_v25, %v12474_v9  ;;  %v12531_v50 = vrot.slane %v23379_v14, 1  ;;  %v18208_v9 = vld [vmem:[%s24680_s7 + $0x138] sm:$0xff]  }
 0x515   :  { %18045 = vrot.lane.b32.xlu0 %v25140_v24, %s18609_s5  ;;  %v12526_v10 = vsel %vm12001_vm11, %v25141_v21, %v23352_v5  ;;  %v12539_v58 = vrot.slane %v23275_v40, 4  ;;  %18050 = vrot.lane.b32.xlu1 %v18049_v39, %s18609_s5  ;;  %v18064_v60 = vpack.i.bf16 %v12462_v17, %v23161_v47  ;;  %v25142_v18 = vrot.slane %v23254_v41, 5 }
 0x516   :  { %v12541_v5 = vrot.slane %v23344_v53, 3  ;;  %v12543_v19 = vrot.slane %v23366_v38, 2  ;;  %v18074_v15 = vpack.i.bf16 %v12476_v51, %v23164_v34  ;;  %v12528_v31 = vsel %vm12004_vm12, %v12527_v1, %v12526_v10  ;;  %v18210_v10 = vld [vmem:[%s24680_s7 + $0x170] sm:$0xff]  }
 0x517   :  { %v12538_v13 = vsel %vm11998_vm10, %v25142_v18, %v23264_v28  ;;  %v12545_v57 = vrot.slane %v23389_v30, 1  ;;  %v12530_v47 = vsel %vm12007_vm13, %v12529_v48, %v12528_v31  ;;  %v12045_v28 = vrot.slane %v23254_v41, 6  ;;  %v18211_v18 = vld [vmem:[%s24680_s7 + $0x130] sm:$0xff]   ;;  %v18213_v31 = vld [vmem:[%s24680_s7 + $0x168] sm:$0xff]  }
 0x518   :  { %v12540_v6 = vsel %vm12001_vm11, %v12539_v58, %v12538_v13  ;;  %v12047_v36 = vrot.slane %v23275_v40, 5  ;;  %v12532_v27 = vsel %vm12010_vm14, %v12531_v50, %v12530_v47  ;;  %v12049_v3 = vrot.slane %v23344_v53, 4  ;;  %v18212_v13 = vld [vmem:[%s24680_s7 + $0x1b8] sm:$0xff]  }
 0x519   :  { %18055 = vrot.lane.b32.xlu0 %v18054_v22, %s18610_s22  ;;  %v12542_v43 = vsel %vm12004_vm12, %v12541_v5, %v12540_v6  ;;  %v12051_v0 = vrot.slane %v23366_v38, 3  ;;  %18060 = vrot.lane.b32.xlu1 %v18059_v45, %s18610_s22  ;;  %v12046_v52 = vsel %vm11998_vm10, %v12045_v28, %v23207_v46  ;;  %v12053_v20 = vrot.slane %v23389_v30, 2  ;;  %v18214_v6 = vld [vmem:[%s24680_s7 + $0x1f0] sm:$0xff]  }
 0x51a   :  { %v12544_v34 = vsel %vm12007_vm13, %v12543_v19, %v12542_v43  ;;  %v12031_v41 = vrot.slane %v23246_v42, 6  ;;  %v12048_v40 = vsel %vm12001_vm11, %v12047_v36, %v12046_v52  ;;  %v12055_v8 = vrot.slane %v23411_v23, 1  ;;  %v18215_v36 = vld [vmem:[%s24680_s7 + $0x128] sm:$0xff]  }
 0x51b   :  { %v12546_v54 = vsel %vm12010_vm14, %v12545_v57, %v12544_v34  ;;  %v12033_v49 = vrot.slane %v23266_v44, 5  ;;  %v12035_v53 = vrot.slane %v23328_v62, 4  ;;  %v12050_v7 = vsel %vm12004_vm12, %v12049_v3, %v12048_v40  ;;  %v18218_v40 = vld [vmem:[%s24680_s7 + $0x1e8] sm:$0xff]  }
 0x51c   :  { %v12547_v38 = vsel %vm12013_vm15, %v23411_v23, %v12546_v54  ;;  %v12032_v46 = vsel %vm11998_vm10, %v12031_v41, %v23224_v55  ;;  %v12037_v42 = vrot.slane %v23355_v56, 3  ;;  %v12052_v30 = vsel %vm12007_vm13, %v12051_v0, %v12050_v7  ;;  %v18217_v0 = vld [vmem:[%s24680_s7 + $0x160] sm:$0xff]   ;;  %v18220_v7 = vld [vmem:[%s24680_s7 + $0x1a8] sm:$0xff]  }
 0x51d   :  { %18065 = vrot.lane.b32.xlu0 %v18064_v60, %s18611_s1  ;;  %v12034_v11 = vsel %vm12001_vm11, %v12033_v49, %v12032_v46  ;;  %v12039_v44 = vrot.slane %v23379_v14, 2  ;;  %v12041_v62 = vrot.slane %v23403_v16, 1  ;;  %18075 = vrot.lane.b32.xlu1 %v18074_v15, %s18611_s1  ;;  %v18069_v37 = vpack.i.bf16 %v23174_v35, %v23168_v12 }
 0x51e   :  { %v12054_v23 = vsel %vm12010_vm14, %v12053_v20, %v12052_v30  ;;  %v12036_v63 = vsel %vm12004_vm12, %v12035_v53, %v12034_v11  ;;  %v12533_v55 = vsel %vm12013_vm15, %v23403_v16, %v12532_v27  ;;  %v18216_v27 = vld [vmem:[%s24680_s7 + $0x1b0] sm:$0xff]   ;;  %vm12412_vm10 = vcmask 850944   ;;  %v18221_v30 = vld [vmem:[%s24680_s7 + $0x158] sm:$0xff]   ;;  %v18222_v11 = vld [vmem:[%s24680_s7 + $0x1e0] sm:$0xff]  }
 0x51f   :  { %v12056_v56 = vsel %vm12013_vm15, %v12055_v8, %v12054_v23  ;;  %v12038_v25 = vsel %vm12007_vm13, %v12037_v42, %v12036_v63  ;;  %v18079_v14 = vpack.i.bf16 %v12547_v38, %v12533_v55  ;;  %v18219_v38 = vld [vmem:[%s24680_s7 + $0x120] sm:$0xff]   ;;  %v18223_v55 = vld [vmem:[%s24680_s7 + $0x118] sm:$0xff]   ;;  %vm12485_vm11 = vcmask 392192  }
 0x520   :  { %v12040_v33 = vsel %vm12010_vm14, %v12039_v44, %v12038_v25  ;;  %vm12556_vm12 = vcmask 982016   ;;  %vm16023_vm13 = vcmask 1040384   ;;  %vm16029_vm14 = vcmask 1042432  }
 0x521   :  { %18070 = vrot.lane.b32.xlu0 %v18069_v37, %s18612_s25  ;;  %v12042_v26 = vsel %vm12013_vm15, %v12041_v62, %v12040_v33  ;;  %18080 = vrot.lane.b32.xlu1 %v18079_v14, %s18612_s25  ;;  %v18225_v14 = vld [vmem:[%s24680_s7 + $0x150] sm:$0xff]   ;;  %v18226_v33 = vld [vmem:[%s24680_s7 + $0x1d8] sm:$0xff]   ;;  %vm16032_vm15 = vcmask 1043456  }
 0x522   :  { %v12579_v12 = vpack.c.bf16 %v12042_v26, %v23220_v2  ;;  %v18227_v26 = vld [vmem:[%s24680_s7 + $0x110] sm:$0xff]  }
 0x579   :  { %v18016_v35 = vpop.permute.xlu0 %18015 }
 0x57a   :  { %v18018_v61 = vunpack.i.h.bf16 %v18016_v35  ;;  %v18017_v29 = vunpack.i.l.bf16 %v18016_v35  ;;  %v18229_v35 = vld [vmem:[%s24680_s7 + $0x148] sm:$0xff]  }
 0x57b   :  { %v18021_v39 = vpop.permute.xlu1 %18020 }
 0x57c   :  { %v18023_v16 = vunpack.i.h.bf16 %v18021_v39  ;;  %v18022_v17 = vunpack.i.l.bf16 %v18021_v39  ;;  %v12565_v32 = vsel %vm12125_vm4, %v23201_v59, %v18017_v29  ;;  %v12566_v1 = vsel %vm12125_vm4, %v12056_v56, %v18018_v61  ;;  %v18224_v56 = vld [vmem:[%s24680_s7 + $0x1a0] sm:$0xff]  }
 0x57d   :  { %v23569_v24 = vpop.permute.xlu0 %18025  ;;  %v12580_v22 = vpack.c.bf16 %v12566_v1, %v12565_v32 }
 0x57e   :  { %v18028_v21 = vunpack.i.h.bf16 %v23569_v24  ;;  %v18027_v2 = vunpack.i.l.bf16 %v23569_v24  ;;  %v12126_v48 = vsel %vm12125_vm4, %v18017_v29, %v18022_v17  ;;  %v12127_v45 = vsel %vm12125_vm4, %v18018_v61, %v18023_v16  ;;  %v18230_v61 = vld [vmem:[%s24680_s7 + $0x1d0] sm:$0xff]  }
 0x57f   :  { %v23579_v51 = vpop.permute.xlu1 %18035  ;;  %13434 = vmatprep.mubr.bf16.mxu0 %v12580_v22  ;;  %v12581_v5 = vpack.c.bf16 %v12127_v45, %v12126_v48  ;;  %v18233_v22 = vld [vmem:[%s24680_s7 + $0x140] sm:$0xff]  }
 0x580   :  { %13435 = vmatmul.mubr.bf16.vlgmr.msra.gmra.mxu0 %v12579_v12  ;;  %v12567_v59 = vsel %vm2668_vm7, %v18022_v17, %v18027_v2  ;;  %v12568_v50 = vsel %vm2668_vm7, %v18023_v16, %v18028_v21  ;;  %v18228_v12 = vld [vmem:[%s24680_s7 + $0x198] sm:$0xff]   ;;  %v18037_v39 = vunpack.i.l.bf16 %v23579_v51  ;;  %v18231_v16 = vld [vmem:[%s24680_s7 + $0x108] sm:$0xff]   ;;  %v18232_v17 = vld [vmem:[%s24680_s7 + $0x190] sm:$0xff]   ;;  %v18038_v32 = vunpack.i.h.bf16 %v23579_v51 }
 0x581   :  { %17142 = vmatpush3.bf16.msra.mxu0 %v18208_v9  ;;  %v12582_v60 = vpack.c.bf16 %v12568_v50, %v12567_v59  ;;  %v18234_v9 = vld [vmem:[%s24680_s7 + $0x1c8] sm:$0xff]   ;;  %v18235_v51 = vld [vmem:[%s24680_s7 + $0x100] sm:$0xff]  }
 0x582   :  { %v23587_v58 = vpop.permute.xlu0 %18030  ;;  %17143 = vmatprep.subr.bf16.mxu0 %v18210_v10  ;;  %v12198_v10 = vsel %vm2668_vm7, %v18027_v2, %v18037_v39  ;;  %v18236_v59 = vld [vmem:[%s24680_s7 + $0x188] sm:$0xff]   ;;  %v12199_v50 = vsel %vm2668_vm7, %v18028_v21, %v18038_v32  ;;  %v18262_v39 = vld [vmem:[%s24680_s7 + $0x2d0] sm:$0xff]   ;;  %v18265_v32 = vld [vmem:[%s24680_s7 + $0x240] sm:$0xff]  }
 0x583   :  { %v18033_v19 = vunpack.i.h.bf16 %v23587_v58  ;;  %v18032_v15 = vunpack.i.l.bf16 %v23587_v58  ;;  %v23603_v57 = vpop.permute.xlu1 %18040  ;;  %13475 = vmatprep.mubr.bf16.mxu1 %v12582_v60  ;;  %v18237_v60 = vld [vmem:[%s24680_s7 + $0x1c0] sm:$0xff]  }
 0x584   :  { %v18043_v47 = vunpack.i.h.bf16 %v23603_v57  ;;  %v18042_v43 = vunpack.i.l.bf16 %v23603_v57  ;;  %13476 = vmatmul.mubr.bf16.vlgmr.msra.gmra.mxu1 %v12581_v5  ;;  %v18243_v57 = vld [vmem:[%s24680_s7 + $0x230] sm:$0xff]  }
 0x585   :  { %17144 = vmatpush3.bf16.msra.mxu0 %v18211_v18  ;;  %17164 = vmatpush3.bf16.msra.mxu1 %v18212_v13  ;;  %v12269_v34 = vsel %vm12268_vm5, %v18032_v15, %v18033_v19  ;;  %v18238_v18 = vld [vmem:[%s24680_s7 + $0x278] sm:$0xff]   ;;  %v12569_v5 = vsel %vm12268_vm5, %v12198_v10, %v18032_v15  ;;  %v18268_v10 = vld [vmem:[%s24680_s7 + $0x288] sm:$0xff]  }
 0x586   :  { %17145 = vmatprep.subr.bf16.mxu0 %v18213_v31  ;;  %17165 = vmatprep.subr.bf16.mxu1 %v18214_v6  ;;  %v12270_v3 = vsel %vm12268_vm5, %v18042_v43, %v18043_v47  ;;  %v12570_v13 = vsel %vm12268_vm5, %v12199_v50, %v18042_v43  ;;  %v18239_v43 = vld [vmem:[%s24680_s7 + $0x180] sm:$0xff]  }
 0x587   :  { %v23607_v28 = vpop.permute.xlu0 %18045  ;;  %v23630_v20 = vpop.permute.xlu1 %18050  ;;  %v12584_v41 = vpack.c.bf16 %v12270_v3, %v12269_v34  ;;  %v12583_v3 = vpack.c.bf16 %v12570_v13, %v12569_v5  ;;  %v18269_v50 = vld [vmem:[%s24680_s7 + $0x2c0] sm:$0xff]   ;;  %v18271_v13 = vld [vmem:[%s24680_s7 + $0x318] sm:$0xff]  }
 0x588   :  { %v18048_v54 = vunpack.i.h.bf16 %v23607_v28  ;;  %v18047_v52 = vunpack.i.l.bf16 %v23607_v28  ;;  %v18053_v8 = vunpack.i.h.bf16 %v23630_v20  ;;  %v18052_v49 = vunpack.i.l.bf16 %v23630_v20  ;;  %v18274_v5 = vld [vmem:[%s24680_s7 + $0x300] sm:$0xff]  }
 0x589   :  { %17146 = vmatpush3.bf16.msra.mxu0 %v18215_v36  ;;  %17166 = vmatpush3.bf16.msra.mxu1 %v18216_v27  ;;  %v18240_v27 = vld [vmem:[%s24680_s7 + $0x238] sm:$0xff]  }
 0x58a   :  { %13516 = vmatprep.mubr.bf16.mxu0 %v12584_v41  ;;  %17147 = vmatprep.subr.bf16.mxu0 %v18217_v0  ;;  %v12343_v44 = vsel %vm12341_vm6, %v18052_v49, %v18053_v8  ;;  %v12342_v62 = vsel %vm12341_vm6, %v18047_v52, %v18048_v54  ;;  %v18241_v0 = vld [vmem:[%s24680_s7 + $0x270] sm:$0xff]   ;;  %v12572_v54 = vsel %vm12341_vm6, %v18043_v47, %v18052_v49  ;;  %v18242_v8 = vld [vmem:[%s24680_s7 + $0x2f8] sm:$0xff]  }
 0x58b   :  { %v23637_v53 = vpop.permute.xlu0 %18055  ;;  %17167 = vmatprep.subr.bf16.mxu1 %v18218_v40  ;;  %v23671_v25 = vpop.permute.xlu1 %18060  ;;  %v12571_v20 = vsel %vm12341_vm6, %v18033_v19, %v18047_v52  ;;  %v18244_v47 = vld [vmem:[%s24680_s7 + $0x2b8] sm:$0xff]   ;;  %v18245_v19 = vld [vmem:[%s24680_s7 + $0x268] sm:$0xff]   ;;  %v18246_v49 = vld [vmem:[%s24680_s7 + $0x2f0] sm:$0xff]  }
 0x58c   :  { %v18058_v46 = vunpack.i.h.bf16 %v23637_v53  ;;  %v18057_v42 = vunpack.i.l.bf16 %v23637_v53  ;;  %v18063_v24 = vunpack.i.h.bf16 %v23671_v25  ;;  %v18062_v21 = vunpack.i.l.bf16 %v23671_v25 }
 0x58d   :  { %17148 = vmatpush3.bf16.msra.mxu0 %v18219_v38  ;;  %17168 = vmatpush3.bf16.msra.mxu1 %v18220_v7  ;;  %v12585_v58 = vpack.c.bf16 %v12572_v54, %v12571_v20 }
 0x58e   :  { %v12573_v37 = vsel %vm12412_vm10, %v12342_v62, %v18057_v42  ;;  %v12574_v23 = vsel %vm12412_vm10, %v12343_v44, %v18058_v46  ;;  %17149 = vmatprep.subr.bf16.mxu0 %v18221_v30  ;;  %17169 = vmatprep.subr.bf16.mxu1 %v18222_v11  ;;  %v18247_v30 = vld [vmem:[%s24680_s7 + $0x228] sm:$0xff]   ;;  %v18248_v11 = vld [vmem:[%s24680_s7 + $0x2b0] sm:$0xff]   ;;  %v18249_v44 = vld [vmem:[%s24680_s7 + $0x260] sm:$0xff]  }
 0x58f   :  { %v12586_v63 = vpack.c.bf16 %v12574_v23, %v12573_v37  ;;  %v23691_v29 = vpop.permute.xlu1 %18075  ;;  %v23701_v1 = vpop.permute.xlu0 %18065  ;;  %v18250_v62 = vld [vmem:[%s24680_s7 + $0x2e8] sm:$0xff]   ;;  %v18251_v37 = vld [vmem:[%s24680_s7 + $0x220] sm:$0xff]  }
 0x590   :  { %v18068_v48 = vunpack.i.h.bf16 %v23701_v1  ;;  %v18067_v45 = vunpack.i.l.bf16 %v23701_v1  ;;  %v18252_v23 = vld [vmem:[%s24680_s7 + $0x2a8] sm:$0xff]   ;;  %v18272_v1 = vld [vmem:[%s24680_s7 + $0x310] sm:$0xff]  }
 0x591   :  { %13557 = vmatprep.mubr.bf16.mxu1 %v12586_v63  ;;  %17150 = vmatpush3.bf16.msra.mxu0 %v18223_v55  ;;  %v18253_v63 = vld [vmem:[%s24680_s7 + $0x258] sm:$0xff]   ;;  %v18254_v55 = vld [vmem:[%s24680_s7 + $0x2e0] sm:$0xff]  }
 0x592   :  { %17170 = vmatpush3.bf16.msra.mxu1 %v18224_v56  ;;  %17151 = vmatprep.subr.bf16.mxu0 %v18225_v14  ;;  %v12575_v15 = vsel %vm12485_vm11, %v18062_v21, %v18067_v45  ;;  %v12576_v34 = vsel %vm12485_vm11, %v18063_v24, %v18068_v48  ;;  %v18255_v56 = vld [vmem:[%s24680_s7 + $0x218] sm:$0xff]   ;;  %v18256_v14 = vld [vmem:[%s24680_s7 + $0x2a0] sm:$0xff]  }
 0x593   :  { %17171 = vmatprep.subr.bf16.mxu1 %v18226_v33  ;;  %v23723_v2 = vpop.permute.xlu1 %18080  ;;  %v23739_v31 = vpop.permute.xlu0 %18070  ;;  %v12588_v38 = vpack.c.bf16 %v12576_v34, %v12575_v15  ;;  %v18257_v33 = vld [vmem:[%s24680_s7 + $0x250] sm:$0xff]   ;;  %v23943_v15 = vld [vmem:[%s24684_s11] sm:$0xff] }
 0x594   :  { %v18083_v6 = vunpack.i.h.bf16 %v23723_v2  ;;  %v18082_v36 = vunpack.i.l.bf16 %v23723_v2  ;;  %v18073_v41 = vunpack.i.h.bf16 %v23739_v31  ;;  %v18072_v40 = vunpack.i.l.bf16 %v23739_v31  ;;  %v13691_v31 = vld [vmem:[%s24682_s9 + $0x10] sm:$0xff]  ;;  %v13690_v2 = vld [vmem:[%s24682_s9 + $0x8] sm:$0xff] }
 0x595   :  { %17152 = vmatpush3.bf16.msra.mxu0 %v18227_v26  ;;  %v18258_v26 = vld [vmem:[%s24680_s7 + $0x2d8] sm:$0xff]  }
 0x596   :  { %17172 = vmatpush3.bf16.msra.mxu1 %v18228_v12  ;;  %17153 = vmatprep.subr.bf16.mxu0 %v18229_v35  ;;  %v12558_v28 = vsel %vm12556_vm12, %v18082_v36, %v18083_v6  ;;  %v12557_v52 = vsel %vm12556_vm12, %v18072_v40, %v18073_v41  ;;  %v18259_v12 = vld [vmem:[%s24680_s7 + $0x210] sm:$0xff]   ;;  %v18260_v35 = vld [vmem:[%s24680_s7 + $0x298] sm:$0xff]  }
 0x597   :  { %17173 = vmatprep.subr.bf16.mxu1 %v18230_v61  ;;  %v12590_v7 = vpack.c.bf16 %v12558_v28, %v12557_v52  ;;  %v18261_v61 = vld [vmem:[%s24680_s7 + $0x248] sm:$0xff]  }
 0x599   :  { %17154 = vmatpush3.bf16.msra.mxu0 %v18231_v16  ;;  %v18263_v16 = vld [vmem:[%s24680_s7 + $0x208] sm:$0xff]  }
 0x59a   :  { %17174 = vmatpush3.bf16.msra.mxu1 %v18232_v17  ;;  %17155 = vmatprep.subr.bf16.mxu0 %v18233_v22  ;;  %v18264_v17 = vld [vmem:[%s24680_s7 + $0x290] sm:$0xff]   ;;  %v18266_v22 = vld [vmem:[%s24680_s7 + $0x2c8] sm:$0xff]  }
 0x59b   :  { %17175 = vmatprep.subr.bf16.mxu1 %v18234_v9  ;;  %v18267_v9 = vld [vmem:[%s24680_s7 + $0x200] sm:$0xff]  }
 0x59d   :  { %17156 = vmatpush3.bf16.msra.mxu0 %v18235_v51  ;;  %v18078_v51 = vunpack.i.h.bf16 %v23691_v29 }
 0x59e   :  { %17176 = vmatpush3.bf16.msra.mxu1 %v18236_v59  ;;  %17185 = vmatprep.subr.bf16.mxu0 %v18238_v18  ;;  %v18077_v59 = vunpack.i.l.bf16 %v23691_v29  ;;  %v12414_v18 = vsel %vm12412_vm10, %v18058_v46, %v18063_v24  ;;  %v18270_v29 = vld [vmem:[%s24680_s7 + $0x280] sm:$0xff]   ;;  %v25143_v46 = vmov 0.0  }
 0x59f   :  { %17177 = vmatprep.subr.bf16.mxu1 %v18237_v60  ;;  %v12413_v60 = vsel %vm12412_vm10, %v18057_v42, %v18062_v21  ;;  %v12487_v53 = vsel %vm12485_vm11, %v18068_v48, %v18078_v51 }
 0x5a0   :  { %13517 = vmatmul.mubr.bf16.vlgmr.msra.gmra.mxu0 %v12583_v3  ;;  %v12486_v42 = vsel %vm12485_vm11, %v18067_v45, %v18077_v59  ;;  %v12587_v25 = vpack.c.bf16 %v12414_v18, %v12413_v60  ;;  %v12578_v24 = vsel %vm12556_vm12, %v12487_v53, %v18082_v36  ;;  %v18273_v45 = vld [vmem:[%s24680_s7 + $0x308] sm:$0xff]   ;;  %v12591_v36 = vpack.c.bf16 %v18083_v6, %v18073_v41  ;;  %v13689_v6 = vld [vmem:[%s24682_s9] sm:$0xff] }
 0x5a1   :  { %17186 = vmatpush3.bf16.msra.mxu0 %v18240_v27  ;;  %13598 = vmatprep.mubr.bf16.mxu0 %v12588_v38  ;;  %v12577_v21 = vsel %vm12556_vm12, %v12486_v42, %v18072_v40  ;;  %v23936_v27 = vld [vmem:[%s24684_s11 + $0x8] sm:$0xff] }
 0x5a2   :  { %17178 = vmatpush3.bf16.msra.mxu1 %v18239_v43  ;;  %17187 = vmatprep.subr.bf16.mxu0 %v18241_v0  ;;  %v12589_v48 = vpack.c.bf16 %v12578_v24, %v12577_v21  ;;  %v13692_v43 = vld [vmem:[%s24682_s9 + $0x18] sm:$0xff] }
 0x5a3   :  { %17207 = vmatprep.subr.bf16.mxu1 %v18242_v8 }
 0x5a5   :  { %13558 = vmatmul.mubr.bf16.vlgmr.msra.gmra.mxu1 %v12585_v58  ;;  %17188 = vmatpush3.bf16.msra.mxu0 %v18243_v57 }
 0x5a6   :  { %17208 = vmatpush3.bf16.msra.mxu1 %v18244_v47  ;;  %13639 = vmatprep.mubr.bf16.mxu1 %v12590_v7 }
 0x5a7   :  { %17189 = vmatprep.subr.bf16.mxu0 %v18245_v19  ;;  %17209 = vmatprep.subr.bf16.mxu1 %v18246_v49 }
 0x5a9   :  { %17190 = vmatpush3.bf16.msra.mxu0 %v18247_v30  ;;  %v16855_v30 = vld [vmem:[%s24681_s8] ss:$0 sm:$0xff] }
 0x5aa   :  { %17210 = vmatpush3.bf16.msra.mxu1 %v18248_v11  ;;  %17191 = vmatprep.subr.bf16.mxu0 %v18249_v44 }
 0x5ab   :  { %17211 = vmatprep.subr.bf16.mxu1 %v18250_v62 }
 0x5ad   :  { %17192 = vmatpush3.bf16.msra.mxu0 %v18251_v37 }
 0x5ae   :  { %17212 = vmatpush3.bf16.msra.mxu1 %v18252_v23  ;;  %17193 = vmatprep.subr.bf16.mxu0 %v18253_v63 }
 0x5af   :  { %17213 = vmatprep.subr.bf16.mxu1 %v18254_v55 }
 0x5b1   :  { %17194 = vmatpush3.bf16.msra.mxu0 %v18255_v56 }
 0x5b2   :  { %17214 = vmatpush3.bf16.msra.mxu1 %v18256_v14  ;;  %17195 = vmatprep.subr.bf16.mxu0 %v18257_v33 }
 0x5b3   :  { %17215 = vmatprep.subr.bf16.mxu1 %v18258_v26 }
 0x5b5   :  { %17196 = vmatpush3.bf16.msra.mxu0 %v18259_v12 }
 0x5b6   :  { %17216 = vmatpush3.bf16.msra.mxu1 %v18260_v35  ;;  %17197 = vmatprep.subr.bf16.mxu0 %v18261_v61 }
 0x5b7   :  { %17217 = vmatprep.subr.bf16.mxu1 %v18262_v39 }
 0x5b9   :  { %17198 = vmatpush3.bf16.msra.mxu0 %v18263_v16 }
 0x5ba   :  { %17218 = vmatpush3.bf16.msra.mxu1 %v18264_v17  ;;  %17199 = vmatprep.subr.bf16.mxu0 %v18265_v32 }
 0x5bb   :  { %17219 = vmatprep.subr.bf16.mxu1 %v18266_v22 }
 0x5bd   :  { %17200 = vmatpush3.bf16.msra.mxu0 %v18267_v9 }
 0x5be   :  { %17220 = vmatpush3.bf16.msra.mxu1 %v18268_v10  ;;  %17381 = vmatprep.subr.bf16.mxu0 %v25143_v46 }
 0x5bf   :  { %17221 = vmatprep.subr.bf16.mxu1 %v18269_v50 }
 0x5c0   :  { %13599 = vmatmul.mubr.bf16.vlgmr.msra.gmra.mxu0 %v12587_v25 }
 0x5c1   :  { %17382 = vmatpush3.bf16.msra.mxu0 %v18271_v13  ;;  %17389 = vmatprep.mubr.msk.bf16.mxu0 %vm18601_vm3, %v25143_v46 }
 0x5c2   :  { %17222 = vmatpush3.bf16.msra.mxu1 %v18270_v29  ;;  %17383 = vmatprep.subr.bf16.mxu0 %v25143_v46 }
 0x5c3   :  { %17393 = vmatprep.subr.mxu1 %v13692_v43 }
 0x5c5   :  { %13640 = vmatmul.mubr.bf16.vlgmr.msra.gmra.mxu1 %v12589_v48  ;;  %17384 = vmatpush3.bf16.msra.mxu0 %v18272_v1 }
 0x5c6   :  { %17385 = vmatprep.subr.bf16.mxu0 %v25143_v46  ;;  %17394 = vmatpush3.msra.mxu1 %v13692_v43  ;;  %v23968_v43 = vld [vmem:[%s24685_s12] sm:$0xff] }
 0x5c7   :  { %17395 = vmatprep.subr.mxu1 %v13691_v31 }
 0x5c8   :  { %17396 = vmatpush3.msra.mxu1 %v13691_v31 }
 0x5c9   :  { %17386 = vmatpush3.bf16.msra.mxu0 %v18273_v45  ;;  %17397 = vmatprep.subr.mxu1 %v13690_v2 }
 0x5ca   :  { %17387 = vmatprep.subr.bf16.mxu0 %v25143_v46  ;;  %17398 = vmatpush3.msra.mxu1 %v13690_v2 }
 0x5cb   :  { %17399 = vmatprep.subr.mxu1 %v13689_v6 }
 0x5cc   :  { %17400 = vmatpush3.msra.mxu1 %v13689_v6 }
 0x5cd   :  { %17388 = vmatpush3.bf16.msra.mxu0 %v18274_v5  ;;  %17404 = vmatprep.subr.mxu1 %v25143_v46 }
 0x5ce   :  { %17418 = vmatprep.subr.mxu0 %v25143_v46 }
 0x5d0   :  { %17390 = vmatmul.mubr.msk.bf16.vlgmr.msra.gmra.mxu0 %vm8097_vm8, %v12591_v36  ;;  %v23960_v36 = vld [vmem:[%s24685_s12 + $0x8] sm:$0xff]  ;;  %vm16026_vm8 = vcmask 1041408  }
 0x5d1   :  { %17422 = vmatprep.mubr.msk.f32.mxu0 %vm18601_vm3, %v25143_v46  ;;  %17419 = vmatpush3.msra.mxu0 %v23936_v27 }
 0x5d2   :  { %17420 = vmatprep.subr.mxu0 %v25143_v46 }
 0x5d3   :  { %17421 = vmatpush3.msra.mxu0 %v23943_v15 }
 0x5d4   :  { %17432 = vmatprep.subr.mxu0 %v25143_v46 }
 0x640   :  { %v17113_v34 = vpop.f32.mrf.mxu0 }
 0x642   :  { %v17114_v3 = vpop.f32.mrf.mxu0 }
 0x643   :  { %v17115_v7 = vadd.f32 %v17114_v3, %v17113_v34 }
 0x644   :  { %v17135_v0 = vpop.f32.mrf.mxu1  ;;  %v17116_v54 = vpop.f32.mrf.mxu0 }
 0x645   :  { %v13437_v23 = vadd.f32 %v17115_v7, %v16855_v30 }
 0x646   :  { %v17136_v41 = vpop.f32.mrf.mxu1  ;;  %v17117_v40 = vpop.f32.mrf.mxu0 }
 0x647   :  { %v17137_v62 = vadd.f32 %v17136_v41, %v17135_v0  ;;  %v17118_v63 = vadd.f32 %v17117_v40, %v17116_v54  ;;  %v16957_v40 = vld [vmem:[%s24683_s10] ss:$0 sm:$0xff]  ;;  %s18614_s10 = smov 80  }
 0x648   :  { %v17138_v8 = vpop.f32.mrf.mxu1 }
 0x649   :  { %v13478_v33 = vadd.f32 %v17137_v62, %v13437_v23  ;;  %v13440_v61 = vadd.f32 %v17118_v63, %v16855_v30 }
 0x64a   :  { %v17139_v20 = vpop.f32.mrf.mxu1 }
 0x64b   :  { %v17140_v26 = vadd.f32 %v17139_v20, %v17138_v8 }
 0x64d   :  { %v13481_v22 = vadd.f32 %v17140_v26, %v13440_v61 }
 0x660   :  { %v17157_v38 = vpop.f32.mrf.mxu0 }
 0x662   :  { %v17158_v57 = vpop.f32.mrf.mxu0 }
 0x663   :  { %v17159_v55 = vadd.f32 %v17158_v57, %v17157_v38 }
 0x664   :  { %v17160_v28 = vpop.f32.mrf.mxu0 }
 0x665   :  { %v17179_v47 = vpop.f32.mrf.mxu1  ;;  %v13519_v39 = vadd.f32 %v17159_v55, %v13478_v33 }
 0x666   :  { %v17161_v19 = vpop.f32.mrf.mxu0 }
 0x667   :  { %v17180_v58 = vpop.f32.mrf.mxu1  ;;  %v17162_v16 = vadd.f32 %v17161_v19, %v17160_v28 }
 0x668   :  { %v17181_v12 = vadd.f32 %v17180_v58, %v17179_v47 }
 0x669   :  { %v17182_v52 = vpop.f32.mrf.mxu1  ;;  %v13522_v50 = vadd.f32 %v17162_v16, %v13481_v22 }
 0x66a   :  { %v13560_v9 = vadd.f32 %v17181_v12, %v13519_v39 }
 0x66b   :  { %v17183_v11 = vpop.f32.mrf.mxu1 }
 0x66c   :  { %v17184_v10 = vadd.f32 %v17183_v11, %v17182_v52 }
 0x66e   :  { %v13563_v29 = vadd.f32 %v17184_v10, %v13522_v50 }
 0x680   :  { %v17201_v49 = vpop.f32.mrf.mxu0 }
 0x682   :  { %v17202_v44 = vpop.f32.mrf.mxu0 }
 0x683   :  { %v17203_v17 = vadd.f32 %v17202_v44, %v17201_v49 }
 0x684   :  { %v17204_v56 = vpop.f32.mrf.mxu0 }
 0x685   :  { %v17223_v37 = vpop.f32.mrf.mxu1  ;;  %v13601_v60 = vadd.f32 %v17203_v17, %v13560_v9 }
 0x686   :  { %v17205_v32 = vpop.f32.mrf.mxu0 }
 0x687   :  { %v17224_v14 = vpop.f32.mrf.mxu1  ;;  %v17206_v18 = vadd.f32 %v17205_v32, %v17204_v56 }
 0x688   :  { %v17225_v51 = vadd.f32 %v17224_v14, %v17223_v37 }
 0x689   :  { %v17226_v35 = vpop.f32.mrf.mxu1  ;;  %v13604_v25 = vadd.f32 %v17206_v18, %v13563_v29 }
 0x68a   :  { %v13642_v42 = vadd.f32 %v17225_v51, %v13601_v60 }
 0x68b   :  { %v17227_v59 = vpop.f32.mrf.mxu1 }
 0x68c   :  { %v17228_v13 = vadd.f32 %v17227_v59, %v17226_v35 }
 0x68e   :  { %v13645_v1 = vadd.f32 %v17228_v13, %v13604_v25 }
 0x690   :  { %v13682_v53 = vpop.f32.mrf.mxu0 }
 0x691   :  { %v13683_v24 = vadd.f32 %v13682_v53, %v13642_v42 }
 0x692   :  { %v17391_v21 = vpop.f32.mrf.mxu0 }
 0x693   :  { %17401 = vmatprep.mubr.msk.f32.mxu1 %vm12341_vm6, %v13683_v24 }
 0x694   :  { %v13685_v48 = vpop.f32.mrf.mxu0 }
 0x695   :  { %v13686_v45 = vadd.f32 %v13685_v48, %v13645_v1 }
 0x696   :  { %v17392_v5 = vpop.f32.mrf.mxu0 }
 0x697   :  { %17402 = vmatmul.mubr.msk.f32.vlgmr.msra.gmra.mxu1 %vm12341_vm6, %v13686_v45 }
 0x698   :  { %17405 = vmatpush3.msra.mxu1 %v23936_v27  ;;  %17408 = vmatprep.mubr.msk.f32.mxu1 %vm18601_vm3, %v25143_v46 }
 0x699   :  { %17406 = vmatprep.subr.mxu1 %v25143_v46 }
 0x69a   :  { %17407 = vmatpush3.msra.mxu1 %v23943_v15 }
 0x69b   :  { %17411 = vmatprep.subr.mxu1 %v25143_v46  ;;  %17409 = vmatmul.mubr.f32.vlgmr.msra.gmra.mxu1 %v25143_v46 }
 0x69c   :  { %17412 = vmatpush3.msra.mxu1 %v23960_v36  ;;  %17415 = vmatprep.mubr.msk.f32.mxu1 %vm18601_vm3, %v25143_v46 }
 0x69d   :  { %17413 = vmatprep.subr.mxu1 %v25143_v46 }
 0x69e   :  { %17414 = vmatpush3.msra.mxu1 %v23968_v43 }
 0x69f   :  { %17416 = vmatmul.mubr.f32.vlgmr.msra.gmra.mxu1 %v25143_v46  ;;  %17425 = vmatprep.subr.mxu1 %v25143_v46 }
 0x6a0   :  { %17426 = vmatpush3.msra.mxu1 %v23960_v36  ;;  %17429 = vmatprep.mubr.msk.f32.mxu1 %vm18601_vm3, %v25143_v46 }
 0x6a1   :  { %17427 = vmatprep.subr.mxu1 %v25143_v46 }
 0x6a2   :  { %17428 = vmatpush3.msra.mxu1 %v23968_v43 }
 0x6a3   :  { %17439 = vmatprep.subr.mxu1 %v25143_v46 }
 0x757   :  { %v17403_v31 = vpop.f32.mrf.mxu1 }
 0x758   :  { %v23990_v38 = vadd.f32 %v17403_v31, %v16957_v40 }
 0x759   :  { %v13772_v2 = vpop.f32.mrf.mxu1 }
 0x75a   :  { %v23988_v8 = vadd.f32 %v16957_v40, %v13772_v2 }
 0x75b   :  { %v13854_v6 = vpop.f32.mrf.mxu1 }
 0x75c   :  { %v13859_v12 = vrot.slane %v13854_v6, 1  ;;  %v13862_v51 = vadd.f32 %v13854_v6, %v23988_v8 }
 0x75d   :  { %v17410_v34 = vpop.f32.mrf.mxu1 }
 0x75e   :  { %v13863_v32 = vadd.f32 %v13859_v12, %v23990_v38  ;;  %v13864_v24 = vsub.f32 0.0, %v13862_v51 }
 0x75f   :  { %v13978_v3 = vpop.f32.mrf.mxu1 }
 0x760   :  { %v13983_v0 = vrot.slane %v13978_v3, 1  ;;  %v13984_v54 = vrot.slane %v13978_v3, 2  ;;  %v13865_v21 = vsub.f32 0.0, %v13863_v32  ;;  %v13866_v1 = vmul.f32 1.442695, %v13864_v24 }
 0x761   :  { %v17417_v41 = vpop.f32.mrf.mxu1 }
 0x762   :  { %13985 = vrot.lane.b32.xlu0 %v13983_v0, %s18603_s23  ;;  %13987 = vrot.lane.b32.xlu1 %v13984_v54, %s18603_s23  ;;  %v13868_v48 = vmul.f32 1.442695, %v13865_v21 }
 0x7d4   :  { %v13986_v20 = vpop.permute.xlu0 %13985  ;;  %v13988_v57 = vpop.permute.xlu1 %13987 }
 0x7d5   :  { %v13991_v47 = vadd.f32 %v13986_v20, %v23988_v8  ;;  %v13992_v28 = vadd.f32 %v13988_v57, %v23990_v38 }
 0x7d7   :  { %18275 = vtanh.f32 %v13991_v47  ;;  %v13993_v52 = vsub.f32 0.0, %v13991_v47  ;;  %v13994_v49 = vsub.f32 0.0, %v13992_v28 }
 0x7d8   :  { %18277 = vtanh.f32 %v13992_v28 }
 0x7d9   :  { %v13995_v7 = vmul.f32 1.442695, %v13993_v52  ;;  %v13997_v30 = vmul.f32 1.442695, %v13994_v49 }
 0x7db   :  { %18279 = vpow2.f32 %v13995_v7 }
 0x7dc   :  { %18281 = vpow2.f32 %v13997_v30 }
 0x7e4   :  { %v18276_v58 = vpop.eup %18275 }
 0x7e5   :  { %v18278_v19 = vpop.eup %18277  ;;  %14011 = vrot.lane.b32.xlu0 %v18276_v58, %s18613_s2 }
 0x7e6   :  { %14013 = vrot.lane.b32.xlu1 %v18278_v19, %s18613_s2 }
 0x7e8   :  { %v18280_v11 = vpop.eup %18279 }
 0x7e9   :  { %v18282_v44 = vpop.eup %18281  ;;  %v13999_v62 = vadd.f32 1.0, %v18280_v11 }
 0x7ea   :  { %v14000_v37 = vadd.f32 1.0, %v18282_v44 }
 0x7eb   :  { %18283 = vrcp.f32 %v13999_v62 }
 0x7ec   :  { %18285 = vrcp.f32 %v14000_v37 }
 0x7f8   :  { %v18284_v23 = vpop.eup %18283 }
 0x7f9   :  { %v18286_v55 = vpop.eup %18285  ;;  %v14007_v26 = vmul.f32 0.0, %v18284_v23 }
 0x7fa   :  { %v14008_v35 = vmul.f32 0.0, %v18286_v55 }
 0x857   :  { %v14012_v63 = vpop.permute.xlu0 %14011 }
 0x858   :  { %v14014_v56 = vpop.permute.xlu1 %14013  ;;  %v14017_v14 = vmul.f32 %v18284_v23, %v14012_v63 }
 0x859   :  { %v14018_v33 = vmul.f32 %v18286_v55, %v14014_v56 }
 0x85a   :  { %14021 = vrot.lane.b32.xlu0 %v14017_v14, %s18607_s16 }
 0x85b   :  { %14023 = vrot.lane.b32.xlu1 %v14018_v33, %s18607_s16 }
 0x8cc   :  { %v14022_v61 = vpop.permute.xlu0 %14021 }
 0x8cd   :  { %v14024_v39 = vpop.permute.xlu1 %14023  ;;  %v23998_v16 = vadd.f32 %v14022_v61, %v14007_v26 }
 0x8ce   :  { %v24000_v17 = vadd.f32 %v14024_v39, %v14008_v35 }
 0x8cf   :  { %18287 = vtanh.f32 %v23998_v16  ;;  %v14285_v24 = vrot.slane %v23998_v16, 1 }
 0x8d0   :  { %18289 = vtanh.f32 %v24000_v17  ;;  %v14286_v21 = vrot.slane %v24000_v17, 1 }
 0x8d1   :  { %18291 = vtanh.f32 %v13863_v32 }
 0x8d2   :  { %18293 = vtanh.f32 %v13862_v51 }
 0x8d3   :  { %18295 = vpow2.f32 %v13866_v1 }
 0x8d4   :  { %18297 = vpow2.f32 %v13868_v48 }
 0x8dc   :  { %v18288_v22 = vpop.eup %18287 }
 0x8dd   :  { %v18290_v9 = vpop.eup %18289  ;;  %14033 = vrot.lane.b32.xlu0 %v18288_v22, %s18609_s5 }
 0x8de   :  { %14035 = vrot.lane.b32.xlu1 %v18290_v9, %s18609_s5  ;;  %v18292_v10 = vpop.eup %18291 }
 0x8df   :  { %v18294_v53 = vpop.eup %18293 }
 0x8e0   :  { %v18296_v45 = vpop.eup %18295 }
 0x8e1   :  { %v18298_v5 = vpop.eup %18297  ;;  %v13870_v31 = vadd.f32 1.0, %v18296_v45 }
 0x8e2   :  { %13884 = vrot.lane.b32.xlu1 %v18292_v10, %s18613_s2  ;;  %v13871_v2 = vadd.f32 1.0, %v18298_v5 }
 0x8e3   :  { %18299 = vrcp.f32 %v13870_v31 }
 0x8e4   :  { %18301 = vrcp.f32 %v13871_v2 }
 0x8f0   :  { %v18300_v40 = vpop.eup %18299 }
 0x8f1   :  { %v18302_v20 = vpop.eup %18301  ;;  %v13878_v11 = vmul.f32 0.0, %v18300_v40 }
 0x8f2   :  { %v13879_v49 = vmul.f32 0.0, %v18302_v20 }
 0x94f   :  { %v14034_v59 = vpop.permute.xlu0 %14033 }
 0x950   :  { %v14036_v50 = vpop.permute.xlu1 %14035  ;;  %v24009_v60 = vmul.f32 %v18284_v23, %v14034_v59 }
 0x951   :  { %v24011_v18 = vmul.f32 %v18286_v55, %v14036_v50 }
 0x952   :  { %v14181_v29 = vrot.slane %v24009_v60, 7 }
 0x953   :  { %v14182_v13 = vrot.slane %v24011_v18, 6 }
 0x954   :  { %v13885_v34 = vpop.permute.xlu1 %13884 }
 0x955   :  { %v14183_v42 = vsel %vm11995_vm9, %v14182_v13, %v14181_v29  ;;  %v13889_v57 = vmul.f32 %v18302_v20, %v13885_v34 }
 0x956   :  { %14184 = vrot.lane.b32.xlu0 %v14183_v42, %s18607_s16 }
 0x95a   :  { %13882 = vrot.lane.b32.xlu0 %v18294_v53, %s18613_s2 }
 0x9c8   :  { %v14185_v25 = vpop.permute.xlu0 %14184 }
 0x9c9   :  { %17430 = vmatmul.mubr.msk.f32.vlgmr.msra.gmra.mxu1 %vm2668_vm7, %v14185_v25 }
 0x9ca   :  { %17440 = vmatpush3.msra.mxu1 %v23960_v36  ;;  %17443 = vmatprep.mubr.msk.f32.mxu1 %vm18601_vm3, %v25143_v46 }
 0x9cb   :  { %17441 = vmatprep.subr.mxu1 %v25143_v46 }
 0x9cc   :  { %17442 = vmatpush3.msra.mxu1 %v23968_v43  ;;  %v13883_v54 = vpop.permute.xlu0 %13882 }
 0x9cd   :  { %17453 = vmatprep.subr.mxu1 %v25143_v46  ;;  %v13888_v47 = vmul.f32 %v18300_v40, %v13883_v54 }
 0xa89   :  { %v14254_v6 = vpop.f32.mrf.mxu1 }
 0xa8a   :  { %v14259_v3 = vrot.slane %v14254_v6, 2  ;;  %v14260_v0 = vrot.slane %v14254_v6, 3 }
 0xa8b   :  { %v17431_v41 = vpop.f32.mrf.mxu1 }
 0xa8c   :  { %14261 = vrot.lane.b32.xlu1 %v14259_v3, %s18603_s23  ;;  %14263 = vrot.lane.b32.xlu0 %v14260_v0, %s18603_s23 }
 0xa90   :  { %13894 = vrot.lane.b32.xlu1 %v13889_v57, %s18607_s16  ;;  %13892 = vrot.lane.b32.xlu0 %v13888_v47, %s18607_s16 }
 0xafe   :  { %v14262_v28 = vpop.permute.xlu1 %14261  ;;  %v14264_v58 = vpop.permute.xlu0 %14263 }
 0xaff   :  { %v14267_v19 = vadd.f32 %v14262_v28, %v23988_v8  ;;  %v14268_v52 = vadd.f32 %v14264_v58, %v23990_v38 }
 0xb01   :  { %18303 = vtanh.f32 %v14267_v19  ;;  %v14269_v56 = vsub.f32 0.0, %v14267_v19  ;;  %v14270_v14 = vsub.f32 0.0, %v14268_v52 }
 0xb02   :  { %18305 = vtanh.f32 %v14268_v52  ;;  %v13895_v7 = vpop.permute.xlu1 %13894  ;;  %v13893_v30 = vpop.permute.xlu0 %13892 }
 0xb03   :  { %v24031_v44 = vadd.f32 %v13895_v7, %v13879_v49  ;;  %v24033_v62 = vadd.f32 %v13893_v30, %v13878_v11  ;;  %v14271_v33 = vmul.f32 1.442695, %v14269_v56  ;;  %v14273_v26 = vmul.f32 1.442695, %v14270_v14 }
 0xb05   :  { %18307 = vtanh.f32 %v24031_v44 }
 0xb06   :  { %18309 = vtanh.f32 %v24033_v62 }
 0xb07   :  { %18311 = vpow2.f32 %v14271_v33 }
 0xb08   :  { %18313 = vpow2.f32 %v14273_v26 }
 0xb0e   :  { %v18304_v37 = vpop.eup %18303 }
 0xb0f   :  { %v18306_v23 = vpop.eup %18305  ;;  %14293 = vrot.lane.b32.xlu1 %v18304_v37, %s18613_s2 }
 0xb10   :  { %14295 = vrot.lane.b32.xlu0 %v18306_v23, %s18613_s2 }
 0xb12   :  { %v18308_v63 = vpop.eup %18307 }
 0xb13   :  { %v18310_v55 = vpop.eup %18309  ;;  %13906 = vrot.lane.b32.xlu1 %v18308_v63, %s18609_s5 }
 0xb14   :  { %13904 = vrot.lane.b32.xlu0 %v18310_v55, %s18609_s5  ;;  %v18312_v12 = vpop.eup %18311 }
 0xb15   :  { %v18314_v35 = vpop.eup %18313  ;;  %v14275_v61 = vadd.f32 1.0, %v18312_v12 }
 0xb16   :  { %v14276_v39 = vadd.f32 1.0, %v18314_v35 }
 0xb17   :  { %18315 = vrcp.f32 %v14275_v61 }
 0xb18   :  { %18317 = vrcp.f32 %v14276_v39 }
 0xb24   :  { %v18316_v32 = vpop.eup %18315 }
 0xb25   :  { %v18318_v9 = vpop.eup %18317  ;;  %v14289_v1 = vmul.f32 %v18316_v32, %v14285_v24 }
 0xb26   :  { %v14290_v45 = vmul.f32 %v18318_v9, %v14286_v21 }
 0xb81   :  { %v14294_v22 = vpop.permute.xlu1 %14293 }
 0xb82   :  { %v14299_v10 = vmul.f32 %v18316_v32, %v14294_v22  ;;  %v14296_v51 = vpop.permute.xlu0 %14295 }
 0xb83   :  { %v14300_v59 = vmul.f32 %v18318_v9, %v14296_v51 }
 0xb84   :  { %14303 = vrot.lane.b32.xlu1 %v14299_v10, %s18607_s16  ;;  %v14142_v10 = vrot.slane %v24031_v44, 7 }
 0xb85   :  { %14305 = vrot.lane.b32.xlu0 %v14300_v59, %s18607_s16  ;;  %v13907_v50 = vpop.permute.xlu1 %13906  ;;  %v14141_v59 = vrot.slane %v24033_v62, 7 }
 0xb86   :  { %v24043_v29 = vmul.f32 %v18302_v20, %v13907_v50  ;;  %v13905_v13 = vpop.permute.xlu0 %13904 }
 0xb87   :  { %v24046_v53 = vmul.f32 %v18300_v40, %v13905_v13 }
 0xb88   :  { %v14043_v42 = vrot.slane %v24043_v29, 7 }
 0xb8a   :  { %v14044_v25 = vsel %vm11995_vm9, %v14043_v42, %v24046_v53 }
 0xb8b   :  { %14045 = vrot.lane.b32.xlu1 %v14044_v25, %s18614_s10 }
 0xbf6   :  { %v14304_v48 = vpop.permute.xlu1 %14303 }
 0xbf7   :  { %v24053_v5 = vadd.f32 %v14304_v48, %v14289_v1  ;;  %v14306_v31 = vpop.permute.xlu0 %14305 }
 0xbf8   :  { %v24055_v2 = vadd.f32 %v14306_v31, %v14290_v45 }
 0xbf9   :  { %18319 = vtanh.f32 %v24053_v5 }
 0xbfa   :  { %18321 = vtanh.f32 %v24055_v2 }
 0xbfd   :  { %v14046_v6 = vpop.permute.xlu1 %14045 }
 0xbfe   :  { %17423 = vmatmul.mubr.msk.f32.vlgmr.msra.gmra.mxu0 %vm2668_vm7, %v14046_v6 }
 0xbff   :  { %17433 = vmatpush3.msra.mxu0 %v23936_v27  ;;  %17436 = vmatprep.mubr.msk.f32.mxu0 %vm18601_vm3, %v25143_v46 }
 0xc00   :  { %17434 = vmatprep.subr.mxu0 %v25143_v46 }
 0xc01   :  { %17435 = vmatpush3.msra.mxu0 %v23943_v15 }
 0xc02   :  { %17446 = vmatprep.subr.mxu0 %v25143_v46 }
 0xc06   :  { %v18320_v16 = vpop.eup %18319 }
 0xc07   :  { %v18322_v17 = vpop.eup %18321  ;;  %14315 = vrot.lane.b32.xlu0 %v18320_v16, %s18609_s5 }
 0xc08   :  { %14317 = vrot.lane.b32.xlu1 %v18322_v17, %s18609_s5 }
 0xc79   :  { %v14316_v34 = vpop.permute.xlu0 %14315 }
 0xc7a   :  { %v14318_v3 = vpop.permute.xlu1 %14317  ;;  %v24068_v0 = vmul.f32 %v18316_v32, %v14316_v34 }
 0xc7b   :  { %v24070_v54 = vmul.f32 %v18318_v9, %v14318_v3 }
 0xc7c   :  { %v14464_v41 = vrot.slane %v24068_v0, 6 }
 0xc7d   :  { %v14465_v40 = vrot.slane %v24070_v54, 5 }
 0xc7f   :  { %v14466_v20 = vsel %vm11995_vm9, %v14465_v40, %v14464_v41 }
 0xc80   :  { %14467 = vrot.lane.b32.xlu0 %v14466_v20, %s18607_s16 }
 0xcbe   :  { %v14115_v57 = vpop.f32.mrf.mxu0 }
 0xcbf   :  { %v14120_v47 = vrot.slane %v14115_v57, 7  ;;  %v14124_v28 = vadd.f32 %v14115_v57, %v23990_v38 }
 0xcc0   :  { %v17424_v58 = vpop.f32.mrf.mxu0 }
 0xcc1   :  { %v14123_v19 = vadd.f32 %v14120_v47, %v23988_v8  ;;  %18323 = vtanh.f32 %v14124_v28  ;;  %v14126_v30 = vsub.f32 0.0, %v14124_v28 }
 0xcc3   :  { %18325 = vtanh.f32 %v14123_v19  ;;  %v14125_v11 = vsub.f32 0.0, %v14123_v19  ;;  %v14129_v37 = vmul.f32 1.442695, %v14126_v30 }
 0xcc5   :  { %v14127_v23 = vmul.f32 1.442695, %v14125_v11  ;;  %18327 = vpow2.f32 %v14129_v37 }
 0xcc7   :  { %18329 = vpow2.f32 %v14127_v23 }
 0xcce   :  { %v18324_v52 = vpop.eup %18323 }
 0xccf   :  { %14151 = vrot.lane.b32.xlu0 %v18324_v52, %s18613_s2 }
 0xcd0   :  { %v18326_v49 = vpop.eup %18325 }
 0xcd1   :  { %14149 = vrot.lane.b32.xlu1 %v18326_v49, %s18613_s2 }
 0xcd2   :  { %v18328_v63 = vpop.eup %18327 }
 0xcd3   :  { %v14132_v56 = vadd.f32 1.0, %v18328_v63 }
 0xcd4   :  { %v18330_v55 = vpop.eup %18329 }
 0xcd5   :  { %v14131_v14 = vadd.f32 1.0, %v18330_v55  ;;  %18331 = vrcp.f32 %v14132_v56 }
 0xcd7   :  { %18333 = vrcp.f32 %v14131_v14  ;;  %v14568_v14 = vrot.slane %v24053_v5, 1 }
 0xce2   :  { %v18332_v33 = vpop.eup %18331 }
 0xce3   :  { %v14146_v50 = vmul.f32 %v18332_v33, %v14142_v10 }
 0xce4   :  { %v18334_v35 = vpop.eup %18333 }
 0xce5   :  { %v14145_v25 = vmul.f32 %v18334_v35, %v14141_v59 }
 0xcf2   :  { %v14468_v7 = vpop.permute.xlu0 %14467 }
 0xcf3   :  { %17444 = vmatmul.mubr.msk.f32.vlgmr.msra.gmra.mxu1 %vm2668_vm7, %v14468_v7 }
 0xcf4   :  { %17454 = vmatpush3.msra.mxu1 %v23960_v36  ;;  %17457 = vmatprep.mubr.msk.f32.mxu1 %vm18601_vm3, %v25143_v46 }
 0xcf5   :  { %17455 = vmatprep.subr.mxu1 %v25143_v46 }
 0xcf6   :  { %17456 = vmatpush3.msra.mxu1 %v23968_v43 }
 0xcf7   :  { %17467 = vmatprep.subr.mxu1 %v25143_v46 }
 0xd41   :  { %v14152_v26 = vpop.permute.xlu0 %14151 }
 0xd42   :  { %v14156_v12 = vmul.f32 %v18332_v33, %v14152_v26 }
 0xd43   :  { %v14150_v61 = vpop.permute.xlu1 %14149 }
 0xd44   :  { %v14155_v39 = vmul.f32 %v18334_v35, %v14150_v61  ;;  %14161 = vrot.lane.b32.xlu0 %v14156_v12, %s18607_s16 }
 0xd46   :  { %14159 = vrot.lane.b32.xlu1 %v14155_v39, %s18607_s16 }
 0xdb3   :  { %v14537_v32 = vpop.f32.mrf.mxu1 }
 0xdb4   :  { %v14542_v22 = vrot.slane %v14537_v32, 3  ;;  %v14543_v9 = vrot.slane %v14537_v32, 4 }
 0xdb5   :  { %v17445_v51 = vpop.f32.mrf.mxu1 }
 0xdb6   :  { %14544 = vrot.lane.b32.xlu1 %v14542_v22, %s18603_s23  ;;  %14546 = vrot.lane.b32.xlu0 %v14543_v9, %s18603_s23  ;;  %v14162_v13 = vpop.permute.xlu0 %14161 }
 0xdb7   :  { %v24093_v42 = vadd.f32 %v14162_v13, %v14146_v50 }
 0xdb8   :  { %v14160_v24 = vpop.permute.xlu1 %14159 }
 0xdb9   :  { %18335 = vtanh.f32 %v24093_v42  ;;  %v24096_v21 = vadd.f32 %v14160_v24, %v14145_v25 }
 0xdbb   :  { %18337 = vtanh.f32 %v24096_v21 }
 0xdc6   :  { %v18336_v44 = vpop.eup %18335 }
 0xdc7   :  { %14173 = vrot.lane.b32.xlu0 %v18336_v44, %s18609_s5 }
 0xdc8   :  { %v18338_v1 = vpop.eup %18337 }
 0xdc9   :  { %14171 = vrot.lane.b32.xlu1 %v18338_v1, %s18609_s5 }
 0xe28   :  { %v14545_v48 = vpop.permute.xlu1 %14544  ;;  %v14547_v62 = vpop.permute.xlu0 %14546 }
 0xe29   :  { %v14550_v45 = vadd.f32 %v14545_v48, %v23988_v8  ;;  %v14551_v31 = vadd.f32 %v14547_v62, %v23990_v38 }
 0xe2b   :  { %18339 = vtanh.f32 %v14550_v45  ;;  %v14552_v57 = vsub.f32 0.0, %v14550_v45  ;;  %v14553_v47 = vsub.f32 0.0, %v14551_v31 }
 0xe2c   :  { %18341 = vtanh.f32 %v14551_v31 }
 0xe2d   :  { %v14554_v28 = vmul.f32 1.442695, %v14552_v57  ;;  %v14556_v58 = vmul.f32 1.442695, %v14553_v47 }
 0xe2f   :  { %18343 = vpow2.f32 %v14554_v28 }
 0xe30   :  { %18345 = vpow2.f32 %v14556_v58 }
 0xe38   :  { %v18340_v6 = vpop.eup %18339 }
 0xe39   :  { %v18342_v16 = vpop.eup %18341  ;;  %14576 = vrot.lane.b32.xlu1 %v18340_v6, %s18613_s2  ;;  %v14174_v17 = vpop.permute.xlu0 %14173 }
 0xe3a   :  { %14578 = vrot.lane.b32.xlu0 %v18342_v16, %s18613_s2  ;;  %v24107_v41 = vmul.f32 %v18332_v33, %v14174_v17  ;;  %v14569_v33 = vrot.slane %v24055_v2, 1 }
 0xe3b   :  { %v14172_v34 = vpop.permute.xlu1 %14171 }
 0xe3c   :  { %v24105_v3 = vmul.f32 %v18334_v35, %v14172_v34  ;;  %v18344_v19 = vpop.eup %18343 }
 0xe3d   :  { %v18346_v52 = vpop.eup %18345  ;;  %v14558_v49 = vadd.f32 1.0, %v18344_v19 }
 0xe3e   :  { %v14325_v40 = vrot.slane %v24105_v3, 1  ;;  %v14559_v7 = vadd.f32 1.0, %v18346_v52 }
 0xe3f   :  { %18347 = vrcp.f32 %v14558_v49 }
 0xe40   :  { %v14326_v20 = vsel %vm11995_vm9, %v24107_v41, %v14325_v40  ;;  %18349 = vrcp.f32 %v14559_v7 }
 0xe41   :  { %14327 = vrot.lane.b32.xlu1 %v14326_v20, %s18614_s10 }
 0xe4c   :  { %v18348_v30 = vpop.eup %18347 }
 0xe4d   :  { %v18350_v37 = vpop.eup %18349  ;;  %v14572_v26 = vmul.f32 %v18348_v30, %v14568_v14 }
 0xe4e   :  { %v14573_v12 = vmul.f32 %v18350_v37, %v14569_v33 }
 0xeab   :  { %v14577_v11 = vpop.permute.xlu1 %14576 }
 0xeac   :  { %v14582_v23 = vmul.f32 %v18348_v30, %v14577_v11  ;;  %v14579_v63 = vpop.permute.xlu0 %14578  ;;  %v14424_v11 = vrot.slane %v24096_v21, 7 }
 0xead   :  { %v14583_v55 = vmul.f32 %v18350_v37, %v14579_v63 }
 0xeae   :  { %14586 = vrot.lane.b32.xlu0 %v14582_v23, %s18607_s16 }
 0xeaf   :  { %14588 = vrot.lane.b32.xlu1 %v14583_v55, %s18607_s16 }
 0xeb3   :  { %v14328_v56 = vpop.permute.xlu1 %14327 }
 0xeb4   :  { %17437 = vmatmul.mubr.msk.f32.vlgmr.msra.gmra.mxu0 %vm2668_vm7, %v14328_v56  ;;  %v14425_v56 = vrot.slane %v24093_v42, 7 }
 0xeb5   :  { %17447 = vmatpush3.msra.mxu0 %v23936_v27  ;;  %17450 = vmatprep.mubr.msk.f32.mxu0 %vm18601_vm3, %v25143_v46 }
 0xeb6   :  { %17448 = vmatprep.subr.mxu0 %v25143_v46 }
 0xeb7   :  { %17449 = vmatpush3.msra.mxu0 %v23943_v15 }
 0xeb8   :  { %17460 = vmatprep.subr.mxu0 %v25143_v46 }
 0xf20   :  { %v14587_v35 = vpop.permute.xlu0 %14586 }
 0xf21   :  { %v14589_v61 = vpop.permute.xlu1 %14588  ;;  %v24124_v39 = vadd.f32 %v14587_v35, %v14572_v26 }
 0xf22   :  { %v24126_v32 = vadd.f32 %v14589_v61, %v14573_v12 }
 0xf23   :  { %18351 = vtanh.f32 %v24124_v39 }
 0xf24   :  { %18353 = vtanh.f32 %v24126_v32 }
 0xf30   :  { %v18352_v22 = vpop.eup %18351 }
 0xf31   :  { %v18354_v9 = vpop.eup %18353  ;;  %14598 = vrot.lane.b32.xlu0 %v18352_v22, %s18609_s5 }
 0xf32   :  { %14600 = vrot.lane.b32.xlu1 %v18354_v9, %s18609_s5 }
 0xf74   :  { %v14397_v5 = vpop.f32.mrf.mxu0 }
 0xf75   :  { %v14402_v2 = vrot.slane %v14397_v5, 6  ;;  %v14403_v50 = vrot.slane %v14397_v5, 7  ;;  %v16024_v5 = vsel %vm16023_vm13, %v24046_v53, %v24105_v3 }
 0xf76   :  { %v17438_v10 = vpop.f32.mrf.mxu0 }
 0xf77   :  { %v14406_v51 = vadd.f32 %v14402_v2, %v23988_v8  ;;  %v14407_v13 = vadd.f32 %v14403_v50, %v23990_v38 }
 0xf79   :  { %18355 = vtanh.f32 %v14406_v51  ;;  %v14408_v6 = vsub.f32 0.0, %v14406_v51  ;;  %v14409_v40 = vsub.f32 0.0, %v14407_v13 }
 0xf7a   :  { %18357 = vtanh.f32 %v14407_v13 }
 0xf7b   :  { %v14410_v16 = vmul.f32 1.442695, %v14408_v6  ;;  %v14412_v57 = vmul.f32 1.442695, %v14409_v40 }
 0xf7d   :  { %18359 = vpow2.f32 %v14410_v16 }
 0xf86   :  { %v18356_v59 = vpop.eup %18355 }
 0xf87   :  { %14432 = vrot.lane.b32.xlu1 %v18356_v59, %s18613_s2  ;;  %v18358_v31 = vpop.eup %18357  ;;  %v16025_v59 = vsel %vm16023_vm13, %v24043_v29, %v24107_v41 }
 0xf8a   :  { %v18360_v17 = vpop.eup %18359 }
 0xf8b   :  { %v14414_v34 = vadd.f32 1.0, %v18360_v17 }
 0xf8d   :  { %18361 = vrcp.f32 %v14414_v34 }
 0xf8e   :  { %18363 = vpow2.f32 %v14412_v57 }
 0xf9a   :  { %v18362_v20 = vpop.eup %18361 }
 0xf9b   :  { %v18364_v58 = vpop.eup %18363 }
 0xf9c   :  { %v14415_v19 = vadd.f32 1.0, %v18364_v58 }
 0xf9e   :  { %18365 = vrcp.f32 %v14415_v19 }
 0xfa3   :  { %v14599_v25 = vpop.permute.xlu0 %14598 }
 0xfa4   :  { %v14601_v24 = vpop.permute.xlu1 %14600  ;;  %v24135_v44 = vmul.f32 %v18348_v30, %v14599_v25 }
 0xfa5   :  { %v24137_v1 = vmul.f32 %v18350_v37, %v14601_v24  ;;  %v14428_v37 = vmul.f32 %v18362_v20, %v14424_v11 }
 0xfa6   :  { %v14748_v48 = vrot.slane %v24135_v44, 5 }
 0xfa7   :  { %v14749_v62 = vrot.slane %v24137_v1, 4 }
 0xfa9   :  { %v14750_v45 = vsel %vm11995_vm9, %v14749_v62, %v14748_v48 }
 0xfaa   :  { %14751 = vrot.lane.b32.xlu0 %v14750_v45, %s18607_s16 }
 0xfab   :  { %v18366_v49 = vpop.eup %18365 }
 0xfac   :  { %v14429_v14 = vmul.f32 %v18366_v49, %v14425_v56 }
 0xfae   :  { %14434 = vrot.lane.b32.xlu0 %v18358_v31, %s18613_s2 }
 0xff9   :  { %v14433_v47 = vpop.permute.xlu1 %14432 }
 0xffa   :  { %v14438_v28 = vmul.f32 %v18362_v20, %v14433_v47 }
 0xffc   :  { %14442 = vrot.lane.b32.xlu1 %v14438_v28, %s18607_s16 }
0x101c   :  { %v14752_v52 = vpop.permute.xlu0 %14751 }
0x101d   :  { %17458 = vmatmul.mubr.msk.f32.vlgmr.msra.gmra.mxu1 %vm2668_vm7, %v14752_v52  ;;  %v14852_v52 = vrot.slane %v24124_v39, 1 }
0x101e   :  { %17468 = vmatpush3.msra.mxu1 %v23960_v36  ;;  %17471 = vmatprep.mubr.msk.f32.mxu1 %vm18601_vm3, %v25143_v46 }
0x101f   :  { %17469 = vmatprep.subr.mxu1 %v25143_v46 }
0x1020   :  { %v14435_v7 = vpop.permute.xlu0 %14434  ;;  %17470 = vmatpush3.msra.mxu1 %v23968_v43 }
0x1021   :  { %v14439_v30 = vmul.f32 %v18366_v49, %v14435_v7  ;;  %17481 = vmatprep.subr.mxu1 %v25143_v46 }
0x1023   :  { %14444 = vrot.lane.b32.xlu0 %v14439_v30, %s18607_s16 }
0x106e   :  { %v14443_v23 = vpop.permute.xlu1 %14442 }
0x106f   :  { %v24154_v63 = vadd.f32 %v14443_v23, %v14428_v37 }
0x1071   :  { %18367 = vtanh.f32 %v24154_v63 }
0x107e   :  { %v18368_v55 = vpop.eup %18367 }
0x107f   :  { %14454 = vrot.lane.b32.xlu1 %v18368_v55, %s18609_s5 }
0x1095   :  { %v14445_v33 = vpop.permute.xlu0 %14444 }
0x1096   :  { %v24159_v26 = vadd.f32 %v14445_v33, %v14429_v14 }
0x1098   :  { %18369 = vtanh.f32 %v24159_v26 }
0x10a5   :  { %v18370_v12 = vpop.eup %18369 }
0x10a6   :  { %14456 = vrot.lane.b32.xlu0 %v18370_v12, %s18609_s5 }
0x10dd   :  { %v14821_v21 = vpop.f32.mrf.mxu1 }
0x10de   :  { %v14826_v35 = vrot.slane %v14821_v21, 4  ;;  %v14827_v61 = vrot.slane %v14821_v21, 5 }
0x10df   :  { %v17459_v22 = vpop.f32.mrf.mxu1 }
0x10e0   :  { %14828 = vrot.lane.b32.xlu1 %v14826_v35, %s18603_s23  ;;  %14830 = vrot.lane.b32.xlu0 %v14827_v61, %s18603_s23 }
0x10f1   :  { %v14455_v9 = vpop.permute.xlu1 %14454 }
0x10f2   :  { %v14460_v42 = vmul.f32 %v18362_v20, %v14455_v9 }
0x10f4   :  { %v24169_v2 = vsel %vm16026_vm8, %v16024_v5, %v14460_v42  ;;  %v14608_v50 = vrot.slane %v14460_v42, 2 }
0x1118   :  { %v14457_v10 = vpop.permute.xlu0 %14456 }
0x1119   :  { %v14461_v51 = vmul.f32 %v18366_v49, %v14457_v10  ;;  %v14853_v49 = vrot.slane %v24126_v32, 1 }
0x111b   :  { %v14609_v13 = vrot.slane %v14461_v51, 1  ;;  %v24175_v25 = vsel %vm16026_vm8, %v16025_v59, %v14461_v51 }
0x111d   :  { %v14610_v24 = vsel %vm11995_vm9, %v14609_v13, %v14608_v50 }
0x111e   :  { %14611 = vrot.lane.b32.xlu1 %v14610_v24, %s18614_s10 }
0x1152   :  { %v14829_v48 = vpop.permute.xlu1 %14828  ;;  %v14831_v53 = vpop.permute.xlu0 %14830 }
0x1153   :  { %v14834_v3 = vadd.f32 %v14829_v48, %v23988_v8  ;;  %v14835_v62 = vadd.f32 %v14831_v53, %v23990_v38 }
0x1155   :  { %18371 = vtanh.f32 %v14834_v3  ;;  %v14836_v41 = vsub.f32 0.0, %v14834_v3  ;;  %v14837_v6 = vsub.f32 0.0, %v14835_v62 }
0x1156   :  { %18373 = vtanh.f32 %v14835_v62 }
0x1157   :  { %v14838_v16 = vmul.f32 1.442695, %v14836_v41  ;;  %v14840_v17 = vmul.f32 1.442695, %v14837_v6 }
0x1159   :  { %18375 = vpow2.f32 %v14838_v16 }
0x115a   :  { %18377 = vpow2.f32 %v14840_v17  ;;  %v14708_v17 = vrot.slane %v24154_v63, 7  ;;  %v14709_v63 = vrot.slane %v24159_v26, 7 }
0x1162   :  { %v18372_v45 = vpop.eup %18371 }
0x1163   :  { %v18374_v31 = vpop.eup %18373  ;;  %14860 = vrot.lane.b32.xlu0 %v18372_v45, %s18613_s2 }
0x1164   :  { %14862 = vrot.lane.b32.xlu1 %v18374_v31, %s18613_s2 }
0x1166   :  { %v18376_v34 = vpop.eup %18375 }
0x1167   :  { %v18378_v40 = vpop.eup %18377  ;;  %v14842_v20 = vadd.f32 1.0, %v18376_v34 }
0x1168   :  { %v14843_v57 = vadd.f32 1.0, %v18378_v40 }
0x1169   :  { %18379 = vrcp.f32 %v14842_v20 }
0x116a   :  { %18381 = vrcp.f32 %v14843_v57 }
0x1190   :  { %v14612_v29 = vpop.permute.xlu1 %14611 }
0x1191   :  { %17451 = vmatmul.mubr.msk.f32.vlgmr.msra.gmra.mxu0 %vm2668_vm7, %v14612_v29 }
0x1192   :  { %17461 = vmatpush3.msra.mxu0 %v23936_v27  ;;  %17464 = vmatprep.mubr.msk.f32.mxu0 %vm18601_vm3, %v25143_v46  ;;  %v18380_v27 = vpop.eup %18379 }
0x1193   :  { %17462 = vmatprep.subr.mxu0 %v25143_v46  ;;  %v18382_v28 = vpop.eup %18381  ;;  %v14856_v7 = vmul.f32 %v18380_v27, %v14852_v52 }
0x1194   :  { %17463 = vmatpush3.msra.mxu0 %v23943_v15  ;;  %v14857_v30 = vmul.f32 %v18382_v28, %v14853_v49 }
0x1195   :  { %17474 = vmatprep.subr.mxu0 %v25143_v46 }
0x11d5   :  { %v14861_v47 = vpop.permute.xlu0 %14860 }
0x11d6   :  { %v14863_v58 = vpop.permute.xlu1 %14862  ;;  %v14866_v19 = vmul.f32 %v18380_v27, %v14861_v47 }
0x11d7   :  { %v14867_v15 = vmul.f32 %v18382_v28, %v14863_v58 }
0x11d8   :  { %14870 = vrot.lane.b32.xlu0 %v14866_v19, %s18607_s16 }
0x11d9   :  { %14872 = vrot.lane.b32.xlu1 %v14867_v15, %s18607_s16 }
0x124a   :  { %v14871_v11 = vpop.permute.xlu0 %14870 }
0x124b   :  { %v14873_v37 = vpop.permute.xlu1 %14872  ;;  %v24194_v23 = vadd.f32 %v14871_v11, %v14856_v7 }
0x124c   :  { %v24196_v55 = vadd.f32 %v14873_v37, %v14857_v30 }
0x124d   :  { %18383 = vtanh.f32 %v24194_v23 }
0x124e   :  { %18385 = vtanh.f32 %v24196_v55 }
0x1251   :  { %v14681_v56 = vpop.f32.mrf.mxu0 }
0x1252   :  { %v14686_v14 = vrot.slane %v14681_v56, 5  ;;  %v14687_v9 = vrot.slane %v14681_v56, 6 }
0x1253   :  { %v17452_v33 = vpop.f32.mrf.mxu0 }
0x1254   :  { %v14690_v12 = vadd.f32 %v14686_v14, %v23988_v8  ;;  %v14691_v5 = vadd.f32 %v14687_v9, %v23990_v38 }
0x1256   :  { %18387 = vtanh.f32 %v14690_v12  ;;  %v14692_v35 = vsub.f32 0.0, %v14690_v12  ;;  %v14693_v31 = vsub.f32 0.0, %v14691_v5 }
0x1258   :  { %v14694_v61 = vmul.f32 1.442695, %v14692_v35  ;;  %v14696_v29 = vmul.f32 1.442695, %v14693_v31 }
0x125a   :  { %v18384_v39 = vpop.eup %18383  ;;  %18389 = vpow2.f32 %v14694_v61 }
0x125b   :  { %v18386_v32 = vpop.eup %18385  ;;  %14882 = vrot.lane.b32.xlu0 %v18384_v39, %s18609_s5 }
0x125c   :  { %14884 = vrot.lane.b32.xlu1 %v18386_v32, %s18609_s5 }
0x1263   :  { %v18388_v21 = vpop.eup %18387 }
0x1264   :  { %14716 = vrot.lane.b32.xlu1 %v18388_v21, %s18613_s2 }
0x1267   :  { %v18390_v22 = vpop.eup %18389 }
0x1268   :  { %v14698_v42 = vadd.f32 1.0, %v18390_v22  ;;  %v24260_v22 = vld [vmem:[%s24684_s11] sm:$0xff] }
0x126a   :  { %18391 = vrcp.f32 %v14698_v42 }
0x126b   :  { %18393 = vtanh.f32 %v14691_v5 }
0x126c   :  { %18395 = vpow2.f32 %v14696_v29 }
0x1277   :  { %v18392_v53 = vpop.eup %18391 }
0x1278   :  { %v18394_v62 = vpop.eup %18393  ;;  %v14712_v20 = vmul.f32 %v18392_v53, %v14708_v17 }
0x1279   :  { %v18396_v41 = vpop.eup %18395 }
0x127a   :  { %v14699_v6 = vadd.f32 1.0, %v18396_v41 }
0x127c   :  { %18397 = vrcp.f32 %v14699_v6 }
0x1289   :  { %v18398_v34 = vpop.eup %18397 }
0x12cd   :  { %v14883_v10 = vpop.permute.xlu0 %14882 }
0x12ce   :  { %v14885_v51 = vpop.permute.xlu1 %14884  ;;  %v24205_v59 = vmul.f32 %v18380_v27, %v14883_v10 }
0x12cf   :  { %v24207_v50 = vmul.f32 %v18382_v28, %v14885_v51  ;;  %v14713_v28 = vmul.f32 %v18398_v34, %v14709_v63 }
0x12d0   :  { %v15032_v13 = vrot.slane %v24205_v59, 4 }
0x12d1   :  { %v15033_v24 = vrot.slane %v24207_v50, 3 }
0x12d3   :  { %v15034_v48 = vsel %vm11995_vm9, %v15033_v24, %v15032_v13 }
0x12d4   :  { %15035 = vrot.lane.b32.xlu0 %v15034_v48, %s18607_s16 }
0x12d6   :  { %v14717_v3 = vpop.permute.xlu1 %14716 }
0x12d7   :  { %v14722_v45 = vmul.f32 %v18392_v53, %v14717_v3 }
0x12d8   :  { %14718 = vrot.lane.b32.xlu0 %v18394_v62, %s18613_s2 }
0x12d9   :  { %14726 = vrot.lane.b32.xlu1 %v14722_v45, %s18607_s16 }
0x1346   :  { %v15036_v16 = vpop.permute.xlu0 %15035 }
0x1347   :  { %17472 = vmatmul.mubr.msk.f32.vlgmr.msra.gmra.mxu1 %vm2668_vm7, %v15036_v16  ;;  %v15136_v16 = vrot.slane %v24194_v23, 1  ;;  %v15137_v23 = vrot.slane %v24196_v55, 1 }
0x1348   :  { %17482 = vmatpush3.msra.mxu1 %v23960_v36  ;;  %17485 = vmatprep.mubr.msk.f32.mxu1 %vm18601_vm3, %v25143_v46 }
0x1349   :  { %17483 = vmatprep.subr.mxu1 %v25143_v46 }
0x134a   :  { %v14719_v40 = vpop.permute.xlu0 %14718  ;;  %17484 = vmatpush3.msra.mxu1 %v23968_v43 }
0x134b   :  { %v14723_v57 = vmul.f32 %v18398_v34, %v14719_v40  ;;  %v14727_v27 = vpop.permute.xlu1 %14726  ;;  %17495 = vmatprep.subr.mxu1 %v25143_v46 }
0x134c   :  { %v24223_v47 = vadd.f32 %v14727_v27, %v14712_v20 }
0x134d   :  { %14728 = vrot.lane.b32.xlu0 %v14723_v57, %s18607_s16 }
0x134e   :  { %18399 = vtanh.f32 %v24223_v47 }
0x135b   :  { %v18400_v36 = vpop.eup %18399 }
0x135c   :  { %14738 = vrot.lane.b32.xlu1 %v18400_v36, %s18609_s5 }
0x13bf   :  { %v14729_v58 = vpop.permute.xlu0 %14728 }
0x13c0   :  { %v24229_v19 = vadd.f32 %v14729_v58, %v14713_v28 }
0x13c2   :  { %18401 = vtanh.f32 %v24229_v19 }
0x13ce   :  { %v14739_v43 = vpop.permute.xlu1 %14738 }
0x13cf   :  { %v18402_v15 = vpop.eup %18401  ;;  %v14744_v52 = vmul.f32 %v18392_v53, %v14739_v43 }
0x13d0   :  { %14740 = vrot.lane.b32.xlu0 %v18402_v15, %s18609_s5 }
0x13d1   :  { %v24235_v49 = vsel %vm16029_vm14, %v24169_v2, %v14744_v52  ;;  %v14892_v56 = vrot.slane %v14744_v52, 3 }
0x1407   :  { %v15105_v7 = vpop.f32.mrf.mxu1 }
0x1408   :  { %v15110_v30 = vrot.slane %v15105_v7, 5  ;;  %v15111_v39 = vrot.slane %v15105_v7, 6 }
0x1409   :  { %v17473_v11 = vpop.f32.mrf.mxu1 }
0x140a   :  { %15112 = vrot.lane.b32.xlu0 %v15110_v30, %s18603_s23 }
0x1442   :  { %v14741_v26 = vpop.permute.xlu0 %14740 }
0x1443   :  { %v14745_v37 = vmul.f32 %v18398_v34, %v14741_v26 }
0x1445   :  { %v14893_v14 = vrot.slane %v14745_v37, 2  ;;  %v24240_v33 = vsel %vm16029_vm14, %v24175_v25, %v14745_v37  ;;  %v24251_v25 = vld [vmem:[%s24684_s11 + $0x8] sm:$0xff]  ;;  %s18615_s11 = smov [#allocation3]  }
0x1447   :  { %v14894_v12 = vsel %vm11995_vm9, %v14893_v14, %v14892_v56 }
0x1448   :  { %14895 = vrot.lane.b32.xlu1 %v14894_v12, %s18614_s10 }
0x144c   :  { %15114 = vrot.lane.b32.xlu1 %v15111_v39, %s18603_s23 }
0x147c   :  { %v15113_v2 = vpop.permute.xlu0 %15112 }
0x147d   :  { %v15118_v32 = vadd.f32 %v15113_v2, %v23988_v8 }
0x147f   :  { %18403 = vtanh.f32 %v15118_v32  ;;  %v15120_v5 = vsub.f32 0.0, %v15118_v32 }
0x1481   :  { %v15122_v10 = vmul.f32 1.442695, %v15120_v5 }
0x148c   :  { %v18404_v21 = vpop.eup %18403 }
0x148d   :  { %15144 = vrot.lane.b32.xlu0 %v18404_v21, %s18613_s2 }
0x14ba   :  { %v14896_v35 = vpop.permute.xlu1 %14895 }
0x14bb   :  { %17465 = vmatmul.mubr.msk.f32.vlgmr.msra.gmra.mxu0 %vm2668_vm7, %v14896_v35 }
0x14bc   :  { %17475 = vmatpush3.msra.mxu0 %v24251_v25  ;;  %17478 = vmatprep.mubr.msk.f32.mxu0 %vm18601_vm3, %v25143_v46 }
0x14bd   :  { %17476 = vmatprep.subr.mxu0 %v25143_v46 }
0x14be   :  { %v15115_v61 = vpop.permute.xlu1 %15114  ;;  %17477 = vmatpush3.msra.mxu0 %v24260_v22 }
0x14bf   :  { %v15119_v9 = vadd.f32 %v15115_v61, %v23990_v38  ;;  %17488 = vmatprep.subr.mxu0 %v25143_v46 }
0x14c1   :  { %18405 = vtanh.f32 %v15119_v9  ;;  %v15121_v3 = vsub.f32 0.0, %v15119_v9 }
0x14c2   :  { %18407 = vpow2.f32 %v15122_v10 }
0x14c3   :  { %v15124_v62 = vmul.f32 1.442695, %v15121_v3 }
0x14ce   :  { %v18406_v42 = vpop.eup %18405 }
0x14cf   :  { %15146 = vrot.lane.b32.xlu1 %v18406_v42, %s18613_s2  ;;  %v18408_v51 = vpop.eup %18407 }
0x14d0   :  { %v15126_v13 = vadd.f32 1.0, %v18408_v51 }
0x14d2   :  { %18409 = vrcp.f32 %v15126_v13 }
0x14d3   :  { %18411 = vpow2.f32 %v15124_v62  ;;  %v14992_v62 = vrot.slane %v24223_v47, 7 }
0x14df   :  { %v18410_v24 = vpop.eup %18409 }
0x14e0   :  { %v18412_v45 = vpop.eup %18411  ;;  %v15140_v17 = vmul.f32 %v18410_v24, %v15136_v16  ;;  %v24302_v16 = vld [vmem:[%s24685_s12 + $0x8] sm:$0xff] }
0x14e1   :  { %v15127_v31 = vadd.f32 1.0, %v18412_v45 }
0x14e3   :  { %18413 = vrcp.f32 %v15127_v31 }
0x14f0   :  { %v18414_v29 = vpop.eup %18413 }
0x14f1   :  { %v15141_v43 = vmul.f32 %v18414_v29, %v15137_v23 }
0x14ff   :  { %v15145_v48 = vpop.permute.xlu0 %15144 }
0x1500   :  { %v15150_v53 = vmul.f32 %v18410_v24, %v15145_v48 }
0x1502   :  { %15154 = vrot.lane.b32.xlu0 %v15150_v53, %s18607_s16 }
0x1541   :  { %v15147_v41 = vpop.permute.xlu1 %15146 }
0x1542   :  { %v15151_v6 = vmul.f32 %v18414_v29, %v15147_v41 }
0x1544   :  { %15156 = vrot.lane.b32.xlu1 %v15151_v6, %s18607_s16  ;;  %v14993_v6 = vrot.slane %v24229_v19, 7  ;;  %v24311_v19 = vld [vmem:[%s24685_s12] sm:$0xff] }
0x1574   :  { %v15155_v34 = vpop.permute.xlu0 %15154 }
0x1575   :  { %v24269_v40 = vadd.f32 %v15155_v34, %v15140_v17 }
0x1577   :  { %18415 = vtanh.f32 %v24269_v40 }
0x157b   :  { %v14965_v20 = vpop.f32.mrf.mxu0 }
0x157c   :  { %v14970_v57 = vrot.slane %v14965_v20, 4  ;;  %v14971_v58 = vrot.slane %v14965_v20, 5 }
0x157d   :  { %v17466_v27 = vpop.f32.mrf.mxu0 }
0x157e   :  { %v14974_v36 = vadd.f32 %v14970_v57, %v23988_v8  ;;  %v14975_v7 = vadd.f32 %v14971_v58, %v23990_v38 }
0x1580   :  { %18417 = vtanh.f32 %v14974_v36  ;;  %v14976_v26 = vsub.f32 0.0, %v14974_v36  ;;  %v14977_v32 = vsub.f32 0.0, %v14975_v7 }
0x1582   :  { %v14978_v37 = vmul.f32 1.442695, %v14976_v26  ;;  %v14980_v21 = vmul.f32 1.442695, %v14977_v32 }
0x1584   :  { %v18416_v63 = vpop.eup %18415 }
0x1585   :  { %15166 = vrot.lane.b32.xlu0 %v18416_v63, %s18609_s5 }
0x158d   :  { %v18418_v28 = vpop.eup %18417 }
0x158e   :  { %15000 = vrot.lane.b32.xlu0 %v18418_v28, %s18613_s2 }
0x15b6   :  { %v15157_v15 = vpop.permute.xlu1 %15156 }
0x15b7   :  { %v24276_v52 = vadd.f32 %v15157_v15, %v15141_v43 }
0x15b9   :  { %18419 = vtanh.f32 %v24276_v52 }
0x15ba   :  { %18421 = vtanh.f32 %v14975_v7 }
0x15bb   :  { %18423 = vpow2.f32 %v14978_v37 }
0x15c6   :  { %v18420_v30 = vpop.eup %18419 }
0x15c7   :  { %15168 = vrot.lane.b32.xlu1 %v18420_v30, %s18609_s5  ;;  %v18422_v11 = vpop.eup %18421 }
0x15c8   :  { %v18424_v55 = vpop.eup %18423 }
0x15c9   :  { %v14982_v56 = vadd.f32 1.0, %v18424_v55 }
0x15cb   :  { %15002 = vrot.lane.b32.xlu1 %v18422_v11, %s18613_s2  ;;  %18425 = vrcp.f32 %v14982_v56 }
0x15cc   :  { %18427 = vpow2.f32 %v14980_v21 }
0x15d8   :  { %v18426_v12 = vpop.eup %18425 }
0x15d9   :  { %v18428_v35 = vpop.eup %18427 }
0x15da   :  { %v14983_v61 = vadd.f32 1.0, %v18428_v35 }
0x15dc   :  { %18429 = vrcp.f32 %v14983_v61 }
0x15e9   :  { %v18430_v53 = vpop.eup %18429 }
0x15ea   :  { %v14997_v47 = vmul.f32 %v18430_v53, %v14993_v6 }
0x15f7   :  { %v15167_v14 = vpop.permute.xlu0 %15166 }
0x15f8   :  { %v24283_v9 = vmul.f32 %v18410_v24, %v15167_v14  ;;  %v14996_v24 = vmul.f32 %v18426_v12, %v14992_v62 }
0x15fa   :  { %v15316_v10 = vrot.slane %v24283_v9, 3 }
0x1600   :  { %v15001_v39 = vpop.permute.xlu0 %15000 }
0x1601   :  { %v15006_v2 = vmul.f32 %v18426_v12, %v15001_v39 }
0x1603   :  { %15010 = vrot.lane.b32.xlu1 %v15006_v2, %s18607_s16 }
0x1639   :  { %v15169_v42 = vpop.permute.xlu1 %15168 }
0x163a   :  { %v24285_v5 = vmul.f32 %v18414_v29, %v15169_v42 }
0x163c   :  { %v15317_v51 = vrot.slane %v24285_v5, 2 }
0x163d   :  { %v15003_v13 = vpop.permute.xlu1 %15002 }
0x163e   :  { %v15318_v48 = vsel %vm11995_vm9, %v15317_v51, %v15316_v10  ;;  %v15007_v3 = vmul.f32 %v18430_v53, %v15003_v13 }
0x163f   :  { %15319 = vrot.lane.b32.xlu0 %v15318_v48, %s18607_s16 }
0x1643   :  { %15012 = vrot.lane.b32.xlu0 %v15007_v3, %s18607_s16 }
0x1675   :  { %v15011_v45 = vpop.permute.xlu1 %15010 }
0x1676   :  { %v24293_v31 = vadd.f32 %v15011_v45, %v14996_v24 }
0x1678   :  { %18431 = vtanh.f32 %v24293_v31 }
0x1685   :  { %v18432_v29 = vpop.eup %18431 }
0x1686   :  { %15022 = vrot.lane.b32.xlu1 %v18432_v29, %s18609_s5 }
0x16b1   :  { %v15320_v41 = vpop.permute.xlu0 %15319 }
0x16b2   :  { %17486 = vmatmul.mubr.msk.f32.vlgmr.msra.gmra.mxu1 %vm2668_vm7, %v15320_v41 }
0x16b3   :  { %17496 = vmatpush3.msra.mxu1 %v24302_v16  ;;  %17499 = vmatprep.mubr.msk.f32.mxu1 %vm18601_vm3, %v25143_v46 }
0x16b4   :  { %17497 = vmatprep.subr.mxu1 %v25143_v46 }
0x16b5   :  { %v15013_v17 = vpop.permute.xlu0 %15012  ;;  %17498 = vmatpush3.msra.mxu1 %v24311_v19 }
0x16b6   :  { %v24314_v34 = vadd.f32 %v15013_v17, %v14997_v47  ;;  %17509 = vmatprep.subr.mxu1 %v25143_v46 }
0x16b8   :  { %18433 = vtanh.f32 %v24314_v34 }
0x16c5   :  { %v18434_v20 = vpop.eup %18433 }
0x16c6   :  { %15024 = vrot.lane.b32.xlu0 %v18434_v20, %s18609_s5 }
0x16f8   :  { %v15023_v57 = vpop.permute.xlu1 %15022 }
0x16f9   :  { %v15028_v27 = vmul.f32 %v18426_v12, %v15023_v57 }
0x16fb   :  { %v24321_v36 = vsel %vm16032_vm15, %v24235_v49, %v15028_v27  ;;  %v15176_v23 = vrot.slane %v15028_v27, 4 }
0x1738   :  { %v15025_v63 = vpop.permute.xlu0 %15024 }
0x1739   :  { %v15029_v28 = vmul.f32 %v18430_v53, %v15025_v63 }
0x173b   :  { %v15177_v58 = vrot.slane %v15029_v28, 3  ;;  %v24325_v43 = vsel %vm16032_vm15, %v24240_v33, %v15029_v28 }
0x173d   :  { %v15178_v15 = vsel %vm11995_vm9, %v15177_v58, %v15176_v23  ;;  %v15421_v23 = vrot.slane %v24276_v52, 1  ;;  %v15420_v58 = vrot.slane %v24269_v40, 1 }
0x173e   :  { %15179 = vrot.lane.b32.xlu1 %v15178_v15, %s18614_s10 }
0x1772   :  { %v15389_v7 = vpop.f32.mrf.mxu1 }
0x1773   :  { %v15394_v30 = vrot.slane %v15389_v7, 6  ;;  %v15395_v11 = vrot.slane %v15389_v7, 7 }
0x1774   :  { %v17487_v26 = vpop.f32.mrf.mxu1 }
0x1775   :  { %15396 = vrot.lane.b32.xlu0 %v15394_v30, %s18603_s23  ;;  %15398 = vrot.lane.b32.xlu1 %v15395_v11, %s18603_s23 }
0x17b0   :  { %v15180_v49 = vpop.permute.xlu1 %15179 }
0x17b1   :  { %17479 = vmatmul.mubr.msk.f32.vlgmr.msra.gmra.mxu0 %vm2668_vm7, %v15180_v49 }
0x17b2   :  { %17489 = vmatpush3.msra.mxu0 %v24251_v25  ;;  %17492 = vmatprep.mubr.msk.f32.mxu0 %vm18601_vm3, %v25143_v46 }
0x17b3   :  { %17490 = vmatprep.subr.mxu0 %v25143_v46 }
0x17b4   :  { %17491 = vmatpush3.msra.mxu0 %v24260_v22 }
0x17b5   :  { %17502 = vmatprep.subr.mxu0 %v25143_v46 }
0x17e7   :  { %v15399_v33 = vpop.permute.xlu1 %15398  ;;  %v15397_v37 = vpop.permute.xlu0 %15396 }
0x17e8   :  { %v15403_v55 = vadd.f32 %v15399_v33, %v23990_v38  ;;  %v15402_v56 = vadd.f32 %v15397_v37, %v23988_v8 }
0x17ea   :  { %18435 = vtanh.f32 %v15403_v55  ;;  %v15405_v39 = vsub.f32 0.0, %v15403_v55  ;;  %v15404_v2 = vsub.f32 0.0, %v15402_v56 }
0x17eb   :  { %18437 = vtanh.f32 %v15402_v56 }
0x17ec   :  { %v15408_v32 = vmul.f32 1.442695, %v15405_v39  ;;  %v15406_v21 = vmul.f32 1.442695, %v15404_v2 }
0x17ee   :  { %18439 = vpow2.f32 %v15408_v32 }
0x17ef   :  { %18441 = vpow2.f32 %v15406_v21 }
0x17f7   :  { %v18436_v14 = vpop.eup %18435 }
0x17f8   :  { %v18438_v12 = vpop.eup %18437  ;;  %15430 = vrot.lane.b32.xlu1 %v18436_v14, %s18613_s2 }
0x17f9   :  { %15428 = vrot.lane.b32.xlu0 %v18438_v12, %s18613_s2 }
0x17fb   :  { %v18440_v35 = vpop.eup %18439 }
0x17fc   :  { %v18442_v61 = vpop.eup %18441  ;;  %v15411_v42 = vadd.f32 1.0, %v18440_v35 }
0x17fd   :  { %v15410_v10 = vadd.f32 1.0, %v18442_v61 }
0x17fe   :  { %18443 = vrcp.f32 %v15411_v42 }
0x17ff   :  { %18445 = vrcp.f32 %v15410_v10 }
0x180b   :  { %v18444_v51 = vpop.eup %18443 }
0x180c   :  { %v18446_v48 = vpop.eup %18445  ;;  %v15425_v15 = vmul.f32 %v18444_v51, %v15421_v23 }
0x180d   :  { %v15424_v30 = vmul.f32 %v18446_v48, %v15420_v58 }
0x186a   :  { %v15431_v13 = vpop.permute.xlu1 %15430 }
0x186b   :  { %v15435_v53 = vmul.f32 %v18444_v51, %v15431_v13  ;;  %v15429_v3 = vpop.permute.xlu0 %15428 }
0x186c   :  { %v15434_v62 = vmul.f32 %v18446_v48, %v15429_v3  ;;  %v15276_v3 = vrot.slane %v24293_v31, 7 }
0x186d   :  { %15440 = vrot.lane.b32.xlu1 %v15435_v53, %s18607_s16 }
0x186e   :  { %15438 = vrot.lane.b32.xlu0 %v15434_v62, %s18607_s16 }
0x1871   :  { %v15249_v24 = vpop.f32.mrf.mxu0 }
0x1872   :  { %v15254_v45 = vrot.slane %v15249_v24, 3  ;;  %v15255_v29 = vrot.slane %v15249_v24, 4  ;;  %v15277_v24 = vrot.slane %v24314_v34, 7 }
0x1873   :  { %v17480_v41 = vpop.f32.mrf.mxu0 }
0x1874   :  { %v15258_v6 = vadd.f32 %v15254_v45, %v23988_v8  ;;  %v15259_v47 = vadd.f32 %v15255_v29, %v23990_v38 }
0x1876   :  { %18447 = vtanh.f32 %v15258_v6  ;;  %v15260_v57 = vsub.f32 0.0, %v15258_v6  ;;  %v15261_v27 = vsub.f32 0.0, %v15259_v47 }
0x1877   :  { %18449 = vtanh.f32 %v15259_v47 }
0x1878   :  { %v15262_v63 = vmul.f32 1.442695, %v15260_v57  ;;  %v15264_v28 = vmul.f32 1.442695, %v15261_v27 }
0x187a   :  { %18451 = vpow2.f32 %v15262_v63 }
0x187b   :  { %18453 = vpow2.f32 %v15264_v28 }
0x1883   :  { %v18448_v17 = vpop.eup %18447 }
0x1884   :  { %v18450_v20 = vpop.eup %18449  ;;  %15284 = vrot.lane.b32.xlu0 %v18448_v17, %s18613_s2 }
0x1885   :  { %15286 = vrot.lane.b32.xlu1 %v18450_v20, %s18613_s2 }
0x1887   :  { %v18452_v33 = vpop.eup %18451 }
0x1888   :  { %v18454_v37 = vpop.eup %18453  ;;  %v15266_v55 = vadd.f32 1.0, %v18452_v33 }
0x1889   :  { %v15267_v56 = vadd.f32 1.0, %v18454_v37 }
0x18df   :  { %v15441_v7 = vpop.permute.xlu1 %15440 }
0x18e0   :  { %v24350_v11 = vadd.f32 %v15441_v7, %v15425_v15  ;;  %v15439_v26 = vpop.permute.xlu0 %15438 }
0x18e1   :  { %v24352_v49 = vadd.f32 %v15439_v26, %v15424_v30 }
0x18e2   :  { %18455 = vtanh.f32 %v24350_v11 }
0x18e3   :  { %18457 = vtanh.f32 %v24352_v49 }
0x18e4   :  { %18459 = vrcp.f32 %v15266_v55 }
0x18e5   :  { %18461 = vrcp.f32 %v15267_v56 }
0x18ef   :  { %v18456_v52 = vpop.eup %18455 }
0x18f0   :  { %v18458_v40 = vpop.eup %18457  ;;  %15452 = vrot.lane.b32.xlu1 %v18456_v52, %s18609_s5 }
0x18f1   :  { %15450 = vrot.lane.b32.xlu0 %v18458_v40, %s18609_s5  ;;  %v18460_v14 = vpop.eup %18459 }
0x18f2   :  { %v18462_v39 = vpop.eup %18461  ;;  %v15280_v45 = vmul.f32 %v18460_v14, %v15276_v3 }
0x18f3   :  { %v15281_v29 = vmul.f32 %v18462_v39, %v15277_v24 }
0x18f6   :  { %v15285_v12 = vpop.permute.xlu0 %15284 }
0x18f7   :  { %v15287_v2 = vpop.permute.xlu1 %15286  ;;  %v15290_v32 = vmul.f32 %v18460_v14, %v15285_v12 }
0x18f8   :  { %v15291_v21 = vmul.f32 %v18462_v39, %v15287_v2 }
0x18f9   :  { %15294 = vrot.lane.b32.xlu0 %v15290_v32, %s18607_s16 }
0x18fa   :  { %15296 = vrot.lane.b32.xlu1 %v15291_v21, %s18607_s16 }
0x1962   :  { %v15453_v35 = vpop.permute.xlu1 %15452 }
0x1963   :  { %v24360_v61 = vmul.f32 %v18444_v51, %v15453_v35  ;;  %v15451_v42 = vpop.permute.xlu0 %15450 }
0x1964   :  { %v24362_v10 = vmul.f32 %v18446_v48, %v15451_v42 }
0x1965   :  { %v15601_v13 = vrot.slane %v24360_v61, 1 }
0x1966   :  { %v15600_v53 = vrot.slane %v24362_v10, 2 }
0x1968   :  { %v15602_v62 = vsel %vm11995_vm9, %v15601_v13, %v15600_v53 }
0x1969   :  { %15603 = vrot.lane.b32.xlu0 %v15602_v62, %s18607_s16 }
0x196b   :  { %v15295_v41 = vpop.permute.xlu0 %15294 }
0x196c   :  { %v15297_v51 = vpop.permute.xlu1 %15296  ;;  %v24370_v6 = vadd.f32 %v15295_v41, %v15280_v45 }
0x196d   :  { %v24372_v48 = vadd.f32 %v15297_v51, %v15281_v29 }
0x196e   :  { %18463 = vtanh.f32 %v24370_v6 }
0x196f   :  { %18465 = vtanh.f32 %v24372_v48 }
0x197b   :  { %v18464_v47 = vpop.eup %18463 }
0x197c   :  { %v18466_v31 = vpop.eup %18465  ;;  %15306 = vrot.lane.b32.xlu1 %v18464_v47, %s18609_s5 }
0x197d   :  { %15308 = vrot.lane.b32.xlu0 %v18466_v31, %s18609_s5 }
0x19db   :  { %v15604_v34 = vpop.permute.xlu0 %15603 }
0x19dc   :  { %17500 = vmatmul.mubr.msk.f32.vlgmr.msra.gmra.mxu1 %vm2668_vm7, %v15604_v34 }
0x19dd   :  { %17510 = vmatpush3.msra.mxu1 %v24302_v16  ;;  %17513 = vmatprep.mubr.msk.f32.mxu1 %vm18601_vm3, %v25143_v46 }
0x19de   :  { %17511 = vmatprep.subr.mxu1 %v25143_v46 }
0x19df   :  { %17512 = vmatpush3.msra.mxu1 %v24311_v19 }
0x19ee   :  { %v15307_v17 = vpop.permute.xlu1 %15306 }
0x19ef   :  { %v15312_v20 = vmul.f32 %v18460_v14, %v15307_v17  ;;  %v15309_v57 = vpop.permute.xlu0 %15308 }
0x19f0   :  { %v15313_v27 = vmul.f32 %v18462_v39, %v15309_v57 }
0x19f1   :  { %v15460_v63 = vrot.slane %v15312_v20, 5  ;;  %v24386_v28 = vsel %vm426_vm2, %v24321_v36, %v15312_v20 }
0x19f2   :  { %v15461_v23 = vrot.slane %v15313_v27, 4  ;;  %v24390_v16 = vsel %vm426_vm2, %v24325_v43, %v15313_v27 }
0x19f4   :  { %v15462_v58 = vsel %vm11995_vm9, %v15461_v23, %v15460_v63  ;;  %v15704_v23 = vrot.slane %v24350_v11, 1 }
0x19f5   :  { %15463 = vrot.lane.b32.xlu1 %v15462_v58, %s18614_s10  ;;  %v15703_v58 = vrot.slane %v24352_v49, 1 }
0x1a67   :  { %v15464_v15 = vpop.permute.xlu1 %15463 }
0x1a68   :  { %17493 = vmatmul.mubr.msk.f32.vlgmr.msra.gmra.mxu0 %vm2668_vm7, %v15464_v15 }
0x1a69   :  { %17503 = vmatpush3.msra.mxu0 %v24251_v25  ;;  %17506 = vmatprep.mubr.msk.f32.mxu0 %vm18601_vm3, %v25143_v46 }
0x1a6a   :  { %17504 = vmatprep.subr.mxu0 %v25143_v46 }
0x1a6b   :  { %17505 = vmatpush3.msra.mxu0 %v24260_v22 }
0x1a9c   :  { %v15673_v19 = vpop.f32.mrf.mxu1 }
0x1a9d   :  { %v15678_v36 = vrot.slane %v15673_v19, 7  ;;  %15681 = vrot.lane.b32.xlu1 %v15673_v19, %s18603_s23 }
0x1a9e   :  { %v17501_v43 = vpop.f32.mrf.mxu1 }
0x1a9f   :  { %15679 = vrot.lane.b32.xlu0 %v15678_v36, %s18603_s23 }
0x1b0f   :  { %v15682_v7 = vpop.permute.xlu1 %15681 }
0x1b10   :  { %v15686_v30 = vadd.f32 %v15682_v7, %v23990_v38 }
0x1b11   :  { %v15680_v26 = vpop.permute.xlu0 %15679 }
0x1b12   :  { %18467 = vtanh.f32 %v15686_v30  ;;  %v15685_v25 = vadd.f32 %v15680_v26, %v23988_v8  ;;  %v15688_v56 = vsub.f32 0.0, %v15686_v30 }
0x1b14   :  { %18469 = vtanh.f32 %v15685_v25  ;;  %v15687_v52 = vsub.f32 0.0, %v15685_v25  ;;  %v15691_v40 = vmul.f32 1.442695, %v15688_v56  ;;  %v15561_v56 = vrot.slane %v24372_v48, 7 }
0x1b16   :  { %v15689_v14 = vmul.f32 1.442695, %v15687_v52  ;;  %18471 = vpow2.f32 %v15691_v40  ;;  %v15560_v52 = vrot.slane %v24370_v6, 7 }
0x1b18   :  { %18473 = vpow2.f32 %v15689_v14 }
0x1b1f   :  { %v18468_v33 = vpop.eup %18467 }
0x1b20   :  { %15713 = vrot.lane.b32.xlu1 %v18468_v33, %s18613_s2 }
0x1b21   :  { %v18470_v37 = vpop.eup %18469 }
0x1b22   :  { %15711 = vrot.lane.b32.xlu0 %v18470_v37, %s18613_s2 }
0x1b23   :  { %v18472_v12 = vpop.eup %18471 }
0x1b24   :  { %v15694_v2 = vadd.f32 1.0, %v18472_v12 }
0x1b25   :  { %v18474_v39 = vpop.eup %18473 }
0x1b26   :  { %v15693_v32 = vadd.f32 1.0, %v18474_v39  ;;  %18475 = vrcp.f32 %v15694_v2 }
0x1b28   :  { %v15533_v22 = vpop.f32.mrf.mxu0  ;;  %18477 = vrcp.f32 %v15693_v32 }
0x1b29   :  { %v15539_v21 = vrot.slane %v15533_v22, 3  ;;  %v15538_v35 = vrot.slane %v15533_v22, 2 }
0x1b2a   :  { %v17494_v55 = vpop.f32.mrf.mxu0 }
0x1b2b   :  { %v15543_v42 = vadd.f32 %v15539_v21, %v23990_v38  ;;  %v15542_v13 = vadd.f32 %v15538_v35, %v23988_v8 }
0x1b2d   :  { %18479 = vtanh.f32 %v15543_v42  ;;  %v15545_v47 = vsub.f32 0.0, %v15543_v42  ;;  %v15544_v31 = vsub.f32 0.0, %v15542_v13 }
0x1b2e   :  { %18481 = vtanh.f32 %v15542_v13 }
0x1b2f   :  { %v15548_v34 = vmul.f32 1.442695, %v15545_v47  ;;  %v15546_v17 = vmul.f32 1.442695, %v15544_v31 }
0x1b31   :  { %18483 = vpow2.f32 %v15548_v34 }
0x1b32   :  { %18485 = vpow2.f32 %v15546_v17 }
0x1b33   :  { %v24408_v53 = vpop.eup %18475 }
0x1b34   :  { %v15708_v15 = vmul.f32 %v24408_v53, %v15704_v23 }
0x1b35   :  { %v18478_v24 = vpop.eup %18477 }
0x1b36   :  { %v15707_v43 = vmul.f32 %v18478_v24, %v15703_v58 }
0x1b3a   :  { %v18480_v41 = vpop.eup %18479 }
0x1b3b   :  { %v18482_v51 = vpop.eup %18481 }
0x1b3e   :  { %v18484_v20 = vpop.eup %18483 }
0x1b3f   :  { %v18486_v57 = vpop.eup %18485  ;;  %v15551_v27 = vadd.f32 1.0, %v18484_v20 }
0x1b40   :  { %v15550_v63 = vadd.f32 1.0, %v18486_v57 }
0x1b41   :  { %18487 = vrcp.f32 %v15551_v27 }
0x1b42   :  { %18489 = vrcp.f32 %v15550_v63 }
0x1b4e   :  { %v18488_v26 = vpop.eup %18487 }
0x1b4f   :  { %v18490_v37 = vpop.eup %18489  ;;  %v15565_v40 = vmul.f32 %v18488_v26, %v15561_v56 }
0x1b50   :  { %v15564_v39 = vmul.f32 %v18490_v37, %v15560_v52 }
0x1b92   :  { %v15714_v3 = vpop.permute.xlu1 %15713 }
0x1b93   :  { %v15718_v62 = vmul.f32 %v24408_v53, %v15714_v3 }
0x1b94   :  { %v15712_v45 = vpop.permute.xlu0 %15711 }
0x1b95   :  { %v15717_v29 = vmul.f32 %v18478_v24, %v15712_v45  ;;  %15723 = vrot.lane.b32.xlu1 %v15718_v62, %s18607_s16 }
0x1b97   :  { %15721 = vrot.lane.b32.xlu0 %v15717_v29, %s18607_s16 }
0x1b99   :  { %15570 = vrot.lane.b32.xlu1 %v18480_v41, %s18613_s2 }
0x1b9b   :  { %15568 = vrot.lane.b32.xlu0 %v18482_v51, %s18613_s2 }
0x1c07   :  { %v15724_v19 = vpop.permute.xlu1 %15723 }
0x1c08   :  { %v24418_v36 = vadd.f32 %v15724_v19, %v15708_v15 }
0x1c09   :  { %v15722_v7 = vpop.permute.xlu0 %15721 }
0x1c0a   :  { %18491 = vtanh.f32 %v24418_v36  ;;  %v24421_v30 = vadd.f32 %v15722_v7, %v15707_v43 }
0x1c0b   :  { %v15571_v25 = vpop.permute.xlu1 %15570 }
0x1c0c   :  { %18493 = vtanh.f32 %v24421_v30  ;;  %v15575_v33 = vmul.f32 %v18488_v26, %v15571_v25 }
0x1c0d   :  { %v15569_v11 = vpop.permute.xlu0 %15568 }
0x1c0e   :  { %v15574_v22 = vmul.f32 %v18490_v37, %v15569_v11  ;;  %15580 = vrot.lane.b32.xlu1 %v15575_v33, %s18607_s16 }
0x1c10   :  { %15578 = vrot.lane.b32.xlu0 %v15574_v22, %s18607_s16 }
0x1c17   :  { %v18492_v49 = vpop.eup %18491 }
0x1c18   :  { %15735 = vrot.lane.b32.xlu1 %v18492_v49, %s18609_s5 }
0x1c19   :  { %v18494_v55 = vpop.eup %18493 }
0x1c1a   :  { %15733 = vrot.lane.b32.xlu0 %v18494_v55, %s18609_s5 }
0x1c80   :  { %v15581_v14 = vpop.permute.xlu1 %15580 }
0x1c81   :  { %v24430_v12 = vadd.f32 %v15581_v14, %v15565_v40 }
0x1c82   :  { %v15579_v2 = vpop.permute.xlu0 %15578 }
0x1c83   :  { %18495 = vtanh.f32 %v24430_v12  ;;  %v24433_v32 = vadd.f32 %v15579_v2, %v15564_v39 }
0x1c85   :  { %18497 = vtanh.f32 %v24433_v32 }
0x1c8a   :  { %v15736_v13 = vpop.permute.xlu1 %15735 }
0x1c8b   :  { %v24442_v3 = vmul.f32 %v24408_v53, %v15736_v13 }
0x1c8c   :  { %v15734_v21 = vpop.permute.xlu0 %15733 }
0x1c8d   :  { %v24436_v35 = vmul.f32 %v18478_v24, %v15734_v21 }
0x1c8f   :  { %v15883_v48 = vrot.slane %v24436_v35, 1 }
0x1c90   :  { %v18496_v42 = vpop.eup %18495 }
0x1c91   :  { %15592 = vrot.lane.b32.xlu1 %v18496_v42, %s18609_s5  ;;  %v15884_v62 = vsel %vm11995_vm9, %v24442_v3, %v15883_v48 }
0x1c92   :  { %v18498_v6 = vpop.eup %18497 }
0x1c93   :  { %15590 = vrot.lane.b32.xlu0 %v18498_v6, %s18609_s5 }
0x1c97   :  { %15885 = vrot.lane.b32.xlu0 %v15884_v62, %s18607_s16 }
0x1d03   :  { %v15593_v45 = vpop.permute.xlu1 %15592 }
0x1d04   :  { %v15597_v24 = vmul.f32 %v18488_v26, %v15593_v45 }
0x1d05   :  { %v15591_v29 = vpop.permute.xlu0 %15590 }
0x1d06   :  { %v24449_v41 = vsel %vm281_vm0, %v24390_v16, %v15597_v24  ;;  %v15596_v51 = vmul.f32 %v18490_v37, %v15591_v29  ;;  %v15744_v47 = vrot.slane %v15597_v24, 5 }
0x1d08   :  { %v15743_v31 = vrot.slane %v15596_v51, 6  ;;  %v24453_v34 = vsel %vm281_vm0, %v24386_v28, %v15596_v51 }
0x1d09   :  { %v15886_v53 = vpop.permute.xlu0 %15885 }
0x1d0a   :  { %17514 = vmatmul.mubr.msk.f32.vlgmr.msra.gmra.mxu1 %vm2668_vm7, %v15886_v53  ;;  %v15745_v17 = vsel %vm11995_vm9, %v15744_v47, %v15743_v31 }
0x1d0b   :  { %15746 = vrot.lane.b32.xlu1 %v15745_v17, %s18614_s10 }
0x1d7d   :  { %v15747_v20 = vpop.permute.xlu1 %15746 }
0x1d7e   :  { %17507 = vmatmul.mubr.msk.f32.vlgmr.msra.gmra.mxu0 %vm2668_vm7, %v15747_v20 }
0x1dca   :  { %v15955_v57 = vpop.f32.mrf.mxu1 }
0x1dcb   :  { %v15960_v16 = vrot.slane %v15955_v57, 1  ;;  %15961 = vrot.lane.b32.xlu0 %v15955_v57, %s18603_s23 }
0x1dcc   :  { %v17515_v27 = vpop.f32.mrf.mxu1 }
0x1dcd   :  { %15963 = vrot.lane.b32.xlu1 %v15960_v16, %s18603_s23 }
0x1e3d   :  { %v15962_v63 = vpop.permute.xlu0 %15961 }
0x1e3e   :  { %v15967_v28 = vadd.f32 %v15962_v63, %v23988_v8  ;;  %v15816_v23 = vpop.f32.mrf.mxu0  ;;  %v15985_v63 = vrot.slane %v24421_v30, 1 }
0x1e3f   :  { %v15821_v58 = vrot.slane %v15816_v23, 1  ;;  %v15822_v15 = vrot.slane %v15816_v23, 2  ;;  %v15964_v19 = vpop.permute.xlu1 %15963 }
0x1e40   :  { %18499 = vtanh.f32 %v15967_v28  ;;  %v15968_v43 = vadd.f32 %v15964_v19, %v23990_v38  ;;  %v17508_v7 = vpop.f32.mrf.mxu0  ;;  %v15969_v49 = vsub.f32 0.0, %v15967_v28  ;;  %v15986_v28 = vrot.slane %v24418_v36, 1 }
0x1e41   :  { %v15825_v26 = vadd.f32 %v15821_v58, %v23988_v8  ;;  %v15826_v25 = vadd.f32 %v15822_v15, %v23990_v38  ;;  %v15843_v15 = vrot.slane %v24433_v32, 7  ;;  %v16076_v32 = vld [vmem:[%s24686_s13 + $0x18] sm:$0xff] }
0x1e42   :  { %18501 = vtanh.f32 %v15968_v43  ;;  %v15970_v55 = vsub.f32 0.0, %v15968_v43  ;;  %v15971_v8 = vmul.f32 1.442695, %v15969_v49  ;;  %17516 = vmatprep.subr.mxu1 %v16076_v32 }
0x1e43   :  { %18503 = vtanh.f32 %v15825_v26  ;;  %v15827_v56 = vsub.f32 0.0, %v15825_v26  ;;  %v15828_v38 = vsub.f32 0.0, %v15826_v25  ;;  %v15844_v26 = vrot.slane %v24430_v12, 7  ;;  %17517 = vmatpush3.msra.mxu1 %v16076_v32 }
0x1e44   :  { %18505 = vtanh.f32 %v15826_v25  ;;  %v15973_v52 = vmul.f32 1.442695, %v15970_v55 }
0x1e45   :  { %18507 = vpow2.f32 %v15971_v8  ;;  %v15829_v40 = vmul.f32 1.442695, %v15827_v56  ;;  %v15831_v14 = vmul.f32 1.442695, %v15828_v38  ;;  %v16075_v56 = vld [vmem:[%s24686_s13 + $0x10] sm:$0xff]  ;;  %v16074_v38 = vld [vmem:[%s24686_s13 + $0x8] sm:$0xff] }
0x1e46   :  { %18509 = vpow2.f32 %v15973_v52  ;;  %17518 = vmatprep.subr.mxu1 %v16075_v56  ;;  %v16073_v52 = vld [vmem:[%s24686_s13] sm:$0xff] }
0x1e47   :  { %18511 = vpow2.f32 %v15829_v40  ;;  %17519 = vmatpush3.msra.mxu1 %v16075_v56 }
0x1e48   :  { %18513 = vpow2.f32 %v15831_v14  ;;  %17520 = vmatprep.subr.mxu1 %v16074_v38 }
0x1e49   :  { %17521 = vmatpush3.msra.mxu1 %v16074_v38 }
0x1e4a   :  { %17522 = vmatprep.subr.mxu1 %v16073_v52 }
0x1e4b   :  { %17523 = vmatpush3.msra.mxu1 %v16073_v52  ;;  %v25144_v52 = vld [vmem:[#allocation71_spill] sm:$0xff] }
0x1e4c   :  { %17527 = vmatprep.subr.mxu1 %v25143_v46 }
0x1e4d   :  { %v18500_v33 = vpop.eup %18499 }
0x1e4e   :  { %15993 = vrot.lane.b32.xlu0 %v18500_v33, %s18613_s2 }
0x1e4f   :  { %v18502_v37 = vpop.eup %18501 }
0x1e50   :  { %v18504_v11 = vpop.eup %18503  ;;  %15995 = vrot.lane.b32.xlu1 %v18502_v37, %s18613_s2 }
0x1e51   :  { %v18506_v22 = vpop.eup %18505 }
0x1e52   :  { %15851 = vrot.lane.b32.xlu0 %v18504_v11, %s18613_s2  ;;  %v18508_v39 = vpop.eup %18507 }
0x1e53   :  { %v18510_v2 = vpop.eup %18509  ;;  %v15975_v21 = vadd.f32 1.0, %v18508_v39 }
0x1e54   :  { %15853 = vrot.lane.b32.xlu1 %v18506_v22, %s18613_s2  ;;  %v18512_v42 = vpop.eup %18511  ;;  %v15976_v13 = vadd.f32 1.0, %v18510_v2 }
0x1e55   :  { %v18514_v6 = vpop.eup %18513  ;;  %18515 = vrcp.f32 %v15975_v21  ;;  %v15833_v48 = vadd.f32 1.0, %v18512_v42 }
0x1e56   :  { %v15834_v62 = vadd.f32 1.0, %v18514_v6  ;;  %18517 = vrcp.f32 %v15976_v13 }
0x1e57   :  { %18519 = vrcp.f32 %v15833_v48 }
0x1e58   :  { %18521 = vrcp.f32 %v15834_v62 }
0x1e62   :  { %v18516_v45 = vpop.eup %18515 }
0x1e63   :  { %v18518_v51 = vpop.eup %18517  ;;  %v15989_v23 = vmul.f32 %v18516_v45, %v15985_v63 }
0x1e64   :  { %v18520_v53 = vpop.eup %18519  ;;  %v15990_v43 = vmul.f32 %v18518_v51, %v15986_v28  ;;  %v16077_v28 = vld [vmem:[%s24686_s13 + $0x20] sm:$0xff] }
0x1e65   :  { %v18522_v57 = vpop.eup %18521  ;;  %v15847_v33 = vmul.f32 %v18520_v53, %v15843_v15  ;;  %v16293_v15 = vld [vmem:[%s24688_s15 + $0x50] sm:$0xff] }
0x1e66   :  { %v15848_v22 = vmul.f32 %v18522_v57, %v15844_v26  ;;  %v16289_v26 = vld [vmem:[%s24688_s15 + $0x30] sm:$0xff] }
0x1ec0   :  { %v15994_v24 = vpop.permute.xlu0 %15993 }
0x1ec1   :  { %v15999_v29 = vmul.f32 %v18516_v45, %v15994_v24 }
0x1ec2   :  { %v15996_v47 = vpop.permute.xlu1 %15995 }
0x1ec3   :  { %v16000_v31 = vmul.f32 %v18518_v51, %v15996_v47  ;;  %16003 = vrot.lane.b32.xlu0 %v15999_v29, %s18607_s16 }
0x1ec4   :  { %v15852_v17 = vpop.permute.xlu0 %15851 }
0x1ec5   :  { %v15857_v20 = vmul.f32 %v18520_v53, %v15852_v17  ;;  %16005 = vrot.lane.b32.xlu1 %v16000_v31, %s18607_s16 }
0x1ec6   :  { %v15854_v16 = vpop.permute.xlu1 %15853 }
0x1ec7   :  { %v15858_v27 = vmul.f32 %v18522_v57, %v15854_v16  ;;  %15861 = vrot.lane.b32.xlu0 %v15857_v20, %s18607_s16  ;;  %v16080_v20 = vld [vmem:[%s24686_s13 + $0x38] sm:$0xff]  ;;  %v16079_v16 = vld [vmem:[%s24686_s13 + $0x30] sm:$0xff] }
0x1ec9   :  { %15863 = vrot.lane.b32.xlu1 %v15858_v27, %s18607_s16  ;;  %v16078_v27 = vld [vmem:[%s24686_s13 + $0x28] sm:$0xff] }
0x1f35   :  { %v16004_v58 = vpop.permute.xlu0 %16003 }
0x1f36   :  { %v16009_v19 = vadd.f32 %v16004_v58, %v15989_v23 }
0x1f37   :  { %v16006_v7 = vpop.permute.xlu1 %16005 }
0x1f38   :  { %18523 = vtanh.f32 %v16009_v19  ;;  %v16010_v25 = vadd.f32 %v16006_v7, %v15990_v43  ;;  %v16292_v19 = vld [vmem:[%s24688_s15 + $0x48] sm:$0xff]  ;;  %v16291_v43 = vld [vmem:[%s24688_s15 + $0x40] sm:$0xff]  ;;  %v16290_v7 = vld [vmem:[%s24688_s15 + $0x38] sm:$0xff] }
0x1f39   :  { %v15862_v37 = vpop.permute.xlu0 %15861 }
0x1f3a   :  { %18525 = vtanh.f32 %v16010_v25  ;;  %v15867_v11 = vadd.f32 %v15862_v37, %v15847_v33  ;;  %v16288_v25 = vld [vmem:[%s24688_s15 + $0x28] sm:$0xff]  ;;  %v16287_v33 = vld [vmem:[%s24688_s15 + $0x20] sm:$0xff]  ;;  %v16286_v37 = vld [vmem:[%s24688_s15 + $0x18] sm:$0xff] }
0x1f3b   :  { %v15864_v49 = vpop.permute.xlu1 %15863 }
0x1f3c   :  { %18527 = vtanh.f32 %v15867_v11  ;;  %v15868_v30 = vadd.f32 %v15864_v49, %v15848_v22  ;;  %v16285_v11 = vld [vmem:[%s24688_s15 + $0x10] sm:$0xff]  ;;  %v16284_v22 = vld [vmem:[%s24688_s15 + $0x8] sm:$0xff]  ;;  %v16283_v49 = vld [vmem:[%s24688_s15] sm:$0xff] }
0x1f3e   :  { %18529 = vtanh.f32 %v15868_v30 }
0x1f45   :  { %v18524_v36 = vpop.eup %18523 }
0x1f46   :  { %16015 = vrot.lane.b32.xlu0 %v18524_v36, %s18609_s5 }
0x1f47   :  { %v18526_v55 = vpop.eup %18525 }
0x1f48   :  { %16017 = vrot.lane.b32.xlu1 %v18526_v55, %s18609_s5 }
0x1f49   :  { %v18528_v12 = vpop.eup %18527 }
0x1f4a   :  { %15873 = vrot.lane.b32.xlu0 %v18528_v12, %s18609_s5 }
0x1f4b   :  { %v18530_v8 = vpop.eup %18529 }
0x1f4c   :  { %15875 = vrot.lane.b32.xlu1 %v18530_v8, %s18609_s5 }
0x1fb8   :  { %v16016_v40 = vpop.permute.xlu0 %16015 }
0x1fb9   :  { %v16021_v14 = vmul.f32 %v18516_v45, %v16016_v40 }
0x1fba   :  { %v16018_v39 = vpop.permute.xlu1 %16017 }
0x1fbb   :  { %v16041_v2 = vsel %vm16023_vm13, %v16021_v14, %v24436_v35  ;;  %v16022_v21 = vmul.f32 %v18518_v51, %v16018_v39  ;;  %v16977_v14 = vld [vmem:[%s24687_s14] ss:$0 sm:$0xff] }
0x1fbc   :  { %v16043_v42 = vsel %vm16026_vm8, %v16041_v2, %v24362_v10  ;;  %v15874_v13 = vpop.permute.xlu0 %15873 }
0x1fbd   :  { %v16045_v6 = vsel %vm16029_vm14, %v16043_v42, %v24283_v9  ;;  %v16042_v48 = vsel %vm16023_vm13, %v16022_v21, %v24442_v3  ;;  %v15879_v62 = vmul.f32 %v18520_v53, %v15874_v13 }
0x1fbe   :  { %v16044_v45 = vsel %vm16026_vm8, %v16042_v48, %v24360_v61  ;;  %v15876_v24 = vpop.permute.xlu1 %15875  ;;  %v16047_v35 = vsel %vm16032_vm15, %v16045_v6, %v24205_v59 }
0x1fbf   :  { %v16046_v29 = vsel %vm16029_vm14, %v16044_v45, %v24285_v5  ;;  %v15880_v51 = vmul.f32 %v18522_v57, %v15876_v24  ;;  %v16039_v10 = vsel %vm136_vm1, %v24453_v34, %v15879_v62  ;;  %v16049_v9 = vsel %vm426_vm2, %v16047_v35, %v24135_v44  ;;  %v16298_v44 = vld [vmem:[%s24688_s15 + $0x78] sm:$0xff]  ;;  %v16978_v62 = vld [vmem:[#allocation2] ss:$0 sm:$0xff] }
0x1fc0   :  { %16057 = vrot.lane.b32.xlu0 %v16039_v10, %s18614_s10  ;;  %v16051_v3 = vsel %vm281_vm0, %v16049_v9, %v24068_v0  ;;  %v16048_v61 = vsel %vm16032_vm15, %v16046_v29, %v24207_v50  ;;  %v16297_v0 = vld [vmem:[%s24688_s15 + $0x70] sm:$0xff]  ;;  %17538 = vmatprep.subr.mxu0 %v16298_v44 }
0x1fc1   :  { %v16053_v59 = vsel %vm136_vm1, %v16051_v3, %v24009_v60  ;;  %v16050_v5 = vsel %vm426_vm2, %v16048_v61, %v24137_v1  ;;  %v16040_v50 = vsel %vm136_vm1, %v24449_v41, %v15880_v51  ;;  %17539 = vmatpush3.msra.mxu0 %v16298_v44  ;;  %v16296_v60 = vld [vmem:[%s24688_s15 + $0x68] sm:$0xff]  ;;  %v16295_v1 = vld [vmem:[%s24688_s15 + $0x60] sm:$0xff]  ;;  %v16294_v41 = vld [vmem:[%s24688_s15 + $0x58] sm:$0xff] }
0x1fc2   :  { %16065 = vrot.lane.b32.xlu1 %v16053_v59, %s18609_s5  ;;  %v16052_v34 = vsel %vm281_vm0, %v16050_v5, %v24070_v54  ;;  %17540 = vmatprep.subr.mxu0 %v16297_v0  ;;  %vm16381_vm0 = vcmask 7168  }
0x1fc3   :  { %v16054_v54 = vsel %vm136_vm1, %v16052_v34, %v24011_v18  ;;  %17541 = vmatpush3.msra.mxu0 %v16297_v0  ;;  %vm16617_vm1 = vcmask 25600  }
0x1fc4   :  { %16059 = vrot.lane.b32.xlu0 %v16040_v50, %s18614_s10  ;;  %17542 = vmatprep.subr.mxu0 %v16296_v60 }
0x1fc5   :  { %17543 = vmatpush3.msra.mxu0 %v16296_v60 }
0x1fc6   :  { %16067 = vrot.lane.b32.xlu1 %v16054_v54, %s18609_s5  ;;  %17544 = vmatprep.subr.mxu0 %v16295_v1 }
0x1fc7   :  { %17545 = vmatpush3.msra.mxu0 %v16295_v1 }
0x1fc8   :  { %17546 = vmatprep.subr.mxu0 %v16294_v41 }
0x1fc9   :  { %17547 = vmatpush3.msra.mxu0 %v16294_v41 }
0x1fca   :  { %17548 = vmatprep.subr.mxu0 %v16293_v15 }
0x1fcb   :  { %17549 = vmatpush3.msra.mxu0 %v16293_v15 }
0x1fcc   :  { %17550 = vmatprep.subr.mxu0 %v16292_v19 }
0x1fcd   :  { %17551 = vmatpush3.msra.mxu0 %v16292_v19 }
0x1fce   :  { %17552 = vmatprep.subr.mxu0 %v16291_v43 }
0x1fcf   :  { %17553 = vmatpush3.msra.mxu0 %v16291_v43 }
0x1fd0   :  { %17554 = vmatprep.subr.mxu0 %v16290_v7 }
0x1fd1   :  { %17555 = vmatpush3.msra.mxu0 %v16290_v7 }
0x1fd2   :  { %17556 = vmatprep.subr.mxu0 %v16289_v26 }
0x1fd3   :  { %17557 = vmatpush3.msra.mxu0 %v16289_v26 }
0x1fd4   :  { %17558 = vmatprep.subr.mxu0 %v16288_v25 }
0x1fd5   :  { %17559 = vmatpush3.msra.mxu0 %v16288_v25 }
0x1fd6   :  { %17560 = vmatprep.subr.mxu0 %v16287_v33 }
0x1fd7   :  { %17561 = vmatpush3.msra.mxu0 %v16287_v33 }
0x1fd8   :  { %17562 = vmatprep.subr.mxu0 %v16286_v37 }
0x1fd9   :  { %17563 = vmatpush3.msra.mxu0 %v16286_v37 }
0x1fda   :  { %17564 = vmatprep.subr.mxu0 %v16285_v11 }
0x1fdb   :  { %17565 = vmatpush3.msra.mxu0 %v16285_v11 }
0x1fdc   :  { %17566 = vmatprep.subr.mxu0 %v16284_v22 }
0x1fdd   :  { %17567 = vmatpush3.msra.mxu0 %v16284_v22 }
0x1fde   :  { %17568 = vmatprep.subr.mxu0 %v16283_v49 }
0x1fdf   :  { %17569 = vmatpush3.msra.mxu0 %v16283_v49 }
0x2032   :  { %v16058_v47 = vpop.permute.xlu0 %16057 }
0x2034   :  { %v16066_v18 = vpop.permute.xlu1 %16065 }
0x2035   :  { %v24546_v31 = vsel %vm2668_vm7, %v16058_v47, %v16066_v18 }
0x2036   :  { %17524 = vmatprep.mubr.msk.f32.mxu1 %vm12341_vm6, %v24546_v31  ;;  %v16060_v53 = vpop.permute.xlu0 %16059  ;;  %v16162_v23 = vrot.slane %v24546_v31, 7 }
0x2038   :  { %v16068_v17 = vpop.permute.xlu1 %16067 }
0x2039   :  { %v24554_v57 = vsel %vm2668_vm7, %v16060_v53, %v16068_v17 }
0x203a   :  { %17525 = vmatmul.mubr.msk.f32.vlgmr.msra.gmra.mxu1 %vm12341_vm6, %v24554_v57  ;;  %v16163_v63 = vrot.slane %v24554_v57, 6 }
0x203b   :  { %17528 = vmatpush3.msra.mxu1 %v16080_v20  ;;  %17535 = vmatprep.mubr.msk.f32.mxu1 %vm18601_vm3, %v25143_v46 }
0x203c   :  { %17529 = vmatprep.subr.mxu1 %v25143_v46  ;;  %v16164_v58 = vsel %vm11995_vm9, %v16163_v63, %v16162_v23 }
0x203d   :  { %17530 = vmatpush3.msra.mxu1 %v16079_v16 }
0x203e   :  { %17531 = vmatprep.subr.mxu1 %v25143_v46 }
0x203f   :  { %17532 = vmatpush3.msra.mxu1 %v16078_v27 }
0x2040   :  { %17533 = vmatprep.subr.mxu1 %v25143_v46 }
0x2041   :  { %17534 = vmatpush3.msra.mxu1 %v16077_v28 }
0x2042   :  { %17536 = vmatmul.mubr.msk.f32.vlgmr.msra.gmra.mxu1 %vm12341_vm6, %v16164_v58  ;;  %17573 = vmatprep.subr.mxu1 %v25143_v46 }
0x2043   :  { %17581 = vmatprep.mubr.msk.f32.mxu1 %vm18601_vm3, %v25143_v46 }
0x20fa   :  { %v17526_v30 = vpop.f32.mrf.mxu1 }
0x20fc   :  { %v16153_v36 = vpop.f32.mrf.mxu1 }
0x2102   :  { %v16233_v32 = vpop.f32.mrf.mxu1 }
0x2103   :  { %v16244_v55 = vrot.slane %v16233_v32, %v19178_v4  ;;  %v16447_v32 = vld [vmem:[%s24690_s17 + $0x8] sm:$0xff] }
0x2104   :  { %v17537_v12 = vpop.f32.mrf.mxu1 }
0x2105   :  { %v16245_v8 = vcombine.high %v16244_v55, %v16244_v55  ;;  %v16252_v56 = vrot.slane %v16244_v55, %v19178_v4  ;;  %v16446_v55 = vld [vmem:[%s24690_s17] sm:$0xff] }
0x2107   :  { %v16259_v38 = vrot.slane %v16245_v8, %v19178_v4  ;;  %v16263_v40 = vrot.slane %v16252_v56, %v25144_v52 }
0x2109   :  { %v16267_v39 = vrot.slane %v16259_v38, %v25144_v52  ;;  %v16270_v2 = vadd.f32 %v16263_v40, %v16153_v36  ;;  %v16448_v36 = vld [vmem:[%s24690_s17 + $0x10] sm:$0xff] }
0x210b   :  { %v16271_v21 = vadd.f32 %v17526_v30, %v16267_v39  ;;  %v16279_v42 = vadd.f32 %v16977_v14, %v16270_v2  ;;  %v16449_v30 = vld [vmem:[%s24690_s17 + $0x18] sm:$0xff] }
0x210c   :  { %17574 = vmatpush3.msra.mxu1 %v16449_v30 }
0x210d   :  { %v16280_v13 = vadd.f32 %v16977_v14, %v16271_v21  ;;  %v16281_v6 = vmax.f32 %v16279_v42, 0.0  ;;  %17575 = vmatprep.subr.mxu1 %v25143_v46 }
0x210e   :  { %17576 = vmatpush3.msra.mxu1 %v16448_v36 }
0x210f   :  { %v16282_v48 = vmax.f32 %v16280_v13, 0.0  ;;  %17570 = vmatprep.mubr.f32.mxu0 %v16281_v6  ;;  %17577 = vmatprep.subr.mxu1 %v25143_v46 }
0x2110   :  { %17578 = vmatpush3.msra.mxu1 %v16447_v32 }
0x2111   :  { %17571 = vmatmul.mubr.f32.vlgmr.msra.gmra.mxu0 %v16282_v48  ;;  %17579 = vmatprep.subr.mxu1 %v25143_v46 }
0x2112   :  { %17580 = vmatpush3.msra.mxu1 %v16446_v55 }
0x2113   :  { %17584 = vmatprep.subr.mxu1 %v25143_v46 }
0x21d1   :  { %v17572_v45 = vpop.f32.mrf.mxu0 }
0x21d2   :  { %v16378_v4 = vadd.f32 %v17572_v45, %v16978_v62 }
0x21d3   :  { %v16372_v24 = vpop.f32.mrf.mxu0 }
0x21d4   :  { %v16389_v35 = vsel %vm16381_vm0, %v16378_v4, -inf  ;;  %v16373_v29 = vadd.f32 %v16978_v62, %v16372_v24 }
0x21d5   :  { %v16390_v51 = vrot.slane %v16389_v35, 4 }
0x21d6   :  { %v16382_v10 = vsel %vm16381_vm0, %v16373_v29, -inf }
0x21d7   :  { %v16391_v9 = vmax.f32 %v16389_v35, %v16390_v51  ;;  %v16383_v3 = vrot.slane %v16382_v10, 4  ;;  %v16535_v35 = vld [vmem:[%s24692_s19 + $0x10] sm:$0xff]  ;;  %v16533_v51 = vld [vmem:[%s24692_s19] sm:$0xff] }
0x21d9   :  { %v16392_v61 = vrot.slane %v16391_v9, 2  ;;  %v16384_v59 = vmax.f32 %v16382_v10, %v16383_v3  ;;  %v16979_v10 = vld [vmem:[%s24691_s18] ss:$0 sm:$0xff] }
0x21db   :  { %v16393_v5 = vmax.f32 %v16391_v9, %v16392_v61  ;;  %v16385_v34 = vrot.slane %v16384_v59, 2 }
0x21dd   :  { %v16394_v44 = vrot.slane %v16393_v5, 1  ;;  %v16386_v0 = vmax.f32 %v16384_v59, %v16385_v34 }
0x21df   :  { %v16395_v50 = vmax.f32 %v16393_v5, %v16394_v44  ;;  %v16387_v60 = vrot.slane %v16386_v0, 1  ;;  %v16981_v5 = vld [vmem:[%s24693_s20] ss:$0 sm:$0xff] }
0x21e1   :  { %v16397_v54 = vsub.f32 %v16378_v4, %v16395_v50  ;;  %v16388_v1 = vmax.f32 %v16386_v0, %v16387_v60 }
0x21e3   :  { %v16400_v41 = vmul.f32 1.442695, %v16397_v54  ;;  %v16396_v47 = vsub.f32 %v16373_v29, %v16388_v1  ;;  %v16534_v29 = vld [vmem:[%s24692_s19 + $0x8] sm:$0xff] }
0x21e5   :  { %18531 = vpow2.f32 %v16400_v41  ;;  %v16398_v18 = vmul.f32 1.442695, %v16396_v47 }
0x21e7   :  { %18533 = vpow2.f32 %v16398_v18 }
0x21f2   :  { %v18532_v53 = vpop.eup %18531 }
0x21f3   :  { %v16409_v17 = vsel %vm16381_vm0, %v18532_v53, 0.0 }
0x21f4   :  { %v18534_v20 = vpop.eup %18533  ;;  %v16410_v16 = vrot.slane %v16409_v17, 4 }
0x21f5   :  { %v16402_v27 = vsel %vm16381_vm0, %v18534_v20, 0.0 }
0x21f6   :  { %v16411_v63 = vadd.f32 %v16410_v16, %v16409_v17  ;;  %v16403_v28 = vrot.slane %v16402_v27, 4 }
0x21f8   :  { %v16412_v23 = vrot.slane %v16411_v63, 2  ;;  %v16404_v58 = vadd.f32 %v16403_v28, %v16402_v27 }
0x21fa   :  { %v16413_v15 = vadd.f32 %v16412_v23, %v16411_v63  ;;  %v16405_v19 = vrot.slane %v16404_v58, 2 }
0x21fc   :  { %v16414_v43 = vrot.slane %v16413_v15, 1  ;;  %v16406_v7 = vadd.f32 %v16405_v19, %v16404_v58 }
0x21fe   :  { %v16415_v26 = vadd.f32 %v16414_v43, %v16413_v15  ;;  %v16407_v25 = vrot.slane %v16406_v7, 1 }
0x2200   :  { %18535 = vrcp.f32 %v16415_v26  ;;  %v16408_v33 = vadd.f32 %v16407_v25, %v16406_v7 }
0x2202   :  { %18537 = vrcp.f32 %v16408_v33 }
0x220d   :  { %v18536_v37 = vpop.eup %18535 }
0x220e   :  { %v16419_v11 = vmul.f32 %v18536_v37, %v18532_v53 }
0x220f   :  { %v18538_v22 = vpop.eup %18537 }
0x2210   :  { %16427 = vperm.xlu1 %18085, %v16419_v11   ;;  %v16417_v49 = vmul.f32 %v18538_v22, %v18534_v20 }
0x2212   :  { %16422 = vperm.xlu0 %18084, %v16417_v49  }
0x228b   :  { %v16428_v12 = vpop.permute.xlu1 %16427 }
0x228c   :  { %v16431_v8 = vmul.f32 %v16428_v12, %v24554_v57  ;;  %v16536_v57 = vld [vmem:[%s24692_s19 + $0x18] sm:$0xff]  ;;  %s16625_s19 = sshll.u32 %s18615_s11, 4  ;;  %s16626_s19 = int_to_ptr.vmem [resolvable:$true] %s16625_s19 }
0x228d   :  { %v16423_v56 = vpop.permute.xlu0 %16422  ;;  %s18575_s25 = scalar_lea.vmem %s16626_s19, 32  ;;  %p18580_p1 = scmp.lt.s32.totalorder %s16626_s19, %s16626_s19 }
0x228e   :  { %v16439_v38 = vsel %vm12341_vm6, %v16431_v8, 0.0  ;;  %v16430_v52 = vmul.f32 %v16423_v56, %v24546_v31  ;;  %p18576_p0 = scmp.ne.s32.totalorder %s16626_s19, %s18575_s25  ;;  %p18581_p2 = scmp.lt.s32.totalorder %s18575_s25, %s18575_s25 }
0x228f   :  { %v16440_v40 = vrot.slane %v16439_v38, 4 }
0x2290   :  { %v16432_v14 = vsel %vm12341_vm6, %v16430_v52, 0.0  ;;  %p18582_p3 = por %p18581_p2, %p18580_p1 }
0x2291   :  { %v16441_v39 = vadd.f32 %v16440_v40, %v16439_v38  ;;  %v16433_v2 = vrot.slane %v16432_v14, 4 }
0x2292   :  { %p18583_p4 = pnand %p18582_p3, %p18576_p0 }
0x2293   :  { %v16442_v21 = vrot.slane %v16441_v39, 2  ;;  %v16434_v42 = vadd.f32 %v16433_v2, %v16432_v14 }
0x2295   :  { %v16443_v13 = vadd.f32 %v16442_v21, %v16441_v39  ;;  %v16435_v6 = vrot.slane %v16434_v42, 2 }
0x2297   :  { %v16444_v48 = vrot.slane %v16443_v13, 1  ;;  %v16436_v62 = vadd.f32 %v16435_v6, %v16434_v42 }
0x2299   :  { %v16437_v45 = vrot.slane %v16436_v62, 1  ;;  %v16445_v4 = vadd.f32 %v16444_v48, %v16443_v13 }
0x229b   :  { %v16438_v24 = vadd.f32 %v16437_v45, %v16436_v62 }
0x229d   :  { %v16459_v31 = vsel %vm11995_vm9, %v16445_v4, %v16438_v24 }
0x229e   :  { %17582 = vmatmul.mubr.msk.f32.vlgmr.msra.gmra.mxu1 %vm12341_vm6, %v16459_v31 }
0x229f   :  { %17585 = vmatpush3.msra.mxu1 %v16536_v57  ;;  %17592 = vmatprep.mubr.msk.f32.mxu1 %vm18601_vm3, %v25143_v46 }
0x22a0   :  { %17586 = vmatprep.subr.mxu1 %v25143_v46 }
0x22a1   :  { %17587 = vmatpush3.msra.mxu1 %v16535_v35 }
0x22a2   :  { %17588 = vmatprep.subr.mxu1 %v25143_v46 }
0x22a3   :  { %17589 = vmatpush3.msra.mxu1 %v16534_v29 }
0x22a4   :  { %17590 = vmatprep.subr.mxu1 %v25143_v46 }
0x22a5   :  { %17591 = vmatpush3.msra.mxu1 %v16533_v51 }
0x235e   :  { %v16528_v9 = vpop.f32.mrf.mxu1 }
0x235f   :  { %v16529_v3 = vadd.f32 %v16979_v10, %v16528_v9 }
0x2360   :  { %v17583_v61 = vpop.f32.mrf.mxu1 }
0x2361   :  { %v16532_v59 = vmax.f32 %v16529_v3, 0.0 }
0x2363   :  { %17593 = vmatmul.mubr.msk.f32.vlgmr.msra.gmra.mxu1 %vm12341_vm6, %v16532_v59 }
0x2423   :  { %v16613_v34 = vpop.f32.mrf.mxu1 }
0x2424   :  { %v16614_v46 = vadd.f32 %v16981_v5, %v16613_v34 }
0x2425   :  { %v17594_v44 = vpop.f32.mrf.mxu1 }
0x2426   :  { %16618 = vst.msk [vmem:[#allocation3] sm:$0x3] %vm16617_vm1, %v16614_v46 }
0x2427   :  { %18586 = shalt.err (!%p18583_p4)
}
0x2428   :  { %16628 = dma.vmem_to_hbm [thread:$0]  %s16626_s19, 32, %s24694_s21, [#allocation4]  }
0x2429   :  { %18595 = dma.done.wait [#allocation4], 32  }
0x242a   :  { %18596 = vsyncadd [#allocation4], 4294967264 }
0x242b   :  { %16632 = vsyncpa [#allocation4], 1 }

</bundles_post_ra>
